<compile_context>
chip_gen: v7x
topology: tpu7x:2x2x1
jax: 0.10.0
libtpu: 0.0.40
codegen_flags: <defaults>
</compile_context>

<pallas_src>
import functools

import jax
import jax.numpy as jnp
from jax import lax
from jax.experimental import pallas as pl
from jax.experimental.pallas import tpu as pltpu


_MXU_DTYPE = jnp.bfloat16            # MXU operand dtype (f32 accumulation everywhere)
_VMEM_LIMIT = 32 * 1024 * 1024       # safe scoped-VMEM limit on v5e / v6e / v7x


def _round_up(x, m):
    return (x + m - 1) // m * m


# ----------------------------- in-kernel helpers -----------------------------

def _layernorm(x, eps=1e-5):
    mu = jnp.mean(x, axis=-1, keepdims=True)
    var = jnp.mean((x - mu) ** 2, axis=-1, keepdims=True)
    return (x - mu) * lax.rsqrt(var + eps)


def _encoder_layer(x, w_q, b_q, w_k, b_k, w_v, b_v, w_out, b_out, ln,
                   w1, b1, w2, b2, key_mask=None):
    # Single-head post-LN transformer encoder layer over the token axis (axis=1).
    # x: (n, a, d) f32.  Weights are bf16; all matmuls accumulate in f32.
    n, a, d = x.shape
    x2 = x.reshape(n * a, d)
    xb = x2.astype(_MXU_DTYPE)

    # Three un-packed (d, d) projections: keeps q/k/v off sub-128 lane slices.
    q = (jnp.dot(xb, w_q, preferred_element_type=jnp.float32) + b_q).reshape(n, a, d)
    k = (jnp.dot(xb, w_k, preferred_element_type=jnp.float32) + b_k).reshape(n, a, d)
    v = (jnp.dot(xb, w_v, preferred_element_type=jnp.float32) + b_v).reshape(n, a, d)

    scale = 1.0 / jnp.sqrt(jnp.float32(d))
    # Tiny batched einsums stay f32 (latency/VPU work; keeps -1e30 masking safe).
    scores = jnp.einsum('nqd,nkd->nqk', q, k,
                        preferred_element_type=jnp.float32) * scale     # (n, a, a)
    if key_mask is not None:
        scores = jnp.where(key_mask[:, None, :] > 0, scores, -1e30)
    scores = scores - jnp.max(scores, axis=-1, keepdims=True)
    p = jnp.exp(scores)
    if key_mask is not None:
        p = p * key_mask[:, None, :]
    denom = jnp.maximum(jnp.sum(p, axis=-1, keepdims=True), 1e-12)
    p = p * pl.reciprocal(denom, approx=True)

    attn = jnp.einsum('nqk,nkd->nqd', p, v,
                      preferred_element_type=jnp.float32)               # (n, a, d)
    attn = jnp.dot(attn.reshape(n * a, d).astype(_MXU_DTYPE), w_out,
                   preferred_element_type=jnp.float32) + b_out
    attn = attn.reshape(n, a, d)

    h = _layernorm(x + attn) * ln[0][None, None, :] + ln[1][None, None, :]

    h2 = h.reshape(n * a, d).astype(_MXU_DTYPE)
    f = jnp.maximum(jnp.dot(h2, w1, preferred_element_type=jnp.float32) + b1, 0.0)
    f = jnp.dot(f.astype(_MXU_DTYPE), w2, preferred_element_type=jnp.float32) + b2
    f = f.reshape(n, a, d)

    return _layernorm(h + f) * ln[2][None, None, :] + ln[3][None, None, :]


def _hard_attn_fuse(x, ae, m, enc_w):
    # Dense form of the reference's keep_indices gather/scatter:
    #   L2-norm masked softmax vs adaptive threshold -> hard key mask,
    #   encoder over boxes with that key-padding mask, masked token mean,
    #   samples with no kept boxes produce zeros.
    l2 = jnp.sqrt(jnp.sum(ae * ae, axis=-1))                      # (nb, A)
    logits = jnp.where(m > 0, l2, -1e30)
    logits = logits - jnp.max(logits, axis=-1, keepdims=True)
    e = jnp.exp(logits) * m
    sm = e / jnp.maximum(jnp.sum(e, axis=-1, keepdims=True), 1e-12)  # exact (threshold compare)
    cnt = jnp.sum(m, axis=-1, keepdims=True)
    thresh = jnp.clip(1.0 / jnp.maximum(cnt, 1e-12), 0.0, 1.0)
    hard = (sm >= thresh).astype(jnp.float32)                     # (nb, A)

    enc = _encoder_layer(x, *enc_w, key_mask=hard)                # (nb, A, D)

    hcnt = jnp.sum(hard, axis=-1, keepdims=True)                  # (nb, 1)
    keep = (hcnt > 0).astype(jnp.float32)
    fused = jnp.sum(enc, axis=1) * pl.reciprocal(jnp.maximum(hcnt, 1.0),
                                                 approx=True)
    return fused * keep                                           # (nb, D)


# --------------------------------- kernels -----------------------------------

def agent_fuse_kernel(feats_ref, mask_ref, lw_ref, lb_ref,
                      wq_ref, bq_ref, wk_ref, bk_ref, wv_ref, bv_ref,
                      wo_ref, bo_ref, ln_ref, w1_ref, b1_ref, w2_ref, b2_ref,
                      o_ref):
    nb, a, din = feats_ref.shape
    d = lw_ref.shape[1]
    feats = feats_ref[...].reshape(nb * a, din)                   # bf16
    x = (jnp.dot(feats, lw_ref[...], preferred_element_type=jnp.float32)
         + lb_ref[...]).reshape(nb, a, d)
    m = mask_ref[...].astype(jnp.float32)
    enc_w = (wq_ref[...], bq_ref[...], wk_ref[...], bk_ref[...],
             wv_ref[...], bv_ref[...], wo_ref[...], bo_ref[...], ln_ref[...],
             w1_ref[...], b1_ref[...], w2_ref[...], b2_ref[...])
    # reference fuse_agent zeroes env before agent+env, so ae == x
    o_ref[...] = _hard_attn_fuse(x, x, m, enc_w).astype(o_ref.dtype)


def obj_fuse_kernel(feats_ref, env_ref, mask_ref, lw_ref, lb_ref, ew_ref, eb_ref,
                    wq_ref, bq_ref, wk_ref, bk_ref, wv_ref, bv_ref,
                    wo_ref, bo_ref, ln_ref, w1_ref, b1_ref, w2_ref, b2_ref,
                    fused_ref, envp_ref):
    nb, a, din = feats_ref.shape
    d = lw_ref.shape[1]
    feats = feats_ref[...].reshape(nb * a, din)                   # bf16
    x = (jnp.dot(feats, lw_ref[...], preferred_element_type=jnp.float32)
         + lb_ref[...]).reshape(nb, a, d)
    env_p = jnp.dot(env_ref[...], ew_ref[...],
                    preferred_element_type=jnp.float32) + eb_ref[...]   # (nb, D)
    ae = x + env_p[:, None, :]
    m = mask_ref[...].astype(jnp.float32)
    enc_w = (wq_ref[...], bq_ref[...], wk_ref[...], bk_ref[...],
             wv_ref[...], bv_ref[...], wo_ref[...], bo_ref[...], ln_ref[...],
             w1_ref[...], b1_ref[...], w2_ref[...], b2_ref[...])
    fused_ref[...] = _hard_attn_fuse(x, ae, m, enc_w).astype(fused_ref.dtype)
    envp_ref[...] = env_p.astype(envp_ref.dtype)   # reused by ctx kernel (no re-projection)


def ctx_det_kernel(envp_ref, agent_f_ref, obj_f_ref,
                   wq_ref, bq_ref, wk_ref, bk_ref, wv_ref, bv_ref,
                   wo_ref, bo_ref, ln_ref, w1_ref, b1_ref, w2_ref, b2_ref,
                   dw_ref, db_ref, o_ref):
    # agents_environment_fuser over {env, agent_fused, obj_fused} tokens,
    # mean over tokens, then the detector head, fused in one kernel.
    tokens = jnp.concatenate(
        [envp_ref[...][:, None, :],
         agent_f_ref[...][:, None, :],
         obj_f_ref[...][:, None, :]], axis=1)                           # (nb, 3, D)
    enc_w = (wq_ref[...], bq_ref[...], wk_ref[...], bk_ref[...],
             wv_ref[...], bv_ref[...], wo_ref[...], bo_ref[...], ln_ref[...],
             w1_ref[...], b1_ref[...], w2_ref[...], b2_ref[...])
    enc = _encoder_layer(tokens, *enc_w)
    ctx = jnp.mean(enc, axis=1)                                          # (nb, D)
    # TODO(synk): BoundaryMatchingNetwork head replaced by 1x1-conv + sigmoid.
    # det_w is (2, D); contract D of both -> (2, nb), lane-dense output.
    det = lax.dot_general(dw_ref[...], ctx.astype(_MXU_DTYPE),
                          (((1,), (1,)), ((), ())),
                          preferred_element_type=jnp.float32) + db_ref[...]
    o_ref[...] = jax.nn.sigmoid(det).astype(o_ref.dtype)                 # (2, nb)


# ------------------------------ pallas wrappers -------------------------------

def _enc_specs(d, ffn):
    z = lambda i: (0, 0)                      # weights resident across all grid steps
    return [pl.BlockSpec((d, d), z), pl.BlockSpec((1, d), z),    # q
            pl.BlockSpec((d, d), z), pl.BlockSpec((1, d), z),    # k
            pl.BlockSpec((d, d), z), pl.BlockSpec((1, d), z),    # v
            pl.BlockSpec((d, d), z), pl.BlockSpec((1, d), z),    # out proj
            pl.BlockSpec((4, d), z),                             # ln gamma/beta x2
            pl.BlockSpec((d, ffn), z), pl.BlockSpec((1, ffn), z),
            pl.BlockSpec((ffn, d), z), pl.BlockSpec((1, d), z)]


def _enc_args(W):
    b16 = lambda a: a.astype(_MXU_DTYPE)
    return (b16(W["w_q"]), W["b_q"], b16(W["w_k"]), W["b_k"],
            b16(W["w_v"]), W["b_v"], b16(W["w_out"]), W["b_out"], W["ln"],
            b16(W["w1"]), W["b1"], b16(W["w2"]), W["b2"])


def _compiler_params():
    return pltpu.CompilerParams(dimension_semantics=("parallel",),
                                vmem_limit_bytes=_VMEM_LIMIT)


def pallas_agent_fuse(agent_raw, masks, lin_w, lin_b, W, *, row_block=256):
    n, a, din = agent_raw.shape
    d = lin_w.shape[1]
    ffn = W["w1"].shape[1]
    nb = _round_up(min(row_block, _round_up(n, 8)), 8)
    n_pad = _round_up(n, nb)
    if n_pad != n:
        agent_raw = jnp.pad(agent_raw, ((0, n_pad - n), (0, 0), (0, 0)))
        masks = jnp.pad(masks, ((0, n_pad - n), (0, 0)))
    grid = (n_pad // nb,)
    out = pl.pallas_call(
        agent_fuse_kernel,
        out_shape=jax.ShapeDtypeStruct((n_pad, d), jnp.float32),
        grid=grid,
        in_specs=[pl.BlockSpec((nb, a, din), lambda i: (i, 0, 0)),
                  pl.BlockSpec((nb, a), lambda i: (i, 0)),
                  pl.BlockSpec((din, d), lambda i: (0, 0)),
                  pl.BlockSpec((1, d), lambda i: (0, 0))]
                 + _enc_specs(d, ffn),
        out_specs=pl.BlockSpec((nb, d), lambda i: (i, 0)),
        compiler_params=_compiler_params(),
    )(agent_raw.astype(_MXU_DTYPE), masks, lin_w.astype(_MXU_DTYPE), lin_b,
      *_enc_args(W))
    return out[:n]


def pallas_obj_fuse(obj_raw, env_raw, masks, lin_w, lin_b, env_w, env_b, W, *,
                    row_block=256):
    n, a, din = obj_raw.shape
    env_dim = env_raw.shape[1]
    d = lin_w.shape[1]
    ffn = W["w1"].shape[1]
    nb = _round_up(min(row_block, _round_up(n, 8)), 8)
    n_pad = _round_up(n, nb)
    if n_pad != n:
        obj_raw = jnp.pad(obj_raw, ((0, n_pad - n), (0, 0), (0, 0)))
        env_raw = jnp.pad(env_raw, ((0, n_pad - n), (0, 0)))
        masks = jnp.pad(masks, ((0, n_pad - n), (0, 0)))
    grid = (n_pad // nb,)
    fused, env_p = pl.pallas_call(
        obj_fuse_kernel,
        out_shape=(jax.ShapeDtypeStruct((n_pad, d), jnp.float32),
                   jax.ShapeDtypeStruct((n_pad, d), jnp.float32)),
        grid=grid,
        in_specs=[pl.BlockSpec((nb, a, din), lambda i: (i, 0, 0)),
                  pl.BlockSpec((nb, env_dim), lambda i: (i, 0)),
                  pl.BlockSpec((nb, a), lambda i: (i, 0)),
                  pl.BlockSpec((din, d), lambda i: (0, 0)),
                  pl.BlockSpec((1, d), lambda i: (0, 0)),
                  pl.BlockSpec((env_dim, d), lambda i: (0, 0)),
                  pl.BlockSpec((1, d), lambda i: (0, 0))]
                 + _enc_specs(d, ffn),
        out_specs=(pl.BlockSpec((nb, d), lambda i: (i, 0)),
                   pl.BlockSpec((nb, d), lambda i: (i, 0))),
        compiler_params=_compiler_params(),
    )(obj_raw.astype(_MXU_DTYPE), env_raw.astype(_MXU_DTYPE), masks,
      lin_w.astype(_MXU_DTYPE), lin_b, env_w.astype(_MXU_DTYPE), env_b,
      *_enc_args(W))
    return fused[:n], env_p[:n]


def pallas_ctx_det(env_p, agent_fused, obj_fused, W, det_w, det_b, *,
                   row_block=512):
    n, d = env_p.shape
    ffn = W["w1"].shape[1]
    dout = det_w.shape[0]
    # Lane-dense (dout, nb) output: nb must be a multiple of 128 or the full
    # (padded) row count — never a sub-128 partial lane block.
    if n > 128:
        nb = min(_round_up(row_block, 128), _round_up(n, 128))
        n_pad = _round_up(n, nb)
    else:
        nb = _round_up(n, 8)
        n_pad = nb
    if n_pad != n:
        pad = ((0, n_pad - n), (0, 0))
        env_p = jnp.pad(env_p, pad)
        agent_fused = jnp.pad(agent_fused, pad)
        obj_fused = jnp.pad(obj_fused, pad)
    grid = (n_pad // nb,)
    out = pl.pallas_call(
        ctx_det_kernel,
        out_shape=jax.ShapeDtypeStruct((dout, n_pad), jnp.float32),
        grid=grid,
        in_specs=[pl.BlockSpec((nb, d), lambda i: (i, 0)),
                  pl.BlockSpec((nb, d), lambda i: (i, 0)),
                  pl.BlockSpec((nb, d), lambda i: (i, 0))]
                 + _enc_specs(d, ffn)
                 + [pl.BlockSpec((dout, d), lambda i: (0, 0)),
                    pl.BlockSpec((dout, 1), lambda i: (0, 0))],
        out_specs=pl.BlockSpec((dout, nb), lambda i: (0, i)),
        compiler_params=_compiler_params(),
    )(env_p, agent_fused, obj_fused, *_enc_args(W),
      det_w.astype(_MXU_DTYPE), det_b)
    return out[:, :n]


# ------------------------------ model forward ---------------------------------

def event_detection_forward(params, env_features, agent_features, agent_masks,
                            obj_features, obj_masks, *, attention_steps,
                            row_block=256):
    # NOTE: the reference's time-chunking by attention_steps is a pure memory
    # optimization — every (b, t) sample is processed independently by the
    # fusers — so row-tiling over B*T samples is equivalent.
    del attention_steps
    bsz, t, a, adin = agent_features.shape
    o, odin = obj_features.shape[2], obj_features.shape[3]
    env_dim = env_features.shape[-1]
    n = bsz * t

    agent_fused = pallas_agent_fuse(
        agent_features.reshape(n, a, adin),
        agent_masks.reshape(n, a).astype(jnp.float32),
        params["agent_w"], params["agent_b"], params["agents_fuser"],
        row_block=row_block)

    # TODO(synk): on v7x the agent/obj fusers could be merged into one
    # pallas_call with a leading 2-wide "parallel" fuser axis (one TC per
    # fuser); kept as two calls here to support differing A/O and feature dims.
    obj_fused, env_p = pallas_obj_fuse(
        obj_features.reshape(n, o, odin),
        env_features.reshape(n, env_dim),
        obj_masks.reshape(n, o).astype(jnp.float32),
        params["obj_w"], params["obj_b"],
        params["env_w"], params["env_b"], params["objs_fuser"],
        row_block=row_block)

    det = pallas_ctx_det(
        env_p, agent_fused, obj_fused, params["env_fuser"],
        params["det_w"], params["det_b"])              # (2, B*T) lane-dense

    return det.reshape(2, bsz, t).transpose(1, 0, 2)   # (B, 2, T)


# ------------------------------ parameter init ---------------------------------

def _encoder_params(key, d, ffn):
    k = jax.random.split(key, 6)
    return dict(
        w_q=0.05 * jax.random.normal(k[0], (d, d), jnp.float32),
        b_q=jnp.zeros((1, d), jnp.float32),
        w_k=0.05 * jax.random.normal(k[1], (d, d), jnp.float32),
        b_k=jnp.zeros((1, d), jnp.float32),
        w_v=0.05 * jax.random.normal(k[2], (d, d), jnp.float32),
        b_v=jnp.zeros((1, d), jnp.float32),
        w_out=0.05 * jax.random.normal(k[3], (d, d), jnp.float32),
        b_out=jnp.zeros((1, d), jnp.float32),
        ln=jnp.stack([jnp.ones((d,)), jnp.zeros((d,)),
                      jnp.ones((d,)), jnp.zeros((d,))]).astype(jnp.float32),
        w1=0.05 * jax.random.normal(k[4], (d, ffn), jnp.float32),
        b1=jnp.zeros((1, ffn), jnp.float32),
        w2=0.05 * jax.random.normal(k[5], (ffn, d), jnp.float32),
        b2=jnp.zeros((1, d), jnp.float32),
    )


if __name__ == "__main__":
    B, T, A, O = 2, 8, 8, 8
    ENV_DIM, AGENT_DIM, OBJ_DIM = 32, 48, 48
    D, FFN = 32, 64
    STEP = 4  # cfg.TRAIN.ATTENTION_STEPS

    key = jax.random.PRNGKey(0)
    ks = jax.random.split(key, 12)

    params = dict(
        env_w=0.05 * jax.random.normal(ks[0], (ENV_DIM, D), jnp.float32),
        env_b=jnp.zeros((1, D), jnp.float32),
        agent_w=0.05 * jax.random.normal(ks[1], (AGENT_DIM, D), jnp.float32),
        agent_b=jnp.zeros((1, D), jnp.float32),
        obj_w=0.05 * jax.random.normal(ks[2], (OBJ_DIM, D), jnp.float32),
        obj_b=jnp.zeros((1, D), jnp.float32),
        agents_fuser=_encoder_params(ks[3], D, FFN),
        objs_fuser=_encoder_params(ks[4], D, FFN),
        env_fuser=_encoder_params(ks[5], D, FFN),
        det_w=0.05 * jax.random.normal(ks[6], (2, D), jnp.float32),  # Conv1d (out, in)
        det_b=jnp.zeros((2, 1), jnp.float32),
    )

    env_features = jax.random.normal(ks[7], (B, T, ENV_DIM), jnp.float32)
    agent_features = jax.random.normal(ks[8], (B, T, A, AGENT_DIM), jnp.float32)
    agent_masks = (jax.random.uniform(ks[9], (B, T, A)) > 0.3).astype(jnp.float32)
    obj_features = jax.random.normal(ks[10], (B, T, O, OBJ_DIM), jnp.float32)
    obj_masks = (jax.random.uniform(ks[11], (B, T, O)) > 0.3).astype(jnp.float32)

    # row_block=8 at this toy size exercises a multi-step, pipelined grid
    # (grid=(2,)); for production scale leave the default (~256) and sweep.
    forward = jax.jit(functools.partial(event_detection_forward,
                                        attention_steps=STEP, row_block=8))
    out = forward(params, env_features, agent_features, agent_masks,
                  obj_features, obj_masks)
    jax.block_until_ready(out)
    assert out.shape == (B, 2, T)
    print("KERNEL_OK")
</pallas_src>

<mosaic_0001>
module attributes {stable_mosaic.version = 11 : i64} {
  func.func @agent_fuse_kernel(%arg0: i32, %arg1: memref<8x8x48xbf16, #tpu.memory_space<vmem>>, %arg2: memref<8x8xf32, #tpu.memory_space<vmem>>, %arg3: memref<48x32xbf16, #tpu.memory_space<vmem>>, %arg4: memref<1x32xf32, #tpu.memory_space<vmem>>, %arg5: memref<32x32xbf16, #tpu.memory_space<vmem>>, %arg6: memref<1x32xf32, #tpu.memory_space<vmem>>, %arg7: memref<32x32xbf16, #tpu.memory_space<vmem>>, %arg8: memref<1x32xf32, #tpu.memory_space<vmem>>, %arg9: memref<32x32xbf16, #tpu.memory_space<vmem>>, %arg10: memref<1x32xf32, #tpu.memory_space<vmem>>, %arg11: memref<32x32xbf16, #tpu.memory_space<vmem>>, %arg12: memref<1x32xf32, #tpu.memory_space<vmem>>, %arg13: memref<4x32xf32, #tpu.memory_space<vmem>>, %arg14: memref<32x64xbf16, #tpu.memory_space<vmem>>, %arg15: memref<1x64xf32, #tpu.memory_space<vmem>>, %arg16: memref<64x32xbf16, #tpu.memory_space<vmem>>, %arg17: memref<1x32xf32, #tpu.memory_space<vmem>>, %arg18: memref<8x32xf32, #tpu.memory_space<vmem>>) attributes {dimension_semantics = [#tpu.dimension_semantics<parallel>], iteration_bounds = array<i64: 2>, scalar_prefetch = 0 : i64, scratch_operands = 0 : i64, tpu.core_type = #tpu.core_type<tc>, window_params = [{transform_indices = @transform_0, window_bounds = array<i64: 8, 8, 48>}, {transform_indices = @transform_1, window_bounds = array<i64: 8, 8>}, {pipeline_mode = #tpu.pipeline_mode<synchronous>, transform_indices = @transform_2, window_bounds = array<i64: 48, 32>}, {pipeline_mode = #tpu.pipeline_mode<synchronous>, transform_indices = @transform_3, window_bounds = array<i64: 1, 32>}, {pipeline_mode = #tpu.pipeline_mode<synchronous>, transform_indices = @transform_4, window_bounds = array<i64: 32, 32>}, {pipeline_mode = #tpu.pipeline_mode<synchronous>, transform_indices = @transform_5, window_bounds = array<i64: 1, 32>}, {pipeline_mode = #tpu.pipeline_mode<synchronous>, transform_indices = @transform_6, window_bounds = array<i64: 32, 32>}, {pipeline_mode = #tpu.pipeline_mode<synchronous>, transform_indices = @transform_7, window_bounds = array<i64: 1, 32>}, {pipeline_mode = #tpu.pipeline_mode<synchronous>, transform_indices = @transform_8, window_bounds = array<i64: 32, 32>}, {pipeline_mode = #tpu.pipeline_mode<synchronous>, transform_indices = @transform_9, window_bounds = array<i64: 1, 32>}, {pipeline_mode = #tpu.pipeline_mode<synchronous>, transform_indices = @transform_10, window_bounds = array<i64: 32, 32>}, {pipeline_mode = #tpu.pipeline_mode<synchronous>, transform_indices = @transform_11, window_bounds = array<i64: 1, 32>}, {pipeline_mode = #tpu.pipeline_mode<synchronous>, transform_indices = @transform_12, window_bounds = array<i64: 4, 32>}, {pipeline_mode = #tpu.pipeline_mode<synchronous>, transform_indices = @transform_13, window_bounds = array<i64: 32, 64>}, {pipeline_mode = #tpu.pipeline_mode<synchronous>, transform_indices = @transform_14, window_bounds = array<i64: 1, 64>}, {pipeline_mode = #tpu.pipeline_mode<synchronous>, transform_indices = @transform_15, window_bounds = array<i64: 64, 32>}, {pipeline_mode = #tpu.pipeline_mode<synchronous>, transform_indices = @transform_16, window_bounds = array<i64: 1, 32>}, {transform_indices = @transform_17, window_bounds = array<i64: 8, 32>}]} {
    %c0 = arith.constant 0 : index
    %c0_0 = arith.constant 0 : index
    %c0_1 = arith.constant 0 : index
    %0 = vector.load %arg1[%c0, %c0_0, %c0_1] : memref<8x8x48xbf16, #tpu.memory_space<vmem>>, vector<8x8x48xbf16>
    %1 = vector.shape_cast %0 : vector<8x8x48xbf16> to vector<64x48xbf16>
    %c0_2 = arith.constant 0 : index
    %c0_3 = arith.constant 0 : index
    %2 = vector.load %arg3[%c0_2, %c0_3] : memref<48x32xbf16, #tpu.memory_space<vmem>>, vector<48x32xbf16>
    %cst = arith.constant dense<0.000000e+00> : vector<64x32xf32>
    %3 = tpu.matmul %1, %2, %cst {dimension_numbers = #tpu.dot_dimension_numbers<[1], [0], [0], [1], [0, 0, 1, 1], [], []>} : vector<64x48xbf16>, vector<48x32xbf16>, vector<64x32xf32> -> vector<64x32xf32>
    %c0_4 = arith.constant 0 : index
    %c0_5 = arith.constant 0 : index
    %4 = vector.load %arg4[%c0_4, %c0_5] : memref<1x32xf32, #tpu.memory_space<vmem>>, vector<1x32xf32>
    %5 = vector.broadcast %4 : vector<1x32xf32> to vector<64x32xf32>
    %6 = arith.addf %3, %5 : vector<64x32xf32>
    %7 = vector.shape_cast %6 : vector<64x32xf32> to vector<8x8x32xf32>
    %c0_6 = arith.constant 0 : index
    %c0_7 = arith.constant 0 : index
    %8 = vector.load %arg2[%c0_6, %c0_7] : memref<8x8xf32, #tpu.memory_space<vmem>>, vector<8x8xf32>
    %c0_8 = arith.constant 0 : index
    %c0_9 = arith.constant 0 : index
    %9 = vector.load %arg5[%c0_8, %c0_9] : memref<32x32xbf16, #tpu.memory_space<vmem>>, vector<32x32xbf16>
    %c0_10 = arith.constant 0 : index
    %c0_11 = arith.constant 0 : index
    %10 = vector.load %arg6[%c0_10, %c0_11] : memref<1x32xf32, #tpu.memory_space<vmem>>, vector<1x32xf32>
    %c0_12 = arith.constant 0 : index
    %c0_13 = arith.constant 0 : index
    %11 = vector.load %arg7[%c0_12, %c0_13] : memref<32x32xbf16, #tpu.memory_space<vmem>>, vector<32x32xbf16>
    %c0_14 = arith.constant 0 : index
    %c0_15 = arith.constant 0 : index
    %12 = vector.load %arg8[%c0_14, %c0_15] : memref<1x32xf32, #tpu.memory_space<vmem>>, vector<1x32xf32>
    %c0_16 = arith.constant 0 : index
    %c0_17 = arith.constant 0 : index
    %13 = vector.load %arg9[%c0_16, %c0_17] : memref<32x32xbf16, #tpu.memory_space<vmem>>, vector<32x32xbf16>
    %c0_18 = arith.constant 0 : index
    %c0_19 = arith.constant 0 : index
    %14 = vector.load %arg10[%c0_18, %c0_19] : memref<1x32xf32, #tpu.memory_space<vmem>>, vector<1x32xf32>
    %c0_20 = arith.constant 0 : index
    %c0_21 = arith.constant 0 : index
    %15 = vector.load %arg11[%c0_20, %c0_21] : memref<32x32xbf16, #tpu.memory_space<vmem>>, vector<32x32xbf16>
    %c0_22 = arith.constant 0 : index
    %c0_23 = arith.constant 0 : index
    %16 = vector.load %arg12[%c0_22, %c0_23] : memref<1x32xf32, #tpu.memory_space<vmem>>, vector<1x32xf32>
    %c0_24 = arith.constant 0 : index
    %c0_25 = arith.constant 0 : index
    %17 = vector.load %arg13[%c0_24, %c0_25] : memref<4x32xf32, #tpu.memory_space<vmem>>, vector<4x32xf32>
    %c0_26 = arith.constant 0 : index
    %c0_27 = arith.constant 0 : index
    %18 = vector.load %arg14[%c0_26, %c0_27] : memref<32x64xbf16, #tpu.memory_space<vmem>>, vector<32x64xbf16>
    %c0_28 = arith.constant 0 : index
    %c0_29 = arith.constant 0 : index
    %19 = vector.load %arg15[%c0_28, %c0_29] : memref<1x64xf32, #tpu.memory_space<vmem>>, vector<1x64xf32>
    %c0_30 = arith.constant 0 : index
    %c0_31 = arith.constant 0 : index
    %20 = vector.load %arg16[%c0_30, %c0_31] : memref<64x32xbf16, #tpu.memory_space<vmem>>, vector<64x32xbf16>
    %c0_32 = arith.constant 0 : index
    %c0_33 = arith.constant 0 : index
    %21 = vector.load %arg17[%c0_32, %c0_33] : memref<1x32xf32, #tpu.memory_space<vmem>>, vector<1x32xf32>
    %22 = arith.mulf %7, %7 : vector<8x8x32xf32>
    %cst_34 = arith.constant dense<0.000000e+00> : vector<8x8xf32>
    %23 = vector.multi_reduction <add>, %22, %cst_34 [2] : vector<8x8x32xf32> to vector<8x8xf32>
    %24 = math.sqrt %23 : vector<8x8xf32>
    %cst_35 = arith.constant 0.000000e+00 : f32
    %25 = vector.broadcast %cst_35 : f32 to vector<8x8xf32>
    %26 = arith.cmpf ogt, %8, %25 : vector<8x8xf32>
    %cst_36 = arith.constant -1.000000e+30 : f32
    %27 = vector.broadcast %cst_36 : f32 to vector<8x8xf32>
    %28 = arith.select %26, %24, %27 : vector<8x8xi1>, vector<8x8xf32>
    %cst_37 = arith.constant dense<0xFF800000> : vector<8xf32>
    %29 = vector.multi_reduction <maximumf>, %28, %cst_37 [1] : vector<8x8xf32> to vector<8xf32>
    %30 = vector.shape_cast %29 : vector<8xf32> to vector<8x1xf32>
    %31 = vector.broadcast %30 : vector<8x1xf32> to vector<8x8xf32>
    %32 = arith.subf %28, %31 : vector<8x8xf32>
    %33 = math.exp %32 : vector<8x8xf32>
    %34 = arith.mulf %33, %8 : vector<8x8xf32>
    %cst_38 = arith.constant dense<0.000000e+00> : vector<8xf32>
    %35 = vector.multi_reduction <add>, %34, %cst_38 [1] : vector<8x8xf32> to vector<8xf32>
    %36 = vector.shape_cast %35 : vector<8xf32> to vector<8x1xf32>
    %cst_39 = arith.constant 9.99999996E-13 : f32
    %37 = vector.broadcast %cst_39 : f32 to vector<8x1xf32>
    %38 = arith.maximumf %36, %37 : vector<8x1xf32>
    %39 = vector.broadcast %38 : vector<8x1xf32> to vector<8x8xf32>
    %40 = arith.divf %34, %39 : vector<8x8xf32>
    %cst_40 = arith.constant dense<0.000000e+00> : vector<8xf32>
    %41 = vector.multi_reduction <add>, %8, %cst_40 [1] : vector<8x8xf32> to vector<8xf32>
    %42 = vector.shape_cast %41 : vector<8xf32> to vector<8x1xf32>
    %cst_41 = arith.constant 9.99999996E-13 : f32
    %43 = vector.broadcast %cst_41 : f32 to vector<8x1xf32>
    %44 = arith.maximumf %42, %43 : vector<8x1xf32>
    %cst_42 = arith.constant 1.000000e+00 : f32
    %45 = vector.broadcast %cst_42 : f32 to vector<8x1xf32>
    %46 = arith.divf %45, %44 : vector<8x1xf32>
    %cst_43 = arith.constant 0.000000e+00 : f32
    %cst_44 = arith.constant 1.000000e+00 : f32
    %47 = vector.broadcast %cst_43 : f32 to vector<8x1xf32>
    %48 = arith.maximumf %47, %46 : vector<8x1xf32>
    %49 = vector.broadcast %cst_44 : f32 to vector<8x1xf32>
    %50 = arith.minimumf %49, %48 : vector<8x1xf32>
    %51 = vector.broadcast %50 : vector<8x1xf32> to vector<8x8xf32>
    %52 = arith.cmpf oge, %40, %51 : vector<8x8xf32>
    %53 = arith.extui %52 : vector<8x8xi1> to vector<8x8xi32>
    %54 = arith.sitofp %53 : vector<8x8xi32> to vector<8x8xf32>
    %55 = vector.shape_cast %7 : vector<8x8x32xf32> to vector<64x32xf32>
    %56 = arith.truncf %55 : vector<64x32xf32> to vector<64x32xbf16>
    %cst_45 = arith.constant dense<0.000000e+00> : vector<64x32xf32>
    %57 = tpu.matmul %56, %9, %cst_45 {dimension_numbers = #tpu.dot_dimension_numbers<[1], [0], [0], [1], [0, 0, 1, 1], [], []>} : vector<64x32xbf16>, vector<32x32xbf16>, vector<64x32xf32> -> vector<64x32xf32>
    %58 = vector.broadcast %10 : vector<1x32xf32> to vector<64x32xf32>
    %59 = arith.addf %57, %58 : vector<64x32xf32>
    %60 = vector.shape_cast %59 : vector<64x32xf32> to vector<8x8x32xf32>
    %cst_46 = arith.constant dense<0.000000e+00> : vector<64x32xf32>
    %61 = tpu.matmul %56, %11, %cst_46 {dimension_numbers = #tpu.dot_dimension_numbers<[1], [0], [0], [1], [0, 0, 1, 1], [], []>} : vector<64x32xbf16>, vector<32x32xbf16>, vector<64x32xf32> -> vector<64x32xf32>
    %62 = vector.broadcast %12 : vector<1x32xf32> to vector<64x32xf32>
    %63 = arith.addf %61, %62 : vector<64x32xf32>
    %64 = vector.shape_cast %63 : vector<64x32xf32> to vector<8x8x32xf32>
    %cst_47 = arith.constant dense<0.000000e+00> : vector<64x32xf32>
    %65 = tpu.matmul %56, %13, %cst_47 {dimension_numbers = #tpu.dot_dimension_numbers<[1], [0], [0], [1], [0, 0, 1, 1], [], []>} : vector<64x32xbf16>, vector<32x32xbf16>, vector<64x32xf32> -> vector<64x32xf32>
    %66 = vector.broadcast %14 : vector<1x32xf32> to vector<64x32xf32>
    %67 = arith.addf %65, %66 : vector<64x32xf32>
    %68 = vector.shape_cast %67 : vector<64x32xf32> to vector<8x8x32xf32>
    %cst_48 = arith.constant 3.200000e+01 : f32
    %69 = math.sqrt %cst_48 : f32
    %cst_49 = arith.constant 1.000000e+00 : f32
    %70 = arith.divf %cst_49, %69 : f32
    "tpu.trace_start"() <{level = 10 : i32, message = "nqd,nkd->nqk"}> : () -> ()
    %cst_50 = arith.constant dense<0.000000e+00> : vector<8x8x8xf32>
    %71 = tpu.matmul %60, %64, %cst_50 {dimension_numbers = #tpu.dot_dimension_numbers<[2], [2], [1], [1], [0, 0, 0, 1, 1, 1], [0], [0]>} : vector<8x8x32xf32>, vector<8x8x32xf32>, vector<8x8x8xf32> -> vector<8x8x8xf32>
    "tpu.trace_stop"() : () -> ()
    %72 = vector.broadcast %70 : f32 to vector<8x8x8xf32>
    %73 = arith.mulf %71, %72 : vector<8x8x8xf32>
    %74 = vector.shape_cast %54 : vector<8x8xf32> to vector<8x1x8xf32>
    %cst_51 = arith.constant 0.000000e+00 : f32
    %75 = vector.broadcast %cst_51 : f32 to vector<8x1x8xf32>
    %76 = arith.cmpf ogt, %74, %75 : vector<8x1x8xf32>
    %cst_52 = arith.constant -1.000000e+30 : f32
    %77 = vector.shape_cast %76 : vector<8x1x8xi1> to vector<8x1x8xi1>
    %78 = vector.broadcast %77 : vector<8x1x8xi1> to vector<8x8x8xi1>
    %79 = vector.broadcast %cst_52 : f32 to vector<8x8x8xf32>
    %80 = arith.select %78, %73, %79 : vector<8x8x8xi1>, vector<8x8x8xf32>
    %cst_53 = arith.constant dense<0xFF800000> : vector<8x8xf32>
    %81 = vector.multi_reduction <maximumf>, %80, %cst_53 [2] : vector<8x8x8xf32> to vector<8x8xf32>
    %82 = vector.shape_cast %81 : vector<8x8xf32> to vector<8x8x1xf32>
    %83 = vector.broadcast %82 : vector<8x8x1xf32> to vector<8x8x8xf32>
    %84 = arith.subf %80, %83 : vector<8x8x8xf32>
    %85 = math.exp %84 : vector<8x8x8xf32>
    %86 = vector.shape_cast %54 : vector<8x8xf32> to vector<8x1x8xf32>
    %87 = vector.broadcast %86 : vector<8x1x8xf32> to vector<8x8x8xf32>
    %88 = arith.mulf %85, %87 : vector<8x8x8xf32>
    %cst_54 = arith.constant dense<0.000000e+00> : vector<8x8xf32>
    %89 = vector.multi_reduction <add>, %88, %cst_54 [2] : vector<8x8x8xf32> to vector<8x8xf32>
    %90 = vector.shape_cast %89 : vector<8x8xf32> to vector<8x8x1xf32>
    %cst_55 = arith.constant 9.99999996E-13 : f32
    %91 = vector.broadcast %cst_55 : f32 to vector<8x8x1xf32>
    %92 = arith.maximumf %90, %91 : vector<8x8x1xf32>
    %93 = tpu.reciprocal %92 {approx = true} : vector<8x8x1xf32> -> vector<8x8x1xf32>
    %94 = vector.broadcast %93 : vector<8x8x1xf32> to vector<8x8x8xf32>
    %95 = arith.mulf %88, %94 : vector<8x8x8xf32>
    "tpu.trace_start"() <{level = 10 : i32, message = "nqk,nkd->nqd"}> : () -> ()
    %cst_56 = arith.constant dense<0.000000e+00> : vector<8x8x32xf32>
    %96 = tpu.matmul %95, %68, %cst_56 {dimension_numbers = #tpu.dot_dimension_numbers<[2], [1], [1], [2], [0, 0, 0, 1, 1, 2], [0], [0]>} : vector<8x8x8xf32>, vector<8x8x32xf32>, vector<8x8x32xf32> -> vector<8x8x32xf32>
    "tpu.trace_stop"() : () -> ()
    %97 = vector.shape_cast %96 : vector<8x8x32xf32> to vector<64x32xf32>
    %98 = arith.truncf %97 : vector<64x32xf32> to vector<64x32xbf16>
    %cst_57 = arith.constant dense<0.000000e+00> : vector<64x32xf32>
    %99 = tpu.matmul %98, %15, %cst_57 {dimension_numbers = #tpu.dot_dimension_numbers<[1], [0], [0], [1], [0, 0, 1, 1], [], []>} : vector<64x32xbf16>, vector<32x32xbf16>, vector<64x32xf32> -> vector<64x32xf32>
    %100 = vector.broadcast %16 : vector<1x32xf32> to vector<64x32xf32>
    %101 = arith.addf %99, %100 : vector<64x32xf32>
    %102 = vector.shape_cast %101 : vector<64x32xf32> to vector<8x8x32xf32>
    %103 = arith.addf %7, %102 : vector<8x8x32xf32>
    %cst_58 = arith.constant dense<0.000000e+00> : vector<8x8xf32>
    %104 = vector.multi_reduction <add>, %103, %cst_58 [2] : vector<8x8x32xf32> to vector<8x8xf32>
    %105 = vector.shape_cast %104 : vector<8x8xf32> to vector<8x8x1xf32>
    %cst_59 = arith.constant 3.200000e+01 : f32
    %106 = vector.broadcast %cst_59 : f32 to vector<8x8x1xf32>
    %107 = arith.divf %105, %106 : vector<8x8x1xf32>
    %108 = vector.broadcast %107 : vector<8x8x1xf32> to vector<8x8x32xf32>
    %109 = arith.subf %103, %108 : vector<8x8x32xf32>
    %110 = arith.mulf %109, %109 : vector<8x8x32xf32>
    %cst_60 = arith.constant dense<0.000000e+00> : vector<8x8xf32>
    %111 = vector.multi_reduction <add>, %110, %cst_60 [2] : vector<8x8x32xf32> to vector<8x8xf32>
    %112 = vector.shape_cast %111 : vector<8x8xf32> to vector<8x8x1xf32>
    %cst_61 = arith.constant 3.200000e+01 : f32
    %113 = vector.broadcast %cst_61 : f32 to vector<8x8x1xf32>
    %114 = arith.divf %112, %113 : vector<8x8x1xf32>
    %115 = vector.broadcast %107 : vector<8x8x1xf32> to vector<8x8x32xf32>
    %116 = arith.subf %103, %115 : vector<8x8x32xf32>
    %cst_62 = arith.constant 9.99999974E-6 : f32
    %117 = vector.broadcast %cst_62 : f32 to vector<8x8x1xf32>
    %118 = arith.addf %114, %117 : vector<8x8x1xf32>
    %119 = math.rsqrt %118 : vector<8x8x1xf32>
    %120 = vector.broadcast %119 : vector<8x8x1xf32> to vector<8x8x32xf32>
    %121 = arith.mulf %116, %120 : vector<8x8x32xf32>
    %122 = vector.extract_strided_slice %17 {offsets = [0, 0], sizes = [1, 32], strides = [1, 1]} : vector<4x32xf32> to vector<1x32xf32>
    %123 = vector.shape_cast %122 : vector<1x32xf32> to vector<32xf32>
    %124 = vector.shape_cast %123 : vector<32xf32> to vector<1x1x32xf32>
    %125 = vector.broadcast %124 : vector<1x1x32xf32> to vector<8x8x32xf32>
    %126 = arith.mulf %121, %125 : vector<8x8x32xf32>
    %127 = vector.extract_strided_slice %17 {offsets = [1, 0], sizes = [1, 32], strides = [1, 1]} : vector<4x32xf32> to vector<1x32xf32>
    %128 = vector.shape_cast %127 : vector<1x32xf32> to vector<32xf32>
    %129 = vector.shape_cast %128 : vector<32xf32> to vector<1x1x32xf32>
    %130 = vector.broadcast %129 : vector<1x1x32xf32> to vector<8x8x32xf32>
    %131 = arith.addf %126, %130 : vector<8x8x32xf32>
    %132 = vector.shape_cast %131 : vector<8x8x32xf32> to vector<64x32xf32>
    %133 = arith.truncf %132 : vector<64x32xf32> to vector<64x32xbf16>
    %cst_63 = arith.constant dense<0.000000e+00> : vector<64x64xf32>
    %134 = tpu.matmul %133, %18, %cst_63 {dimension_numbers = #tpu.dot_dimension_numbers<[1], [0], [0], [1], [0, 0, 1, 1], [], []>} : vector<64x32xbf16>, vector<32x64xbf16>, vector<64x64xf32> -> vector<64x64xf32>
    %135 = vector.broadcast %19 : vector<1x64xf32> to vector<64x64xf32>
    %136 = arith.addf %134, %135 : vector<64x64xf32>
    %cst_64 = arith.constant 0.000000e+00 : f32
    %137 = vector.broadcast %cst_64 : f32 to vector<64x64xf32>
    %138 = arith.maximumf %136, %137 : vector<64x64xf32>
    %139 = arith.truncf %138 : vector<64x64xf32> to vector<64x64xbf16>
    %cst_65 = arith.constant dense<0.000000e+00> : vector<64x32xf32>
    %140 = tpu.matmul %139, %20, %cst_65 {dimension_numbers = #tpu.dot_dimension_numbers<[1], [0], [0], [1], [0, 0, 1, 1], [], []>} : vector<64x64xbf16>, vector<64x32xbf16>, vector<64x32xf32> -> vector<64x32xf32>
    %141 = vector.broadcast %21 : vector<1x32xf32> to vector<64x32xf32>
    %142 = arith.addf %140, %141 : vector<64x32xf32>
    %143 = vector.shape_cast %142 : vector<64x32xf32> to vector<8x8x32xf32>
    %144 = arith.addf %131, %143 : vector<8x8x32xf32>
    %cst_66 = arith.constant dense<0.000000e+00> : vector<8x8xf32>
    %145 = vector.multi_reduction <add>, %144, %cst_66 [2] : vector<8x8x32xf32> to vector<8x8xf32>
    %146 = vector.shape_cast %145 : vector<8x8xf32> to vector<8x8x1xf32>
    %cst_67 = arith.constant 3.200000e+01 : f32
    %147 = vector.broadcast %cst_67 : f32 to vector<8x8x1xf32>
    %148 = arith.divf %146, %147 : vector<8x8x1xf32>
    %149 = vector.broadcast %148 : vector<8x8x1xf32> to vector<8x8x32xf32>
    %150 = arith.subf %144, %149 : vector<8x8x32xf32>
    %151 = arith.mulf %150, %150 : vector<8x8x32xf32>
    %cst_68 = arith.constant dense<0.000000e+00> : vector<8x8xf32>
    %152 = vector.multi_reduction <add>, %151, %cst_68 [2] : vector<8x8x32xf32> to vector<8x8xf32>
    %153 = vector.shape_cast %152 : vector<8x8xf32> to vector<8x8x1xf32>
    %cst_69 = arith.constant 3.200000e+01 : f32
    %154 = vector.broadcast %cst_69 : f32 to vector<8x8x1xf32>
    %155 = arith.divf %153, %154 : vector<8x8x1xf32>
    %156 = vector.broadcast %148 : vector<8x8x1xf32> to vector<8x8x32xf32>
    %157 = arith.subf %144, %156 : vector<8x8x32xf32>
    %cst_70 = arith.constant 9.99999974E-6 : f32
    %158 = vector.broadcast %cst_70 : f32 to vector<8x8x1xf32>
    %159 = arith.addf %155, %158 : vector<8x8x1xf32>
    %160 = math.rsqrt %159 : vector<8x8x1xf32>
    %161 = vector.broadcast %160 : vector<8x8x1xf32> to vector<8x8x32xf32>
    %162 = arith.mulf %157, %161 : vector<8x8x32xf32>
    %163 = vector.extract_strided_slice %17 {offsets = [2, 0], sizes = [1, 32], strides = [1, 1]} : vector<4x32xf32> to vector<1x32xf32>
    %164 = vector.shape_cast %163 : vector<1x32xf32> to vector<32xf32>
    %165 = vector.shape_cast %164 : vector<32xf32> to vector<1x1x32xf32>
    %166 = vector.broadcast %165 : vector<1x1x32xf32> to vector<8x8x32xf32>
    %167 = arith.mulf %162, %166 : vector<8x8x32xf32>
    %168 = vector.extract_strided_slice %17 {offsets = [3, 0], sizes = [1, 32], strides = [1, 1]} : vector<4x32xf32> to vector<1x32xf32>
    %169 = vector.shape_cast %168 : vector<1x32xf32> to vector<32xf32>
    %170 = vector.shape_cast %169 : vector<32xf32> to vector<1x1x32xf32>
    %171 = vector.broadcast %170 : vector<1x1x32xf32> to vector<8x8x32xf32>
    %172 = arith.addf %167, %171 : vector<8x8x32xf32>
    %cst_71 = arith.constant dense<0.000000e+00> : vector<8xf32>
    %173 = vector.multi_reduction <add>, %54, %cst_71 [1] : vector<8x8xf32> to vector<8xf32>
    %174 = vector.shape_cast %173 : vector<8xf32> to vector<8x1xf32>
    %cst_72 = arith.constant 0.000000e+00 : f32
    %175 = vector.broadcast %cst_72 : f32 to vector<8x1xf32>
    %176 = arith.cmpf ogt, %174, %175 : vector<8x1xf32>
    %177 = arith.extui %176 : vector<8x1xi1> to vector<8x1xi32>
    %178 = arith.sitofp %177 : vector<8x1xi32> to vector<8x1xf32>
    %cst_73 = arith.constant dense<0.000000e+00> : vector<8x32xf32>
    %179 = vector.multi_reduction <add>, %172, %cst_73 [1] : vector<8x8x32xf32> to vector<8x32xf32>
    %cst_74 = arith.constant 1.000000e+00 : f32
    %180 = vector.broadcast %cst_74 : f32 to vector<8x1xf32>
    %181 = arith.maximumf %174, %180 : vector<8x1xf32>
    %182 = tpu.reciprocal %181 {approx = true} : vector<8x1xf32> -> vector<8x1xf32>
    %183 = vector.broadcast %182 : vector<8x1xf32> to vector<8x32xf32>
    %184 = arith.mulf %179, %183 : vector<8x32xf32>
    %185 = vector.broadcast %178 : vector<8x1xf32> to vector<8x32xf32>
    %186 = arith.mulf %184, %185 : vector<8x32xf32>
    %c0_75 = arith.constant 0 : index
    %c0_76 = arith.constant 0 : index
    %187 = vector.load %arg18[%c0_75, %c0_76] : memref<8x32xf32, #tpu.memory_space<vmem>>, vector<8x32xf32>
    tpu.vector_store %arg18[%c0_75, %c0_76], %186 {strides = array<i32>} : memref<8x32xf32, #tpu.memory_space<vmem>>, vector<8x32xf32>,
    return
  }
  func.func @transform_0(%arg0: i32) -> (i32, i32, i32) {
    %c0_i32 = arith.constant 0 : i32
    %c0_i32_0 = arith.constant 0 : i32
    %c0_i32_1 = arith.constant 0 : i32
    return %arg0, %c0_i32, %c0_i32_0 : i32, i32, i32
  }
  func.func @transform_1(%arg0: i32) -> (i32, i32) {
    %c0_i32 = arith.constant 0 : i32
    %c0_i32_0 = arith.constant 0 : i32
    return %arg0, %c0_i32 : i32, i32
  }
  func.func @transform_2(%arg0: i32) -> (i32, i32) {
    %c0_i32 = arith.constant 0 : i32
    %c0_i32_0 = arith.constant 0 : i32
    %c0_i32_1 = arith.constant 0 : i32
    return %c0_i32, %c0_i32_0 : i32, i32
  }
  func.func @transform_3(%arg0: i32) -> (i32, i32) {
    %c0_i32 = arith.constant 0 : i32
    %c0_i32_0 = arith.constant 0 : i32
    %c0_i32_1 = arith.constant 0 : i32
    return %c0_i32, %c0_i32_0 : i32, i32
  }
  func.func @transform_4(%arg0: i32) -> (i32, i32) {
    %c0_i32 = arith.constant 0 : i32
    %c0_i32_0 = arith.constant 0 : i32
    %c0_i32_1 = arith.constant 0 : i32
    return %c0_i32, %c0_i32_0 : i32, i32
  }
  func.func @transform_5(%arg0: i32) -> (i32, i32) {
    %c0_i32 = arith.constant 0 : i32
    %c0_i32_0 = arith.constant 0 : i32
    %c0_i32_1 = arith.constant 0 : i32
    return %c0_i32, %c0_i32_0 : i32, i32
  }
  func.func @transform_6(%arg0: i32) -> (i32, i32) {
    %c0_i32 = arith.constant 0 : i32
    %c0_i32_0 = arith.constant 0 : i32
    %c0_i32_1 = arith.constant 0 : i32
    return %c0_i32, %c0_i32_0 : i32, i32
  }
  func.func @transform_7(%arg0: i32) -> (i32, i32) {
    %c0_i32 = arith.constant 0 : i32
    %c0_i32_0 = arith.constant 0 : i32
    %c0_i32_1 = arith.constant 0 : i32
    return %c0_i32, %c0_i32_0 : i32, i32
  }
  func.func @transform_8(%arg0: i32) -> (i32, i32) {
    %c0_i32 = arith.constant 0 : i32
    %c0_i32_0 = arith.constant 0 : i32
    %c0_i32_1 = arith.constant 0 : i32
    return %c0_i32, %c0_i32_0 : i32, i32
  }
  func.func @transform_9(%arg0: i32) -> (i32, i32) {
    %c0_i32 = arith.constant 0 : i32
    %c0_i32_0 = arith.constant 0 : i32
    %c0_i32_1 = arith.constant 0 : i32
    return %c0_i32, %c0_i32_0 : i32, i32
  }
  func.func @transform_10(%arg0: i32) -> (i32, i32) {
    %c0_i32 = arith.constant 0 : i32
    %c0_i32_0 = arith.constant 0 : i32
    %c0_i32_1 = arith.constant 0 : i32
    return %c0_i32, %c0_i32_0 : i32, i32
  }
  func.func @transform_11(%arg0: i32) -> (i32, i32) {
    %c0_i32 = arith.constant 0 : i32
    %c0_i32_0 = arith.constant 0 : i32
    %c0_i32_1 = arith.constant 0 : i32
    return %c0_i32, %c0_i32_0 : i32, i32
  }
  func.func @transform_12(%arg0: i32) -> (i32, i32) {
    %c0_i32 = arith.constant 0 : i32
    %c0_i32_0 = arith.constant 0 : i32
    %c0_i32_1 = arith.constant 0 : i32
    return %c0_i32, %c0_i32_0 : i32, i32
  }
  func.func @transform_13(%arg0: i32) -> (i32, i32) {
    %c0_i32 = arith.constant 0 : i32
    %c0_i32_0 = arith.constant 0 : i32
    %c0_i32_1 = arith.constant 0 : i32
    return %c0_i32, %c0_i32_0 : i32, i32
  }
  func.func @transform_14(%arg0: i32) -> (i32, i32) {
    %c0_i32 = arith.constant 0 : i32
    %c0_i32_0 = arith.constant 0 : i32
    %c0_i32_1 = arith.constant 0 : i32
    return %c0_i32, %c0_i32_0 : i32, i32
  }
  func.func @transform_15(%arg0: i32) -> (i32, i32) {
    %c0_i32 = arith.constant 0 : i32
    %c0_i32_0 = arith.constant 0 : i32
    %c0_i32_1 = arith.constant 0 : i32
    return %c0_i32, %c0_i32_0 : i32, i32
  }
  func.func @transform_16(%arg0: i32) -> (i32, i32) {
    %c0_i32 = arith.constant 0 : i32
    %c0_i32_0 = arith.constant 0 : i32
    %c0_i32_1 = arith.constant 0 : i32
    return %c0_i32, %c0_i32_0 : i32, i32
  }
  func.func @transform_17(%arg0: i32) -> (i32, i32) {
    %c0_i32 = arith.constant 0 : i32
    %c0_i32_0 = arith.constant 0 : i32
    return %arg0, %c0_i32 : i32, i32
  }
}

module attributes {stable_mosaic.version = 11 : i64} {
  func.func @obj_fuse_kernel(%arg0: i32, %arg1: memref<8x8x48xbf16, #tpu.memory_space<vmem>>, %arg2: memref<8x32xbf16, #tpu.memory_space<vmem>>, %arg3: memref<8x8xf32, #tpu.memory_space<vmem>>, %arg4: memref<48x32xbf16, #tpu.memory_space<vmem>>, %arg5: memref<1x32xf32, #tpu.memory_space<vmem>>, %arg6: memref<32x32xbf16, #tpu.memory_space<vmem>>, %arg7: memref<1x32xf32, #tpu.memory_space<vmem>>, %arg8: memref<32x32xbf16, #tpu.memory_space<vmem>>, %arg9: memref<1x32xf32, #tpu.memory_space<vmem>>, %arg10: memref<32x32xbf16, #tpu.memory_space<vmem>>, %arg11: memref<1x32xf32, #tpu.memory_space<vmem>>, %arg12: memref<32x32xbf16, #tpu.memory_space<vmem>>, %arg13: memref<1x32xf32, #tpu.memory_space<vmem>>, %arg14: memref<32x32xbf16, #tpu.memory_space<vmem>>, %arg15: memref<1x32xf32, #tpu.memory_space<vmem>>, %arg16: memref<4x32xf32, #tpu.memory_space<vmem>>, %arg17: memref<32x64xbf16, #tpu.memory_space<vmem>>, %arg18: memref<1x64xf32, #tpu.memory_space<vmem>>, %arg19: memref<64x32xbf16, #tpu.memory_space<vmem>>, %arg20: memref<1x32xf32, #tpu.memory_space<vmem>>, %arg21: memref<8x32xf32, #tpu.memory_space<vmem>>, %arg22: memref<8x32xf32, #tpu.memory_space<vmem>>) attributes {dimension_semantics = [#tpu.dimension_semantics<parallel>], iteration_bounds = array<i64: 2>, scalar_prefetch = 0 : i64, scratch_operands = 0 : i64, tpu.core_type = #tpu.core_type<tc>, window_params = [{transform_indices = @transform_0, window_bounds = array<i64: 8, 8, 48>}, {transform_indices = @transform_1, window_bounds = array<i64: 8, 32>}, {transform_indices = @transform_2, window_bounds = array<i64: 8, 8>}, {pipeline_mode = #tpu.pipeline_mode<synchronous>, transform_indices = @transform_3, window_bounds = array<i64: 48, 32>}, {pipeline_mode = #tpu.pipeline_mode<synchronous>, transform_indices = @transform_4, window_bounds = array<i64: 1, 32>}, {pipeline_mode = #tpu.pipeline_mode<synchronous>, transform_indices = @transform_5, window_bounds = array<i64: 32, 32>}, {pipeline_mode = #tpu.pipeline_mode<synchronous>, transform_indices = @transform_6, window_bounds = array<i64: 1, 32>}, {pipeline_mode = #tpu.pipeline_mode<synchronous>, transform_indices = @transform_7, window_bounds = array<i64: 32, 32>}, {pipeline_mode = #tpu.pipeline_mode<synchronous>, transform_indices = @transform_8, window_bounds = array<i64: 1, 32>}, {pipeline_mode = #tpu.pipeline_mode<synchronous>, transform_indices = @transform_9, window_bounds = array<i64: 32, 32>}, {pipeline_mode = #tpu.pipeline_mode<synchronous>, transform_indices = @transform_10, window_bounds = array<i64: 1, 32>}, {pipeline_mode = #tpu.pipeline_mode<synchronous>, transform_indices = @transform_11, window_bounds = array<i64: 32, 32>}, {pipeline_mode = #tpu.pipeline_mode<synchronous>, transform_indices = @transform_12, window_bounds = array<i64: 1, 32>}, {pipeline_mode = #tpu.pipeline_mode<synchronous>, transform_indices = @transform_13, window_bounds = array<i64: 32, 32>}, {pipeline_mode = #tpu.pipeline_mode<synchronous>, transform_indices = @transform_14, window_bounds = array<i64: 1, 32>}, {pipeline_mode = #tpu.pipeline_mode<synchronous>, transform_indices = @transform_15, window_bounds = array<i64: 4, 32>}, {pipeline_mode = #tpu.pipeline_mode<synchronous>, transform_indices = @transform_16, window_bounds = array<i64: 32, 64>}, {pipeline_mode = #tpu.pipeline_mode<synchronous>, transform_indices = @transform_17, window_bounds = array<i64: 1, 64>}, {pipeline_mode = #tpu.pipeline_mode<synchronous>, transform_indices = @transform_18, window_bounds = array<i64: 64, 32>}, {pipeline_mode = #tpu.pipeline_mode<synchronous>, transform_indices = @transform_19, window_bounds = array<i64: 1, 32>}, {transform_indices = @transform_20, window_bounds = array<i64: 8, 32>}, {transform_indices = @transform_21, window_bounds = array<i64: 8, 32>}]} {
    %c0 = arith.constant 0 : index
    %c0_0 = arith.constant 0 : index
    %c0_1 = arith.constant 0 : index
    %0 = vector.load %arg1[%c0, %c0_0, %c0_1] : memref<8x8x48xbf16, #tpu.memory_space<vmem>>, vector<8x8x48xbf16>
    %1 = vector.shape_cast %0 : vector<8x8x48xbf16> to vector<64x48xbf16>
    %c0_2 = arith.constant 0 : index
    %c0_3 = arith.constant 0 : index
    %2 = vector.load %arg4[%c0_2, %c0_3] : memref<48x32xbf16, #tpu.memory_space<vmem>>, vector<48x32xbf16>
    %cst = arith.constant dense<0.000000e+00> : vector<64x32xf32>
    %3 = tpu.matmul %1, %2, %cst {dimension_numbers = #tpu.dot_dimension_numbers<[1], [0], [0], [1], [0, 0, 1, 1], [], []>} : vector<64x48xbf16>, vector<48x32xbf16>, vector<64x32xf32> -> vector<64x32xf32>
    %c0_4 = arith.constant 0 : index
    %c0_5 = arith.constant 0 : index
    %4 = vector.load %arg5[%c0_4, %c0_5] : memref<1x32xf32, #tpu.memory_space<vmem>>, vector<1x32xf32>
    %5 = vector.broadcast %4 : vector<1x32xf32> to vector<64x32xf32>
    %6 = arith.addf %3, %5 : vector<64x32xf32>
    %7 = vector.shape_cast %6 : vector<64x32xf32> to vector<8x8x32xf32>
    %c0_6 = arith.constant 0 : index
    %c0_7 = arith.constant 0 : index
    %8 = vector.load %arg2[%c0_6, %c0_7] : memref<8x32xbf16, #tpu.memory_space<vmem>>, vector<8x32xbf16>
    %c0_8 = arith.constant 0 : index
    %c0_9 = arith.constant 0 : index
    %9 = vector.load %arg6[%c0_8, %c0_9] : memref<32x32xbf16, #tpu.memory_space<vmem>>, vector<32x32xbf16>
    %cst_10 = arith.constant dense<0.000000e+00> : vector<8x32xf32>
    %10 = tpu.matmul %8, %9, %cst_10 {dimension_numbers = #tpu.dot_dimension_numbers<[1], [0], [0], [1], [0, 0, 1, 1], [], []>} : vector<8x32xbf16>, vector<32x32xbf16>, vector<8x32xf32> -> vector<8x32xf32>
    %c0_11 = arith.constant 0 : index
    %c0_12 = arith.constant 0 : index
    %11 = vector.load %arg7[%c0_11, %c0_12] : memref<1x32xf32, #tpu.memory_space<vmem>>, vector<1x32xf32>
    %12 = vector.broadcast %11 : vector<1x32xf32> to vector<8x32xf32>
    %13 = arith.addf %10, %12 : vector<8x32xf32>
    %14 = vector.shape_cast %13 : vector<8x32xf32> to vector<8x1x32xf32>
    %15 = vector.broadcast %14 : vector<8x1x32xf32> to vector<8x8x32xf32>
    %16 = arith.addf %7, %15 : vector<8x8x32xf32>
    %c0_13 = arith.constant 0 : index
    %c0_14 = arith.constant 0 : index
    %17 = vector.load %arg3[%c0_13, %c0_14] : memref<8x8xf32, #tpu.memory_space<vmem>>, vector<8x8xf32>
    %c0_15 = arith.constant 0 : index
    %c0_16 = arith.constant 0 : index
    %18 = vector.load %arg8[%c0_15, %c0_16] : memref<32x32xbf16, #tpu.memory_space<vmem>>, vector<32x32xbf16>
    %c0_17 = arith.constant 0 : index
    %c0_18 = arith.constant 0 : index
    %19 = vector.load %arg9[%c0_17, %c0_18] : memref<1x32xf32, #tpu.memory_space<vmem>>, vector<1x32xf32>
    %c0_19 = arith.constant 0 : index
    %c0_20 = arith.constant 0 : index
    %20 = vector.load %arg10[%c0_19, %c0_20] : memref<32x32xbf16, #tpu.memory_space<vmem>>, vector<32x32xbf16>
    %c0_21 = arith.constant 0 : index
    %c0_22 = arith.constant 0 : index
    %21 = vector.load %arg11[%c0_21, %c0_22] : memref<1x32xf32, #tpu.memory_space<vmem>>, vector<1x32xf32>
    %c0_23 = arith.constant 0 : index
    %c0_24 = arith.constant 0 : index
    %22 = vector.load %arg12[%c0_23, %c0_24] : memref<32x32xbf16, #tpu.memory_space<vmem>>, vector<32x32xbf16>
    %c0_25 = arith.constant 0 : index
    %c0_26 = arith.constant 0 : index
    %23 = vector.load %arg13[%c0_25, %c0_26] : memref<1x32xf32, #tpu.memory_space<vmem>>, vector<1x32xf32>
    %c0_27 = arith.constant 0 : index
    %c0_28 = arith.constant 0 : index
    %24 = vector.load %arg14[%c0_27, %c0_28] : memref<32x32xbf16, #tpu.memory_space<vmem>>, vector<32x32xbf16>
    %c0_29 = arith.constant 0 : index
    %c0_30 = arith.constant 0 : index
    %25 = vector.load %arg15[%c0_29, %c0_30] : memref<1x32xf32, #tpu.memory_space<vmem>>, vector<1x32xf32>
    %c0_31 = arith.constant 0 : index
    %c0_32 = arith.constant 0 : index
    %26 = vector.load %arg16[%c0_31, %c0_32] : memref<4x32xf32, #tpu.memory_space<vmem>>, vector<4x32xf32>
    %c0_33 = arith.constant 0 : index
    %c0_34 = arith.constant 0 : index
    %27 = vector.load %arg17[%c0_33, %c0_34] : memref<32x64xbf16, #tpu.memory_space<vmem>>, vector<32x64xbf16>
    %c0_35 = arith.constant 0 : index
    %c0_36 = arith.constant 0 : index
    %28 = vector.load %arg18[%c0_35, %c0_36] : memref<1x64xf32, #tpu.memory_space<vmem>>, vector<1x64xf32>
    %c0_37 = arith.constant 0 : index
    %c0_38 = arith.constant 0 : index
    %29 = vector.load %arg19[%c0_37, %c0_38] : memref<64x32xbf16, #tpu.memory_space<vmem>>, vector<64x32xbf16>
    %c0_39 = arith.constant 0 : index
    %c0_40 = arith.constant 0 : index
    %30 = vector.load %arg20[%c0_39, %c0_40] : memref<1x32xf32, #tpu.memory_space<vmem>>, vector<1x32xf32>
    %31 = arith.mulf %16, %16 : vector<8x8x32xf32>
    %cst_41 = arith.constant dense<0.000000e+00> : vector<8x8xf32>
    %32 = vector.multi_reduction <add>, %31, %cst_41 [2] : vector<8x8x32xf32> to vector<8x8xf32>
    %33 = math.sqrt %32 : vector<8x8xf32>
    %cst_42 = arith.constant 0.000000e+00 : f32
    %34 = vector.broadcast %cst_42 : f32 to vector<8x8xf32>
    %35 = arith.cmpf ogt, %17, %34 : vector<8x8xf32>
    %cst_43 = arith.constant -1.000000e+30 : f32
    %36 = vector.broadcast %cst_43 : f32 to vector<8x8xf32>
    %37 = arith.select %35, %33, %36 : vector<8x8xi1>, vector<8x8xf32>
    %cst_44 = arith.constant dense<0xFF800000> : vector<8xf32>
    %38 = vector.multi_reduction <maximumf>, %37, %cst_44 [1] : vector<8x8xf32> to vector<8xf32>
    %39 = vector.shape_cast %38 : vector<8xf32> to vector<8x1xf32>
    %40 = vector.broadcast %39 : vector<8x1xf32> to vector<8x8xf32>
    %41 = arith.subf %37, %40 : vector<8x8xf32>
    %42 = math.exp %41 : vector<8x8xf32>
    %43 = arith.mulf %42, %17 : vector<8x8xf32>
    %cst_45 = arith.constant dense<0.000000e+00> : vector<8xf32>
    %44 = vector.multi_reduction <add>, %43, %cst_45 [1] : vector<8x8xf32> to vector<8xf32>
    %45 = vector.shape_cast %44 : vector<8xf32> to vector<8x1xf32>
    %cst_46 = arith.constant 9.99999996E-13 : f32
    %46 = vector.broadcast %cst_46 : f32 to vector<8x1xf32>
    %47 = arith.maximumf %45, %46 : vector<8x1xf32>
    %48 = vector.broadcast %47 : vector<8x1xf32> to vector<8x8xf32>
    %49 = arith.divf %43, %48 : vector<8x8xf32>
    %cst_47 = arith.constant dense<0.000000e+00> : vector<8xf32>
    %50 = vector.multi_reduction <add>, %17, %cst_47 [1] : vector<8x8xf32> to vector<8xf32>
    %51 = vector.shape_cast %50 : vector<8xf32> to vector<8x1xf32>
    %cst_48 = arith.constant 9.99999996E-13 : f32
    %52 = vector.broadcast %cst_48 : f32 to vector<8x1xf32>
    %53 = arith.maximumf %51, %52 : vector<8x1xf32>
    %cst_49 = arith.constant 1.000000e+00 : f32
    %54 = vector.broadcast %cst_49 : f32 to vector<8x1xf32>
    %55 = arith.divf %54, %53 : vector<8x1xf32>
    %cst_50 = arith.constant 0.000000e+00 : f32
    %cst_51 = arith.constant 1.000000e+00 : f32
    %56 = vector.broadcast %cst_50 : f32 to vector<8x1xf32>
    %57 = arith.maximumf %56, %55 : vector<8x1xf32>
    %58 = vector.broadcast %cst_51 : f32 to vector<8x1xf32>
    %59 = arith.minimumf %58, %57 : vector<8x1xf32>
    %60 = vector.broadcast %59 : vector<8x1xf32> to vector<8x8xf32>
    %61 = arith.cmpf oge, %49, %60 : vector<8x8xf32>
    %62 = arith.extui %61 : vector<8x8xi1> to vector<8x8xi32>
    %63 = arith.sitofp %62 : vector<8x8xi32> to vector<8x8xf32>
    %64 = vector.shape_cast %7 : vector<8x8x32xf32> to vector<64x32xf32>
    %65 = arith.truncf %64 : vector<64x32xf32> to vector<64x32xbf16>
    %cst_52 = arith.constant dense<0.000000e+00> : vector<64x32xf32>
    %66 = tpu.matmul %65, %18, %cst_52 {dimension_numbers = #tpu.dot_dimension_numbers<[1], [0], [0], [1], [0, 0, 1, 1], [], []>} : vector<64x32xbf16>, vector<32x32xbf16>, vector<64x32xf32> -> vector<64x32xf32>
    %67 = vector.broadcast %19 : vector<1x32xf32> to vector<64x32xf32>
    %68 = arith.addf %66, %67 : vector<64x32xf32>
    %69 = vector.shape_cast %68 : vector<64x32xf32> to vector<8x8x32xf32>
    %cst_53 = arith.constant dense<0.000000e+00> : vector<64x32xf32>
    %70 = tpu.matmul %65, %20, %cst_53 {dimension_numbers = #tpu.dot_dimension_numbers<[1], [0], [0], [1], [0, 0, 1, 1], [], []>} : vector<64x32xbf16>, vector<32x32xbf16>, vector<64x32xf32> -> vector<64x32xf32>
    %71 = vector.broadcast %21 : vector<1x32xf32> to vector<64x32xf32>
    %72 = arith.addf %70, %71 : vector<64x32xf32>
    %73 = vector.shape_cast %72 : vector<64x32xf32> to vector<8x8x32xf32>
    %cst_54 = arith.constant dense<0.000000e+00> : vector<64x32xf32>
    %74 = tpu.matmul %65, %22, %cst_54 {dimension_numbers = #tpu.dot_dimension_numbers<[1], [0], [0], [1], [0, 0, 1, 1], [], []>} : vector<64x32xbf16>, vector<32x32xbf16>, vector<64x32xf32> -> vector<64x32xf32>
    %75 = vector.broadcast %23 : vector<1x32xf32> to vector<64x32xf32>
    %76 = arith.addf %74, %75 : vector<64x32xf32>
    %77 = vector.shape_cast %76 : vector<64x32xf32> to vector<8x8x32xf32>
    %cst_55 = arith.constant 3.200000e+01 : f32
    %78 = math.sqrt %cst_55 : f32
    %cst_56 = arith.constant 1.000000e+00 : f32
    %79 = arith.divf %cst_56, %78 : f32
    "tpu.trace_start"() <{level = 10 : i32, message = "nqd,nkd->nqk"}> : () -> ()
    %cst_57 = arith.constant dense<0.000000e+00> : vector<8x8x8xf32>
    %80 = tpu.matmul %69, %73, %cst_57 {dimension_numbers = #tpu.dot_dimension_numbers<[2], [2], [1], [1], [0, 0, 0, 1, 1, 1], [0], [0]>} : vector<8x8x32xf32>, vector<8x8x32xf32>, vector<8x8x8xf32> -> vector<8x8x8xf32>
    "tpu.trace_stop"() : () -> ()
    %81 = vector.broadcast %79 : f32 to vector<8x8x8xf32>
    %82 = arith.mulf %80, %81 : vector<8x8x8xf32>
    %83 = vector.shape_cast %63 : vector<8x8xf32> to vector<8x1x8xf32>
    %cst_58 = arith.constant 0.000000e+00 : f32
    %84 = vector.broadcast %cst_58 : f32 to vector<8x1x8xf32>
    %85 = arith.cmpf ogt, %83, %84 : vector<8x1x8xf32>
    %cst_59 = arith.constant -1.000000e+30 : f32
    %86 = vector.shape_cast %85 : vector<8x1x8xi1> to vector<8x1x8xi1>
    %87 = vector.broadcast %86 : vector<8x1x8xi1> to vector<8x8x8xi1>
    %88 = vector.broadcast %cst_59 : f32 to vector<8x8x8xf32>
    %89 = arith.select %87, %82, %88 : vector<8x8x8xi1>, vector<8x8x8xf32>
    %cst_60 = arith.constant dense<0xFF800000> : vector<8x8xf32>
    %90 = vector.multi_reduction <maximumf>, %89, %cst_60 [2] : vector<8x8x8xf32> to vector<8x8xf32>
    %91 = vector.shape_cast %90 : vector<8x8xf32> to vector<8x8x1xf32>
    %92 = vector.broadcast %91 : vector<8x8x1xf32> to vector<8x8x8xf32>
    %93 = arith.subf %89, %92 : vector<8x8x8xf32>
    %94 = math.exp %93 : vector<8x8x8xf32>
    %95 = vector.shape_cast %63 : vector<8x8xf32> to vector<8x1x8xf32>
    %96 = vector.broadcast %95 : vector<8x1x8xf32> to vector<8x8x8xf32>
    %97 = arith.mulf %94, %96 : vector<8x8x8xf32>
    %cst_61 = arith.constant dense<0.000000e+00> : vector<8x8xf32>
    %98 = vector.multi_reduction <add>, %97, %cst_61 [2] : vector<8x8x8xf32> to vector<8x8xf32>
    %99 = vector.shape_cast %98 : vector<8x8xf32> to vector<8x8x1xf32>
    %cst_62 = arith.constant 9.99999996E-13 : f32
    %100 = vector.broadcast %cst_62 : f32 to vector<8x8x1xf32>
    %101 = arith.maximumf %99, %100 : vector<8x8x1xf32>
    %102 = tpu.reciprocal %101 {approx = true} : vector<8x8x1xf32> -> vector<8x8x1xf32>
    %103 = vector.broadcast %102 : vector<8x8x1xf32> to vector<8x8x8xf32>
    %104 = arith.mulf %97, %103 : vector<8x8x8xf32>
    "tpu.trace_start"() <{level = 10 : i32, message = "nqk,nkd->nqd"}> : () -> ()
    %cst_63 = arith.constant dense<0.000000e+00> : vector<8x8x32xf32>
    %105 = tpu.matmul %104, %77, %cst_63 {dimension_numbers = #tpu.dot_dimension_numbers<[2], [1], [1], [2], [0, 0, 0, 1, 1, 2], [0], [0]>} : vector<8x8x8xf32>, vector<8x8x32xf32>, vector<8x8x32xf32> -> vector<8x8x32xf32>
    "tpu.trace_stop"() : () -> ()
    %106 = vector.shape_cast %105 : vector<8x8x32xf32> to vector<64x32xf32>
    %107 = arith.truncf %106 : vector<64x32xf32> to vector<64x32xbf16>
    %cst_64 = arith.constant dense<0.000000e+00> : vector<64x32xf32>
    %108 = tpu.matmul %107, %24, %cst_64 {dimension_numbers = #tpu.dot_dimension_numbers<[1], [0], [0], [1], [0, 0, 1, 1], [], []>} : vector<64x32xbf16>, vector<32x32xbf16>, vector<64x32xf32> -> vector<64x32xf32>
    %109 = vector.broadcast %25 : vector<1x32xf32> to vector<64x32xf32>
    %110 = arith.addf %108, %109 : vector<64x32xf32>
    %111 = vector.shape_cast %110 : vector<64x32xf32> to vector<8x8x32xf32>
    %112 = arith.addf %7, %111 : vector<8x8x32xf32>
    %cst_65 = arith.constant dense<0.000000e+00> : vector<8x8xf32>
    %113 = vector.multi_reduction <add>, %112, %cst_65 [2] : vector<8x8x32xf32> to vector<8x8xf32>
    %114 = vector.shape_cast %113 : vector<8x8xf32> to vector<8x8x1xf32>
    %cst_66 = arith.constant 3.200000e+01 : f32
    %115 = vector.broadcast %cst_66 : f32 to vector<8x8x1xf32>
    %116 = arith.divf %114, %115 : vector<8x8x1xf32>
    %117 = vector.broadcast %116 : vector<8x8x1xf32> to vector<8x8x32xf32>
    %118 = arith.subf %112, %117 : vector<8x8x32xf32>
    %119 = arith.mulf %118, %118 : vector<8x8x32xf32>
    %cst_67 = arith.constant dense<0.000000e+00> : vector<8x8xf32>
    %120 = vector.multi_reduction <add>, %119, %cst_67 [2] : vector<8x8x32xf32> to vector<8x8xf32>
    %121 = vector.shape_cast %120 : vector<8x8xf32> to vector<8x8x1xf32>
    %cst_68 = arith.constant 3.200000e+01 : f32
    %122 = vector.broadcast %cst_68 : f32 to vector<8x8x1xf32>
    %123 = arith.divf %121, %122 : vector<8x8x1xf32>
    %124 = vector.broadcast %116 : vector<8x8x1xf32> to vector<8x8x32xf32>
    %125 = arith.subf %112, %124 : vector<8x8x32xf32>
    %cst_69 = arith.constant 9.99999974E-6 : f32
    %126 = vector.broadcast %cst_69 : f32 to vector<8x8x1xf32>
    %127 = arith.addf %123, %126 : vector<8x8x1xf32>
    %128 = math.rsqrt %127 : vector<8x8x1xf32>
    %129 = vector.broadcast %128 : vector<8x8x1xf32> to vector<8x8x32xf32>
    %130 = arith.mulf %125, %129 : vector<8x8x32xf32>
    %131 = vector.extract_strided_slice %26 {offsets = [0, 0], sizes = [1, 32], strides = [1, 1]} : vector<4x32xf32> to vector<1x32xf32>
    %132 = vector.shape_cast %131 : vector<1x32xf32> to vector<32xf32>
    %133 = vector.shape_cast %132 : vector<32xf32> to vector<1x1x32xf32>
    %134 = vector.broadcast %133 : vector<1x1x32xf32> to vector<8x8x32xf32>
    %135 = arith.mulf %130, %134 : vector<8x8x32xf32>
    %136 = vector.extract_strided_slice %26 {offsets = [1, 0], sizes = [1, 32], strides = [1, 1]} : vector<4x32xf32> to vector<1x32xf32>
    %137 = vector.shape_cast %136 : vector<1x32xf32> to vector<32xf32>
    %138 = vector.shape_cast %137 : vector<32xf32> to vector<1x1x32xf32>
    %139 = vector.broadcast %138 : vector<1x1x32xf32> to vector<8x8x32xf32>
    %140 = arith.addf %135, %139 : vector<8x8x32xf32>
    %141 = vector.shape_cast %140 : vector<8x8x32xf32> to vector<64x32xf32>
    %142 = arith.truncf %141 : vector<64x32xf32> to vector<64x32xbf16>
    %cst_70 = arith.constant dense<0.000000e+00> : vector<64x64xf32>
    %143 = tpu.matmul %142, %27, %cst_70 {dimension_numbers = #tpu.dot_dimension_numbers<[1], [0], [0], [1], [0, 0, 1, 1], [], []>} : vector<64x32xbf16>, vector<32x64xbf16>, vector<64x64xf32> -> vector<64x64xf32>
    %144 = vector.broadcast %28 : vector<1x64xf32> to vector<64x64xf32>
    %145 = arith.addf %143, %144 : vector<64x64xf32>
    %cst_71 = arith.constant 0.000000e+00 : f32
    %146 = vector.broadcast %cst_71 : f32 to vector<64x64xf32>
    %147 = arith.maximumf %145, %146 : vector<64x64xf32>
    %148 = arith.truncf %147 : vector<64x64xf32> to vector<64x64xbf16>
    %cst_72 = arith.constant dense<0.000000e+00> : vector<64x32xf32>
    %149 = tpu.matmul %148, %29, %cst_72 {dimension_numbers = #tpu.dot_dimension_numbers<[1], [0], [0], [1], [0, 0, 1, 1], [], []>} : vector<64x64xbf16>, vector<64x32xbf16>, vector<64x32xf32> -> vector<64x32xf32>
    %150 = vector.broadcast %30 : vector<1x32xf32> to vector<64x32xf32>
    %151 = arith.addf %149, %150 : vector<64x32xf32>
    %152 = vector.shape_cast %151 : vector<64x32xf32> to vector<8x8x32xf32>
    %153 = arith.addf %140, %152 : vector<8x8x32xf32>
    %cst_73 = arith.constant dense<0.000000e+00> : vector<8x8xf32>
    %154 = vector.multi_reduction <add>, %153, %cst_73 [2] : vector<8x8x32xf32> to vector<8x8xf32>
    %155 = vector.shape_cast %154 : vector<8x8xf32> to vector<8x8x1xf32>
    %cst_74 = arith.constant 3.200000e+01 : f32
    %156 = vector.broadcast %cst_74 : f32 to vector<8x8x1xf32>
    %157 = arith.divf %155, %156 : vector<8x8x1xf32>
    %158 = vector.broadcast %157 : vector<8x8x1xf32> to vector<8x8x32xf32>
    %159 = arith.subf %153, %158 : vector<8x8x32xf32>
    %160 = arith.mulf %159, %159 : vector<8x8x32xf32>
    %cst_75 = arith.constant dense<0.000000e+00> : vector<8x8xf32>
    %161 = vector.multi_reduction <add>, %160, %cst_75 [2] : vector<8x8x32xf32> to vector<8x8xf32>
    %162 = vector.shape_cast %161 : vector<8x8xf32> to vector<8x8x1xf32>
    %cst_76 = arith.constant 3.200000e+01 : f32
    %163 = vector.broadcast %cst_76 : f32 to vector<8x8x1xf32>
    %164 = arith.divf %162, %163 : vector<8x8x1xf32>
    %165 = vector.broadcast %157 : vector<8x8x1xf32> to vector<8x8x32xf32>
    %166 = arith.subf %153, %165 : vector<8x8x32xf32>
    %cst_77 = arith.constant 9.99999974E-6 : f32
    %167 = vector.broadcast %cst_77 : f32 to vector<8x8x1xf32>
    %168 = arith.addf %164, %167 : vector<8x8x1xf32>
    %169 = math.rsqrt %168 : vector<8x8x1xf32>
    %170 = vector.broadcast %169 : vector<8x8x1xf32> to vector<8x8x32xf32>
    %171 = arith.mulf %166, %170 : vector<8x8x32xf32>
    %172 = vector.extract_strided_slice %26 {offsets = [2, 0], sizes = [1, 32], strides = [1, 1]} : vector<4x32xf32> to vector<1x32xf32>
    %173 = vector.shape_cast %172 : vector<1x32xf32> to vector<32xf32>
    %174 = vector.shape_cast %173 : vector<32xf32> to vector<1x1x32xf32>
    %175 = vector.broadcast %174 : vector<1x1x32xf32> to vector<8x8x32xf32>
    %176 = arith.mulf %171, %175 : vector<8x8x32xf32>
    %177 = vector.extract_strided_slice %26 {offsets = [3, 0], sizes = [1, 32], strides = [1, 1]} : vector<4x32xf32> to vector<1x32xf32>
    %178 = vector.shape_cast %177 : vector<1x32xf32> to vector<32xf32>
    %179 = vector.shape_cast %178 : vector<32xf32> to vector<1x1x32xf32>
    %180 = vector.broadcast %179 : vector<1x1x32xf32> to vector<8x8x32xf32>
    %181 = arith.addf %176, %180 : vector<8x8x32xf32>
    %cst_78 = arith.constant dense<0.000000e+00> : vector<8xf32>
    %182 = vector.multi_reduction <add>, %63, %cst_78 [1] : vector<8x8xf32> to vector<8xf32>
    %183 = vector.shape_cast %182 : vector<8xf32> to vector<8x1xf32>
    %cst_79 = arith.constant 0.000000e+00 : f32
    %184 = vector.broadcast %cst_79 : f32 to vector<8x1xf32>
    %185 = arith.cmpf ogt, %183, %184 : vector<8x1xf32>
    %186 = arith.extui %185 : vector<8x1xi1> to vector<8x1xi32>
    %187 = arith.sitofp %186 : vector<8x1xi32> to vector<8x1xf32>
    %cst_80 = arith.constant dense<0.000000e+00> : vector<8x32xf32>
    %188 = vector.multi_reduction <add>, %181, %cst_80 [1] : vector<8x8x32xf32> to vector<8x32xf32>
    %cst_81 = arith.constant 1.000000e+00 : f32
    %189 = vector.broadcast %cst_81 : f32 to vector<8x1xf32>
    %190 = arith.maximumf %183, %189 : vector<8x1xf32>
    %191 = tpu.reciprocal %190 {approx = true} : vector<8x1xf32> -> vector<8x1xf32>
    %192 = vector.broadcast %191 : vector<8x1xf32> to vector<8x32xf32>
    %193 = arith.mulf %188, %192 : vector<8x32xf32>
    %194 = vector.broadcast %187 : vector<8x1xf32> to vector<8x32xf32>
    %195 = arith.mulf %193, %194 : vector<8x32xf32>
    %c0_82 = arith.constant 0 : index
    %c0_83 = arith.constant 0 : index
    %196 = vector.load %arg21[%c0_82, %c0_83] : memref<8x32xf32, #tpu.memory_space<vmem>>, vector<8x32xf32>
    tpu.vector_store %arg21[%c0_82, %c0_83], %195 {strides = array<i32>} : memref<8x32xf32, #tpu.memory_space<vmem>>, vector<8x32xf32>,
    %c0_84 = arith.constant 0 : index
    %c0_85 = arith.constant 0 : index
    %197 = vector.load %arg22[%c0_84, %c0_85] : memref<8x32xf32, #tpu.memory_space<vmem>>, vector<8x32xf32>
    tpu.vector_store %arg22[%c0_84, %c0_85], %13 {strides = array<i32>} : memref<8x32xf32, #tpu.memory_space<vmem>>, vector<8x32xf32>,
    return
  }
  func.func @transform_0(%arg0: i32) -> (i32, i32, i32) {
    %c0_i32 = arith.constant 0 : i32
    %c0_i32_0 = arith.constant 0 : i32
    %c0_i32_1 = arith.constant 0 : i32
    return %arg0, %c0_i32, %c0_i32_0 : i32, i32, i32
  }
  func.func @transform_1(%arg0: i32) -> (i32, i32) {
    %c0_i32 = arith.constant 0 : i32
    %c0_i32_0 = arith.constant 0 : i32
    return %arg0, %c0_i32 : i32, i32
  }
  func.func @transform_2(%arg0: i32) -> (i32, i32) {
    %c0_i32 = arith.constant 0 : i32
    %c0_i32_0 = arith.constant 0 : i32
    return %arg0, %c0_i32 : i32, i32
  }
  func.func @transform_3(%arg0: i32) -> (i32, i32) {
    %c0_i32 = arith.constant 0 : i32
    %c0_i32_0 = arith.constant 0 : i32
    %c0_i32_1 = arith.constant 0 : i32
    return %c0_i32, %c0_i32_0 : i32, i32
  }
  func.func @transform_4(%arg0: i32) -> (i32, i32) {
    %c0_i32 = arith.constant 0 : i32
    %c0_i32_0 = arith.constant 0 : i32
    %c0_i32_1 = arith.constant 0 : i32
    return %c0_i32, %c0_i32_0 : i32, i32
  }
  func.func @transform_5(%arg0: i32) -> (i32, i32) {
    %c0_i32 = arith.constant 0 : i32
    %c0_i32_0 = arith.constant 0 : i32
    %c0_i32_1 = arith.constant 0 : i32
    return %c0_i32, %c0_i32_0 : i32, i32
  }
  func.func @transform_6(%arg0: i32) -> (i32, i32) {
    %c0_i32 = arith.constant 0 : i32
    %c0_i32_0 = arith.constant 0 : i32
    %c0_i32_1 = arith.constant 0 : i32
    return %c0_i32, %c0_i32_0 : i32, i32
  }
  func.func @transform_7(%arg0: i32) -> (i32, i32) {
    %c0_i32 = arith.constant 0 : i32
    %c0_i32_0 = arith.constant 0 : i32
    %c0_i32_1 = arith.constant 0 : i32
    return %c0_i32, %c0_i32_0 : i32, i32
  }
  func.func @transform_8(%arg0: i32) -> (i32, i32) {
    %c0_i32 = arith.constant 0 : i32
    %c0_i32_0 = arith.constant 0 : i32
    %c0_i32_1 = arith.constant 0 : i32
    return %c0_i32, %c0_i32_0 : i32, i32
  }
  func.func @transform_9(%arg0: i32) -> (i32, i32) {
    %c0_i32 = arith.constant 0 : i32
    %c0_i32_0 = arith.constant 0 : i32
    %c0_i32_1 = arith.constant 0 : i32
    return %c0_i32, %c0_i32_0 : i32, i32
  }
  func.func @transform_10(%arg0: i32) -> (i32, i32) {
    %c0_i32 = arith.constant 0 : i32
    %c0_i32_0 = arith.constant 0 : i32
    %c0_i32_1 = arith.constant 0 : i32
    return %c0_i32, %c0_i32_0 : i32, i32
  }
  func.func @transform_11(%arg0: i32) -> (i32, i32) {
    %c0_i32 = arith.constant 0 : i32
    %c0_i32_0 = arith.constant 0 : i32
    %c0_i32_1 = arith.constant 0 : i32
    return %c0_i32, %c0_i32_0 : i32, i32
  }
  func.func @transform_12(%arg0: i32) -> (i32, i32) {
    %c0_i32 = arith.constant 0 : i32
    %c0_i32_0 = arith.constant 0 : i32
    %c0_i32_1 = arith.constant 0 : i32
    return %c0_i32, %c0_i32_0 : i32, i32
  }
  func.func @transform_13(%arg0: i32) -> (i32, i32) {
    %c0_i32 = arith.constant 0 : i32
    %c0_i32_0 = arith.constant 0 : i32
    %c0_i32_1 = arith.constant 0 : i32
    return %c0_i32, %c0_i32_0 : i32, i32
  }
  func.func @transform_14(%arg0: i32) -> (i32, i32) {
    %c0_i32 = arith.constant 0 : i32
    %c0_i32_0 = arith.constant 0 : i32
    %c0_i32_1 = arith.constant 0 : i32
    return %c0_i32, %c0_i32_0 : i32, i32
  }
  func.func @transform_15(%arg0: i32) -> (i32, i32) {
    %c0_i32 = arith.constant 0 : i32
    %c0_i32_0 = arith.constant 0 : i32
    %c0_i32_1 = arith.constant 0 : i32
    return %c0_i32, %c0_i32_0 : i32, i32
  }
  func.func @transform_16(%arg0: i32) -> (i32, i32) {
    %c0_i32 = arith.constant 0 : i32
    %c0_i32_0 = arith.constant 0 : i32
    %c0_i32_1 = arith.constant 0 : i32
    return %c0_i32, %c0_i32_0 : i32, i32
  }
  func.func @transform_17(%arg0: i32) -> (i32, i32) {
    %c0_i32 = arith.constant 0 : i32
    %c0_i32_0 = arith.constant 0 : i32
    %c0_i32_1 = arith.constant 0 : i32
    return %c0_i32, %c0_i32_0 : i32, i32
  }
  func.func @transform_18(%arg0: i32) -> (i32, i32) {
    %c0_i32 = arith.constant 0 : i32
    %c0_i32_0 = arith.constant 0 : i32
    %c0_i32_1 = arith.constant 0 : i32
    return %c0_i32, %c0_i32_0 : i32, i32
  }
  func.func @transform_19(%arg0: i32) -> (i32, i32) {
    %c0_i32 = arith.constant 0 : i32
    %c0_i32_0 = arith.constant 0 : i32
    %c0_i32_1 = arith.constant 0 : i32
    return %c0_i32, %c0_i32_0 : i32, i32
  }
  func.func @transform_20(%arg0: i32) -> (i32, i32) {
    %c0_i32 = arith.constant 0 : i32
    %c0_i32_0 = arith.constant 0 : i32
    return %arg0, %c0_i32 : i32, i32
  }
  func.func @transform_21(%arg0: i32) -> (i32, i32) {
    %c0_i32 = arith.constant 0 : i32
    %c0_i32_0 = arith.constant 0 : i32
    return %arg0, %c0_i32 : i32, i32
  }
}

module attributes {stable_mosaic.version = 11 : i64} {
  func.func @ctx_det_kernel(%arg0: i32, %arg1: memref<16x32xf32, #tpu.memory_space<vmem>>, %arg2: memref<16x32xf32, #tpu.memory_space<vmem>>, %arg3: memref<16x32xf32, #tpu.memory_space<vmem>>, %arg4: memref<32x32xbf16, #tpu.memory_space<vmem>>, %arg5: memref<1x32xf32, #tpu.memory_space<vmem>>, %arg6: memref<32x32xbf16, #tpu.memory_space<vmem>>, %arg7: memref<1x32xf32, #tpu.memory_space<vmem>>, %arg8: memref<32x32xbf16, #tpu.memory_space<vmem>>, %arg9: memref<1x32xf32, #tpu.memory_space<vmem>>, %arg10: memref<32x32xbf16, #tpu.memory_space<vmem>>, %arg11: memref<1x32xf32, #tpu.memory_space<vmem>>, %arg12: memref<4x32xf32, #tpu.memory_space<vmem>>, %arg13: memref<32x64xbf16, #tpu.memory_space<vmem>>, %arg14: memref<1x64xf32, #tpu.memory_space<vmem>>, %arg15: memref<64x32xbf16, #tpu.memory_space<vmem>>, %arg16: memref<1x32xf32, #tpu.memory_space<vmem>>, %arg17: memref<2x32xbf16, #tpu.memory_space<vmem>>, %arg18: memref<2x1xf32, #tpu.memory_space<vmem>>, %arg19: memref<2x16xf32, #tpu.memory_space<vmem>>) attributes {dimension_semantics = [#tpu.dimension_semantics<parallel>], iteration_bounds = array<i64: 1>, scalar_prefetch = 0 : i64, scratch_operands = 0 : i64, tpu.core_type = #tpu.core_type<tc>, window_params = [{transform_indices = @transform_0, window_bounds = array<i64: 16, 32>}, {transform_indices = @transform_1, window_bounds = array<i64: 16, 32>}, {transform_indices = @transform_2, window_bounds = array<i64: 16, 32>}, {pipeline_mode = #tpu.pipeline_mode<synchronous>, transform_indices = @transform_3, window_bounds = array<i64: 32, 32>}, {pipeline_mode = #tpu.pipeline_mode<synchronous>, transform_indices = @transform_4, window_bounds = array<i64: 1, 32>}, {pipeline_mode = #tpu.pipeline_mode<synchronous>, transform_indices = @transform_5, window_bounds = array<i64: 32, 32>}, {pipeline_mode = #tpu.pipeline_mode<synchronous>, transform_indices = @transform_6, window_bounds = array<i64: 1, 32>}, {pipeline_mode = #tpu.pipeline_mode<synchronous>, transform_indices = @transform_7, window_bounds = array<i64: 32, 32>}, {pipeline_mode = #tpu.pipeline_mode<synchronous>, transform_indices = @transform_8, window_bounds = array<i64: 1, 32>}, {pipeline_mode = #tpu.pipeline_mode<synchronous>, transform_indices = @transform_9, window_bounds = array<i64: 32, 32>}, {pipeline_mode = #tpu.pipeline_mode<synchronous>, transform_indices = @transform_10, window_bounds = array<i64: 1, 32>}, {pipeline_mode = #tpu.pipeline_mode<synchronous>, transform_indices = @transform_11, window_bounds = array<i64: 4, 32>}, {pipeline_mode = #tpu.pipeline_mode<synchronous>, transform_indices = @transform_12, window_bounds = array<i64: 32, 64>}, {pipeline_mode = #tpu.pipeline_mode<synchronous>, transform_indices = @transform_13, window_bounds = array<i64: 1, 64>}, {pipeline_mode = #tpu.pipeline_mode<synchronous>, transform_indices = @transform_14, window_bounds = array<i64: 64, 32>}, {pipeline_mode = #tpu.pipeline_mode<synchronous>, transform_indices = @transform_15, window_bounds = array<i64: 1, 32>}, {pipeline_mode = #tpu.pipeline_mode<synchronous>, transform_indices = @transform_16, window_bounds = array<i64: 2, 32>}, {pipeline_mode = #tpu.pipeline_mode<synchronous>, transform_indices = @transform_17, window_bounds = array<i64: 2, 1>}, {transform_indices = @transform_18, window_bounds = array<i64: 2, 16>}]} {
    %c0 = arith.constant 0 : index
    %c0_0 = arith.constant 0 : index
    %0 = vector.load %arg1[%c0, %c0_0] : memref<16x32xf32, #tpu.memory_space<vmem>>, vector<16x32xf32>
    %1 = vector.shape_cast %0 : vector<16x32xf32> to vector<16x1x32xf32>
    %c0_1 = arith.constant 0 : index
    %c0_2 = arith.constant 0 : index
    %2 = vector.load %arg2[%c0_1, %c0_2] : memref<16x32xf32, #tpu.memory_space<vmem>>, vector<16x32xf32>
    %3 = vector.shape_cast %2 : vector<16x32xf32> to vector<16x1x32xf32>
    %c0_3 = arith.constant 0 : index
    %c0_4 = arith.constant 0 : index
    %4 = vector.load %arg3[%c0_3, %c0_4] : memref<16x32xf32, #tpu.memory_space<vmem>>, vector<16x32xf32>
    %5 = vector.shape_cast %4 : vector<16x32xf32> to vector<16x1x32xf32>
    %6 = tpu.concatenate %1, %3, %5 in 1 : vector<16x1x32xf32>, vector<16x1x32xf32>, vector<16x1x32xf32> -> vector<16x3x32xf32>
    %c0_5 = arith.constant 0 : index
    %c0_6 = arith.constant 0 : index
    %7 = vector.load %arg4[%c0_5, %c0_6] : memref<32x32xbf16, #tpu.memory_space<vmem>>, vector<32x32xbf16>
    %c0_7 = arith.constant 0 : index
    %c0_8 = arith.constant 0 : index
    %8 = vector.load %arg5[%c0_7, %c0_8] : memref<1x32xf32, #tpu.memory_space<vmem>>, vector<1x32xf32>
    %c0_9 = arith.constant 0 : index
    %c0_10 = arith.constant 0 : index
    %9 = vector.load %arg6[%c0_9, %c0_10] : memref<32x32xbf16, #tpu.memory_space<vmem>>, vector<32x32xbf16>
    %c0_11 = arith.constant 0 : index
    %c0_12 = arith.constant 0 : index
    %10 = vector.load %arg7[%c0_11, %c0_12] : memref<1x32xf32, #tpu.memory_space<vmem>>, vector<1x32xf32>
    %c0_13 = arith.constant 0 : index
    %c0_14 = arith.constant 0 : index
    %11 = vector.load %arg8[%c0_13, %c0_14] : memref<32x32xbf16, #tpu.memory_space<vmem>>, vector<32x32xbf16>
    %c0_15 = arith.constant 0 : index
    %c0_16 = arith.constant 0 : index
    %12 = vector.load %arg9[%c0_15, %c0_16] : memref<1x32xf32, #tpu.memory_space<vmem>>, vector<1x32xf32>
    %c0_17 = arith.constant 0 : index
    %c0_18 = arith.constant 0 : index
    %13 = vector.load %arg10[%c0_17, %c0_18] : memref<32x32xbf16, #tpu.memory_space<vmem>>, vector<32x32xbf16>
    %c0_19 = arith.constant 0 : index
    %c0_20 = arith.constant 0 : index
    %14 = vector.load %arg11[%c0_19, %c0_20] : memref<1x32xf32, #tpu.memory_space<vmem>>, vector<1x32xf32>
    %c0_21 = arith.constant 0 : index
    %c0_22 = arith.constant 0 : index
    %15 = vector.load %arg12[%c0_21, %c0_22] : memref<4x32xf32, #tpu.memory_space<vmem>>, vector<4x32xf32>
    %c0_23 = arith.constant 0 : index
    %c0_24 = arith.constant 0 : index
    %16 = vector.load %arg13[%c0_23, %c0_24] : memref<32x64xbf16, #tpu.memory_space<vmem>>, vector<32x64xbf16>
    %c0_25 = arith.constant 0 : index
    %c0_26 = arith.constant 0 : index
    %17 = vector.load %arg14[%c0_25, %c0_26] : memref<1x64xf32, #tpu.memory_space<vmem>>, vector<1x64xf32>
    %c0_27 = arith.constant 0 : index
    %c0_28 = arith.constant 0 : index
    %18 = vector.load %arg15[%c0_27, %c0_28] : memref<64x32xbf16, #tpu.memory_space<vmem>>, vector<64x32xbf16>
    %c0_29 = arith.constant 0 : index
    %c0_30 = arith.constant 0 : index
    %19 = vector.load %arg16[%c0_29, %c0_30] : memref<1x32xf32, #tpu.memory_space<vmem>>, vector<1x32xf32>
    %20 = vector.shape_cast %6 : vector<16x3x32xf32> to vector<48x32xf32>
    %21 = arith.truncf %20 : vector<48x32xf32> to vector<48x32xbf16>
    %cst = arith.constant dense<0.000000e+00> : vector<48x32xf32>
    %22 = tpu.matmul %21, %7, %cst {dimension_numbers = #tpu.dot_dimension_numbers<[1], [0], [0], [1], [0, 0, 1, 1], [], []>} : vector<48x32xbf16>, vector<32x32xbf16>, vector<48x32xf32> -> vector<48x32xf32>
    %23 = vector.broadcast %8 : vector<1x32xf32> to vector<48x32xf32>
    %24 = arith.addf %22, %23 : vector<48x32xf32>
    %25 = vector.shape_cast %24 : vector<48x32xf32> to vector<16x3x32xf32>
    %cst_31 = arith.constant dense<0.000000e+00> : vector<48x32xf32>
    %26 = tpu.matmul %21, %9, %cst_31 {dimension_numbers = #tpu.dot_dimension_numbers<[1], [0], [0], [1], [0, 0, 1, 1], [], []>} : vector<48x32xbf16>, vector<32x32xbf16>, vector<48x32xf32> -> vector<48x32xf32>
    %27 = vector.broadcast %10 : vector<1x32xf32> to vector<48x32xf32>
    %28 = arith.addf %26, %27 : vector<48x32xf32>
    %29 = vector.shape_cast %28 : vector<48x32xf32> to vector<16x3x32xf32>
    %cst_32 = arith.constant dense<0.000000e+00> : vector<48x32xf32>
    %30 = tpu.matmul %21, %11, %cst_32 {dimension_numbers = #tpu.dot_dimension_numbers<[1], [0], [0], [1], [0, 0, 1, 1], [], []>} : vector<48x32xbf16>, vector<32x32xbf16>, vector<48x32xf32> -> vector<48x32xf32>
    %31 = vector.broadcast %12 : vector<1x32xf32> to vector<48x32xf32>
    %32 = arith.addf %30, %31 : vector<48x32xf32>
    %33 = vector.shape_cast %32 : vector<48x32xf32> to vector<16x3x32xf32>
    %cst_33 = arith.constant 3.200000e+01 : f32
    %34 = math.sqrt %cst_33 : f32
    %cst_34 = arith.constant 1.000000e+00 : f32
    %35 = arith.divf %cst_34, %34 : f32
    "tpu.trace_start"() <{level = 10 : i32, message = "nqd,nkd->nqk"}> : () -> ()
    %cst_35 = arith.constant dense<0.000000e+00> : vector<16x3x3xf32>
    %36 = tpu.matmul %25, %29, %cst_35 {dimension_numbers = #tpu.dot_dimension_numbers<[2], [2], [1], [1], [0, 0, 0, 1, 1, 1], [0], [0]>} : vector<16x3x32xf32>, vector<16x3x32xf32>, vector<16x3x3xf32> -> vector<16x3x3xf32>
    "tpu.trace_stop"() : () -> ()
    %37 = vector.broadcast %35 : f32 to vector<16x3x3xf32>
    %38 = arith.mulf %36, %37 : vector<16x3x3xf32>
    %cst_36 = arith.constant dense<0xFF800000> : vector<16x3xf32>
    %39 = vector.multi_reduction <maximumf>, %38, %cst_36 [2] : vector<16x3x3xf32> to vector<16x3xf32>
    %40 = vector.shape_cast %39 : vector<16x3xf32> to vector<16x3x1xf32>
    %41 = vector.broadcast %40 : vector<16x3x1xf32> to vector<16x3x3xf32>
    %42 = arith.subf %38, %41 : vector<16x3x3xf32>
    %43 = math.exp %42 : vector<16x3x3xf32>
    %cst_37 = arith.constant dense<0.000000e+00> : vector<16x3xf32>
    %44 = vector.multi_reduction <add>, %43, %cst_37 [2] : vector<16x3x3xf32> to vector<16x3xf32>
    %45 = vector.shape_cast %44 : vector<16x3xf32> to vector<16x3x1xf32>
    %cst_38 = arith.constant 9.99999996E-13 : f32
    %46 = vector.broadcast %cst_38 : f32 to vector<16x3x1xf32>
    %47 = arith.maximumf %45, %46 : vector<16x3x1xf32>
    %48 = tpu.reciprocal %47 {approx = true} : vector<16x3x1xf32> -> vector<16x3x1xf32>
    %49 = vector.broadcast %48 : vector<16x3x1xf32> to vector<16x3x3xf32>
    %50 = arith.mulf %43, %49 : vector<16x3x3xf32>
    "tpu.trace_start"() <{level = 10 : i32, message = "nqk,nkd->nqd"}> : () -> ()
    %cst_39 = arith.constant dense<0.000000e+00> : vector<16x3x32xf32>
    %51 = tpu.matmul %50, %33, %cst_39 {dimension_numbers = #tpu.dot_dimension_numbers<[2], [1], [1], [2], [0, 0, 0, 1, 1, 2], [0], [0]>} : vector<16x3x3xf32>, vector<16x3x32xf32>, vector<16x3x32xf32> -> vector<16x3x32xf32>
    "tpu.trace_stop"() : () -> ()
    %52 = vector.shape_cast %51 : vector<16x3x32xf32> to vector<48x32xf32>
    %53 = arith.truncf %52 : vector<48x32xf32> to vector<48x32xbf16>
    %cst_40 = arith.constant dense<0.000000e+00> : vector<48x32xf32>
    %54 = tpu.matmul %53, %13, %cst_40 {dimension_numbers = #tpu.dot_dimension_numbers<[1], [0], [0], [1], [0, 0, 1, 1], [], []>} : vector<48x32xbf16>, vector<32x32xbf16>, vector<48x32xf32> -> vector<48x32xf32>
    %55 = vector.broadcast %14 : vector<1x32xf32> to vector<48x32xf32>
    %56 = arith.addf %54, %55 : vector<48x32xf32>
    %57 = vector.shape_cast %56 : vector<48x32xf32> to vector<16x3x32xf32>
    %58 = arith.addf %6, %57 : vector<16x3x32xf32>
    %cst_41 = arith.constant dense<0.000000e+00> : vector<16x3xf32>
    %59 = vector.multi_reduction <add>, %58, %cst_41 [2] : vector<16x3x32xf32> to vector<16x3xf32>
    %60 = vector.shape_cast %59 : vector<16x3xf32> to vector<16x3x1xf32>
    %cst_42 = arith.constant 3.200000e+01 : f32
    %61 = vector.broadcast %cst_42 : f32 to vector<16x3x1xf32>
    %62 = arith.divf %60, %61 : vector<16x3x1xf32>
    %63 = vector.broadcast %62 : vector<16x3x1xf32> to vector<16x3x32xf32>
    %64 = arith.subf %58, %63 : vector<16x3x32xf32>
    %65 = arith.mulf %64, %64 : vector<16x3x32xf32>
    %cst_43 = arith.constant dense<0.000000e+00> : vector<16x3xf32>
    %66 = vector.multi_reduction <add>, %65, %cst_43 [2] : vector<16x3x32xf32> to vector<16x3xf32>
    %67 = vector.shape_cast %66 : vector<16x3xf32> to vector<16x3x1xf32>
    %cst_44 = arith.constant 3.200000e+01 : f32
    %68 = vector.broadcast %cst_44 : f32 to vector<16x3x1xf32>
    %69 = arith.divf %67, %68 : vector<16x3x1xf32>
    %70 = vector.broadcast %62 : vector<16x3x1xf32> to vector<16x3x32xf32>
    %71 = arith.subf %58, %70 : vector<16x3x32xf32>
    %cst_45 = arith.constant 9.99999974E-6 : f32
    %72 = vector.broadcast %cst_45 : f32 to vector<16x3x1xf32>
    %73 = arith.addf %69, %72 : vector<16x3x1xf32>
    %74 = math.rsqrt %73 : vector<16x3x1xf32>
    %75 = vector.broadcast %74 : vector<16x3x1xf32> to vector<16x3x32xf32>
    %76 = arith.mulf %71, %75 : vector<16x3x32xf32>
    %77 = vector.extract_strided_slice %15 {offsets = [0, 0], sizes = [1, 32], strides = [1, 1]} : vector<4x32xf32> to vector<1x32xf32>
    %78 = vector.shape_cast %77 : vector<1x32xf32> to vector<32xf32>
    %79 = vector.shape_cast %78 : vector<32xf32> to vector<1x1x32xf32>
    %80 = vector.broadcast %79 : vector<1x1x32xf32> to vector<16x3x32xf32>
    %81 = arith.mulf %76, %80 : vector<16x3x32xf32>
    %82 = vector.extract_strided_slice %15 {offsets = [1, 0], sizes = [1, 32], strides = [1, 1]} : vector<4x32xf32> to vector<1x32xf32>
    %83 = vector.shape_cast %82 : vector<1x32xf32> to vector<32xf32>
    %84 = vector.shape_cast %83 : vector<32xf32> to vector<1x1x32xf32>
    %85 = vector.broadcast %84 : vector<1x1x32xf32> to vector<16x3x32xf32>
    %86 = arith.addf %81, %85 : vector<16x3x32xf32>
    %87 = vector.shape_cast %86 : vector<16x3x32xf32> to vector<48x32xf32>
    %88 = arith.truncf %87 : vector<48x32xf32> to vector<48x32xbf16>
    %cst_46 = arith.constant dense<0.000000e+00> : vector<48x64xf32>
    %89 = tpu.matmul %88, %16, %cst_46 {dimension_numbers = #tpu.dot_dimension_numbers<[1], [0], [0], [1], [0, 0, 1, 1], [], []>} : vector<48x32xbf16>, vector<32x64xbf16>, vector<48x64xf32> -> vector<48x64xf32>
    %90 = vector.broadcast %17 : vector<1x64xf32> to vector<48x64xf32>
    %91 = arith.addf %89, %90 : vector<48x64xf32>
    %cst_47 = arith.constant 0.000000e+00 : f32
    %92 = vector.broadcast %cst_47 : f32 to vector<48x64xf32>
    %93 = arith.maximumf %91, %92 : vector<48x64xf32>
    %94 = arith.truncf %93 : vector<48x64xf32> to vector<48x64xbf16>
    %cst_48 = arith.constant dense<0.000000e+00> : vector<48x32xf32>
    %95 = tpu.matmul %94, %18, %cst_48 {dimension_numbers = #tpu.dot_dimension_numbers<[1], [0], [0], [1], [0, 0, 1, 1], [], []>} : vector<48x64xbf16>, vector<64x32xbf16>, vector<48x32xf32> -> vector<48x32xf32>
    %96 = vector.broadcast %19 : vector<1x32xf32> to vector<48x32xf32>
    %97 = arith.addf %95, %96 : vector<48x32xf32>
    %98 = vector.shape_cast %97 : vector<48x32xf32> to vector<16x3x32xf32>
    %99 = arith.addf %86, %98 : vector<16x3x32xf32>
    %cst_49 = arith.constant dense<0.000000e+00> : vector<16x3xf32>
    %100 = vector.multi_reduction <add>, %99, %cst_49 [2] : vector<16x3x32xf32> to vector<16x3xf32>
    %101 = vector.shape_cast %100 : vector<16x3xf32> to vector<16x3x1xf32>
    %cst_50 = arith.constant 3.200000e+01 : f32
    %102 = vector.broadcast %cst_50 : f32 to vector<16x3x1xf32>
    %103 = arith.divf %101, %102 : vector<16x3x1xf32>
    %104 = vector.broadcast %103 : vector<16x3x1xf32> to vector<16x3x32xf32>
    %105 = arith.subf %99, %104 : vector<16x3x32xf32>
    %106 = arith.mulf %105, %105 : vector<16x3x32xf32>
    %cst_51 = arith.constant dense<0.000000e+00> : vector<16x3xf32>
    %107 = vector.multi_reduction <add>, %106, %cst_51 [2] : vector<16x3x32xf32> to vector<16x3xf32>
    %108 = vector.shape_cast %107 : vector<16x3xf32> to vector<16x3x1xf32>
    %cst_52 = arith.constant 3.200000e+01 : f32
    %109 = vector.broadcast %cst_52 : f32 to vector<16x3x1xf32>
    %110 = arith.divf %108, %109 : vector<16x3x1xf32>
    %111 = vector.broadcast %103 : vector<16x3x1xf32> to vector<16x3x32xf32>
    %112 = arith.subf %99, %111 : vector<16x3x32xf32>
    %cst_53 = arith.constant 9.99999974E-6 : f32
    %113 = vector.broadcast %cst_53 : f32 to vector<16x3x1xf32>
    %114 = arith.addf %110, %113 : vector<16x3x1xf32>
    %115 = math.rsqrt %114 : vector<16x3x1xf32>
    %116 = vector.broadcast %115 : vector<16x3x1xf32> to vector<16x3x32xf32>
    %117 = arith.mulf %112, %116 : vector<16x3x32xf32>
    %118 = vector.extract_strided_slice %15 {offsets = [2, 0], sizes = [1, 32], strides = [1, 1]} : vector<4x32xf32> to vector<1x32xf32>
    %119 = vector.shape_cast %118 : vector<1x32xf32> to vector<32xf32>
    %120 = vector.shape_cast %119 : vector<32xf32> to vector<1x1x32xf32>
    %121 = vector.broadcast %120 : vector<1x1x32xf32> to vector<16x3x32xf32>
    %122 = arith.mulf %117, %121 : vector<16x3x32xf32>
    %123 = vector.extract_strided_slice %15 {offsets = [3, 0], sizes = [1, 32], strides = [1, 1]} : vector<4x32xf32> to vector<1x32xf32>
    %124 = vector.shape_cast %123 : vector<1x32xf32> to vector<32xf32>
    %125 = vector.shape_cast %124 : vector<32xf32> to vector<1x1x32xf32>
    %126 = vector.broadcast %125 : vector<1x1x32xf32> to vector<16x3x32xf32>
    %127 = arith.addf %122, %126 : vector<16x3x32xf32>
    %cst_54 = arith.constant dense<0.000000e+00> : vector<16x32xf32>
    %128 = vector.multi_reduction <add>, %127, %cst_54 [1] : vector<16x3x32xf32> to vector<16x32xf32>
    %cst_55 = arith.constant 3.000000e+00 : f32
    %129 = vector.broadcast %cst_55 : f32 to vector<16x32xf32>
    %130 = arith.divf %128, %129 : vector<16x32xf32>
    %c0_56 = arith.constant 0 : index
    %c0_57 = arith.constant 0 : index
    %131 = vector.load %arg17[%c0_56, %c0_57] : memref<2x32xbf16, #tpu.memory_space<vmem>>, vector<2x32xbf16>
    %132 = arith.truncf %130 : vector<16x32xf32> to vector<16x32xbf16>
    %cst_58 = arith.constant dense<0.000000e+00> : vector<2x16xf32>
    %133 = tpu.matmul %131, %132, %cst_58 {dimension_numbers = #tpu.dot_dimension_numbers<[1], [1], [0], [0], [0, 0, 1, 0], [], []>} : vector<2x32xbf16>, vector<16x32xbf16>, vector<2x16xf32> -> vector<2x16xf32>
    %c0_59 = arith.constant 0 : index
    %c0_60 = arith.constant 0 : index
    %134 = vector.load %arg18[%c0_59, %c0_60] : memref<2x1xf32, #tpu.memory_space<vmem>>, vector<2x1xf32>
    %135 = vector.broadcast %134 : vector<2x1xf32> to vector<2x16xf32>
    %136 = arith.addf %133, %135 : vector<2x16xf32>
    %137 = arith.negf %136 : vector<2x16xf32>
    %138 = math.exp %137 : vector<2x16xf32>
    %cst_61 = arith.constant 1.000000e+00 : f32
    %139 = vector.broadcast %cst_61 : f32 to vector<2x16xf32>
    %140 = arith.addf %139, %138 : vector<2x16xf32>
    %141 = arith.divf %139, %140 : vector<2x16xf32>
    %c0_62 = arith.constant 0 : index
    %c0_63 = arith.constant 0 : index
    %142 = vector.load %arg19[%c0_62, %c0_63] : memref<2x16xf32, #tpu.memory_space<vmem>>, vector<2x16xf32>
    tpu.vector_store %arg19[%c0_62, %c0_63], %141 {strides = array<i32>} : memref<2x16xf32, #tpu.memory_space<vmem>>, vector<2x16xf32>,
    return
  }
  func.func @transform_0(%arg0: i32) -> (i32, i32) {
    %c0_i32 = arith.constant 0 : i32
    %c0_i32_0 = arith.constant 0 : i32
    return %arg0, %c0_i32 : i32, i32
  }
  func.func @transform_1(%arg0: i32) -> (i32, i32) {
    %c0_i32 = arith.constant 0 : i32
    %c0_i32_0 = arith.constant 0 : i32
    return %arg0, %c0_i32 : i32, i32
  }
  func.func @transform_2(%arg0: i32) -> (i32, i32) {
    %c0_i32 = arith.constant 0 : i32
    %c0_i32_0 = arith.constant 0 : i32
    return %arg0, %c0_i32 : i32, i32
  }
  func.func @transform_3(%arg0: i32) -> (i32, i32) {
    %c0_i32 = arith.constant 0 : i32
    %c0_i32_0 = arith.constant 0 : i32
    %c0_i32_1 = arith.constant 0 : i32
    return %c0_i32, %c0_i32_0 : i32, i32
  }
  func.func @transform_4(%arg0: i32) -> (i32, i32) {
    %c0_i32 = arith.constant 0 : i32
    %c0_i32_0 = arith.constant 0 : i32
    %c0_i32_1 = arith.constant 0 : i32
    return %c0_i32, %c0_i32_0 : i32, i32
  }
  func.func @transform_5(%arg0: i32) -> (i32, i32) {
    %c0_i32 = arith.constant 0 : i32
    %c0_i32_0 = arith.constant 0 : i32
    %c0_i32_1 = arith.constant 0 : i32
    return %c0_i32, %c0_i32_0 : i32, i32
  }
  func.func @transform_6(%arg0: i32) -> (i32, i32) {
    %c0_i32 = arith.constant 0 : i32
    %c0_i32_0 = arith.constant 0 : i32
    %c0_i32_1 = arith.constant 0 : i32
    return %c0_i32, %c0_i32_0 : i32, i32
  }
  func.func @transform_7(%arg0: i32) -> (i32, i32) {
    %c0_i32 = arith.constant 0 : i32
    %c0_i32_0 = arith.constant 0 : i32
    %c0_i32_1 = arith.constant 0 : i32
    return %c0_i32, %c0_i32_0 : i32, i32
  }
  func.func @transform_8(%arg0: i32) -> (i32, i32) {
    %c0_i32 = arith.constant 0 : i32
    %c0_i32_0 = arith.constant 0 : i32
    %c0_i32_1 = arith.constant 0 : i32
    return %c0_i32, %c0_i32_0 : i32, i32
  }
  func.func @transform_9(%arg0: i32) -> (i32, i32) {
    %c0_i32 = arith.constant 0 : i32
    %c0_i32_0 = arith.constant 0 : i32
    %c0_i32_1 = arith.constant 0 : i32
    return %c0_i32, %c0_i32_0 : i32, i32
  }
  func.func @transform_10(%arg0: i32) -> (i32, i32) {
    %c0_i32 = arith.constant 0 : i32
    %c0_i32_0 = arith.constant 0 : i32
    %c0_i32_1 = arith.constant 0 : i32
    return %c0_i32, %c0_i32_0 : i32, i32
  }
  func.func @transform_11(%arg0: i32) -> (i32, i32) {
    %c0_i32 = arith.constant 0 : i32
    %c0_i32_0 = arith.constant 0 : i32
    %c0_i32_1 = arith.constant 0 : i32
    return %c0_i32, %c0_i32_0 : i32, i32
  }
  func.func @transform_12(%arg0: i32) -> (i32, i32) {
    %c0_i32 = arith.constant 0 : i32
    %c0_i32_0 = arith.constant 0 : i32
    %c0_i32_1 = arith.constant 0 : i32
    return %c0_i32, %c0_i32_0 : i32, i32
  }
  func.func @transform_13(%arg0: i32) -> (i32, i32) {
    %c0_i32 = arith.constant 0 : i32
    %c0_i32_0 = arith.constant 0 : i32
    %c0_i32_1 = arith.constant 0 : i32
    return %c0_i32, %c0_i32_0 : i32, i32
  }
  func.func @transform_14(%arg0: i32) -> (i32, i32) {
    %c0_i32 = arith.constant 0 : i32
    %c0_i32_0 = arith.constant 0 : i32
    %c0_i32_1 = arith.constant 0 : i32
    return %c0_i32, %c0_i32_0 : i32, i32
  }
  func.func @transform_15(%arg0: i32) -> (i32, i32) {
    %c0_i32 = arith.constant 0 : i32
    %c0_i32_0 = arith.constant 0 : i32
    %c0_i32_1 = arith.constant 0 : i32
    return %c0_i32, %c0_i32_0 : i32, i32
  }
  func.func @transform_16(%arg0: i32) -> (i32, i32) {
    %c0_i32 = arith.constant 0 : i32
    %c0_i32_0 = arith.constant 0 : i32
    %c0_i32_1 = arith.constant 0 : i32
    return %c0_i32, %c0_i32_0 : i32, i32
  }
  func.func @transform_17(%arg0: i32) -> (i32, i32) {
    %c0_i32 = arith.constant 0 : i32
    %c0_i32_0 = arith.constant 0 : i32
    %c0_i32_1 = arith.constant 0 : i32
    return %c0_i32, %c0_i32_0 : i32, i32
  }
  func.func @transform_18(%arg0: i32) -> (i32, i32) {
    %c0_i32 = arith.constant 0 : i32
    %c0_i32_0 = arith.constant 0 : i32
    return %c0_i32, %arg0 : i32, i32
  }
}

</mosaic_0001>

<bundles_post_ra>
// kernel: event_detection_forward.4
= control target key start
LH: loop header
LB: loop body
LE: loop exit
PB: predicated region body
PF: predicated region fallthrough
CT: control target
= control target key end

     0   :  { %s5091_s0 = inlined_call_operand.vmem [shape: bf16[16,8,48], index: 0, kind: input, shape index: {}]   ;;  %s5092_s1 = inlined_call_operand.vmem [shape: bf16[16,32], index: 1, kind: input, shape index: {}]   ;;  %s5093_s2 = inlined_call_operand.vmem [shape: f32[16,8], index: 2, kind: input, shape index: {}]   ;;  %s5094_s3 = inlined_call_operand.vmem [shape: bf16[48,32], index: 3, kind: input, shape index: {}]   ;;  %s5095_s4 = inlined_call_operand.vmem [shape: f32[1,32], index: 4, kind: input, shape index: {}]   ;;  %s5096_s5 = inlined_call_operand.vmem [shape: bf16[32,32], index: 5, kind: input, shape index: {}]   ;;  %s5097_s6 = inlined_call_operand.vmem [shape: f32[1,32], index: 6, kind: input, shape index: {}]   ;;  %s5098_s7 = inlined_call_operand.vmem [shape: bf16[32,32], index: 7, kind: input, shape index: {}]   ;;  %s5099_s8 = inlined_call_operand.vmem [shape: f32[1,32], index: 8, kind: input, shape index: {}]   ;;  %s5100_s9 = inlined_call_operand.vmem [shape: bf16[32,32], index: 9, kind: input, shape index: {}]   ;;  %s5101_s10 = inlined_call_operand.vmem [shape: f32[1,32], index: 10, kind: input, shape index: {}]   ;;  %s5102_s11 = inlined_call_operand.vmem [shape: bf16[32,32], index: 11, kind: input, shape index: {}]   ;;  %s5103_s12 = inlined_call_operand.vmem [shape: f32[1,32], index: 12, kind: input, shape index: {}]   ;;  %s5104_s13 = inlined_call_operand.vmem [shape: bf16[32,32], index: 13, kind: input, shape index: {}]   ;;  %s5105_s14 = inlined_call_operand.vmem [shape: f32[1,32], index: 14, kind: input, shape index: {}]   ;;  %s5106_s15 = inlined_call_operand.vmem [shape: f32[4,32], index: 15, kind: input, shape index: {}]   ;;  %s5107_s16 = inlined_call_operand.vmem [shape: bf16[32,64], index: 16, kind: input, shape index: {}]   ;;  %s5108_s17 = inlined_call_operand.vmem [shape: f32[1,64], index: 17, kind: input, shape index: {}]   ;;  %s5109_s18 = inlined_call_operand.vmem [shape: bf16[64,32], index: 18, kind: input, shape index: {}]   ;;  %s5110_s19 = inlined_call_operand.vmem [shape: f32[1,32], index: 19, kind: input, shape index: {}]   ;;  %s5111_s20 = inlined_call_operand.vmem [shape: f32[16,32], index: 20, kind: output, shape index: {0}]   ;;  %s5112_s21 = inlined_call_operand.vmem [shape: f32[16,32], index: 21, kind: output, shape index: {1}]  }
   0x1   :  { %5115 = sst [smem:[#allocation2_spill]] %s5091_s0 }
   0x2   :  { %5116 = sst [smem:[#allocation3_spill]] %s5092_s1 }
   0x3   :  { %5117 = sst [smem:[#allocation4_spill]] %s5093_s2  ;;  %s4383_s2 = smov 0  }
   0x4   :  { %5118 = sst [smem:[#allocation5_spill]] %s5094_s3 }
   0x5   :  { %5119 = sst [smem:[#allocation6_spill]] %s5095_s4 }
   0x6   :  { %5120 = sst [smem:[#allocation7_spill]] %s5096_s5 }
   0x7 LB: > { %s3781_s25 = sadd.s32 4294967295, %s4267_s2   ;;  %p3785_p0 = scmp.ge.s32.totalorder %s4267_s2, 1  ;;  %s4267_s2 = sphi %s4383_s2, %s32_s2  }
   0x8   : > { %p609_p1 = scmp.lt.s32.totalorder %s4267_s2, 3 }
   0xa   : > { %p610_p2 = pnand %p3785_p0, %p609_p1 }
   0xb   : > { %s5121_s3 = sld [smem:[#allocation5_spill]] (!%p610_p2)  ;;  %s3786_s28 = sshll.u32 (!%p610_p2), %s3781_s25, 3  ;;  %vm762_vm0 = vcmask (!%p610_p2), 392192   ;;  %v4269_v7 = vmov (!%p610_p2), 0.0   ;;  %vm4270_vm1 = vmmov (!%p610_p2), 0   ;;  %vm864_vm2 = vcmask (!%p610_p2), 261120  }
   0xc   : > { %613 = sbr.rel (%p610_p2) target bundleno = 2639 (0xa4f), region = 100  ;;  %p681_p3 = scmp.lt.s32.totalorder (!%p610_p2), %s3786_s28, 15  ;;  %v4159_v11 = vld [vmem:[%s5098_s7] sm:$0xff] (!%p610_p2)   ;;  %v4161_v13 = vld [vmem:[%s5098_s7 + $0x8] sm:$0xff] (!%p610_p2)   ;;  %v4271_v27 = vmov (!%p610_p2), 1966171168   ;;  %v913_v29 = vlaneseq (!%p610_p2) }
   0xd   : > { %s5122_s1 = sld [smem:[#allocation2_spill]] (!%p610_p2)  ;;  %p686_p4 = scmp.lt.s32.totalorder (!%p610_p2), %s3781_s25, 1  ;;  %v4160_v12 = vld [vmem:[%s5100_s9] sm:$0xff] (!%p610_p2)   ;;  %3982 = vmatprep.subr.bf16.mxu1 (!%p610_p2), %v4159_v11  ;;  %v4162_v14 = vld [vmem:[%s5100_s9 + $0x8] sm:$0xff] (!%p610_p2)   ;;  %v911_v28 = vunpack.c.l.s4 (!%p610_p2), %v4271_v27  ;;  %vm1173_vm4 = vcmask (!%p610_p2), 1041409   ;;  %vm1175_vm5 = vcmask (!%p610_p2), 1042434  }
   0xe   : > { %s5123_s29 = sld [smem:[#allocation7_spill]] (!%p610_p2)  ;;  %s5124_s22 = sld [smem:[#allocation3_spill]] (!%p610_p2)  ;;  %3983 = vmatpush3.bf16.msra.mxu1 (!%p610_p2), %v4159_v11  ;;  %v4163_v15 = vld [vmem:[%s5102_s11] sm:$0xff] (!%p610_p2)   ;;  %v4164_v30 = vld [vmem:[%s5102_s11 + $0x8] sm:$0xff] (!%p610_p2)   ;;  %v4465_v37 = vshrl.u32 (!%p610_p2), %v913_v29, 7  ;;  %vm1177_vm7 = vcmask (!%p610_p2), 1043459  }
   0xf   : > { %3984 = vmatprep.subr.bf16.mxu1 (!%p610_p2), %v4161_v13  ;;  %v912_v36 = vunpack.c.0.s8 (!%p610_p2), %v911_v28  ;;  %v3804_v42 = vld [vmem:[%s5097_s6] ss:$0 sm:$0xff] (!%p610_p2)  ;;  %vm1179_vm10 = vcmask (!%p610_p2), 1044484   ;;  %vm1181_vm14 = vcmask (!%p610_p2), 1045509  }
  0x10   : > { %v4500_v51 = vsub.s32 (!%p610_p2), 0, %v4465_v37 }
  0x11   : > { %v4150_v0 = vld [vmem:[%s5121_s3] sm:$0xff] (!%p610_p2)   ;;  %v4151_v1 = vld [vmem:[%s5121_s3 + $0x8] sm:$0xff] (!%p610_p2)   ;;  %v4152_v2 = vld [vmem:[%s5121_s3 + $0x10] sm:$0xff] (!%p610_p2)   ;;  %v4484_v44 = vsub.s32 (!%p610_p2), %v912_v36, %v4465_v37 }
  0x12   : > { %3960 = vmatprep.subr.bf16.mxu0 (!%p610_p2), %v4150_v0  ;;  %3985 = vmatpush3.bf16.msra.mxu1 (!%p610_p2), %v4161_v13 }
  0x13   : > { %3961 = vmatpush3.bf16.msra.mxu0 %v4150_v0  ;;  %s5128_s28 = smov (!%p681_p3, %s3786_s28), 15  ;;  %s5130_s25 = smov (!%p686_p4, %s3781_s25), 1  ;;  %4006 = vmatprep.subr.bf16.mxu1 %v4163_v15 }
  0x14   : > { %3962 = vmatprep.subr.bf16.mxu0 %v4151_v1  ;;  %s3787_s5 = sshll.u32 %s5128_s28, 2  ;;  %v4155_v4 = vld [vmem:[%s5123_s29] sm:$0xff]   ;;  %v4158_v8 = vld [vmem:[%s5123_s29 + $0x8] sm:$0xff]   ;;  %s3788_s4 = sshll.u32 %s5130_s25, 2 }
  0x15   : > { %s684_s24 = scalar_lea.vmem %s5122_s1, %s3787_s5  ;;  %s689_s23 = scalar_lea.vmem %s5124_s22, %s3788_s4 }
  0x16   : > { %v4153_v3 = vld [vmem:[%s684_s24] sm:$0xff]   ;;  %v4154_v5 = vld [vmem:[%s684_s24 + $0x8] sm:$0xff]   ;;  %v4156_v6 = vld [vmem:[%s684_s24 + $0x10] sm:$0xff]   ;;  %s4474_s28 = sshll.u32 %s5130_s25, 3  ;;  %s5126_s1 = sld [smem:[#allocation4_spill]] }
  0x17   : > { %3963 = vmatpush3.bf16.msra.mxu0 %v4151_v1  ;;  %3966 = vmatprep.mubr.msk.bf16.mxu0 %vm762_vm0, %v4153_v3  ;;  %v4157_v9 = vld [vmem:[%s684_s24 + $0x18] sm:$0xff]   ;;  %v840_v10 = vld [vmem:[%s689_s23] sm:$0xf]  ;;  %s5125_s24 = sld [smem:[#allocation6_spill]]  ;;  %s701_s5 = scalar_lea.vmem %s5112_s21, %s4474_s28 }
  0x18   : > { %3964 = vmatprep.subr.bf16.mxu0 %v4152_v2 }
  0x1b   : > { %3965 = vmatpush3.bf16.msra.mxu0 %v4152_v2 }
  0x1c   : > { %3974 = vmatprep.subr.bf16.mxu0 %v4269_v7 }
  0x1d   : > { %v3792_v17 = vld [vmem:[%s5125_s24] ss:$0 sm:$0xff]  ;;  %s693_s24 = scalar_lea.vmem %s5126_s1, %s4474_s28 }
  0x1e   : > { %3967 = vmatmul.mubr.msk.bf16.vlgmr.msra.gmra.mrb[0].mxu0 %vm762_vm0, %v4154_v5 }
  0x1f   : > { %3975 = vmatpush3.bf16.msra.mxu0 %v4155_v4  ;;  %3970 = vmatprep.mubr.msk.bf16.mxu0 %vm762_vm0, %v4156_v6 }
  0x20   : > { %3976 = vmatprep.subr.bf16.mxu0 %v4269_v7 }
  0x23   : > { %3977 = vmatpush3.bf16.msra.mxu0 %v4158_v8 }
  0x24   : > { %3994 = vmatprep.subr.bf16.mxu0 %v4160_v12 }
  0x26   : > { %3971 = vmatmul.mubr.msk.bf16.gmra.mrb[4].mxu0 %vm762_vm0, %v4157_v9 }
  0x27   : > { %3978 = vmatprep.mubr.msk.bf16.mxu0 %vm4270_vm1, %v4269_v7 }
  0x2e   : > { %3979 = vmatmul.mubr.msk.bf16.vlgmr.msra.gmra.mrb[8].mxu0 %vm864_vm2, %v840_v10 }
  0x2f   : > { %3995 = vmatpush3.bf16.msra.mxu0 %v4160_v12 }
  0x30   : > { %3996 = vmatprep.subr.bf16.mxu0 %v4162_v14 }
  0x33   : > { %3997 = vmatpush3.bf16.msra.mxu0 %v4162_v14 }
  0x34   : > { %4018 = vmatprep.subr.mxu0 %v4269_v7 }
  0xf1   : > { %v3968_v16 = vpop.f32.mrb[0].mxu0 }
  0xf2   : > { %v809_v18 = vpop.f32.mrb[1].mxu0  ;;  %v4449_v24 = vadd.f32 %v3968_v16, %v3792_v17 }
  0xf3   : > { %v3969_v19 = vpop.f32.mrb[2].mxu0  ;;  %v4445_v22 = vadd.f32 %v3792_v17, %v809_v18 }
  0xf4   : > { %v4443_v20 = vadd.f32 %v3969_v19, %v3792_v17  ;;  %v812_v21 = vpop.f32.mrb[3].mxu0 }
  0xf5   : > { %v4447_v23 = vadd.f32 %v3792_v17, %v812_v21 }
  0xf6   : > { %v1215_v26 = vpack.c.bf16 %v4443_v20, %v4449_v24 }
  0xf7   : > { %v1214_v25 = vpack.c.bf16 %v4447_v23, %v4445_v22 }
  0xf9   : > { %v3972_v31 = vpop.f32.mrb[4].mxu0  ;;  %3986 = vmatprep.mubr.msk.bf16.mxu1 %vm864_vm2, %v1214_v25  ;;  %3998 = vmatprep.mubr.msk.bf16.mxu0 %vm864_vm2, %v1214_v25 }
  0xfa   : > { %v825_v32 = vpop.f32.mrb[5].mxu0  ;;  %3987 = vmatmul.mubr.msk.bf16.vlgmr.msra.gmra.mrb[0].mxu1 %vm864_vm2, %v1215_v26  ;;  %3999 = vmatmul.mubr.msk.bf16.vlgmr.msra.gmra.mrb[12].mxu0 %vm864_vm2, %v1215_v26  ;;  %v4471_v40 = vadd.f32 %v3972_v31, %v3792_v17 }
  0xfb   : > { %v3973_v33 = vpop.f32.mrb[6].mxu0  ;;  %4007 = vmatpush3.bf16.msra.mxu1 %v4163_v15  ;;  %v4467_v38 = vadd.f32 %v3792_v17, %v825_v32 }
  0xfc   : > { %v4462_v34 = vadd.f32 %v3973_v33, %v3792_v17  ;;  %v828_v35 = vpop.f32.mrb[7].mxu0  ;;  %4008 = vmatprep.subr.bf16.mxu1 %v4164_v30 }
  0xfd   : > { %v4469_v39 = vadd.f32 %v3792_v17, %v828_v35 }
  0xfe   : > { %v1217_v43 = vpack.c.bf16 %v4462_v34, %v4471_v40 }
  0xff   : > { %v1216_v41 = vpack.c.bf16 %v4469_v39, %v4467_v38  ;;  %4009 = vmatpush3.bf16.msra.mxu1 %v4164_v30 }
 0x100   : > { %4028 = vmatprep.subr.mxu1 %v4269_v7 }
 0x101   : > { %v902_v45 = vpop.f32.mrb[8].mxu0  ;;  %3990 = vmatprep.mubr.msk.bf16.mxu1 %vm864_vm2, %v1216_v41  ;;  %4002 = vmatprep.mubr.msk.bf16.mxu0 %vm864_vm2, %v1216_v41 }
 0x102   : > { %v903_v46 = vadd.f32 %v3804_v42, %v902_v45  ;;  %v3980_v47 = vpop.f32.mrb[9].mxu0  ;;  %3991 = vmatmul.mubr.msk.bf16.gmra.mrb[4].mxu1 %vm864_vm2, %v1217_v43  ;;  %4003 = vmatmul.mubr.msk.bf16.gmra.mrb[16].mxu0 %vm864_vm2, %v1217_v43 }
 0x103   : > { %v905_v48 = vpop.f32.mrb[10].mxu0  ;;  %4010 = vmatprep.mubr.msk.bf16.mxu1 %vm864_vm2, %v1214_v25  ;;  %4020 = vmatprep.mubr.msk.f32.mxu0 %vm4270_vm1, %v4269_v7 }
 0x104   : > { %v909_v49 = vcombine.high %v903_v46, %v903_v46  ;;  %v916_v50 = vrot.slane %v903_v46, %v4484_v44  ;;  %3672 = vst.msk [vmem:[%s701_s5] sm:$0xff] %vm864_vm2, %v903_v46  ;;  %v3981_v52 = vpop.f32.mrb[11].mxu0  ;;  %v1140_v48 = vand.u32 127, %v913_v29 }
 0x106   : > { %v923_v53 = vrot.slane %v909_v49, %v4484_v44  ;;  %v924_v54 = vcombine.high %v916_v50, %v916_v50  ;;  %v932_v55 = vrot.slane %v916_v50, %v4484_v44 }
 0x108   : > { %v961_v56 = vrot.slane %v932_v55, %v4500_v51  ;;  %v954_v57 = vcombine.high %v932_v55, %v932_v55  ;;  %v946_v58 = vrot.slane %v924_v54, %v4484_v44  ;;  %v939_v59 = vrot.slane %v923_v53, %v4484_v44 }
 0x109   : > { %v925_v60 = vcombine.high %v923_v53, %v923_v53  ;;  %v4542_v53 = vsub.s32 %v1140_v48, %v4465_v37 }
 0x10a   : > { %4011 = vmatmul.mubr.msk.bf16.vlgmr.msra.gmra.mrb[8].mxu1 %vm864_vm2, %v1215_v26  ;;  %v998_v61 = vadd.f32 %v961_v56, %v4445_v22  ;;  %v969_v62 = vrot.slane %v954_v57, %v4500_v51  ;;  %v965_v63 = vrot.slane %v946_v58, %v4500_v51  ;;  %v956_v0 = vcombine.high %v946_v58, %v946_v58 }
 0x10b   : > { %4014 = vmatprep.mubr.msk.bf16.mxu1 %vm864_vm2, %v1216_v41  ;;  %v977_v1 = vrot.slane %v939_v59, %v4500_v51  ;;  %v953_v2 = vrot.slane %v925_v60, %v4484_v44  ;;  %v955_v3 = vcombine.high %v939_v59, %v939_v59 }
 0x10c   : > { %v1042_v4 = vmul.f32 %v998_v61, %v998_v61  ;;  %v1000_v5 = vadd.f32 %v969_v62, %v4449_v24  ;;  %v999_v6 = vadd.f32 %v965_v63, %v4447_v23  ;;  %v973_v8 = vrot.slane %v956_v0, %v4500_v51 }
 0x10d   : > { %v1002_v9 = vadd.f32 %v977_v1, %v4467_v38  ;;  %v981_v10 = vrot.slane %v953_v2, %v4500_v51  ;;  %v985_v11 = vrot.slane %v955_v3, %v4500_v51  ;;  %v957_v12 = vcombine.high %v953_v2, %v953_v2 }
 0x10e   : > { %v1050_v13 = vsel %vm864_vm2, %v1042_v4, 0.0  ;;  %v1044_v14 = vmul.f32 %v1000_v5, %v1000_v5  ;;  %v1043_v15 = vmul.f32 %v999_v6, %v999_v6  ;;  %v1001_v16 = vadd.f32 %v973_v8, %v4443_v20 }
 0x10f   : > { %1051 = vadd.xlane.f32.xlu0 %v1050_v13  ;;  %v1003_v19 = vadd.f32 %v981_v10, %v4469_v39  ;;  %v989_v21 = vrot.slane %v957_v12, %v4500_v51  ;;  %v1046_v26 = vmul.f32 %v1002_v9, %v1002_v9  ;;  %v1004_v27 = vadd.f32 %v985_v11, %v4471_v40 }
 0x110   : > { %v1056_v17 = vsel %vm864_vm2, %v1044_v14, 0.0  ;;  %v1045_v18 = vmul.f32 %v1001_v16, %v1001_v16  ;;  %v1053_v25 = vsel %vm864_vm2, %v1043_v15, 0.0 }
 0x111   : > { %1057 = vadd.xlane.f32.xlu1 %v1056_v17  ;;  %v1047_v30 = vmul.f32 %v1003_v19, %v1003_v19  ;;  %v1005_v31 = vadd.f32 %v989_v21, %v4462_v34  ;;  %v1062_v32 = vsel %vm864_vm2, %v1046_v26, 0.0  ;;  %v1048_v33 = vmul.f32 %v1004_v27, %v1004_v27 }
 0x112   : > { %4015 = vmatmul.mubr.msk.bf16.gmra.mrb[12].mxu1 %vm864_vm2, %v1217_v43  ;;  %v1059_v28 = vsel %vm864_vm2, %v1045_v18, 0.0 }
 0x113   : > { %1054 = vadd.xlane.f32.xlu0 %v1053_v25  ;;  %4030 = vmatprep.mubr.msk.f32.mxu1 %vm4270_vm1, %v4269_v7  ;;  %v1065_v35 = vsel %vm864_vm2, %v1047_v30, 0.0  ;;  %v1049_v36 = vmul.f32 %v1005_v31, %v1005_v31  ;;  %v1068_v41 = vsel %vm864_vm2, %v1048_v33, 0.0 }
 0x115   : > { %1060 = vadd.xlane.f32.xlu1 %v1059_v28  ;;  %v1071_v42 = vsel %vm864_vm2, %v1049_v36, 0.0 }
 0x117   : > { %1063 = vadd.xlane.f32.xlu0 %v1062_v32 }
 0x119   : > { %1066 = vadd.xlane.f32.xlu1 %v1065_v35 }
 0x11b   : > { %1069 = vadd.xlane.f32.xlu0 %v1068_v41 }
 0x11d   : > { %1072 = vadd.xlane.f32.xlu1 %v1071_v42 }
 0x19c   : > { %v1052_v43 = vpop.xlane.xlu0 %1051 }
 0x19d   : > { %4173 = vrsqrt.f32 %v1052_v43  ;;  %vm1076_vm3 = vcmp.eq.f32.partialorder %v1052_v43, inf  ;;  %vm1078_vm6 = vcmp.eq.f32.partialorder %v1052_v43, 0.0  ;;  %v1079_v60 = vand.u32 2147483648, %v1052_v43 }
 0x19e   : > { %v1058_v45 = vpop.xlane.xlu1 %1057 }
 0x19f   : > { %4175 = vrsqrt.f32 %v1058_v45  ;;  %vm1090_vm8 = vcmp.eq.f32.partialorder %v1058_v45, inf  ;;  %vm1092_vm9 = vcmp.eq.f32.partialorder %v1058_v45, 0.0  ;;  %v1093_v62 = vand.u32 2147483648, %v1058_v45 }
 0x1a0   : > { %v1055_v46 = vpop.xlane.xlu0 %1054 }
 0x1a1   : > { %4177 = vrsqrt.f32 %v1055_v46  ;;  %vm1083_vm11 = vcmp.eq.f32.partialorder %v1055_v46, inf  ;;  %vm1085_vm12 = vcmp.eq.f32.partialorder %v1055_v46, 0.0  ;;  %v1086_v2 = vand.u32 2147483648, %v1055_v46 }
 0x1a2   : > { %v1061_v47 = vpop.xlane.xlu1 %1060 }
 0x1a3   : > { %4179 = vrsqrt.f32 %v1061_v47  ;;  %vm1097_vm13 = vcmp.eq.f32.partialorder %v1061_v47, inf  ;;  %vm1099_vm15 = vcmp.eq.f32.partialorder %v1061_v47, 0.0  ;;  %v1100_v9 = vand.u32 2147483648, %v1061_v47 }
 0x1a4   : > { %v1064_v49 = vpop.xlane.xlu0 %1063 }
 0x1a5   : > { %4181 = vrsqrt.f32 %v1064_v49  ;;  %vm1104_vm0 = vcmp.eq.f32.partialorder %v1064_v49, inf  ;;  %v1107_v17 = vand.u32 2147483648, %v1064_v49 }
 0x1a6   : > { %v4538_v50 = vpop.xlane.xlu1 %1066 }
 0x1a7   : > { %v4174_v52 = vpop.eup %4173  ;;  %4183 = vrsqrt.f32 %v4538_v50  ;;  %v1114_v28 = vand.u32 2147483648, %v4538_v50 }
 0x1a8   : > { %v1075_v54 = vmul.f32 %v4174_v52, %v1052_v43  ;;  %v4544_v55 = vpop.xlane.xlu0 %1069 }
 0x1a9   : > { %v4176_v56 = vpop.eup %4175  ;;  %4185 = vrsqrt.f32 %v4544_v55  ;;  %v1121_v41 = vand.u32 2147483648, %v4544_v55 }
 0x1aa   : > { %v1077_v29 = vsel %vm1076_vm3, %v1052_v43, %v1075_v54  ;;  %v1089_v57 = vmul.f32 %v4176_v56, %v1058_v45  ;;  %v4547_v58 = vpop.xlane.xlu1 %1072  ;;  %vm1106_vm3 = vcmp.eq.f32.partialorder %v1064_v49, 0.0 }
 0x1ab   : > { %v4178_v59 = vpop.eup %4177  ;;  %4187 = vrsqrt.f32 %v4547_v58  ;;  %v1080_v1 = vsel %vm1078_vm6, %v1079_v60, %v1077_v29  ;;  %vm1111_vm6 = vcmp.eq.f32.partialorder %v4538_v50, inf  ;;  %v1128_v48 = vand.u32 2147483648, %v4547_v58 }
 0x1ac   : > { %v1091_v61 = vsel %vm1090_vm8, %v1058_v45, %v1089_v57  ;;  %v1082_v63 = vmul.f32 %v4178_v59, %v1055_v46  ;;  %v1144_v10 = vrot.slane %v1080_v1, %v4542_v53  ;;  %vm1113_vm8 = vcmp.eq.f32.partialorder %v4538_v50, 0.0 }
 0x1ad   : > { %v4180_v0 = vpop.eup %4179  ;;  %v1094_v3 = vsel %vm1092_vm9, %v1093_v62, %v1091_v61  ;;  %vm1118_vm9 = vcmp.eq.f32.partialorder %v4544_v55, inf  ;;  %v3816_v61 = vld [vmem:[%s5101_s10] ss:$0 sm:$0xff] }
 0x1ae   : > { %v1084_v4 = vsel %vm1083_vm11, %v1055_v46, %v1082_v63  ;;  %v1096_v5 = vmul.f32 %v4180_v0, %v1061_v47  ;;  %v1152_v15 = vrot.slane %v1094_v3, %v4542_v53  ;;  %vm1120_vm11 = vcmp.eq.f32.partialorder %v4544_v55, 0.0 }
 0x1af   : > { %v4182_v6 = vpop.eup %4181  ;;  %v1087_v8 = vsel %vm1085_vm12, %v1086_v2, %v1084_v4  ;;  %vm1125_vm12 = vcmp.eq.f32.partialorder %v4547_v58, inf }
 0x1b0   : > { %v1148_v11 = vrot.slane %v1087_v8, %v4542_v53  ;;  %v1098_v12 = vsel %vm1097_vm13, %v1061_v47, %v1096_v5  ;;  %v1103_v13 = vmul.f32 %v4182_v6, %v1064_v49  ;;  %vm1183_vm13 = vcmask 1046534  }
 0x1b1   : > { %v4184_v14 = vpop.eup %4183  ;;  %v1101_v16 = vsel %vm1099_vm15, %v1100_v9, %v1098_v12  ;;  %vm1127_vm15 = vcmp.eq.f32.partialorder %v4547_v58, 0.0 }
 0x1b2   : > { %v1156_v18 = vrot.slane %v1101_v16, %v4542_v53  ;;  %v1105_v19 = vsel %vm1104_vm0, %v1064_v49, %v1103_v13  ;;  %v1110_v21 = vmul.f32 %v4184_v14, %v4538_v50  ;;  %v1174_v25 = vsel %vm1173_vm4, %v1148_v11, %v1144_v10  ;;  %v4577_v49 = vld [vmem:[%s693_s24] sm:$0xff]  ;;  %s697_s24 = scalar_lea.vmem %s5111_s20, %s4474_s28 }
 0x1b3   : > { %v4186_v26 = vpop.eup %4185  ;;  %v1108_v27 = vsel %vm1106_vm3, %v1107_v17, %v1105_v19  ;;  %v1176_v30 = vsel %vm1175_vm5, %v1152_v15, %v1174_v25  ;;  %vm1185_vm0 = vcmask 1047559   ;;  %vm1130_vm3 = vcmp.gt.f32.partialorder %v4577_v49, 0.0 }
 0x1b4   : > { %v1112_v31 = vsel %vm1111_vm6, %v4538_v50, %v1110_v21  ;;  %v1117_v32 = vmul.f32 %v4186_v26, %v4544_v55  ;;  %v1160_v33 = vrot.slane %v1108_v27, %v4542_v53  ;;  %v1178_v35 = vsel %vm1177_vm7, %v1156_v18, %v1176_v30 }
 0x1b5   : > { %v4188_v36 = vpop.eup %4187  ;;  %v1115_v42 = vsel %vm1113_vm8, %v1114_v28, %v1112_v31  ;;  %vm1189_vm6 = vcmask 64512  }
 0x1b6   : > { %v1119_v43 = vsel %vm1118_vm9, %v4544_v55, %v1117_v32  ;;  %v1124_v45 = vmul.f32 %v4188_v36, %v4547_v58  ;;  %v1164_v46 = vrot.slane %v1115_v42, %v4542_v53  ;;  %v1180_v47 = vsel %vm1179_vm10, %v1160_v33, %v1178_v35  ;;  %v3823_v33 = vld [vmem:[%s5103_s12] ss:$0 sm:$0xff] }
 0x1b7   : > { %v1122_v50 = vsel %vm1120_vm11, %v1121_v41, %v1119_v43  ;;  %v1203_v10 = vsel %vm1189_vm6, %v4577_v49, 0.0 }
 0x1b8   : > { %v1126_v52 = vsel %vm1125_vm12, %v4547_v58, %v1124_v45  ;;  %v1168_v54 = vrot.slane %v1122_v50, %v4542_v53  ;;  %v1182_v55 = vsel %vm1181_vm14, %v1164_v46, %v1180_v47  ;;  %1204 = vadd.xlane.f32.xlu1 %v1203_v10 }
 0x1b9   : > { %v1129_v56 = vsel %vm1127_vm15, %v1128_v48, %v1126_v52 }
 0x1ba   : > { %v1172_v29 = vrot.slane %v1129_v56, %v4542_v53  ;;  %v1184_v57 = vsel %vm1183_vm13, %v1168_v54, %v1182_v55  ;;  %v4597_v53 = vld [vmem:[%s5099_s8] ss:$0 sm:$0xff] }
 0x1bc   : > { %v1186_v59 = vsel %vm1185_vm0, %v1172_v29, %v1184_v57 }
 0x1bd   : > { %v4587_v60 = vsel %vm1130_vm3, %v1186_v59, -1e+30 }
 0x1be   : > { %v1190_v58 = vsel %vm1189_vm6, %v4587_v60, -inf }
 0x1bf   : > { %1191 = vmax.xlane.f32.xlu0 %v1190_v58 }
 0x1cd   : > { %v3988_v62 = vpop.f32.mrb[0].mxu1  ;;  %v4000_v63 = vpop.f32.mrb[12].mxu0 }
 0x1ce   : > { %v1374_v0 = vadd.f32 %v4000_v63, %v3816_v61  ;;  %v1282_v1 = vpop.f32.mrb[1].mxu1  ;;  %v1365_v2 = vpop.f32.mrb[13].mxu0  ;;  %v1291_v9 = vadd.f32 %v3988_v62, %v4597_v53 }
 0x1cf   : > { %v1366_v3 = vadd.f32 %v3816_v61, %v1365_v2  ;;  %v3989_v4 = vpop.f32.mrb[2].mxu1  ;;  %v4001_v5 = vpop.f32.mrb[14].mxu0  ;;  %v1283_v11 = vadd.f32 %v4597_v53, %v1282_v1 }
 0x1d0   : > { %v1285_v6 = vpop.f32.mrb[3].mxu1  ;;  %v1368_v8 = vpop.f32.mrb[15].mxu0  ;;  %4029 = vmatpush3.xpose.msk.msra.mxu1 %vm864_vm2, %v1374_v0  ;;  %v1377_v18 = vadd.f32 %v4001_v5, %v3816_v61  ;;  %v1294_v28 = vadd.f32 %v3989_v4, %v4597_v53 }
 0x1d1   : > { %4019 = vmatpush3.xpose.msk.msra.mxu0 %vm864_vm2, %v1366_v3  ;;  %4038 = vmatprep.subr.mxu1 %v4269_v7  ;;  %v1369_v12 = vadd.f32 %v3816_v61, %v1368_v8  ;;  %v1286_v15 = vadd.f32 %v4597_v53, %v1285_v6 }
 0x1d2   : > { %4023 = vmatprep.subr.mxu0 %v4269_v7 }
 0x1d3   : > { %4031 = vmatmul.mubr.msk.f32.vlgmr.msra.gmra.mrb[16].mxu1 %vm864_vm2, %v1291_v9 }
 0x1d4   : > { %4021 = vmatmul.mubr.msk.f32.vlgmr.msra.gmra.mrb[20].mxu0 %vm864_vm2, %v1283_v11  ;;  %4040 = vmatprep.mubr.msk.f32.mxu1 %vm4270_vm1, %v4269_v7 }
 0x1d5   : > { %v3992_v13 = vpop.f32.mrb[4].mxu1  ;;  %v4004_v14 = vpop.f32.mrb[16].mxu0  ;;  %4024 = vmatpush3.xpose.msk.msra.mxu0 %vm864_vm2, %v1369_v12  ;;  %4025 = vmatprep.mubr.msk.f32.mxu0 %vm4270_vm1, %v4269_v7 }
 0x1d6   : > { %v1298_v16 = vpop.f32.mrb[5].mxu1  ;;  %v1381_v17 = vpop.f32.mrb[17].mxu0  ;;  %4033 = vmatprep.subr.mxu0 %v4269_v7  ;;  %v1390_v31 = vadd.f32 %v4004_v14, %v3816_v61  ;;  %v1307_v36 = vadd.f32 %v3992_v13, %v4597_v53 }
 0x1d7   : > { %v1382_v19 = vadd.f32 %v3816_v61, %v1381_v17  ;;  %v3993_v21 = vpop.f32.mrb[6].mxu1  ;;  %v4005_v25 = vpop.f32.mrb[18].mxu0  ;;  %v1299_v30 = vadd.f32 %v4597_v53, %v1298_v16 }
 0x1d8   : > { %v1301_v26 = vpop.f32.mrb[7].mxu1  ;;  %v1384_v27 = vpop.f32.mrb[19].mxu0  ;;  %4026 = vmatmul.mubr.msk.f32.vlgmr.msra.gmra.mrb[22].mxu0 %vm864_vm2, %v1286_v15  ;;  %v1393_v45 = vadd.f32 %v4005_v25, %v3816_v61  ;;  %v1310_v52 = vadd.f32 %v3993_v21, %v4597_v53 }
 0x1d9   : > { %4034 = vmatpush3.xpose.msk.msra.mxu0 %vm864_vm2, %v1377_v18  ;;  %4039 = vmatpush3.xpose.msk.msra.mxu1 %vm864_vm2, %v1382_v19  ;;  %v1385_v32 = vadd.f32 %v3816_v61, %v1384_v27  ;;  %v1302_v41 = vadd.f32 %v4597_v53, %v1301_v26 }
 0x1da   : > { %4035 = vmatprep.mubr.msk.f32.mxu0 %vm4270_vm1, %v4269_v7  ;;  %4043 = vmatprep.subr.mxu0 %v4269_v7 }
 0x1db   : > { %4048 = vmatprep.subr.mxu1 %v4269_v7 }
 0x1dc   : > { %4036 = vmatmul.mubr.msk.f32.vlgmr.msra.gmra.mrb[24].mxu0 %vm864_vm2, %v1294_v28  ;;  %4041 = vmatmul.mubr.msk.f32.vlgmr.msra.gmra.mrb[18].mxu1 %vm864_vm2, %v1299_v30 }
 0x1dd   : > { %v4012_v35 = vpop.f32.mrb[8].mxu1  ;;  %4044 = vmatpush3.xpose.msk.msra.mxu0 %vm864_vm2, %v1385_v32  ;;  %4049 = vmatpush3.xpose.msk.msra.mxu1 %vm864_vm2, %v1390_v31 }
 0x1de   : > { %v4634_v42 = vadd.f32 %v4012_v35, %v3823_v33  ;;  %v1448_v43 = vpop.f32.mrb[9].mxu1  ;;  %4045 = vmatprep.mubr.msk.f32.mxu0 %vm4270_vm1, %v4269_v7  ;;  %4050 = vmatprep.mubr.msk.f32.mxu1 %vm4270_vm1, %v4269_v7 }
 0x1df   : > { %v1449_v46 = vadd.f32 %v3823_v33, %v1448_v43  ;;  %v4013_v47 = vpop.f32.mrb[10].mxu1  ;;  %4053 = vmatprep.subr.mxu0 %v4269_v7  ;;  %4058 = vmatprep.subr.mxu1 %v4269_v7 }
 0x1e0   : > { %v4642_v48 = vadd.f32 %v4013_v47, %v3823_v33  ;;  %v1451_v50 = vpop.f32.mrb[11].mxu1  ;;  %4046 = vmatmul.mubr.msk.f32.vlgmr.msra.gmra.mrb[26].mxu0 %vm864_vm2, %v1302_v41  ;;  %4051 = vmatmul.mubr.msk.f32.vlgmr.msra.gmra.mrb[20].mxu1 %vm864_vm2, %v1307_v36 }
 0x1e1   : > { %4054 = vmatpush3.xpose.msk.msra.mxu0 %vm864_vm2, %v1393_v45  ;;  %4059 = vmatpush3.msra.mxu1 %v1449_v46  ;;  %v1452_v54 = vadd.f32 %v3823_v33, %v1451_v50 }
 0x1e2   : > { %4055 = vmatprep.mubr.msk.f32.mxu0 %vm4270_vm1, %v4269_v7  ;;  %4063 = vmatprep.subr.mxu0 %v4269_v7 }
 0x1e3   : > { %4060 = vmatprep.mubr.msk.f32.mxu1 %vm4270_vm1, %v4269_v7  ;;  %4068 = vmatprep.subr.mxu1 %v4269_v7 }
 0x1e4   : > { %4056 = vmatmul.mubr.msk.f32.vlgmr.msra.gmra.mrb[28].mxu0 %vm864_vm2, %v1310_v52 }
 0x1e5   : > { %v4016_v55 = vpop.f32.mrb[12].mxu1  ;;  %4064 = vmatpush3.msra.mxu0 %v1452_v54  ;;  %4065 = vmatprep.mubr.msk.f32.mxu0 %vm4270_vm1, %v4269_v7 }
 0x1e6   : > { %v4657_v56 = vadd.f32 %v4016_v55, %v3823_v33  ;;  %v1464_v29 = vpop.f32.mrb[13].mxu1  ;;  %4073 = vmatprep.subr.mxu0 %v4269_v7 }
 0x1e7   : > { %v4660_v57 = vadd.f32 %v3823_v33, %v1464_v29  ;;  %v4017_v59 = vpop.f32.mrb[14].mxu1 }
 0x1e8   : > { %v4662_v58 = vadd.f32 %v4017_v59, %v3823_v33  ;;  %v1467_v61 = vpop.f32.mrb[15].mxu1  ;;  %v4272_v59 = vmov 0  }
 0x1e9   : > { %v4664_v62 = vadd.f32 %v3823_v33, %v1467_v61 }
 0x245   : > { %v1205_v19 = vpop.xlane.xlu1 %1204 }
 0x246   : > { %v1206_v21 = vmax.f32 %v1205_v19, 1e-12 }
 0x24c   : > { %v1192_v63 = vpop.xlane.xlu0 %1191 }
 0x24d   : > { %v1193_v53 = vsub.f32 %v4587_v60, %v1192_v63 }
 0x24f   : > { %v1194_v0 = vmul.f32 1.442695, %v1193_v53 }
 0x251   : > { %4189 = vpow2.f32 %v1194_v0 }
 0x252   : > { %4191 = vrcp.f32 %v1206_v21 }
 0x25b   : > { %v4190_v1 = vpop.eup %4189 }
 0x25c   : > { %v1196_v2 = vmul.f32 %v4190_v1, %v4577_v49  ;;  %v4192_v27 = vpop.eup %4191 }
 0x25d   : > { %v1209_v28 = vmax.f32 %v4192_v27, 0.0 }
 0x25e   : > { %v1197_v3 = vsel %vm1189_vm6, %v1196_v2, 0.0 }
 0x25f   : > { %1198 = vadd.xlane.f32.xlu0 %v1197_v3  ;;  %v1210_v30 = vmin.f32 %v1209_v28, 1.0 }
 0x2a6   : > { %v1703_v4 = vpop.f32.mrb[16].mxu1 }
 0x2a7   : > { %v1551_v5 = vpop.f32.mrb[20].mxu0  ;;  %v4032_v6 = vpop.f32.mrb[17].mxu1  ;;  %v2089_v46 = vmul.f32 0.17677669, %v1703_v4 }
 0x2a8   : > { %v4022_v8 = vpop.f32.mrb[21].mxu0  ;;  %v2087_v47 = vmul.f32 0.17677669, %v1551_v5 }
 0x2ab   : > { %v1627_v9 = vpop.f32.mrb[22].mxu0 }
 0x2ac   : > { %v4027_v10 = vpop.f32.mrb[23].mxu0  ;;  %v2088_v55 = vmul.f32 0.17677669, %v1627_v9 }
 0x2af   : > { %v1779_v11 = vpop.f32.mrb[24].mxu0  ;;  %v4669_v12 = vpop.f32.mrb[18].mxu1 }
 0x2b0   : > { %v4037_v13 = vpop.f32.mrb[25].mxu0  ;;  %v4042_v14 = vpop.f32.mrb[19].mxu1  ;;  %v2090_v29 = vmul.f32 0.17677669, %v1779_v11 }
 0x2b3   : > { %v4671_v60 = vpop.f32.mrb[26].mxu0  ;;  %v4673_v15 = vpop.f32.mrb[20].mxu1 }
 0x2b4   : > { %v4047_v16 = vpop.f32.mrb[27].mxu0  ;;  %v4052_v49 = vpop.f32.mrb[21].mxu1 }
 0x2b5   : > { %v2091_v49 = vmul.f32 0.17677669, %v4669_v12  ;;  %v2092_v12 = vmul.f32 0.17677669, %v4671_v60 }
 0x2b7   : > { %v4675_v17 = vpop.f32.mrb[28].mxu0 }
 0x2b8   : > { %v4057_v18 = vpop.f32.mrb[29].mxu0 }
 0x2ec   : > { %v1199_v25 = vpop.xlane.xlu0 %1198 }
 0x2ed   : > { %v1200_v26 = vmax.f32 %v1199_v25, 1e-12 }
 0x2ef   : > { %4193 = vrcp.f32 %v1200_v26 }
 0x2f9   : > { %v4194_v31 = vpop.eup %4193 }
 0x2fa   : > { %v1202_v32 = vmul.f32 %v4194_v31, %v1196_v2 }
 0x2fc   : > { %vm1211_vm8 = vcmp.ge.f32.partialorder %v1202_v32, %v1210_v30 }
 0x2fd   : > { %v4678_v33 = vsel %vm1211_vm8, 1.0, %v4269_v7 }
 0x2fe   : > { %v2103_v35 = vrot.slane %v4678_v33, %v4484_v44  ;;  %v2096_v36 = vcombine.high %v4678_v33, %v4678_v33 }
 0x300   : > { %v4685_v41 = vrot.slane %v2103_v35, %v4484_v44  ;;  %v2111_v43 = vcombine.high %v2103_v35, %v2103_v35  ;;  %v2110_v45 = vrot.slane %v2096_v36, %v4484_v44 }
 0x302   : > { %vm2153_vm9 = vcmp.gt.f32.partialorder %v4685_v41, 0.0  ;;  %v4690_v50 = vrot.slane %v2111_v43, %v4484_v44  ;;  %v4694_v52 = vcombine.high %v4685_v41, %v4685_v41  ;;  %v4697_v54 = vrot.slane %v2110_v45, %v4484_v44 }
 0x303   : > { %v2161_v61 = vsel %vm2153_vm9, 1, %v4272_v59  ;;  %v2112_v63 = vcombine.high %v2110_v45, %v2110_v45  ;;  %v2093_v45 = vmul.f32 0.17677669, %v4673_v15 }
 0x304   : > { %v2172_v53 = vrot.slane %v2161_v61, %v4500_v51  ;;  %vm2154_vm11 = vcmp.gt.f32.partialorder %v4690_v50, 0.0  ;;  %vm2155_vm12 = vcmp.gt.f32.partialorder %v4694_v52, 0.0  ;;  %v4704_v0 = vcombine.high %v4690_v50, %v4690_v50 }
 0x305   : > { %v2162_v1 = vsel %vm2154_vm11, 1, %v4272_v59  ;;  %v2163_v2 = vsel %vm2155_vm12, 1, %v4272_v59  ;;  %vm2157_vm15 = vcmp.gt.f32.partialorder %v4697_v54, 0.0  ;;  %v4708_v3 = vrot.slane %v2112_v63, %v4484_v44 }
 0x306   : > { %vm2201_vm3 = vcmp.eq.s32.totalorder %v2172_v53, 1  ;;  %v2176_v4 = vrot.slane %v2162_v1, %v4500_v51  ;;  %v2180_v5 = vrot.slane %v2163_v2, %v4500_v51  ;;  %vm2156_vm8 = vcmp.gt.f32.partialorder %v4704_v0, 0.0 }
 0x307   : > { %v2209_v6 = vsel %vm2201_vm3, %v2087_v47, -1e+30  ;;  %v2164_v8 = vsel %vm2156_vm8, 1, %v4272_v59  ;;  %v2165_v9 = vsel %vm2157_vm15, 1, %v4272_v59  ;;  %vm2158_vm9 = vcmp.gt.f32.partialorder %v4708_v3, 0.0 }
 0x308   : > { %v2217_v10 = vsel %vm1189_vm6, %v2209_v6, -inf  ;;  %vm2202_vm11 = vcmp.eq.s32.totalorder %v2176_v4, 1  ;;  %vm2203_vm12 = vcmp.eq.s32.totalorder %v2180_v5, 1  ;;  %v2184_v11 = vrot.slane %v2164_v8, %v4500_v51 }
 0x309   : > { %2218 = vmax.xlane.f32.xlu1 %v2217_v10  ;;  %v2210_v44 = vsel %vm2202_vm11, %v2088_v55, -1e+30  ;;  %v2211_v13 = vsel %vm2203_vm12, %v2089_v46, -1e+30  ;;  %v2188_v14 = vrot.slane %v2165_v9, %v4500_v51  ;;  %v2166_v16 = vsel %vm2158_vm9, 1, %v4272_v59 }
 0x30a   : > { %v2220_v18 = vsel %vm1189_vm6, %v2210_v44, -inf  ;;  %vm2204_vm3 = vcmp.eq.s32.totalorder %v2184_v11, 1  ;;  %v2192_v19 = vrot.slane %v2166_v16, %v4500_v51  ;;  %v4722_v25 = vcombine.high %v4697_v54, %v4697_v54 }
 0x30b   : > { %2221 = vmax.xlane.f32.xlu0 %v2220_v18  ;;  %v2212_v21 = vsel %vm2204_vm3, %v2090_v29, -1e+30  ;;  %vm2205_vm15 = vcmp.eq.s32.totalorder %v2188_v14, 1  ;;  %v4726_v26 = vcombine.high %v4708_v3, %v4708_v3  ;;  %v2223_v27 = vsel %vm1189_vm6, %v2211_v13, -inf }
 0x30c   : > { %vm2206_vm8 = vcmp.eq.s32.totalorder %v2192_v19, 1  ;;  %v2213_v28 = vsel %vm2205_vm15, %v2091_v49, -1e+30  ;;  %vm2159_vm9 = vcmp.gt.f32.partialorder %v4722_v25, 0.0  ;;  %v2226_v30 = vsel %vm1189_vm6, %v2212_v21, -inf }
 0x30d   : > { %2224 = vmax.xlane.f32.xlu1 %v2223_v27  ;;  %vm2160_vm11 = vcmp.gt.f32.partialorder %v4726_v26, 0.0  ;;  %v2167_v31 = vsel %vm2159_vm9, 1, %v4272_v59  ;;  %v2214_v35 = vsel %vm2206_vm8, %v2092_v12, -1e+30  ;;  %v2229_v60 = vsel %vm1189_vm6, %v2213_v28, -inf }
 0x30e   : > { %v2168_v32 = vsel %vm2160_vm11, 1, %v4272_v59  ;;  %v2196_v36 = vrot.slane %v2167_v31, %v4500_v51  ;;  %v2094_v46 = vmul.f32 0.17677669, %v4675_v17  ;;  %v2232_v47 = vsel %vm1189_vm6, %v2214_v35, -inf }
 0x30f   : > { %2227 = vmax.xlane.f32.xlu0 %v2226_v30  ;;  %v2200_v43 = vrot.slane %v2168_v32, %v4500_v51 }
 0x310   : > { %vm2207_vm12 = vcmp.eq.s32.totalorder %v2196_v36, 1 }
 0x311   : > { %2230 = vmax.xlane.f32.xlu1 %v2229_v60  ;;  %vm2208_vm3 = vcmp.eq.s32.totalorder %v2200_v43, 1  ;;  %v2215_v55 = vsel %vm2207_vm12, %v2093_v45, -1e+30  ;;  %v2276_v60 = vrot.slane %v4694_v52, %v4500_v51  ;;  %v2284_v52 = vrot.slane %v4697_v54, %v4500_v51 }
 0x312   : > { %v2216_v29 = vsel %vm2208_vm3, %v2094_v46, -1e+30  ;;  %v2235_v59 = vsel %vm1189_vm6, %v2215_v55, -inf  ;;  %v2292_v54 = vrot.slane %v4722_v25, %v4500_v51 }
 0x313   : > { %2233 = vmax.xlane.f32.xlu0 %v2232_v47  ;;  %v2238_v61 = vsel %vm1189_vm6, %v2216_v29, -inf }
 0x315   : > { %2236 = vmax.xlane.f32.xlu1 %v2235_v59 }
 0x317   : > { %2239 = vmax.xlane.f32.xlu0 %v2238_v61 }
 0x396   : > { %v2219_v63 = vpop.xlane.xlu1 %2218 }
 0x397   : > { %v2241_v15 = vsub.f32 %v2209_v6, %v2219_v63 }
 0x398   : > { %v2222_v53 = vpop.xlane.xlu0 %2221 }
 0x399   : > { %v2249_v1 = vmul.f32 1.442695, %v2241_v15  ;;  %v2242_v2 = vsub.f32 %v2210_v44, %v2222_v53 }
 0x39a   : > { %v2225_v17 = vpop.xlane.xlu1 %2224 }
 0x39b   : > { %4195 = vpow2.f32 %v2249_v1  ;;  %v2251_v4 = vmul.f32 1.442695, %v2242_v2  ;;  %v2243_v5 = vsub.f32 %v2211_v13, %v2225_v17  ;;  %v2268_v13 = vrot.slane %v4685_v41, %v4500_v51 }
 0x39c   : > { %v2228_v8 = vpop.xlane.xlu0 %2227 }
 0x39d   : > { %4197 = vpow2.f32 %v2251_v4  ;;  %v2253_v9 = vmul.f32 1.442695, %v2243_v5  ;;  %v2244_v10 = vsub.f32 %v2212_v21, %v2228_v8 }
 0x39e   : > { %v2231_v11 = vpop.xlane.xlu1 %2230 }
 0x39f   : > { %4199 = vpow2.f32 %v2253_v9  ;;  %v2255_v14 = vmul.f32 1.442695, %v2244_v10  ;;  %v2245_v16 = vsub.f32 %v2213_v28, %v2231_v11  ;;  %v2272_v28 = vrot.slane %v4690_v50, %v4500_v51 }
 0x3a0   : > { %v2234_v49 = vpop.xlane.xlu0 %2233  ;;  %v2280_v50 = vrot.slane %v4704_v0, %v4500_v51  ;;  %v2288_v0 = vrot.slane %v4708_v3, %v4500_v51  ;;  %v2296_v3 = vrot.slane %v4726_v26, %v4500_v51 }
 0x3a1   : > { %4201 = vpow2.f32 %v2255_v14  ;;  %v2257_v18 = vmul.f32 1.442695, %v2245_v16  ;;  %v2246_v19 = vsub.f32 %v2214_v35, %v2234_v49 }
 0x3a2   : > { %v2237_v6 = vpop.xlane.xlu1 %2236 }
 0x3a3   : > { %4203 = vpow2.f32 %v2257_v18  ;;  %v2259_v27 = vmul.f32 1.442695, %v2246_v19  ;;  %v2247_v44 = vsub.f32 %v2215_v55, %v2237_v6 }
 0x3a4   : > { %v2240_v12 = vpop.xlane.xlu0 %2239 }
 0x3a5   : > { %v4196_v30 = vpop.eup %4195  ;;  %4205 = vpow2.f32 %v2259_v27  ;;  %v2261_v31 = vmul.f32 1.442695, %v2247_v44  ;;  %v2248_v21 = vsub.f32 %v2216_v29, %v2240_v12 }
 0x3a6   : > { %v4743_v32 = vmul.f32 %v4196_v30, %v2268_v13 }
 0x3a7   : > { %v4198_v36 = vpop.eup %4197  ;;  %4207 = vpow2.f32 %v2261_v31  ;;  %v2263_v35 = vmul.f32 1.442695, %v2248_v21 }
 0x3a8   : > { %v2313_v43 = vsel %vm1189_vm6, %v4743_v32, 0.0  ;;  %v2306_v45 = vmul.f32 %v4198_v36, %v2272_v28 }
 0x3a9   : > { %v4200_v41 = vpop.eup %4199  ;;  %4209 = vpow2.f32 %v2263_v35  ;;  %2314 = vadd.xlane.f32.xlu1 %v2313_v43 }
 0x3aa   : > { %v2316_v46 = vsel %vm1189_vm6, %v2306_v45, 0.0  ;;  %v4752_v47 = vmul.f32 %v4200_v41, %v2276_v60 }
 0x3ab   : > { %v4202_v55 = vpop.eup %4201  ;;  %2317 = vadd.xlane.f32.xlu0 %v2316_v46 }
 0x3ac   : > { %v2319_v29 = vsel %vm1189_vm6, %v4752_v47, 0.0  ;;  %v4758_v59 = vmul.f32 %v4202_v55, %v2280_v50 }
 0x3ad   : > { %v4204_v61 = vpop.eup %4203  ;;  %2320 = vadd.xlane.f32.xlu1 %v2319_v29 }
 0x3ae   : > { %v2322_v63 = vsel %vm1189_vm6, %v4758_v59, 0.0  ;;  %v4764_v15 = vmul.f32 %v4204_v61, %v2284_v52 }
 0x3af   : > { %v4206_v53 = vpop.eup %4205  ;;  %2323 = vadd.xlane.f32.xlu0 %v2322_v63 }
 0x3b0   : > { %v2325_v1 = vsel %vm1189_vm6, %v4764_v15, 0.0  ;;  %v4770_v2 = vmul.f32 %v4206_v53, %v2288_v0 }
 0x3b1   : > { %v4208_v17 = vpop.eup %4207  ;;  %2326 = vadd.xlane.f32.xlu1 %v2325_v1 }
 0x3b2   : > { %v2328_v4 = vsel %vm1189_vm6, %v4770_v2, 0.0  ;;  %v4776_v5 = vmul.f32 %v4208_v17, %v2292_v54 }
 0x3b3   : > { %v4210_v8 = vpop.eup %4209  ;;  %2329 = vadd.xlane.f32.xlu0 %v2328_v4 }
 0x3b4   : > { %v2331_v9 = vsel %vm1189_vm6, %v4776_v5, 0.0  ;;  %v4782_v10 = vmul.f32 %v4210_v8, %v2296_v3 }
 0x3b5   : > { %2332 = vadd.xlane.f32.xlu1 %v2331_v9 }
 0x3b6   : > { %v2334_v25 = vsel %vm1189_vm6, %v4782_v10, 0.0 }
 0x3b7   : > { %2335 = vadd.xlane.f32.xlu0 %v2334_v25 }
 0x436   : > { %v2315_v11 = vpop.xlane.xlu1 %2314 }
 0x437   : > { %v2337_v14 = vmax.f32 %v2315_v11, 1e-12 }
 0x438   : > { %v2318_v16 = vpop.xlane.xlu0 %2317 }
 0x439   : > { %4211 = vrcp.f32 %v2337_v14  ;;  %v2338_v49 = vmax.f32 %v2318_v16, 1e-12  ;;  %v3854_v16 = vld [vmem:[%s5105_s14] ss:$0 sm:$0xff] }
 0x43a   : > { %v2321_v18 = vpop.xlane.xlu1 %2320 }
 0x43b   : > { %4213 = vrcp.f32 %v2338_v49  ;;  %v2339_v26 = vmax.f32 %v2321_v18, 1e-12 }
 0x43c   : > { %v2324_v19 = vpop.xlane.xlu0 %2323 }
 0x43d   : > { %4215 = vrcp.f32 %v2339_v26  ;;  %v2340_v6 = vmax.f32 %v2324_v19, 1e-12 }
 0x43e   : > { %v2327_v27 = vpop.xlane.xlu1 %2326 }
 0x43f   : > { %4217 = vrcp.f32 %v2340_v6  ;;  %v2341_v44 = vmax.f32 %v2327_v27, 1e-12 }
 0x440   : > { %v2330_v12 = vpop.xlane.xlu0 %2329 }
 0x441   : > { %4219 = vrcp.f32 %v2341_v44  ;;  %v2342_v13 = vmax.f32 %v2330_v12, 1e-12 }
 0x442   : > { %v2333_v30 = vpop.xlane.xlu1 %2332 }
 0x443   : > { %v4212_v31 = vpop.eup %4211  ;;  %4221 = vrcp.f32 %v2342_v13  ;;  %v2343_v21 = vmax.f32 %v2333_v30, 1e-12 }
 0x444   : > { %v2336_v28 = vpop.xlane.xlu0 %2335  ;;  %v2353_v36 = vmul.f32 %v4212_v31, %v4743_v32 }
 0x445   : > { %v4214_v35 = vpop.eup %4213  ;;  %4223 = vrcp.f32 %v2343_v21  ;;  %v2344_v43 = vmax.f32 %v2336_v28, 1e-12 }
 0x446   : > { %4061 = vmatmul.mubr.msk.f32.vlgmr.msra.gmra.mrb[22].mxu1 %vm1189_vm6, %v2353_v36  ;;  %v2354_v60 = vmul.f32 %v4214_v35, %v2306_v45 }
 0x447   : > { %v4216_v41 = vpop.eup %4215  ;;  %4225 = vrcp.f32 %v2344_v43  ;;  %4069 = vmatpush3.msra.mxu1 %v4634_v42  ;;  %4070 = vmatprep.mubr.msk.f32.mxu1 %vm4270_vm1, %v4269_v7 }
 0x448   : > { %4066 = vmatmul.mubr.msk.f32.vlgmr.msra.gmra.mrb[30].mxu0 %vm1189_vm6, %v2354_v60  ;;  %4078 = vmatprep.subr.mxu1 %v4269_v7  ;;  %v2355_v46 = vmul.f32 %v4216_v41, %v4752_v47 }
 0x449   : > { %v4218_v32 = vpop.eup %4217  ;;  %4074 = vmatpush3.msra.mxu0 %v4642_v48  ;;  %4075 = vmatprep.mubr.msk.f32.mxu0 %vm4270_vm1, %v4269_v7 }
 0x44a   : > { %4071 = vmatmul.mubr.msk.f32.vlgmr.msra.gmra.mrb[24].mxu1 %vm1189_vm6, %v2355_v46  ;;  %4083 = vmatprep.subr.mxu0 %v4269_v7  ;;  %v2356_v42 = vmul.f32 %v4218_v32, %v4758_v59  ;;  %v4166_v59 = vld [vmem:[%s5104_s13 + $0x8] sm:$0xff]  }
 0x44b   : > { %v4220_v45 = vpop.eup %4219  ;;  %4079 = vmatpush3.msra.mxu1 %v4660_v57  ;;  %4080 = vmatprep.mubr.msk.f32.mxu1 %vm4270_vm1, %v4269_v7 }
 0x44c   : > { %4076 = vmatmul.mubr.msk.f32.vlgmr.msra.gmra.mrb[32].mxu0 %vm1189_vm6, %v2356_v42  ;;  %4088 = vmatprep.subr.mxu1 %v4269_v7  ;;  %v2357_v48 = vmul.f32 %v4220_v45, %v4764_v15 }
 0x44d   : > { %v4222_v47 = vpop.eup %4221  ;;  %4084 = vmatpush3.msra.mxu0 %v4664_v62  ;;  %4085 = vmatprep.mubr.msk.f32.mxu0 %vm4270_vm1, %v4269_v7 }
 0x44e   : > { %4081 = vmatmul.mubr.msk.f32.vlgmr.msra.gmra.mrb[26].mxu1 %vm1189_vm6, %v2357_v48  ;;  %4093 = vmatprep.subr.mxu0 %v4269_v7  ;;  %v2358_v57 = vmul.f32 %v4222_v47, %v4770_v2 }
 0x44f   : > { %v4224_v50 = vpop.eup %4223  ;;  %4089 = vmatpush3.msra.mxu1 %v4657_v56  ;;  %4090 = vmatprep.mubr.msk.f32.mxu1 %vm4270_vm1, %v4269_v7  ;;  %v4165_v56 = vld [vmem:[%s5104_s13] sm:$0xff]  }
 0x450   : > { %4086 = vmatmul.mubr.msk.f32.vlgmr.msra.gmra.mrb[34].mxu0 %vm1189_vm6, %v2358_v57  ;;  %v2359_v55 = vmul.f32 %v4224_v50, %v4776_v5  ;;  %4098 = vmatprep.subr.bf16.mxu1 %v4165_v56 }
 0x451   : > { %v4226_v62 = vpop.eup %4225  ;;  %4094 = vmatpush3.msra.mxu0 %v4662_v58  ;;  %4095 = vmatprep.mubr.msk.f32.mxu0 %vm4270_vm1, %v4269_v7  ;;  %vm3322_vm1 = vcmask 523264  }
 0x452   : > { %4091 = vmatmul.mubr.msk.f32.vlgmr.msra.gmra.mrb[28].mxu1 %vm1189_vm6, %v2359_v55  ;;  %v2360_v29 = vmul.f32 %v4226_v62, %v4782_v10 }
 0x453   : > { %4099 = vmatpush3.bf16.msra.mxu1 %v4165_v56 }
 0x454   : > { %4096 = vmatmul.mubr.msk.f32.vlgmr.msra.gmra.mrb[36].mxu0 %vm1189_vm6, %v2360_v29  ;;  %4100 = vmatprep.subr.bf16.mxu1 %v4166_v59 }
 0x457   : > { %4101 = vmatpush3.bf16.msra.mxu1 %v4166_v59 }
 0x519   : > { %v2430_v58 = vpop.f32.mrb[22].mxu1 }
 0x51a   : > { %v4062_v52 = vpop.f32.mrb[23].mxu1 }
 0x51b   : > { %v2503_v61 = vpop.f32.mrb[30].mxu0 }
 0x51c   : > { %v2945_v63 = vpack.c.bf16 %v2503_v61, %v2430_v58  ;;  %v4067_v15 = vpop.f32.mrb[31].mxu0 }
 0x51d   : > { %v2576_v0 = vpop.f32.mrb[24].mxu1 }
 0x51e   : > { %v4072_v53 = vpop.f32.mrb[25].mxu1  ;;  %4102 = vmatprep.mubr.msk.bf16.mxu1 %vm864_vm2, %v2945_v63 }
 0x51f   : > { %v2649_v1 = vpop.f32.mrb[32].mxu0 }
 0x520   : > { %v2946_v2 = vpack.c.bf16 %v2649_v1, %v2576_v0  ;;  %v4077_v54 = vpop.f32.mrb[33].mxu0 }
 0x521   : > { %v2722_v17 = vpop.f32.mrb[26].mxu1 }
 0x522   : > { %v4082_v4 = vpop.f32.mrb[27].mxu1  ;;  %4103 = vmatmul.mubr.msk.bf16.vlgmr.msra.gmra.mrb[32].mxu1 %vm864_vm2, %v2946_v2 }
 0x523   : > { %v2795_v5 = vpop.f32.mrb[34].mxu0 }
 0x524   : > { %v2947_v3 = vpack.c.bf16 %v2795_v5, %v2722_v17  ;;  %v4087_v8 = vpop.f32.mrb[35].mxu0 }
 0x525   : > { %v2868_v9 = vpop.f32.mrb[28].mxu1 }
 0x526   : > { %v4092_v10 = vpop.f32.mrb[29].mxu1  ;;  %4106 = vmatprep.mubr.msk.bf16.mxu1 %vm864_vm2, %v2947_v3 }
 0x527   : > { %v2941_v25 = vpop.f32.mrb[36].mxu0 }
 0x528   : > { %v2948_v11 = vpack.c.bf16 %v2941_v25, %v2868_v9  ;;  %v4097_v14 = vpop.f32.mrb[37].mxu0 }
 0x52a   : > { %4107 = vmatmul.mubr.msk.bf16.gmra.mrb[36].mxu1 %vm864_vm2, %v2948_v11 }
 0x5f5   : > { %v4104_v49 = vpop.f32.mrb[32].mxu1 }
 0x5f6   : > { %v3013_v18 = vpop.f32.mrb[33].mxu1  ;;  %v3022_v26 = vadd.f32 %v4104_v49, %v3854_v16 }
 0x5f7   : > { %v3014_v19 = vadd.f32 %v3854_v16, %v3013_v18  ;;  %v4105_v6 = vpop.f32.mrb[34].mxu1 }
 0x5f8   : > { %v3016_v27 = vpop.f32.mrb[35].mxu1  ;;  %v3025_v44 = vadd.f32 %v4105_v6, %v3854_v16  ;;  %v3046_v21 = vadd.f32 %v3022_v26, %v4449_v24 }
 0x5f9   : > { %v3017_v12 = vadd.f32 %v3854_v16, %v3016_v27  ;;  %v3044_v13 = vadd.f32 %v3014_v19, %v4445_v22 }
 0x5fa   : > { %v3047_v35 = vadd.f32 %v3025_v44, %v4443_v20  ;;  %v3058_v32 = vsel %vm864_vm2, %v3046_v21, 0.0 }
 0x5fb   : > { %v3052_v30 = vsel %vm864_vm2, %v3044_v13, 0.0  ;;  %v3045_v31 = vadd.f32 %v3017_v12, %v4447_v23 }
 0x5fc   : > { %3053 = vadd.xlane.f32.xlu1 %v3052_v30  ;;  %v3061_v23 = vsel %vm864_vm2, %v3047_v35, 0.0 }
 0x5fd   : > { %v4108_v28 = vpop.f32.mrb[36].mxu1  ;;  %v3055_v36 = vsel %vm864_vm2, %v3045_v31, 0.0 }
 0x5fe   : > { %3056 = vadd.xlane.f32.xlu0 %v3055_v36  ;;  %v3029_v43 = vpop.f32.mrb[37].mxu1  ;;  %v3038_v60 = vadd.f32 %v4108_v28, %v3854_v16  ;;  %v4167_v28 = vld [vmem:[%s5107_s16] sm:$0xff]   ;;  %v4168_v36 = vld [vmem:[%s5107_s16 + $0x8] sm:$0xff]  }
 0x5ff   : > { %v3030_v41 = vadd.f32 %v3854_v16, %v3029_v43  ;;  %v4109_v46 = vpop.f32.mrb[38].mxu1  ;;  %4110 = vmatprep.subr.bf16.mxu0 %v4167_v28  ;;  %v4170_v43 = vld [vmem:[%s5109_s18 + $0x8] sm:$0xff]  }
 0x600   : > { %3059 = vadd.xlane.f32.xlu1 %v3058_v32  ;;  %v3032_v22 = vpop.f32.mrb[39].mxu1  ;;  %v3041_v42 = vadd.f32 %v4109_v46, %v3854_v16  ;;  %v3050_v47 = vadd.f32 %v3038_v60, %v4471_v40  ;;  %4111 = vmatpush3.bf16.msra.mxu0 %v4167_v28 }
 0x601   : > { %v3033_v45 = vadd.f32 %v3854_v16, %v3032_v22  ;;  %v3048_v24 = vadd.f32 %v3030_v41, %v4467_v38  ;;  %4112 = vmatprep.subr.bf16.mxu0 %v4168_v36 }
 0x602   : > { %3062 = vadd.xlane.f32.xlu0 %v3061_v23  ;;  %v3051_v50 = vadd.f32 %v3041_v42, %v4462_v34  ;;  %v3070_v55 = vsel %vm864_vm2, %v3050_v47, 0.0 }
 0x603   : > { %v3064_v48 = vsel %vm864_vm2, %v3048_v24, 0.0  ;;  %v3049_v20 = vadd.f32 %v3033_v45, %v4469_v39 }
 0x604   : > { %3065 = vadd.xlane.f32.xlu1 %v3064_v48  ;;  %v3073_v62 = vsel %vm864_vm2, %v3051_v50, 0.0  ;;  %4113 = vmatpush3.bf16.msra.mxu0 %v4168_v36 }
 0x605   : > { %v3067_v57 = vsel %vm864_vm2, %v3049_v20, 0.0 }
 0x606   : > { %3068 = vadd.xlane.f32.xlu0 %v3067_v57 }
 0x608   : > { %3071 = vadd.xlane.f32.xlu1 %v3070_v55 }
 0x60a   : > { %3074 = vadd.xlane.f32.xlu0 %v3073_v62  ;;  %v4907_v62 = vld [vmem:[%s5106_s15] sm:$0xf] }
 0x689   : > { %v3054_v38 = vpop.xlane.xlu1 %3053 }
 0x68a   : > { %v3077_v29 = vmul.f32 0.03125, %v3054_v38 }
 0x68b   : > { %v3057_v56 = vpop.xlane.xlu0 %3056 }
 0x68c   : > { %v4852_v59 = vsub.f32 %v3044_v13, %v3077_v29  ;;  %v3078_v39 = vmul.f32 0.03125, %v3057_v56 }
 0x68d   : > { %v3060_v58 = vpop.xlane.xlu1 %3059 }
 0x68e   : > { %v4854_v40 = vsub.f32 %v3045_v31, %v3078_v39  ;;  %v3079_v52 = vmul.f32 0.03125, %v3060_v58  ;;  %v3093_v34 = vmul.f32 %v4852_v59, %v4852_v59 }
 0x68f   : > { %v3063_v61 = vpop.xlane.xlu0 %3062 }
 0x690   : > { %v4858_v63 = vsub.f32 %v3046_v21, %v3079_v52  ;;  %v3080_v15 = vmul.f32 0.03125, %v3063_v61  ;;  %v3101_v0 = vsel %vm864_vm2, %v3093_v34, 0.0  ;;  %v3094_v53 = vmul.f32 %v4854_v40, %v4854_v40 }
 0x691   : > { %3102 = vadd.xlane.f32.xlu1 %v3101_v0  ;;  %v3066_v1 = vpop.xlane.xlu1 %3065  ;;  %v3160_v52 = vrot.slane %v4907_v62, %v4500_v51  ;;  %v3171_v61 = vsub.s32 1, %v4465_v37 }
 0x692   : > { %v4863_v2 = vsub.f32 %v3047_v35, %v3080_v15  ;;  %v3081_v54 = vmul.f32 0.03125, %v3066_v1  ;;  %v3104_v17 = vsel %vm864_vm2, %v3094_v53, 0.0  ;;  %v3095_v4 = vmul.f32 %v4858_v63, %v4858_v63  ;;  %v4169_v35 = vld [vmem:[%s5109_s18] sm:$0xff]  }
 0x693   : > { %3105 = vadd.xlane.f32.xlu0 %v3104_v17  ;;  %v3069_v5 = vpop.xlane.xlu0 %3068  ;;  %4122 = vmatprep.subr.bf16.mxu1 %v4169_v35 }
 0x694   : > { %v4868_v3 = vsub.f32 %v3048_v24, %v3081_v54  ;;  %v3082_v8 = vmul.f32 0.03125, %v3069_v5  ;;  %v3107_v9 = vsel %vm864_vm2, %v3095_v4, 0.0  ;;  %v3096_v10 = vmul.f32 %v4863_v2, %v4863_v2  ;;  %4123 = vmatpush3.bf16.msra.mxu1 %v4169_v35 }
 0x695   : > { %3108 = vadd.xlane.f32.xlu1 %v3107_v9  ;;  %v3072_v25 = vpop.xlane.xlu1 %3071  ;;  %4124 = vmatprep.subr.bf16.mxu1 %v4170_v43 }
 0x696   : > { %v4873_v11 = vsub.f32 %v3049_v20, %v3082_v8  ;;  %v3083_v14 = vmul.f32 0.03125, %v3072_v25  ;;  %v3110_v16 = vsel %vm864_vm2, %v3096_v10, 0.0  ;;  %v3097_v49 = vmul.f32 %v4868_v3, %v4868_v3 }
 0x697   : > { %3111 = vadd.xlane.f32.xlu0 %v3110_v16  ;;  %v3075_v18 = vpop.xlane.xlu0 %3074  ;;  %v3172_v8 = vrot.slane %v4907_v62, %v3171_v61 }
 0x698   : > { %v4878_v26 = vsub.f32 %v3050_v47, %v3083_v14  ;;  %v3084_v19 = vmul.f32 0.03125, %v3075_v18  ;;  %v3113_v6 = vsel %vm864_vm2, %v3097_v49, 0.0  ;;  %v3098_v27 = vmul.f32 %v4873_v11, %v4873_v11  ;;  %4125 = vmatpush3.bf16.msra.mxu1 %v4170_v43 }
 0x699   : > { %3114 = vadd.xlane.f32.xlu1 %v3113_v6 }
 0x69a   : > { %v4883_v44 = vsub.f32 %v3051_v50, %v3084_v19  ;;  %v3116_v12 = vsel %vm864_vm2, %v3098_v27, 0.0  ;;  %v3099_v13 = vmul.f32 %v4878_v26, %v4878_v26 }
 0x69b   : > { %3117 = vadd.xlane.f32.xlu0 %v3116_v12 }
 0x69c   : > { %v3119_v30 = vsel %vm864_vm2, %v3099_v13, 0.0  ;;  %v3100_v31 = vmul.f32 %v4883_v44, %v4883_v44 }
 0x69d   : > { %3120 = vadd.xlane.f32.xlu1 %v3119_v30 }
 0x69e   : > { %v3122_v21 = vsel %vm864_vm2, %v3100_v31, 0.0 }
 0x69f   : > { %3123 = vadd.xlane.f32.xlu0 %v3122_v21 }
 0x71e   : > { %v3103_v60 = vpop.xlane.xlu1 %3102 }
 0x71f   : > { %v3125_v41 = vmul.f32 0.03125, %v3103_v60 }
 0x720   : > { %v3106_v46 = vpop.xlane.xlu0 %3105 }
 0x721   : > { %v3133_v32 = vadd.f32 1e-05, %v3125_v41  ;;  %v3126_v22 = vmul.f32 0.03125, %v3106_v46 }
 0x722   : > { %v3109_v42 = vpop.xlane.xlu1 %3108 }
 0x723   : > { %4227 = vrsqrt.f32 %v3133_v32  ;;  %v3134_v45 = vadd.f32 1e-05, %v3126_v22  ;;  %v3127_v23 = vmul.f32 0.03125, %v3109_v42  ;;  %v4171_v32 = vld [vmem:[%s5109_s18 + $0x10] sm:$0xff]   ;;  %v4172_v22 = vld [vmem:[%s5109_s18 + $0x18] sm:$0xff]  }
 0x724   : > { %v3112_v24 = vpop.xlane.xlu0 %3111  ;;  %4126 = vmatprep.subr.bf16.mxu1 %v4171_v32  ;;  %v3861_v42 = vld [vmem:[%s5108_s17] ss:$0 sm:$0xff] }
 0x725   : > { %4229 = vrsqrt.f32 %v3134_v45  ;;  %v3135_v48 = vadd.f32 1e-05, %v3127_v23  ;;  %v3128_v20 = vmul.f32 0.03125, %v3112_v24  ;;  %4127 = vmatpush3.bf16.msra.mxu1 %v4171_v32 }
 0x726   : > { %v3115_v47 = vpop.xlane.xlu1 %3114  ;;  %4128 = vmatprep.subr.bf16.mxu1 %v4172_v22 }
 0x727   : > { %4231 = vrsqrt.f32 %v3135_v48  ;;  %v3136_v57 = vadd.f32 1e-05, %v3128_v20  ;;  %v3129_v50 = vmul.f32 0.03125, %v3115_v47 }
 0x728   : > { %v3118_v55 = vpop.xlane.xlu0 %3117 }
 0x729   : > { %4233 = vrsqrt.f32 %v3136_v57  ;;  %v3137_v38 = vadd.f32 1e-05, %v3129_v50  ;;  %v3130_v29 = vmul.f32 0.03125, %v3118_v55  ;;  %4129 = vmatpush3.bf16.msra.mxu1 %v4172_v22 }
 0x72a   : > { %v3121_v56 = vpop.xlane.xlu1 %3120 }
 0x72b   : > { %4235 = vrsqrt.f32 %v3137_v38  ;;  %v3138_v39 = vadd.f32 1e-05, %v3130_v29  ;;  %v3131_v58 = vmul.f32 0.03125, %v3121_v56 }
 0x72c   : > { %v3124_v34 = vpop.xlane.xlu0 %3123 }
 0x72d   : > { %v4228_v15 = vpop.eup %4227  ;;  %4237 = vrsqrt.f32 %v3138_v39  ;;  %v3139_v0 = vadd.f32 1e-05, %v3131_v58  ;;  %v3132_v53 = vmul.f32 0.03125, %v3124_v34 }
 0x72e   : > { %v3149_v1 = vmul.f32 %v4228_v15, %v4852_v59 }
 0x72f   : > { %v4230_v54 = vpop.eup %4229  ;;  %4239 = vrsqrt.f32 %v3139_v0  ;;  %v3140_v17 = vadd.f32 1e-05, %v3132_v53 }
 0x730   : > { %v3150_v4 = vmul.f32 %v4230_v54, %v4854_v40  ;;  %v3161_v5 = vmul.f32 %v3160_v52, %v3149_v1 }
 0x731   : > { %v4232_v9 = vpop.eup %4231  ;;  %4241 = vrsqrt.f32 %v3140_v17 }
 0x732   : > { %v3151_v51 = vmul.f32 %v4232_v9, %v4858_v63  ;;  %v3162_v10 = vmul.f32 %v3160_v52, %v3150_v4  ;;  %v4917_v49 = vadd.f32 %v3172_v8, %v3161_v5 }
 0x733   : > { %v4234_v25 = vpop.eup %4233 }
 0x734   : > { %v3163_v14 = vmul.f32 %v3160_v52, %v3151_v51  ;;  %v3152_v16 = vmul.f32 %v4234_v25, %v4863_v2  ;;  %v4919_v59 = vadd.f32 %v3172_v8, %v3162_v10  ;;  %v3868_v10 = vld [vmem:[%s5110_s19] ss:$0 sm:$0xff] }
 0x735   : > { %v4236_v18 = vpop.eup %4235 }
 0x736   : > { %v3164_v19 = vmul.f32 %v3160_v52, %v3152_v16  ;;  %v3153_v40 = vmul.f32 %v4236_v18, %v4868_v3  ;;  %v3181_v6 = vpack.c.bf16 %v4919_v59, %v4917_v49  ;;  %v4926_v63 = vadd.f32 %v3172_v8, %v3163_v14 }
 0x737   : > { %v4238_v27 = vpop.eup %4237 }
 0x738   : > { %v3154_v12 = vmul.f32 %v4238_v27, %v4873_v11  ;;  %4114 = vmatprep.mubr.msk.bf16.mxu0 %vm864_vm2, %v3181_v6  ;;  %v4928_v13 = vadd.f32 %v3172_v8, %v3164_v19  ;;  %v3165_v2 = vmul.f32 %v3160_v52, %v3153_v40 }
 0x739   : > { %v4240_v30 = vpop.eup %4239 }
 0x73a   : > { %v3155_v31 = vmul.f32 %v4240_v30, %v4878_v26  ;;  %v3182_v21 = vpack.c.bf16 %v4928_v13, %v4926_v63  ;;  %v3166_v3 = vmul.f32 %v3160_v52, %v3154_v12  ;;  %v4935_v11 = vadd.f32 %v3172_v8, %v3165_v2 }
 0x73b   : > { %v4242_v28 = vpop.eup %4241 }
 0x73c   : > { %v3156_v36 = vmul.f32 %v4242_v28, %v4883_v44  ;;  %4115 = vmatmul.mubr.msk.bf16.vlgmr.msra.gmra.mrb[40].mxu0 %vm864_vm2, %v3182_v21  ;;  %v4937_v35 = vadd.f32 %v3172_v8, %v3166_v3  ;;  %v3167_v43 = vmul.f32 %v3160_v52, %v3155_v31 }
 0x73e   : > { %v3183_v60 = vpack.c.bf16 %v4937_v35, %v4935_v11  ;;  %v3168_v41 = vmul.f32 %v3160_v52, %v3156_v36  ;;  %v4942_v26 = vadd.f32 %v3172_v8, %v3167_v43 }
 0x740   : > { %4118 = vmatprep.mubr.msk.bf16.mxu0 %vm864_vm2, %v3183_v60  ;;  %v4944_v46 = vadd.f32 %v3172_v8, %v3168_v41 }
 0x742   : > { %v3184_v44 = vpack.c.bf16 %v4944_v46, %v4942_v26 }
 0x744   : > { %4119 = vmatmul.mubr.msk.bf16.gmra.mrb[44].mxu0 %vm864_vm2, %v3184_v44 }
 0x80f   : > { %v4116_v45 = vpop.f32.mrb[40].mxu0 }
 0x810   : > { %v3258_v23 = vadd.f32 %v4116_v45, %v3861_v42  ;;  %v3249_v24 = vpop.f32.mrb[41].mxu0 }
 0x811   : > { %v3250_v48 = vadd.f32 %v3861_v42, %v3249_v24  ;;  %v4117_v20 = vpop.f32.mrb[42].mxu0 }
 0x812   : > { %v3261_v47 = vadd.f32 %v4117_v20, %v3861_v42  ;;  %v3252_v57 = vpop.f32.mrb[43].mxu0  ;;  %v3282_v55 = vmax.f32 %v3258_v23, 0.0 }
 0x813   : > { %v3253_v50 = vadd.f32 %v3861_v42, %v3252_v57  ;;  %v3280_v29 = vmax.f32 %v3250_v48, 0.0 }
 0x814   : > { %v3283_v38 = vmax.f32 %v3261_v47, 0.0 }
 0x815   : > { %v3281_v56 = vmax.f32 %v3253_v50, 0.0 }
 0x816   : > { %v3289_v39 = vpack.c.bf16 %v3283_v38, %v3282_v55 }
 0x817   : > { %v3288_v58 = vpack.c.bf16 %v3281_v56, %v3280_v29  ;;  %v4120_v52 = vpop.f32.mrb[44].mxu0 }
 0x818   : > { %v3274_v34 = vadd.f32 %v4120_v52, %v3861_v42  ;;  %v3265_v61 = vpop.f32.mrb[45].mxu0 }
 0x819   : > { %v3266_v15 = vadd.f32 %v3861_v42, %v3265_v61  ;;  %v4121_v0 = vpop.f32.mrb[46].mxu0  ;;  %4130 = vmatprep.mubr.msk.bf16.mxu1 %vm3322_vm1, %v3288_v58 }
 0x81a   : > { %v3277_v53 = vadd.f32 %v4121_v0, %v3861_v42  ;;  %v3268_v1 = vpop.f32.mrb[47].mxu0  ;;  %4131 = vmatmul.mubr.msk.bf16.vlgmr.msra.gmra.mrb[40].mxu1 %vm3322_vm1, %v3289_v39  ;;  %v3286_v17 = vmax.f32 %v3274_v34, 0.0 }
 0x81b   : > { %v3269_v54 = vadd.f32 %v3861_v42, %v3268_v1  ;;  %v3284_v5 = vmax.f32 %v3266_v15, 0.0 }
 0x81c   : > { %v3287_v4 = vmax.f32 %v3277_v53, 0.0 }
 0x81d   : > { %v3285_v8 = vmax.f32 %v3269_v54, 0.0 }
 0x81e   : > { %v3291_v9 = vpack.c.bf16 %v3287_v4, %v3286_v17 }
 0x81f   : > { %v3290_v51 = vpack.c.bf16 %v3285_v8, %v3284_v5 }
 0x821   : > { %4134 = vmatprep.mubr.msk.bf16.mxu1 %vm3322_vm1, %v3290_v51 }
 0x822   : > { %4135 = vmatmul.mubr.msk.bf16.gmra.mrb[44].mxu1 %vm3322_vm1, %v3291_v9 }
 0x8ed   : > { %v4132_v25 = vpop.f32.mrb[40].mxu1 }
 0x8ee   : > { %v3378_v14 = vadd.f32 %v4132_v25, %v3868_v10  ;;  %v3369_v16 = vpop.f32.mrb[41].mxu1 }
 0x8ef   : > { %v3370_v18 = vadd.f32 %v3868_v10, %v3369_v16  ;;  %v4133_v19 = vpop.f32.mrb[42].mxu1 }
 0x8f0   : > { %v3381_v40 = vadd.f32 %v4133_v19, %v3868_v10  ;;  %v3372_v6 = vpop.f32.mrb[43].mxu1  ;;  %v3402_v27 = vadd.f32 %v3378_v14, %v4926_v63 }
 0x8f1   : > { %v3373_v12 = vadd.f32 %v3868_v10, %v3372_v6  ;;  %v3400_v2 = vadd.f32 %v3370_v18, %v4917_v49 }
 0x8f2   : > { %v3414_v30 = vsel %vm864_vm2, %v3402_v27, 0.0  ;;  %v3403_v31 = vadd.f32 %v3381_v40, %v4928_v13 }
 0x8f3   : > { %3415 = vadd.xlane.f32.xlu0 %v3414_v30  ;;  %v3408_v21 = vsel %vm864_vm2, %v3400_v2, 0.0  ;;  %v3401_v3 = vadd.f32 %v3373_v12, %v4919_v59 }
 0x8f4   : > { %3409 = vadd.xlane.f32.xlu1 %v3408_v21  ;;  %v3417_v43 = vsel %vm864_vm2, %v3403_v31, 0.0  ;;  %v3536_v21 = vsel %vm1189_vm6, %v4678_v33, 0.0 }
 0x8f5   : > { %v4136_v28 = vpop.f32.mrb[44].mxu1  ;;  %v3411_v49 = vsel %vm864_vm2, %v3401_v3, 0.0 }
 0x8f6   : > { %v3385_v36 = vpop.f32.mrb[45].mxu1  ;;  %v3394_v60 = vadd.f32 %v4136_v28, %v3868_v10 }
 0x8f7   : > { %v3386_v41 = vadd.f32 %v3868_v10, %v3385_v36  ;;  %3418 = vadd.xlane.f32.xlu0 %v3417_v43  ;;  %v4137_v63 = vpop.f32.mrb[46].mxu1 }
 0x8f8   : > { %3412 = vadd.xlane.f32.xlu1 %v3411_v49  ;;  %v3388_v44 = vpop.f32.mrb[47].mxu1  ;;  %v3397_v32 = vadd.f32 %v4137_v63, %v3868_v10  ;;  %v3406_v45 = vadd.f32 %v3394_v60, %v4942_v26 }
 0x8f9   : > { %v3389_v13 = vadd.f32 %v3868_v10, %v3388_v44  ;;  %v3404_v22 = vadd.f32 %v3386_v41, %v4935_v11 }
 0x8fa   : > { %v3407_v24 = vadd.f32 %v3397_v32, %v4944_v46  ;;  %v3426_v48 = vsel %vm864_vm2, %v3406_v45, 0.0 }
 0x8fb   : > { %v3420_v42 = vsel %vm864_vm2, %v3404_v22, 0.0  ;;  %v3405_v59 = vadd.f32 %v3389_v13, %v4937_v35 }
 0x8fc   : > { %3421 = vadd.xlane.f32.xlu1 %v3420_v42  ;;  %v3429_v20 = vsel %vm864_vm2, %v3407_v24, 0.0 }
 0x8fd   : > { %v3423_v23 = vsel %vm864_vm2, %v3405_v59, 0.0 }
 0x8fe   : > { %3424 = vadd.xlane.f32.xlu0 %v3423_v23 }
 0x900   : > { %3427 = vadd.xlane.f32.xlu1 %v3426_v48 }
 0x902   : > { %3430 = vadd.xlane.f32.xlu0 %v3429_v20 }
 0x980   : > { %v3416_v47 = vpop.xlane.xlu0 %3415 }
 0x981   : > { %v3434_v11 = vmul.f32 0.03125, %v3416_v47  ;;  %v3410_v57 = vpop.xlane.xlu1 %3409 }
 0x982   : > { %v3432_v50 = vmul.f32 0.03125, %v3410_v57 }
 0x983   : > { %v4981_v55 = vsub.f32 %v3402_v27, %v3434_v11 }
 0x984   : > { %v4983_v35 = vsub.f32 %v3400_v2, %v3432_v50  ;;  %v3419_v26 = vpop.xlane.xlu0 %3418 }
 0x985   : > { %v3435_v38 = vmul.f32 0.03125, %v3419_v26  ;;  %v3413_v29 = vpop.xlane.xlu1 %3412  ;;  %v3450_v46 = vmul.f32 %v4981_v55, %v4981_v55 }
 0x986   : > { %v3433_v56 = vmul.f32 0.03125, %v3413_v29  ;;  %v3448_v39 = vmul.f32 %v4983_v35, %v4983_v35 }
 0x987   : > { %v4989_v58 = vsub.f32 %v3403_v31, %v3435_v38  ;;  %v3462_v52 = vsel %vm864_vm2, %v3450_v46, 0.0 }
 0x988   : > { %v4992_v34 = vsub.f32 %v3401_v3, %v3433_v56  ;;  %3463 = vadd.xlane.f32.xlu0 %v3462_v52  ;;  %v3456_v61 = vsel %vm864_vm2, %v3448_v39, 0.0 }
 0x989   : > { %3457 = vadd.xlane.f32.xlu1 %v3456_v61  ;;  %v3422_v15 = vpop.xlane.xlu1 %3421  ;;  %v3451_v0 = vmul.f32 %v4989_v58, %v4989_v58 }
 0x98a   : > { %v3436_v53 = vmul.f32 0.03125, %v3422_v15  ;;  %v3449_v1 = vmul.f32 %v4992_v34, %v4992_v34 }
 0x98b   : > { %v3425_v54 = vpop.xlane.xlu0 %3424  ;;  %v3465_v17 = vsel %vm864_vm2, %v3451_v0, 0.0 }
 0x98c   : > { %v5000_v4 = vsub.f32 %v3404_v22, %v3436_v53  ;;  %v3437_v5 = vmul.f32 0.03125, %v3425_v54  ;;  %3466 = vadd.xlane.f32.xlu0 %v3465_v17  ;;  %v3459_v8 = vsel %vm864_vm2, %v3449_v1, 0.0 }
 0x98d   : > { %3460 = vadd.xlane.f32.xlu1 %v3459_v8  ;;  %v3428_v9 = vpop.xlane.xlu1 %3427 }
 0x98e   : > { %v5003_v51 = vsub.f32 %v3405_v59, %v3437_v5  ;;  %v3438_v10 = vmul.f32 0.03125, %v3428_v9  ;;  %v3452_v25 = vmul.f32 %v5000_v4, %v5000_v4  ;;  %v3514_v59 = vsub.s32 2, %v4465_v37 }
 0x98f   : > { %v3431_v14 = vpop.xlane.xlu0 %3430 }
 0x990   : > { %v5007_v16 = vsub.f32 %v3406_v45, %v3438_v10  ;;  %v3439_v18 = vmul.f32 0.03125, %v3431_v14  ;;  %v3468_v19 = vsel %vm864_vm2, %v3452_v25, 0.0  ;;  %v3453_v40 = vmul.f32 %v5003_v51, %v5003_v51 }
 0x991   : > { %3469 = vadd.xlane.f32.xlu1 %v3468_v19  ;;  %v3526_v45 = vsub.s32 3, %v4465_v37  ;;  %v5026_v47 = vrot.slane %v4907_v62, %v3514_v59 }
 0x992   : > { %v5012_v6 = vsub.f32 %v3407_v24, %v3439_v18  ;;  %v3471_v27 = vsel %vm864_vm2, %v3453_v40, 0.0  ;;  %v3454_v12 = vmul.f32 %v5007_v16, %v5007_v16 }
 0x993   : > { %3472 = vadd.xlane.f32.xlu0 %v3471_v27  ;;  %v5029_v26 = vrot.slane %v4907_v62, %v3526_v45 }
 0x994   : > { %v3474_v2 = vsel %vm864_vm2, %v3454_v12, 0.0  ;;  %v3455_v30 = vmul.f32 %v5012_v6, %v5012_v6 }
 0x995   : > { %3475 = vadd.xlane.f32.xlu1 %v3474_v2 }
 0x996   : > { %v3477_v31 = vsel %vm864_vm2, %v3455_v30, 0.0 }
 0x997   : > { %3478 = vadd.xlane.f32.xlu0 %v3477_v31 }
 0x999   : > { %3537 = vadd.xlane.f32.xlu1 %v3536_v21 }
 0xa15   : > { %v3464_v3 = vpop.xlane.xlu0 %3463 }
 0xa16   : > { %v3482_v28 = vmul.f32 0.03125, %v3464_v3  ;;  %v3458_v36 = vpop.xlane.xlu1 %3457 }
 0xa17   : > { %v3480_v43 = vmul.f32 0.03125, %v3458_v36 }
 0xa18   : > { %v3490_v60 = vadd.f32 1e-05, %v3482_v28 }
 0xa19   : > { %v3488_v41 = vadd.f32 1e-05, %v3480_v43  ;;  %v3467_v63 = vpop.xlane.xlu0 %3466 }
 0xa1a   : > { %4243 = vrsqrt.f32 %v3490_v60  ;;  %v3483_v49 = vmul.f32 0.03125, %v3467_v63  ;;  %v3461_v44 = vpop.xlane.xlu1 %3460 }
 0xa1b   : > { %4245 = vrsqrt.f32 %v3488_v41  ;;  %v3481_v32 = vmul.f32 0.03125, %v3461_v44 }
 0xa1c   : > { %v3491_v13 = vadd.f32 1e-05, %v3483_v49 }
 0xa1d   : > { %v3489_v22 = vadd.f32 1e-05, %v3481_v32 }
 0xa1e   : > { %4247 = vrsqrt.f32 %v3491_v13  ;;  %v3470_v42 = vpop.xlane.xlu1 %3469 }
 0xa1f   : > { %4249 = vrsqrt.f32 %v3489_v22  ;;  %v3484_v33 = vmul.f32 0.03125, %v3470_v42 }
 0xa20   : > { %v3473_v23 = vpop.xlane.xlu0 %3472 }
 0xa21   : > { %v3492_v24 = vadd.f32 1e-05, %v3484_v33  ;;  %v3485_v48 = vmul.f32 0.03125, %v3473_v23 }
 0xa22   : > { %v3476_v20 = vpop.xlane.xlu1 %3475 }
 0xa23   : > { %4251 = vrsqrt.f32 %v3492_v24  ;;  %v3493_v11 = vadd.f32 1e-05, %v3485_v48  ;;  %v3486_v57 = vmul.f32 0.03125, %v3476_v20 }
 0xa24   : > { %v4244_v50 = vpop.eup %4243  ;;  %v3479_v38 = vpop.xlane.xlu0 %3478 }
 0xa25   : > { %v4246_v29 = vpop.eup %4245  ;;  %v3506_v46 = vmul.f32 %v4244_v50, %v4981_v55  ;;  %4253 = vrsqrt.f32 %v3493_v11  ;;  %v3494_v37 = vadd.f32 1e-05, %v3486_v57  ;;  %v3487_v56 = vmul.f32 0.03125, %v3479_v38 }
 0xa26   : > { %v3504_v39 = vmul.f32 %v4246_v29, %v4983_v35  ;;  %v3538_v53 = vpop.xlane.xlu1 %3537 }
 0xa27   : > { %v3518_v52 = vmul.f32 %v5026_v47, %v3506_v46  ;;  %4255 = vrsqrt.f32 %v3494_v37  ;;  %v3495_v61 = vadd.f32 1e-05, %v3487_v56  ;;  %vm3539_vm6 = vcmp.gt.f32.partialorder %v3538_v53, 0.0 }
 0xa28   : > { %v4248_v15 = vpop.eup %4247  ;;  %v3516_v0 = vmul.f32 %v5026_v47, %v3504_v39  ;;  %v3598_v8 = vmax.f32 %v3538_v53, 1.0  ;;  %v5047_v27 = vsel %vm3539_vm6, 1.0, %v4269_v7 }
 0xa29   : > { %v4250_v1 = vpop.eup %4249  ;;  %v3530_v62 = vadd.f32 %v5029_v26, %v3518_v52  ;;  %v3507_v54 = vmul.f32 %v4248_v15, %v4989_v58  ;;  %4257 = vrsqrt.f32 %v3495_v61  ;;  %v3626_v59 = vrot.slane %v5047_v27, 2 }
 0xa2a   : > { %v3528_v55 = vadd.f32 %v5029_v26, %v3516_v0  ;;  %v3505_v17 = vmul.f32 %v4250_v1, %v4992_v34  ;;  %4259 = vrcp.f32 %v3598_v8  ;;  %v3627_v23 = vrot.slane %v5047_v27, 3 }
 0xa2b   : > { %v3556_v35 = vsel %vm864_vm2, %v3530_v62, 0.0  ;;  %v3519_v5 = vmul.f32 %v5026_v47, %v3507_v54  ;;  %v3628_v15 = vrot.slane %v5047_v27, 4 }
 0xa2c   : > { %v3557_v9 = vrot.slane %v3556_v35, 4  ;;  %v3542_v10 = vsel %vm864_vm2, %v3528_v55, 0.0  ;;  %v3517_v25 = vmul.f32 %v5026_v47, %v3505_v17 }
 0xa2d   : > { %v4252_v14 = vpop.eup %4251  ;;  %v3543_v18 = vrot.slane %v3542_v10, 4  ;;  %v3531_v58 = vadd.f32 %v5029_v26, %v3519_v5 }
 0xa2e   : > { %v3558_v19 = vadd.f32 %v3557_v9, %v3556_v35  ;;  %v3529_v40 = vadd.f32 %v5029_v26, %v3517_v25  ;;  %v3508_v34 = vmul.f32 %v4252_v14, %v5000_v4  ;;  %v3625_v4 = vrot.slane %v5047_v27, 1 }
 0xa2f   : > { %v4254_v12 = vpop.eup %4253  ;;  %v3544_v2 = vadd.f32 %v3543_v18, %v3542_v10  ;;  %v3563_v30 = vsel %vm864_vm2, %v3531_v58, 0.0  ;;  %v3629_v35 = vrot.slane %v5047_v27, 5 }
 0xa30   : > { %v3559_v31 = vrot.slane %v3558_v19, 2  ;;  %v3564_v21 = vrot.slane %v3563_v30, 4  ;;  %v3549_v3 = vsel %vm864_vm2, %v3529_v40, 0.0  ;;  %v3520_v28 = vmul.f32 %v5026_v47, %v3508_v34 }
 0xa31   : > { %v4256_v36 = vpop.eup %4255  ;;  %v3545_v43 = vrot.slane %v3544_v2, 2  ;;  %v3550_v60 = vrot.slane %v3549_v3, 4  ;;  %v3509_v41 = vmul.f32 %v4254_v12, %v5003_v51 }
 0xa32   : > { %v3560_v7 = vadd.f32 %v3559_v31, %v3558_v19  ;;  %v3565_v63 = vadd.f32 %v3564_v21, %v3563_v30  ;;  %v3532_v49 = vadd.f32 %v5029_v26, %v3520_v28  ;;  %v3510_v44 = vmul.f32 %v4256_v36, %v5007_v16 }
 0xa33   : > { %v4258_v32 = vpop.eup %4257  ;;  %v3546_v13 = vadd.f32 %v3545_v43, %v3544_v2  ;;  %v3551_v22 = vadd.f32 %v3550_v60, %v3549_v3  ;;  %v3521_v42 = vmul.f32 %v5026_v47, %v3509_v41 }
 0xa34   : > { %v3566_v33 = vrot.slane %v3565_v63, 2  ;;  %v3570_v45 = vsel %vm864_vm2, %v3532_v49, 0.0  ;;  %v3522_v51 = vmul.f32 %v5026_v47, %v3510_v44  ;;  %v3511_v16 = vmul.f32 %v4258_v32, %v5012_v6  ;;  %v4260_v0 = vpop.eup %4259 }
 0xa35   : > { %v3552_v24 = vrot.slane %v3551_v22, 2  ;;  %v3571_v48 = vrot.slane %v3570_v45, 4  ;;  %v3533_v20 = vadd.f32 %v5029_v26, %v3521_v42  ;;  %v3561_v11 = vrot.slane %v3560_v7, 1 }
 0xa36   : > { %v3567_v57 = vadd.f32 %v3566_v33, %v3565_v63  ;;  %v3534_v50 = vadd.f32 %v5029_v26, %v3522_v51  ;;  %v3547_v38 = vrot.slane %v3546_v13, 1  ;;  %v3523_v56 = vmul.f32 %v5026_v47, %v3511_v16 }
 0xa37   : > { %v3553_v29 = vadd.f32 %v3552_v24, %v3551_v22  ;;  %v3572_v46 = vadd.f32 %v3571_v48, %v3570_v45  ;;  %v3577_v37 = vsel %vm864_vm2, %v3533_v20, 0.0  ;;  %v3562_v17 = vadd.f32 %v3561_v11, %v3560_v7 }
 0xa38   : > { %v3568_v39 = vrot.slane %v3567_v57, 1  ;;  %v3578_v52 = vrot.slane %v3577_v37, 4  ;;  %v3584_v61 = vsel %vm864_vm2, %v3534_v50, 0.0  ;;  %v3535_v62 = vadd.f32 %v5029_v26, %v3523_v56 }
 0xa39   : > { %v3554_v53 = vrot.slane %v3553_v29, 1  ;;  %v3573_v6 = vrot.slane %v3572_v46, 2  ;;  %v3585_v1 = vrot.slane %v3584_v61, 4  ;;  %v3548_v55 = vadd.f32 %v3547_v38, %v3546_v13 }
 0xa3a   : > { %v3579_v54 = vadd.f32 %v3578_v52, %v3577_v37  ;;  %v3591_v47 = vsel %vm864_vm2, %v3535_v62, 0.0  ;;  %v3569_v14 = vadd.f32 %v3568_v39, %v3567_v57  ;;  %v3601_v18 = vrot.slane %v4260_v0, 1 }
 0xa3b   : > { %v3574_v5 = vadd.f32 %v3573_v6, %v3572_v46  ;;  %v3586_v8 = vadd.f32 %v3585_v1, %v3584_v61  ;;  %v3555_v9 = vadd.f32 %v3554_v53, %v3553_v29  ;;  %v3592_v25 = vrot.slane %v3591_v47, 4 }
 0xa3c   : > { %v3580_v10 = vrot.slane %v3579_v54, 2  ;;  %v3602_v40 = vrot.slane %v4260_v0, 2  ;;  %v3603_v34 = vrot.slane %v4260_v0, 3  ;;  %v3604_v2 = vrot.slane %v4260_v0, 4 }
 0xa3d   : > { %v3575_v58 = vrot.slane %v3574_v5, 1  ;;  %v3587_v19 = vrot.slane %v3586_v8, 2  ;;  %v3593_v26 = vadd.f32 %v3592_v25, %v3591_v47  ;;  %v3616_v30 = vmul.f32 %v4260_v0, %v3548_v55 }
 0xa3e   : > { %v3581_v12 = vadd.f32 %v3580_v10, %v3579_v54  ;;  %v3617_v3 = vmul.f32 %v3601_v18, %v3555_v9  ;;  %v3618_v28 = vmul.f32 %v3602_v40, %v3562_v17  ;;  %v3605_v60 = vrot.slane %v4260_v0, 5 }
 0xa3f   : > { %v3588_v31 = vadd.f32 %v3587_v19, %v3586_v8  ;;  %v3576_v21 = vadd.f32 %v3575_v58, %v3574_v5  ;;  %v3594_v43 = vrot.slane %v3593_v26, 2  ;;  %v3619_v41 = vmul.f32 %v3603_v34, %v3569_v14 }
 0xa40   : > { %v3582_v36 = vrot.slane %v3581_v12, 1  ;;  %v3641_v49 = vmul.f32 %v3625_v4, %v3617_v3  ;;  %v3642_v44 = vmul.f32 %v3626_v59, %v3618_v28  ;;  %v3606_v22 = vrot.slane %v4260_v0, 6 }
 0xa41   : > { %v3589_v7 = vrot.slane %v3588_v31, 1  ;;  %v3620_v63 = vmul.f32 %v3604_v2, %v3576_v21  ;;  %v3595_v32 = vadd.f32 %v3594_v43, %v3593_v26  ;;  %v3643_v42 = vmul.f32 %v3627_v23, %v3619_v41 }
 0xa42   : > { %v3583_v13 = vadd.f32 %v3582_v36, %v3581_v12  ;;  %v3640_v45 = vmul.f32 %v5047_v27, %v3616_v30  ;;  %v3656_v24 = vrot.slane %v3641_v49, 7  ;;  %v3630_v16 = vrot.slane %v5047_v27, 6 }
 0xa43   : > { %v3590_v33 = vadd.f32 %v3589_v7, %v3588_v31  ;;  %v3644_v51 = vmul.f32 %v3628_v15, %v3620_v63  ;;  %v3596_v48 = vrot.slane %v3595_v32, 1  ;;  %v3658_v11 = vrot.slane %v3642_v44, 6 }
 0xa44   : > { %v3621_v20 = vmul.f32 %v3605_v60, %v3583_v13  ;;  %v3657_v50 = vsel %vm1173_vm4, %v3656_v24, %v3640_v45  ;;  %v3660_v38 = vrot.slane %v3643_v42, 5  ;;  %v3607_v29 = vrot.slane %v4260_v0, 7 }
 0xa45   : > { %v3622_v57 = vmul.f32 %v3606_v22, %v3590_v33  ;;  %v3662_v4 = vrot.slane %v3644_v51, 4  ;;  %v3597_v59 = vadd.f32 %v3596_v48, %v3595_v32  ;;  %v3659_v23 = vsel %vm1175_vm5, %v3658_v11, %v3657_v50 }
 0xa46   : > { %v3645_v46 = vmul.f32 %v3629_v35, %v3621_v20  ;;  %v3661_v56 = vsel %vm1177_vm7, %v3660_v38, %v3659_v23  ;;  %v3631_v52 = vrot.slane %v5047_v27, 7 }
 0xa47   : > { %v3646_v37 = vmul.f32 %v3630_v16, %v3622_v57  ;;  %v3623_v39 = vmul.f32 %v3607_v29, %v3597_v59  ;;  %v3663_v61 = vsel %vm1179_vm10, %v3662_v4, %v3661_v56 }
 0xa48   : > { %v3664_v15 = vrot.slane %v3645_v46, 3 }
 0xa49   : > { %v3666_v53 = vrot.slane %v3646_v37, 2  ;;  %v3647_v6 = vmul.f32 %v3631_v52, %v3623_v39 }
 0xa4a   : > { %v3665_v1 = vsel %vm1181_vm14, %v3664_v15, %v3663_v61 }
 0xa4b   : > { %v3667_v62 = vsel %vm1183_vm13, %v3666_v53, %v3665_v1  ;;  %v3668_v0 = vrot.slane %v3647_v6, 1 }
 0xa4d   : > { %v3669_v54 = vsel %vm1185_vm0, %v3668_v0, %v3667_v62 }
 0xa4e   : > { %3671 = vst.msk [vmem:[%s697_s24] sm:$0xff] %vm864_vm2, %v3669_v54 }
 0xa4f PF: > { %s32_s2 = sadd.s32 1, %s4267_s2  }
 0xa50   : > { %p29_p5 = scmp.ge.s32.totalorder %s32_s2, 4  }
 0xa52   :  { %31 = sbr.rel (!%p29_p5) target bundleno = 7 (0x7), region = 148 }

// kernel: event_detection_forward.3
= control target key start
LH: loop header
LB: loop body
LE: loop exit
PB: predicated region body
PF: predicated region fallthrough
CT: control target
= control target key end

     0   :  { %s4003_s24 = smov 0   ;;  %s4688_s0 = inlined_call_operand.vmem [shape: bf16[16,8,48], index: 0, kind: input, shape index: {}]   ;;  %s4689_s1 = inlined_call_operand.vmem [shape: f32[16,8], index: 1, kind: input, shape index: {}]   ;;  %s4690_s2 = inlined_call_operand.vmem [shape: bf16[48,32], index: 2, kind: input, shape index: {}]   ;;  %s4691_s3 = inlined_call_operand.vmem [shape: f32[1,32], index: 3, kind: input, shape index: {}]   ;;  %s4692_s4 = inlined_call_operand.vmem [shape: bf16[32,32], index: 4, kind: input, shape index: {}]   ;;  %s4693_s5 = inlined_call_operand.vmem [shape: f32[1,32], index: 5, kind: input, shape index: {}]   ;;  %s4694_s6 = inlined_call_operand.vmem [shape: bf16[32,32], index: 6, kind: input, shape index: {}]   ;;  %s4695_s7 = inlined_call_operand.vmem [shape: f32[1,32], index: 7, kind: input, shape index: {}]   ;;  %s4696_s8 = inlined_call_operand.vmem [shape: bf16[32,32], index: 8, kind: input, shape index: {}]   ;;  %s4697_s9 = inlined_call_operand.vmem [shape: f32[1,32], index: 9, kind: input, shape index: {}]   ;;  %s4698_s10 = inlined_call_operand.vmem [shape: bf16[32,32], index: 10, kind: input, shape index: {}]   ;;  %s4699_s11 = inlined_call_operand.vmem [shape: f32[1,32], index: 11, kind: input, shape index: {}]   ;;  %s4700_s12 = inlined_call_operand.vmem [shape: f32[4,32], index: 12, kind: input, shape index: {}]   ;;  %s4701_s13 = inlined_call_operand.vmem [shape: bf16[32,64], index: 13, kind: input, shape index: {}]   ;;  %s4702_s14 = inlined_call_operand.vmem [shape: f32[1,64], index: 14, kind: input, shape index: {}]   ;;  %s4703_s15 = inlined_call_operand.vmem [shape: bf16[64,32], index: 15, kind: input, shape index: {}]   ;;  %s4704_s16 = inlined_call_operand.vmem [shape: f32[1,32], index: 16, kind: input, shape index: {}]   ;;  %s4705_s17 = inlined_call_operand.vmem [shape: f32[16,32], index: 17, kind: output, shape index: {}]  }
   0x1   :  { %4706 = sst [smem:[#allocation2_spill]] %s4688_s0 }
   0x2   :  { %4707 = sst [smem:[#allocation3_spill]] %s4689_s1 }
   0x3 LB: > { %s4009_s25 = sadd.s32 4294967295, %s3907_s24   ;;  %p3440_p0 = scmp.ge.s32.totalorder %s3907_s24, 1  ;;  %s3907_s24 = sphi %s4003_s24, %s27_s24  }
   0x4   : > { %p497_p1 = scmp.lt.s32.totalorder %s3907_s24, 3 }
   0x6   : > { %p498_p2 = pnand %p3440_p0, %p497_p1 }
   0x7   : > { %v3792_v0 = vld [vmem:[%s4690_s2] sm:$0xff] (!%p498_p2)   ;;  %s3441_s28 = sshll.u32 (!%p498_p2), %s4009_s25, 3  ;;  %v3793_v1 = vld [vmem:[%s4690_s2 + $0x8] sm:$0xff] (!%p498_p2)   ;;  %v3794_v2 = vld [vmem:[%s4690_s2 + $0x10] sm:$0xff] (!%p498_p2)   ;;  %vm626_vm0 = vcmask (!%p498_p2), 392192   ;;  %s4708_s21 = sld [smem:[#allocation2_spill]] (!%p498_p2)  ;;  %v838_v55 = vlaneseq (!%p498_p2) }
   0x8   : > { %501 = sbr.rel (%p498_p2) target bundleno = 2606 (0xa2e), region = 88  ;;  %p553_p3 = scmp.lt.s32.totalorder (!%p498_p2), %s3441_s28, 15  ;;  %3606 = vmatprep.subr.bf16.mxu0 (!%p498_p2), %v3792_v0  ;;  %v3799_v7 = vld [vmem:[%s4692_s4] sm:$0xff] (!%p498_p2)   ;;  %v3800_v8 = vld [vmem:[%s4692_s4 + $0x8] sm:$0xff] (!%p498_p2)   ;;  %vm748_vm1 = vcmask (!%p498_p2), 261120   ;;  %v3909_v50 = vmov (!%p498_p2), 0.0  }
   0x9   : > { %3607 = vmatpush3.bf16.msra.mxu0 (!%p498_p2), %v3792_v0  ;;  %3776 = vmatprep.subr.bf16.mxu1 (!%p498_p2), %v3799_v7  ;;  %v3801_v9 = vld [vmem:[%s4696_s8] sm:$0xff] (!%p498_p2)   ;;  %v3802_v29 = vld [vmem:[%s4696_s8 + $0x8] sm:$0xff] (!%p498_p2)   ;;  %vm3910_vm2 = vmmov (!%p498_p2), 0   ;;  %v839_v57 = vand.u32 (!%p498_p2), 127, %v838_v55  ;;  %v4113_v58 = vshrl.u32 (!%p498_p2), %v838_v55, 7  ;;  %vm872_vm5 = vcmask (!%p498_p2), 1041409  }
   0xa   : > { %3608 = vmatprep.subr.bf16.mxu0 (!%p498_p2), %v3793_v1  ;;  %3778 = vmatpush3.bf16.msra.mxu1 (!%p498_p2), %v3799_v7  ;;  %v3803_v10 = vld [vmem:[%s4694_s6] sm:$0xff] (!%p498_p2)   ;;  %v3804_v47 = vld [vmem:[%s4694_s6 + $0x8] sm:$0xff] (!%p498_p2)   ;;  %p558_p4 = scmp.lt.s32.totalorder (!%p498_p2), %s4009_s25, 1  ;;  %vm874_vm12 = vcmask (!%p498_p2), 1042434   ;;  %vm876_vm13 = vcmask (!%p498_p2), 1043459   ;;  %vm878_vm14 = vcmask (!%p498_p2), 1044484  }
   0xb   : > { %3777 = vmatprep.subr.bf16.mxu1 (!%p498_p2), %v3800_v8  ;;  %v3445_v11 = vld [vmem:[%s4691_s3] ss:$0 sm:$0xff] (!%p498_p2)  ;;  %v4119_v0 = vsub.s32 (!%p498_p2), %v839_v57, %v4113_v58  ;;  %s4709_s29 = sld [smem:[#allocation3_spill]] (!%p498_p2) }
   0xd   : > { %3609 = vmatpush3.bf16.msra.mxu0 (!%p498_p2), %v3793_v1 }
   0xe   : > { %3610 = vmatprep.subr.bf16.mxu0 (!%p498_p2), %v3794_v2  ;;  %3779 = vmatpush3.bf16.msra.mxu1 (!%p498_p2), %v3800_v8 }
   0xf   : > { %s4711_s28 = smov (!%p553_p3, %s3441_s28), 15  ;;  %3632 = vmatprep.subr.bf16.mxu1 %v3803_v10  ;;  %s4713_s25 = smov (!%p558_p4, %s4009_s25), 1 }
  0x10   : > { %s3442_s19 = sshll.u32 %s4711_s28, 2  ;;  %s3443_s26 = sshll.u32 %s4713_s25, 3 }
  0x11   : > { %s556_s22 = scalar_lea.vmem %s4708_s21, %s3442_s19  ;;  %3611 = vmatpush3.bf16.msra.mxu0 %v3794_v2  ;;  %s561_s0 = scalar_lea.vmem %s4709_s29, %s3443_s26 }
  0x12   : > { %v3795_v3 = vld [vmem:[%s556_s22] sm:$0xff]   ;;  %v3796_v4 = vld [vmem:[%s556_s22 + $0x8] sm:$0xff]   ;;  %v3797_v5 = vld [vmem:[%s556_s22 + $0x10] sm:$0xff]   ;;  %3620 = vmatprep.subr.bf16.mxu0 %v3799_v7  ;;  %s565_s27 = scalar_lea.vmem %s4705_s17, %s3443_s26 }
  0x13   : > { %3612 = vmatprep.mubr.msk.bf16.mxu0 %vm626_vm0, %v3795_v3  ;;  %v3798_v6 = vld [vmem:[%s556_s22 + $0x18] sm:$0xff]   ;;  %v4163_v55 = vld [vmem:[%s561_s0] sm:$0xff] }
  0x14   : > { %3613 = vmatmul.mubr.msk.bf16.vlgmr.msra.gmra.mrb[0].mxu0 %vm626_vm0, %v3796_v4 }
  0x15   : > { %3616 = vmatprep.mubr.msk.bf16.mxu0 %vm626_vm0, %v3797_v5  ;;  %3621 = vmatpush3.bf16.msra.mxu0 %v3799_v7 }
  0x16   : > { %3622 = vmatprep.subr.bf16.mxu0 %v3800_v8 }
  0x19   : > { %3623 = vmatpush3.bf16.msra.mxu0 %v3800_v8 }
  0x1a   : > { %3644 = vmatprep.subr.bf16.mxu0 %v3801_v9 }
  0x1c   : > { %3617 = vmatmul.mubr.msk.bf16.gmra.mrb[4].mxu0 %vm626_vm0, %v3798_v6 }
  0xe7   : > { %v3614_v12 = vpop.f32.mrb[0].mxu0 }
  0xe8   : > { %v4041_v13 = vadd.f32 %v3614_v12, %v3445_v11  ;;  %v673_v14 = vpop.f32.mrb[1].mxu0 }
  0xe9   : > { %v4043_v15 = vadd.f32 %v3445_v11, %v673_v14  ;;  %v3615_v16 = vpop.f32.mrb[2].mxu0 }
  0xea   : > { %v4045_v17 = vadd.f32 %v3615_v16, %v3445_v11  ;;  %v676_v18 = vpop.f32.mrb[3].mxu0  ;;  %v742_v19 = vmul.f32 %v4041_v13, %v4041_v13 }
  0xeb   : > { %v4049_v20 = vadd.f32 %v3445_v11, %v676_v18  ;;  %v740_v21 = vmul.f32 %v4043_v15, %v4043_v15 }
  0xec   : > { %v755_v22 = vsel %vm748_vm1, %v742_v19, 0.0  ;;  %v743_v23 = vmul.f32 %v4045_v17, %v4045_v17  ;;  %v914_v27 = vpack.c.bf16 %v4045_v17, %v4041_v13 }
  0xed   : > { %v913_v24 = vpack.c.bf16 %v4049_v20, %v4043_v15  ;;  %756 = vadd.xlane.f32.xlu1 %v755_v22  ;;  %v749_v25 = vsel %vm748_vm1, %v740_v21, 0.0  ;;  %v741_v26 = vmul.f32 %v4049_v20, %v4049_v20 }
  0xee   : > { %750 = vadd.xlane.f32.xlu0 %v749_v25  ;;  %v758_v31 = vsel %vm748_vm1, %v743_v23, 0.0 }
  0xef   : > { %v3618_v28 = vpop.f32.mrb[4].mxu0  ;;  %3624 = vmatprep.mubr.msk.bf16.mxu0 %vm748_vm1, %v913_v24  ;;  %v752_v34 = vsel %vm748_vm1, %v741_v26, 0.0 }
  0xf0   : > { %v689_v30 = vpop.f32.mrb[5].mxu0  ;;  %3625 = vmatmul.mubr.msk.bf16.vlgmr.msra.gmra.mrb[8].mxu0 %vm748_vm1, %v914_v27  ;;  %v4072_v35 = vadd.f32 %v3618_v28, %v3445_v11 }
  0xf1   : > { %v4069_v32 = vadd.f32 %v3445_v11, %v689_v30  ;;  %759 = vadd.xlane.f32.xlu1 %v758_v31  ;;  %v3619_v33 = vpop.f32.mrb[6].mxu0  ;;  %3645 = vmatpush3.bf16.msra.mxu0 %v3801_v9 }
  0xf2   : > { %v4074_v36 = vadd.f32 %v3619_v33, %v3445_v11  ;;  %3648 = vmatprep.mubr.msk.bf16.mxu0 %vm748_vm1, %v913_v24  ;;  %v692_v37 = vpop.f32.mrb[7].mxu0  ;;  %753 = vadd.xlane.f32.xlu0 %v752_v34  ;;  %v746_v44 = vmul.f32 %v4072_v35, %v4072_v35 }
  0xf3   : > { %v4077_v38 = vadd.f32 %v3445_v11, %v692_v37  ;;  %3646 = vmatprep.subr.bf16.mxu0 %v3802_v29  ;;  %v744_v39 = vmul.f32 %v4069_v32, %v4069_v32 }
  0xf4   : > { %v916_v43 = vpack.c.bf16 %v4074_v36, %v4072_v35  ;;  %v747_v46 = vmul.f32 %v4074_v36, %v4074_v36  ;;  %v767_v48 = vsel %vm748_vm1, %v746_v44, 0.0 }
  0xf5   : > { %3647 = vmatpush3.bf16.msra.mxu0 %v3802_v29  ;;  %v761_v40 = vsel %vm748_vm1, %v744_v39, 0.0  ;;  %v915_v41 = vpack.c.bf16 %v4077_v38, %v4069_v32  ;;  %v745_v42 = vmul.f32 %v4077_v38, %v4077_v38 }
  0xf6   : > { %762 = vadd.xlane.f32.xlu0 %v761_v40  ;;  %v770_v49 = vsel %vm748_vm1, %v747_v46, 0.0  ;;  %3661 = vmatprep.subr.mxu0 %v3909_v50 }
  0xf7   : > { %3628 = vmatprep.mubr.msk.bf16.mxu1 %vm748_vm1, %v915_v41  ;;  %v764_v45 = vsel %vm748_vm1, %v745_v42, 0.0 }
  0xf8   : > { %765 = vadd.xlane.f32.xlu1 %v764_v45  ;;  %3629 = vmatmul.mubr.msk.bf16.vlgmr.msra.gmra.mrb[0].mxu1 %vm748_vm1, %v916_v43 }
  0xf9   : > { %3649 = vmatmul.mubr.msk.bf16.vlgmr.msra.gmra.mrb[12].mxu0 %vm748_vm1, %v914_v27  ;;  %3633 = vmatpush3.bf16.msra.mxu1 %v3803_v10 }
  0xfa   : > { %3636 = vmatprep.mubr.msk.bf16.mxu1 %vm748_vm1, %v913_v24  ;;  %3652 = vmatprep.mubr.msk.bf16.mxu0 %vm748_vm1, %v915_v41 }
  0xfb   : > { %768 = vadd.xlane.f32.xlu0 %v767_v48  ;;  %3634 = vmatprep.subr.bf16.mxu1 %v3804_v47 }
  0xfc   : > { %771 = vadd.xlane.f32.xlu1 %v770_v49 }
  0xfd   : > { %3635 = vmatpush3.bf16.msra.mxu1 %v3804_v47 }
  0xfe   : > { %3656 = vmatprep.subr.mxu1 %v3909_v50 }
 0x100   : > { %3637 = vmatmul.mubr.msk.bf16.vlgmr.msra.gmra.mrb[4].mxu1 %vm748_vm1, %v914_v27 }
 0x101   : > { %3653 = vmatmul.mubr.msk.bf16.gmra.mrb[16].mxu0 %vm748_vm1, %v916_v43  ;;  %3640 = vmatprep.mubr.msk.bf16.mxu1 %vm748_vm1, %v915_v41 }
 0x102   : > { %3663 = vmatprep.mubr.msk.f32.mxu0 %vm3910_vm2, %v3909_v50 }
 0x108   : > { %3641 = vmatmul.mubr.msk.bf16.gmra.mrb[8].mxu1 %vm748_vm1, %v916_v43 }
 0x109   : > { %3658 = vmatprep.mubr.msk.f32.mxu1 %vm3910_vm2, %v3909_v50 }
 0x17a   : > { %v757_v51 = vpop.xlane.xlu1 %756 }
 0x17b   : > { %3813 = vrsqrt.f32 %v757_v51  ;;  %v751_v52 = vpop.xlane.xlu0 %750  ;;  %vm789_vm3 = vcmp.eq.f32.partialorder %v757_v51, inf  ;;  %vm791_vm6 = vcmp.eq.f32.partialorder %v757_v51, 0.0  ;;  %v792_v3 = vand.u32 2147483648, %v757_v51 }
 0x17c   : > { %3815 = vrsqrt.f32 %v751_v52  ;;  %vm775_vm4 = vcmp.eq.f32.partialorder %v751_v52, inf  ;;  %vm777_vm7 = vcmp.eq.f32.partialorder %v751_v52, 0.0  ;;  %v778_v8 = vand.u32 2147483648, %v751_v52 }
 0x17e   : > { %v760_v53 = vpop.xlane.xlu1 %759 }
 0x17f   : > { %3817 = vrsqrt.f32 %v760_v53  ;;  %v754_v54 = vpop.xlane.xlu0 %753  ;;  %vm796_vm8 = vcmp.eq.f32.partialorder %v760_v53, inf  ;;  %v799_v10 = vand.u32 2147483648, %v760_v53  ;;  %vm798_vm10 = vcmp.eq.f32.partialorder %v760_v53, 0.0 }
 0x180   : > { %3819 = vrsqrt.f32 %v754_v54  ;;  %vm782_vm9 = vcmp.eq.f32.partialorder %v754_v54, inf  ;;  %v785_v16 = vand.u32 2147483648, %v754_v54  ;;  %vm784_vm11 = vcmp.eq.f32.partialorder %v754_v54, 0.0 }
 0x183   : > { %v763_v56 = vpop.xlane.xlu0 %762 }
 0x184   : > { %3821 = vrsqrt.f32 %v763_v56  ;;  %vm803_vm15 = vcmp.eq.f32.partialorder %v763_v56, inf  ;;  %vm805_vm0 = vcmp.eq.f32.partialorder %v763_v56, 0.0  ;;  %v806_v29 = vand.u32 2147483648, %v763_v56 }
 0x185   : > { %v3814_v59 = vpop.eup %3813  ;;  %v4115_v60 = vpop.xlane.xlu1 %765 }
 0x186   : > { %v3816_v61 = vpop.eup %3815  ;;  %v788_v62 = vmul.f32 %v3814_v59, %v757_v51  ;;  %3823 = vrsqrt.f32 %v4115_v60  ;;  %v813_v39 = vand.u32 2147483648, %v4115_v60 }
 0x187   : > { %v774_v63 = vmul.f32 %v3816_v61, %v751_v52 }
 0x188   : > { %v4121_v1 = vpop.xlane.xlu0 %768  ;;  %v790_v7 = vsel %vm789_vm3, %v757_v51, %v788_v62  ;;  %vm810_vm3 = vcmp.eq.f32.partialorder %v4115_v60, inf }
 0x189   : > { %v3818_v2 = vpop.eup %3817  ;;  %v776_v4 = vsel %vm775_vm4, %v751_v52, %v774_v63  ;;  %3825 = vrsqrt.f32 %v4121_v1  ;;  %v4124_v5 = vpop.xlane.xlu1 %771  ;;  %v793_v18 = vsel %vm791_vm6, %v792_v3, %v790_v7  ;;  %vm812_vm4 = vcmp.eq.f32.partialorder %v4115_v60, 0.0 }
 0x18a   : > { %v3820_v6 = vpop.eup %3819  ;;  %v795_v9 = vmul.f32 %v3818_v2, %v760_v53  ;;  %3827 = vrsqrt.f32 %v4124_v5  ;;  %v779_v12 = vsel %vm777_vm7, %v778_v8, %v776_v4  ;;  %v851_v28 = vrot.slane %v793_v18, %v4119_v0 }
 0x18b   : > { %v781_v11 = vmul.f32 %v3820_v6, %v754_v54  ;;  %v843_v24 = vrot.slane %v779_v12, %v4119_v0  ;;  %vm880_vm6 = vcmask 1045509   ;;  %vm817_vm7 = vcmp.eq.f32.partialorder %v4121_v1, inf }
 0x18c   : > { %v797_v14 = vsel %vm796_vm8, %v760_v53, %v795_v9  ;;  %v820_v48 = vand.u32 2147483648, %v4121_v1  ;;  %vm819_vm8 = vcmp.eq.f32.partialorder %v4121_v1, 0.0 }
 0x18d   : > { %v783_v19 = vsel %vm782_vm9, %v754_v54, %v781_v11  ;;  %v800_v22 = vsel %vm798_vm10, %v799_v10, %v797_v14  ;;  %vm882_vm9 = vcmask 1046534   ;;  %vm824_vm10 = vcmp.eq.f32.partialorder %v4124_v5, inf }
 0x18e   : > { %v3822_v21 = vpop.eup %3821  ;;  %v786_v23 = vsel %vm784_vm11, %v785_v16, %v783_v19  ;;  %v855_v30 = vrot.slane %v800_v22, %v4119_v0  ;;  %v827_v54 = vand.u32 2147483648, %v4124_v5  ;;  %vm826_vm11 = vcmp.eq.f32.partialorder %v4124_v5, 0.0 }
 0x18f   : > { %v847_v25 = vrot.slane %v786_v23, %v4119_v0  ;;  %v802_v26 = vmul.f32 %v3822_v21, %v763_v56  ;;  %v3465_v23 = vld [vmem:[%s4695_s7] ss:$0 sm:$0xff] }
 0x190   : > { %v3824_v27 = vpop.eup %3823 }
 0x191   : > { %v804_v31 = vsel %vm803_vm15, %v763_v56, %v802_v26  ;;  %v809_v33 = vmul.f32 %v3824_v27, %v4115_v60  ;;  %v873_v34 = vsel %vm872_vm5, %v847_v25, %v843_v24  ;;  %vm884_vm15 = vcmask 1047559   ;;  %v3458_v27 = vld [vmem:[%s4693_s5] ss:$0 sm:$0xff] }
 0x192   : > { %v807_v37 = vsel %vm805_vm0, %v806_v29, %v804_v31  ;;  %v875_v40 = vsel %vm874_vm12, %v851_v28, %v873_v34  ;;  %vm829_vm0 = vcmp.gt.f32.partialorder %v4163_v55, 0.0 }
 0x193   : > { %v3826_v41 = vpop.eup %3825  ;;  %v811_v42 = vsel %vm810_vm3, %v4115_v60, %v809_v33  ;;  %v859_v43 = vrot.slane %v807_v37, %v4119_v0  ;;  %v877_v44 = vsel %vm876_vm13, %v855_v30, %v875_v40  ;;  %vm888_vm3 = vcmask 64512  }
 0x194   : > { %v816_v45 = vmul.f32 %v3826_v41, %v4121_v1  ;;  %v814_v46 = vsel %vm812_vm4, %v813_v39, %v811_v42  ;;  %v3828_v47 = vpop.eup %3827  ;;  %v902_v4 = vsel %vm888_vm3, %v4163_v55, 0.0 }
 0x195   : > { %v863_v49 = vrot.slane %v814_v46, %v4119_v0  ;;  %v879_v51 = vsel %vm878_vm14, %v859_v43, %v877_v44  ;;  %v823_v53 = vmul.f32 %v3828_v47, %v4124_v5  ;;  %903 = vadd.xlane.f32.xlu1 %v902_v4 }
 0x196   : > { %v818_v52 = vsel %vm817_vm7, %v4121_v1, %v816_v45 }
 0x197   : > { %v821_v56 = vsel %vm819_vm8, %v820_v48, %v818_v52  ;;  %v881_v57 = vsel %vm880_vm6, %v863_v49, %v879_v51  ;;  %v825_v59 = vsel %vm824_vm10, %v4124_v5, %v823_v53 }
 0x198   : > { %v867_v60 = vrot.slane %v821_v56, %v4119_v0  ;;  %v828_v61 = vsel %vm826_vm11, %v827_v54, %v825_v59 }
 0x199   : > { %v871_v62 = vrot.slane %v828_v61, %v4119_v0  ;;  %v4182_v0 = vld [vmem:[%s4697_s9] ss:$0 sm:$0xff] }
 0x19a   : > { %v883_v63 = vsel %vm882_vm9, %v867_v60, %v881_v57 }
 0x19b   : > { %v885_v1 = vsel %vm884_vm15, %v871_v62, %v883_v63 }
 0x19c   : > { %v4173_v2 = vsel %vm829_vm0, %v885_v1, -1e+30 }
 0x19d   : > { %v889_v3 = vsel %vm888_vm3, %v4173_v2, -inf }
 0x19e   : > { %890 = vmax.xlane.f32.xlu0 %v889_v3 }
 0x1c3   : > { %v3626_v5 = vpop.f32.mrb[8].mxu0 }
 0x1c4   : > { %v981_v6 = vpop.f32.mrb[9].mxu0  ;;  %v990_v48 = vadd.f32 %v3626_v5, %v3458_v27 }
 0x1c5   : > { %v3627_v7 = vpop.f32.mrb[10].mxu0  ;;  %v982_v42 = vadd.f32 %v3458_v27, %v981_v6 }
 0x1c6   : > { %v984_v8 = vpop.f32.mrb[11].mxu0  ;;  %v993_v53 = vadd.f32 %v3627_v7, %v3458_v27 }
 0x1c7   : > { %v985_v45 = vadd.f32 %v3458_v27, %v984_v8 }
 0x1cb   : > { %v4184_v9 = vpop.f32.mrb[0].mxu1 }
 0x1cc   : > { %v3650_v10 = vpop.f32.mrb[12].mxu0  ;;  %v997_v11 = vpop.f32.mrb[1].mxu1  ;;  %v1006_v62 = vadd.f32 %v4184_v9, %v3458_v27 }
 0x1cd   : > { %v4187_v12 = vadd.f32 %v3650_v10, %v4182_v0  ;;  %v4189_v14 = vpop.f32.mrb[13].mxu0  ;;  %v4191_v16 = vpop.f32.mrb[2].mxu1  ;;  %v998_v57 = vadd.f32 %v3458_v27, %v997_v11 }
 0x1ce   : > { %v3651_v18 = vpop.f32.mrb[14].mxu0  ;;  %v1000_v19 = vpop.f32.mrb[3].mxu1  ;;  %v1148_v63 = vadd.f32 %v4182_v0, %v4189_v14  ;;  %v1009_v1 = vadd.f32 %v4191_v16, %v3458_v27 }
 0x1cf   : > { %v4194_v21 = vadd.f32 %v3651_v18, %v4182_v0  ;;  %v4196_v22 = vpop.f32.mrb[15].mxu0  ;;  %v1001_v60 = vadd.f32 %v3458_v27, %v1000_v19 }
 0x1d0   : > { %v1151_v3 = vadd.f32 %v4182_v0, %v4196_v22 }
 0x1d3   : > { %v3638_v24 = vpop.f32.mrb[4].mxu1 }
 0x1d4   : > { %v3654_v25 = vpop.f32.mrb[16].mxu0  ;;  %v1064_v26 = vpop.f32.mrb[5].mxu1  ;;  %v1073_v44 = vadd.f32 %v3638_v24, %v3465_v23 }
 0x1d5   : > { %v4205_v28 = vadd.f32 %v3654_v25, %v4182_v0  ;;  %v1065_v29 = vadd.f32 %v3465_v23, %v1064_v26  ;;  %v1163_v30 = vpop.f32.mrb[17].mxu0  ;;  %v3639_v31 = vpop.f32.mrb[6].mxu1 }
 0x1d6   : > { %v4208_v33 = vadd.f32 %v4182_v0, %v1163_v30  ;;  %v3655_v34 = vpop.f32.mrb[18].mxu0  ;;  %v1067_v37 = vpop.f32.mrb[7].mxu1  ;;  %v1076_v46 = vadd.f32 %v3639_v31, %v3465_v23 }
 0x1d7   : > { %v4211_v39 = vadd.f32 %v3655_v34, %v4182_v0  ;;  %v1068_v40 = vadd.f32 %v3465_v23, %v1067_v37  ;;  %v1166_v41 = vpop.f32.mrb[19].mxu0  ;;  %3657 = vmatpush3.xpose.msk.msra.mxu1 %vm748_vm1, %v1065_v29 }
 0x1d8   : > { %v4215_v43 = vadd.f32 %v4182_v0, %v1166_v41  ;;  %3666 = vmatprep.subr.mxu1 %v3909_v50  ;;  %v3911_v41 = vmov 1966171168  }
 0x1d9   : > { %3662 = vmatpush3.xpose.msk.msra.mxu0 %vm748_vm1, %v1068_v40 }
 0x1da   : > { %3659 = vmatmul.mubr.msk.f32.vlgmr.msra.gmra.mrb[12].mxu1 %vm748_vm1, %v982_v42  ;;  %3671 = vmatprep.subr.mxu0 %v3909_v50  ;;  %v1797_v42 = vunpack.c.l.s4 %v3911_v41 }
 0x1db   : > { %v3642_v47 = vpop.f32.mrb[8].mxu1  ;;  %3667 = vmatpush3.xpose.msk.msra.mxu1 %vm748_vm1, %v1073_v44  ;;  %3668 = vmatprep.mubr.msk.f32.mxu1 %vm3910_vm2, %v3909_v50 }
 0x1dc   : > { %v1080_v49 = vpop.f32.mrb[9].mxu1  ;;  %3664 = vmatmul.mubr.msk.f32.vlgmr.msra.gmra.mrb[20].mxu0 %vm748_vm1, %v985_v45  ;;  %3676 = vmatprep.subr.mxu1 %v3909_v50  ;;  %v1089_v59 = vadd.f32 %v3642_v47, %v3465_v23  ;;  %v1798_v45 = vunpack.c.0.s8 %v1797_v42 }
 0x1dd   : > { %v1081_v51 = vadd.f32 %v3465_v23, %v1080_v49  ;;  %v3643_v52 = vpop.f32.mrb[10].mxu1  ;;  %3672 = vmatpush3.xpose.msk.msra.mxu0 %vm748_vm1, %v1076_v46  ;;  %3673 = vmatprep.mubr.msk.f32.mxu0 %vm3910_vm2, %v3909_v50 }
 0x1de   : > { %v1083_v54 = vpop.f32.mrb[11].mxu1  ;;  %3669 = vmatmul.mubr.msk.f32.vlgmr.msra.gmra.mrb[14].mxu1 %vm748_vm1, %v990_v48  ;;  %3681 = vmatprep.subr.mxu0 %v3909_v50  ;;  %v1092_v61 = vadd.f32 %v3643_v52, %v3465_v23  ;;  %v1801_v49 = vsub.s32 %v1798_v45, %v4113_v58 }
 0x1df   : > { %v1084_v56 = vadd.f32 %v3465_v23, %v1083_v54  ;;  %3677 = vmatpush3.xpose.msk.msra.mxu1 %vm748_vm1, %v1081_v51  ;;  %3678 = vmatprep.mubr.msk.f32.mxu1 %vm3910_vm2, %v3909_v50 }
 0x1e0   : > { %3674 = vmatmul.mubr.msk.f32.vlgmr.msra.gmra.mrb[22].mxu0 %vm748_vm1, %v993_v53  ;;  %3686 = vmatprep.subr.mxu1 %v3909_v50 }
 0x1e1   : > { %3682 = vmatpush3.xpose.msk.msra.mxu0 %vm748_vm1, %v1084_v56  ;;  %3683 = vmatprep.mubr.msk.f32.mxu0 %vm3910_vm2, %v3909_v50 }
 0x1e2   : > { %3679 = vmatmul.mubr.msk.f32.vlgmr.msra.gmra.mrb[16].mxu1 %vm748_vm1, %v998_v57  ;;  %3691 = vmatprep.subr.mxu0 %v3909_v50 }
 0x1e3   : > { %3687 = vmatpush3.xpose.msk.msra.mxu1 %vm748_vm1, %v1089_v59  ;;  %3688 = vmatprep.mubr.msk.f32.mxu1 %vm3910_vm2, %v3909_v50  ;;  %v4285_v59 = vsub.s32 0, %v4113_v58 }
 0x1e4   : > { %3684 = vmatmul.mubr.msk.f32.vlgmr.msra.gmra.mrb[24].mxu0 %vm748_vm1, %v1001_v60  ;;  %3696 = vmatprep.subr.mxu1 %v3909_v50 }
 0x1e5   : > { %3692 = vmatpush3.xpose.msk.msra.mxu0 %vm748_vm1, %v1092_v61  ;;  %3693 = vmatprep.mubr.msk.f32.mxu0 %vm3910_vm2, %v3909_v50 }
 0x1e6   : > { %3689 = vmatmul.mubr.msk.f32.vlgmr.msra.gmra.mrb[18].mxu1 %vm748_vm1, %v1006_v62  ;;  %3701 = vmatprep.subr.mxu0 %v3909_v50 }
 0x1e7   : > { %3697 = vmatpush3.msra.mxu1 %v1148_v63  ;;  %3698 = vmatprep.mubr.msk.f32.mxu1 %vm3910_vm2, %v3909_v50 }
 0x1e8   : > { %3694 = vmatmul.mubr.msk.f32.vlgmr.msra.gmra.mrb[26].mxu0 %vm748_vm1, %v1009_v1  ;;  %3706 = vmatprep.subr.mxu1 %v3909_v50 }
 0x1e9   : > { %3702 = vmatpush3.msra.mxu0 %v1151_v3  ;;  %3703 = vmatprep.mubr.msk.f32.mxu0 %vm3910_vm2, %v3909_v50 }
 0x1ea   : > { %3711 = vmatprep.subr.mxu0 %v3909_v50 }
 0x222   : > { %v904_v30 = vpop.xlane.xlu1 %903 }
 0x223   : > { %v905_v31 = vmax.f32 %v904_v30, 1e-12 }
 0x22b   : > { %v891_v4 = vpop.xlane.xlu0 %890 }
 0x22c   : > { %v892_v5 = vsub.f32 %v4173_v2, %v891_v4 }
 0x22e   : > { %v893_v6 = vmul.f32 1.442695, %v892_v5  ;;  %v3912_v5 = vmov 0  }
 0x230   : > { %3829 = vpow2.f32 %v893_v6 }
 0x231   : > { %3831 = vrcp.f32 %v905_v31 }
 0x23a   : > { %v3830_v7 = vpop.eup %3829 }
 0x23b   : > { %v895_v8 = vmul.f32 %v3830_v7, %v4163_v55  ;;  %v3832_v40 = vpop.eup %3831 }
 0x23c   : > { %v908_v44 = vmax.f32 %v3832_v40, 0.0 }
 0x23d   : > { %v896_v0 = vsel %vm888_vm3, %v895_v8, 0.0 }
 0x23e   : > { %897 = vadd.xlane.f32.xlu0 %v896_v0  ;;  %v909_v46 = vmin.f32 %v908_v44, 1.0 }
 0x2ad   : > { %v1250_v9 = vpop.f32.mrb[12].mxu1 }
 0x2ae   : > { %v3660_v10 = vpop.f32.mrb[13].mxu1  ;;  %v1786_v60 = vmul.f32 0.17677669, %v1250_v9 }
 0x2af   : > { %v1326_v11 = vpop.f32.mrb[20].mxu0 }
 0x2b0   : > { %v3665_v14 = vpop.f32.mrb[21].mxu0  ;;  %v1787_v61 = vmul.f32 0.17677669, %v1326_v11 }
 0x2b1   : > { %v1402_v16 = vpop.f32.mrb[14].mxu1 }
 0x2b2   : > { %v3670_v18 = vpop.f32.mrb[15].mxu1  ;;  %v1788_v3 = vmul.f32 0.17677669, %v1402_v16 }
 0x2b3   : > { %v1478_v19 = vpop.f32.mrb[22].mxu0 }
 0x2b4   : > { %v3675_v22 = vpop.f32.mrb[23].mxu0  ;;  %v1789_v4 = vmul.f32 0.17677669, %v1478_v19 }
 0x2b5   : > { %v4267_v23 = vpop.f32.mrb[16].mxu1 }
 0x2b6   : > { %v3680_v24 = vpop.f32.mrb[17].mxu1 }
 0x2b7   : > { %v4269_v2 = vpop.f32.mrb[24].mxu0 }
 0x2b8   : > { %v3685_v25 = vpop.f32.mrb[25].mxu0 }
 0x2b9   : > { %v4271_v26 = vpop.f32.mrb[18].mxu1 }
 0x2ba   : > { %v3690_v55 = vpop.f32.mrb[19].mxu1 }
 0x2bb   : > { %v4273_v27 = vpop.f32.mrb[26].mxu0 }
 0x2bc   : > { %v3695_v29 = vpop.f32.mrb[27].mxu0 }
 0x2cb   : > { %v898_v34 = vpop.xlane.xlu0 %897 }
 0x2cc   : > { %v899_v37 = vmax.f32 %v898_v34, 1e-12  ;;  %v1790_v34 = vmul.f32 0.17677669, %v4267_v23  ;;  %v1791_v23 = vmul.f32 0.17677669, %v4269_v2 }
 0x2ce   : > { %3833 = vrcp.f32 %v899_v37 }
 0x2d8   : > { %v3834_v47 = vpop.eup %3833 }
 0x2d9   : > { %v901_v48 = vmul.f32 %v3834_v47, %v895_v8 }
 0x2db   : > { %vm910_vm4 = vcmp.ge.f32.partialorder %v901_v48, %v909_v46 }
 0x2dc   : > { %v4277_v51 = vsel %vm910_vm4, 1.0, %v3909_v50 }
 0x2dd   : > { %v1802_v52 = vrot.slane %v4277_v51, %v1801_v49  ;;  %v1795_v53 = vcombine.high %v4277_v51, %v4277_v51 }
 0x2df   : > { %v4282_v54 = vrot.slane %v1802_v52, %v1801_v49  ;;  %v1810_v56 = vcombine.high %v1802_v52, %v1802_v52  ;;  %v1809_v57 = vrot.slane %v1795_v53, %v1801_v49 }
 0x2e1   : > { %vm1852_vm7 = vcmp.gt.f32.partialorder %v4282_v54, 0.0  ;;  %v4288_v62 = vrot.slane %v1810_v56, %v1801_v49  ;;  %v4292_v63 = vcombine.high %v4282_v54, %v4282_v54  ;;  %v4294_v1 = vrot.slane %v1809_v57, %v1801_v49 }
 0x2e2   : > { %v1860_v6 = vsel %vm1852_vm7, 1, %v3912_v5  ;;  %v1811_v7 = vcombine.high %v1809_v57, %v1809_v57  ;;  %v1792_v57 = vmul.f32 0.17677669, %v4271_v26 }
 0x2e3   : > { %v1871_v8 = vrot.slane %v1860_v6, %v4285_v59  ;;  %vm1853_vm8 = vcmp.gt.f32.partialorder %v4288_v62, 0.0  ;;  %vm1854_vm10 = vcmp.gt.f32.partialorder %v4292_v63, 0.0  ;;  %v4301_v0 = vcombine.high %v4288_v62, %v4288_v62 }
 0x2e4   : > { %v1861_v9 = vsel %vm1853_vm8, 1, %v3912_v5  ;;  %v1862_v10 = vsel %vm1854_vm10, 1, %v3912_v5  ;;  %vm1856_vm11 = vcmp.gt.f32.partialorder %v4294_v1, 0.0  ;;  %v4304_v11 = vrot.slane %v1811_v7, %v1801_v49 }
 0x2e5   : > { %vm1900_vm0 = vcmp.eq.s32.totalorder %v1871_v8, 1  ;;  %v1875_v14 = vrot.slane %v1861_v9, %v4285_v59  ;;  %v1879_v16 = vrot.slane %v1862_v10, %v4285_v59  ;;  %vm1855_vm4 = vcmp.gt.f32.partialorder %v4301_v0, 0.0 }
 0x2e6   : > { %v1908_v18 = vsel %vm1900_vm0, %v1786_v60, -1e+30  ;;  %v1863_v19 = vsel %vm1855_vm4, 1, %v3912_v5  ;;  %v1864_v22 = vsel %vm1856_vm11, 1, %v3912_v5  ;;  %vm1857_vm7 = vcmp.gt.f32.partialorder %v4304_v11, 0.0 }
 0x2e7   : > { %v1916_v24 = vsel %vm888_vm3, %v1908_v18, -inf  ;;  %vm1901_vm8 = vcmp.eq.s32.totalorder %v1875_v14, 1  ;;  %vm1902_vm10 = vcmp.eq.s32.totalorder %v1879_v16, 1  ;;  %v1883_v25 = vrot.slane %v1863_v19, %v4285_v59 }
 0x2e8   : > { %1917 = vmax.xlane.f32.xlu1 %v1916_v24  ;;  %v1909_v55 = vsel %vm1901_vm8, %v1787_v61, -1e+30  ;;  %v1910_v29 = vsel %vm1902_vm10, %v1788_v3, -1e+30  ;;  %v1887_v30 = vrot.slane %v1864_v22, %v4285_v59  ;;  %v1865_v31 = vsel %vm1857_vm7, 1, %v3912_v5 }
 0x2e9   : > { %v1919_v37 = vsel %vm888_vm3, %v1909_v55, -inf  ;;  %vm1903_vm0 = vcmp.eq.s32.totalorder %v1883_v25, 1  ;;  %v1891_v40 = vrot.slane %v1865_v31, %v4285_v59  ;;  %v4318_v42 = vcombine.high %v4294_v1, %v4294_v1 }
 0x2ea   : > { %1920 = vmax.xlane.f32.xlu0 %v1919_v37  ;;  %v1911_v41 = vsel %vm1903_vm0, %v1789_v4, -1e+30  ;;  %vm1904_vm11 = vcmp.eq.s32.totalorder %v1887_v30, 1  ;;  %v4322_v44 = vcombine.high %v4304_v11, %v4304_v11  ;;  %v1922_v45 = vsel %vm888_vm3, %v1910_v29, -inf }
 0x2eb   : > { %vm1905_vm4 = vcmp.eq.s32.totalorder %v1891_v40, 1  ;;  %v1912_v46 = vsel %vm1904_vm11, %v1790_v34, -1e+30  ;;  %vm1858_vm7 = vcmp.gt.f32.partialorder %v4318_v42, 0.0  ;;  %v1925_v47 = vsel %vm888_vm3, %v1911_v41, -inf }
 0x2ec   : > { %1923 = vmax.xlane.f32.xlu1 %v1922_v45  ;;  %vm1859_vm8 = vcmp.gt.f32.partialorder %v4322_v44, 0.0  ;;  %v1866_v48 = vsel %vm1858_vm7, 1, %v3912_v5  ;;  %v1913_v52 = vsel %vm1905_vm4, %v1791_v23, -1e+30  ;;  %v1928_v2 = vsel %vm888_vm3, %v1912_v46, -inf }
 0x2ed   : > { %v1867_v49 = vsel %vm1859_vm8, 1, %v3912_v5  ;;  %v1895_v53 = vrot.slane %v1866_v48, %v4285_v59  ;;  %v1793_v60 = vmul.f32 0.17677669, %v4273_v27  ;;  %v1931_v61 = vsel %vm888_vm3, %v1913_v52, -inf }
 0x2ee   : > { %1926 = vmax.xlane.f32.xlu0 %v1925_v47  ;;  %v1899_v56 = vrot.slane %v1867_v49, %v4285_v59 }
 0x2ef   : > { %vm1906_vm10 = vcmp.eq.s32.totalorder %v1895_v53, 1 }
 0x2f0   : > { %1929 = vmax.xlane.f32.xlu1 %v1928_v2  ;;  %vm1907_vm0 = vcmp.eq.s32.totalorder %v1899_v56, 1  ;;  %v1914_v3 = vsel %vm1906_vm10, %v1792_v57, -1e+30  ;;  %v1975_v2 = vrot.slane %v4292_v63, %v4285_v59  ;;  %v1983_v63 = vrot.slane %v4294_v1, %v4285_v59 }
 0x2f1   : > { %v1915_v4 = vsel %vm1907_vm0, %v1793_v60, -1e+30  ;;  %v1934_v5 = vsel %vm888_vm3, %v1914_v3, -inf  ;;  %v1991_v1 = vrot.slane %v4318_v42, %v4285_v59 }
 0x2f2   : > { %1932 = vmax.xlane.f32.xlu0 %v1931_v61  ;;  %v1937_v6 = vsel %vm888_vm3, %v1915_v4, -inf }
 0x2f4   : > { %1935 = vmax.xlane.f32.xlu1 %v1934_v5 }
 0x2f6   : > { %1938 = vmax.xlane.f32.xlu0 %v1937_v6 }
 0x375   : > { %v1918_v7 = vpop.xlane.xlu1 %1917 }
 0x376   : > { %v1940_v26 = vsub.f32 %v1908_v18, %v1918_v7 }
 0x377   : > { %v1921_v8 = vpop.xlane.xlu0 %1920 }
 0x378   : > { %v1948_v9 = vmul.f32 1.442695, %v1940_v26  ;;  %v1941_v10 = vsub.f32 %v1909_v55, %v1921_v8 }
 0x379   : > { %v1924_v27 = vpop.xlane.xlu1 %1923 }
 0x37a   : > { %3835 = vpow2.f32 %v1948_v9  ;;  %v1950_v14 = vmul.f32 1.442695, %v1941_v10  ;;  %v1942_v16 = vsub.f32 %v1910_v29, %v1924_v27  ;;  %v1967_v29 = vrot.slane %v4282_v54, %v4285_v59 }
 0x37b   : > { %v1927_v19 = vpop.xlane.xlu0 %1926 }
 0x37c   : > { %3837 = vpow2.f32 %v1950_v14  ;;  %v1952_v22 = vmul.f32 1.442695, %v1942_v16  ;;  %v1943_v24 = vsub.f32 %v1911_v41, %v1927_v19 }
 0x37d   : > { %v1930_v25 = vpop.xlane.xlu1 %1929 }
 0x37e   : > { %3839 = vpow2.f32 %v1952_v22  ;;  %v1954_v30 = vmul.f32 1.442695, %v1943_v24  ;;  %v1944_v31 = vsub.f32 %v1912_v46, %v1930_v25  ;;  %v1971_v46 = vrot.slane %v4288_v62, %v4285_v59 }
 0x37f   : > { %v1933_v34 = vpop.xlane.xlu0 %1932  ;;  %v1979_v62 = vrot.slane %v4301_v0, %v4285_v59  ;;  %v1987_v0 = vrot.slane %v4304_v11, %v4285_v59  ;;  %v1995_v11 = vrot.slane %v4322_v44, %v4285_v59 }
 0x380   : > { %3841 = vpow2.f32 %v1954_v30  ;;  %v1956_v37 = vmul.f32 1.442695, %v1944_v31  ;;  %v1945_v40 = vsub.f32 %v1913_v52, %v1933_v34 }
 0x381   : > { %v1936_v18 = vpop.xlane.xlu1 %1935 }
 0x382   : > { %3843 = vpow2.f32 %v1956_v37  ;;  %v1958_v45 = vmul.f32 1.442695, %v1945_v40  ;;  %v1946_v55 = vsub.f32 %v1914_v3, %v1936_v18 }
 0x383   : > { %v1939_v23 = vpop.xlane.xlu0 %1938 }
 0x384   : > { %v3836_v47 = vpop.eup %3835  ;;  %3845 = vpow2.f32 %v1958_v45  ;;  %v1960_v48 = vmul.f32 1.442695, %v1946_v55  ;;  %v1947_v41 = vsub.f32 %v1915_v4, %v1939_v23 }
 0x385   : > { %v4339_v49 = vmul.f32 %v3836_v47, %v1967_v29 }
 0x386   : > { %v3838_v53 = vpop.eup %3837  ;;  %3847 = vpow2.f32 %v1960_v48  ;;  %v1962_v52 = vmul.f32 1.442695, %v1947_v41 }
 0x387   : > { %v2012_v56 = vsel %vm888_vm3, %v4339_v49, 0.0  ;;  %v2005_v57 = vmul.f32 %v3838_v53, %v1971_v46 }
 0x388   : > { %v3840_v54 = vpop.eup %3839  ;;  %3849 = vpow2.f32 %v1962_v52  ;;  %2013 = vadd.xlane.f32.xlu1 %v2012_v56 }
 0x389   : > { %v2015_v60 = vsel %vm888_vm3, %v2005_v57, 0.0  ;;  %v4348_v61 = vmul.f32 %v3840_v54, %v1975_v2 }
 0x38a   : > { %v3842_v3 = vpop.eup %3841  ;;  %2016 = vadd.xlane.f32.xlu0 %v2015_v60 }
 0x38b   : > { %v2018_v4 = vsel %vm888_vm3, %v4348_v61, 0.0  ;;  %v4354_v5 = vmul.f32 %v3842_v3, %v1979_v62 }
 0x38c   : > { %v3844_v6 = vpop.eup %3843  ;;  %2019 = vadd.xlane.f32.xlu1 %v2018_v4 }
 0x38d   : > { %v2021_v7 = vsel %vm888_vm3, %v4354_v5, 0.0  ;;  %v4360_v26 = vmul.f32 %v3844_v6, %v1983_v63 }
 0x38e   : > { %v3846_v8 = vpop.eup %3845  ;;  %2022 = vadd.xlane.f32.xlu0 %v2021_v7 }
 0x38f   : > { %v2024_v9 = vsel %vm888_vm3, %v4360_v26, 0.0  ;;  %v4366_v10 = vmul.f32 %v3846_v8, %v1987_v0 }
 0x390   : > { %v3848_v27 = vpop.eup %3847  ;;  %2025 = vadd.xlane.f32.xlu1 %v2024_v9 }
 0x391   : > { %v2027_v14 = vsel %vm888_vm3, %v4366_v10, 0.0  ;;  %v4372_v16 = vmul.f32 %v3848_v27, %v1991_v1 }
 0x392   : > { %v3850_v19 = vpop.eup %3849  ;;  %2028 = vadd.xlane.f32.xlu0 %v2027_v14 }
 0x393   : > { %v2030_v22 = vsel %vm888_vm3, %v4372_v16, 0.0  ;;  %v4378_v24 = vmul.f32 %v3850_v19, %v1995_v11 }
 0x394   : > { %2031 = vadd.xlane.f32.xlu1 %v2030_v22 }
 0x395   : > { %v2033_v42 = vsel %vm888_vm3, %v4378_v24, 0.0 }
 0x396   : > { %2034 = vadd.xlane.f32.xlu0 %v2033_v42 }
 0x415   : > { %v2014_v25 = vpop.xlane.xlu1 %2013 }
 0x416   : > { %v2036_v30 = vmax.f32 %v2014_v25, 1e-12 }
 0x417   : > { %v2017_v31 = vpop.xlane.xlu0 %2016 }
 0x418   : > { %3851 = vrcp.f32 %v2036_v30  ;;  %v2037_v34 = vmax.f32 %v2017_v31, 1e-12  ;;  %v3503_v31 = vld [vmem:[%s4699_s11] ss:$0 sm:$0xff] }
 0x419   : > { %v2020_v37 = vpop.xlane.xlu1 %2019 }
 0x41a   : > { %3853 = vrcp.f32 %v2037_v34  ;;  %v2038_v44 = vmax.f32 %v2020_v37, 1e-12 }
 0x41b   : > { %v2023_v40 = vpop.xlane.xlu0 %2022 }
 0x41c   : > { %3855 = vrcp.f32 %v2038_v44  ;;  %v2039_v18 = vmax.f32 %v2023_v40, 1e-12 }
 0x41d   : > { %v2026_v45 = vpop.xlane.xlu1 %2025 }
 0x41e   : > { %3857 = vrcp.f32 %v2039_v18  ;;  %v2040_v55 = vmax.f32 %v2026_v45, 1e-12 }
 0x41f   : > { %v2029_v23 = vpop.xlane.xlu0 %2028 }
 0x420   : > { %3859 = vrcp.f32 %v2040_v55  ;;  %v2041_v29 = vmax.f32 %v2029_v23, 1e-12 }
 0x421   : > { %v2032_v47 = vpop.xlane.xlu1 %2031 }
 0x422   : > { %v3852_v48 = vpop.eup %3851  ;;  %3861 = vrcp.f32 %v2041_v29  ;;  %v2042_v41 = vmax.f32 %v2032_v47, 1e-12 }
 0x423   : > { %v2035_v46 = vpop.xlane.xlu0 %2034  ;;  %v2052_v53 = vmul.f32 %v3852_v48, %v4339_v49 }
 0x424   : > { %v3854_v52 = vpop.eup %3853  ;;  %3863 = vrcp.f32 %v2042_v41  ;;  %v2043_v56 = vmax.f32 %v2035_v46, 1e-12 }
 0x425   : > { %3699 = vmatmul.mubr.msk.f32.vlgmr.msra.gmra.mrb[20].mxu1 %vm888_vm3, %v2052_v53  ;;  %v2053_v2 = vmul.f32 %v3854_v52, %v2005_v57 }
 0x426   : > { %v3856_v54 = vpop.eup %3855  ;;  %3865 = vrcp.f32 %v2043_v56  ;;  %3707 = vmatpush3.msra.mxu1 %v4187_v12  ;;  %3708 = vmatprep.mubr.msk.f32.mxu1 %vm3910_vm2, %v3909_v50 }
 0x427   : > { %3704 = vmatmul.mubr.msk.f32.vlgmr.msra.gmra.mrb[28].mxu0 %vm888_vm3, %v2053_v2  ;;  %3716 = vmatprep.subr.mxu1 %v3909_v50  ;;  %v2054_v60 = vmul.f32 %v3856_v54, %v4348_v61 }
 0x428   : > { %v3858_v49 = vpop.eup %3857  ;;  %3712 = vmatpush3.msra.mxu0 %v4194_v21  ;;  %3713 = vmatprep.mubr.msk.f32.mxu0 %vm3910_vm2, %v3909_v50 }
 0x429   : > { %3709 = vmatmul.mubr.msk.f32.vlgmr.msra.gmra.mrb[22].mxu1 %vm888_vm3, %v2054_v60  ;;  %3721 = vmatprep.subr.mxu0 %v3909_v50  ;;  %v2055_v12 = vmul.f32 %v3858_v49, %v4354_v5  ;;  %v3806_v5 = vld [vmem:[%s4698_s10 + $0x8] sm:$0xff]  }
 0x42a   : > { %v3860_v57 = vpop.eup %3859  ;;  %3717 = vmatpush3.msra.mxu1 %v4208_v33  ;;  %3718 = vmatprep.mubr.msk.f32.mxu1 %vm3910_vm2, %v3909_v50 }
 0x42b   : > { %3714 = vmatmul.mubr.msk.f32.vlgmr.msra.gmra.mrb[30].mxu0 %vm888_vm3, %v2055_v12  ;;  %3726 = vmatprep.subr.mxu1 %v3909_v50  ;;  %v2056_v21 = vmul.f32 %v3860_v57, %v4360_v26 }
 0x42c   : > { %v3862_v61 = vpop.eup %3861  ;;  %3722 = vmatpush3.msra.mxu0 %v4215_v43  ;;  %3723 = vmatprep.mubr.msk.f32.mxu0 %vm3910_vm2, %v3909_v50 }
 0x42d   : > { %3719 = vmatmul.mubr.msk.f32.vlgmr.msra.gmra.mrb[24].mxu1 %vm888_vm3, %v2056_v21  ;;  %3731 = vmatprep.subr.mxu0 %v3909_v50  ;;  %v2057_v33 = vmul.f32 %v3862_v61, %v4366_v10 }
 0x42e   : > { %v3864_v62 = vpop.eup %3863  ;;  %3727 = vmatpush3.msra.mxu1 %v4205_v28  ;;  %3728 = vmatprep.mubr.msk.f32.mxu1 %vm3910_vm2, %v3909_v50  ;;  %v3805_v28 = vld [vmem:[%s4698_s10] sm:$0xff]  }
 0x42f   : > { %3724 = vmatmul.mubr.msk.f32.vlgmr.msra.gmra.mrb[32].mxu0 %vm888_vm3, %v2057_v33  ;;  %v2058_v3 = vmul.f32 %v3864_v62, %v4372_v16  ;;  %3736 = vmatprep.subr.bf16.mxu1 %v3805_v28 }
 0x430   : > { %v3866_v43 = vpop.eup %3865  ;;  %3732 = vmatpush3.msra.mxu0 %v4211_v39  ;;  %3733 = vmatprep.mubr.msk.f32.mxu0 %vm3910_vm2, %v3909_v50  ;;  %vm3021_vm2 = vcmask 523264  }
 0x431   : > { %3729 = vmatmul.mubr.msk.f32.vlgmr.msra.gmra.mrb[26].mxu1 %vm888_vm3, %v2058_v3  ;;  %v2059_v4 = vmul.f32 %v3866_v43, %v4378_v24 }
 0x432   : > { %3737 = vmatpush3.bf16.msra.mxu1 %v3805_v28 }
 0x433   : > { %3734 = vmatmul.mubr.msk.f32.vlgmr.msra.gmra.mrb[34].mxu0 %vm888_vm3, %v2059_v4  ;;  %3738 = vmatprep.subr.bf16.mxu1 %v3806_v5 }
 0x436   : > { %3739 = vmatpush3.bf16.msra.mxu1 %v3806_v5 }
 0x4f8   : > { %v2129_v39 = vpop.f32.mrb[20].mxu1 }
 0x4f9   : > { %v3700_v63 = vpop.f32.mrb[21].mxu1 }
 0x4fa   : > { %v2202_v6 = vpop.f32.mrb[28].mxu0 }
 0x4fb   : > { %v2644_v7 = vpack.c.bf16 %v2202_v6, %v2129_v39  ;;  %v3705_v26 = vpop.f32.mrb[29].mxu0 }
 0x4fc   : > { %v2275_v0 = vpop.f32.mrb[22].mxu1 }
 0x4fd   : > { %v3710_v8 = vpop.f32.mrb[23].mxu1  ;;  %3740 = vmatprep.mubr.msk.bf16.mxu1 %vm748_vm1, %v2644_v7 }
 0x4fe   : > { %v2348_v9 = vpop.f32.mrb[30].mxu0 }
 0x4ff   : > { %v2645_v10 = vpack.c.bf16 %v2348_v9, %v2275_v0  ;;  %v3715_v1 = vpop.f32.mrb[31].mxu0 }
 0x500   : > { %v2421_v27 = vpop.f32.mrb[24].mxu1 }
 0x501   : > { %v3720_v14 = vpop.f32.mrb[25].mxu1  ;;  %3741 = vmatmul.mubr.msk.bf16.vlgmr.msra.gmra.mrb[28].mxu1 %vm748_vm1, %v2645_v10 }
 0x502   : > { %v2494_v16 = vpop.f32.mrb[32].mxu0 }
 0x503   : > { %v2646_v11 = vpack.c.bf16 %v2494_v16, %v2421_v27  ;;  %v3725_v19 = vpop.f32.mrb[33].mxu0 }
 0x504   : > { %v2567_v22 = vpop.f32.mrb[26].mxu1 }
 0x505   : > { %v3730_v24 = vpop.f32.mrb[27].mxu1  ;;  %3744 = vmatprep.mubr.msk.bf16.mxu1 %vm748_vm1, %v2646_v11 }
 0x506   : > { %v2640_v42 = vpop.f32.mrb[34].mxu0 }
 0x507   : > { %v2647_v25 = vpack.c.bf16 %v2640_v42, %v2567_v22  ;;  %v3735_v30 = vpop.f32.mrb[35].mxu0 }
 0x509   : > { %3745 = vmatmul.mubr.msk.bf16.gmra.mrb[32].mxu1 %vm748_vm1, %v2647_v25 }
 0x5d4   : > { %v3742_v34 = vpop.f32.mrb[28].mxu1 }
 0x5d5   : > { %v2712_v37 = vpop.f32.mrb[29].mxu1  ;;  %v2721_v44 = vadd.f32 %v3742_v34, %v3503_v31 }
 0x5d6   : > { %v2713_v40 = vadd.f32 %v3503_v31, %v2712_v37  ;;  %v3743_v18 = vpop.f32.mrb[30].mxu1 }
 0x5d7   : > { %v2715_v45 = vpop.f32.mrb[31].mxu1  ;;  %v2724_v55 = vadd.f32 %v3743_v18, %v3503_v31  ;;  %v2745_v41 = vadd.f32 %v2721_v44, %v4041_v13 }
 0x5d8   : > { %v2716_v23 = vadd.f32 %v3503_v31, %v2715_v45  ;;  %v2743_v29 = vadd.f32 %v2713_v40, %v4043_v15 }
 0x5d9   : > { %v2746_v52 = vadd.f32 %v2724_v55, %v4045_v17  ;;  %v2757_v49 = vsel %vm748_vm1, %v2745_v41, 0.0 }
 0x5da   : > { %v2751_v47 = vsel %vm748_vm1, %v2743_v29, 0.0  ;;  %v2744_v48 = vadd.f32 %v2716_v23, %v4049_v20 }
 0x5db   : > { %2752 = vadd.xlane.f32.xlu1 %v2751_v47  ;;  %v2760_v20 = vsel %vm748_vm1, %v2746_v52, 0.0 }
 0x5dc   : > { %v3746_v46 = vpop.f32.mrb[32].mxu1  ;;  %v2754_v53 = vsel %vm748_vm1, %v2744_v48, 0.0 }
 0x5dd   : > { %2755 = vadd.xlane.f32.xlu0 %v2754_v53  ;;  %v2728_v56 = vpop.f32.mrb[33].mxu1  ;;  %v2737_v2 = vadd.f32 %v3746_v46, %v3503_v31  ;;  %v3807_v46 = vld [vmem:[%s4701_s13] sm:$0xff]   ;;  %v3808_v53 = vld [vmem:[%s4701_s13 + $0x8] sm:$0xff]  }
 0x5de   : > { %v2729_v54 = vadd.f32 %v3503_v31, %v2728_v56  ;;  %v3747_v60 = vpop.f32.mrb[34].mxu1  ;;  %3748 = vmatprep.subr.bf16.mxu0 %v3807_v46  ;;  %v3810_v56 = vld [vmem:[%s4703_s15 + $0x8] sm:$0xff]  }
 0x5df   : > { %2758 = vadd.xlane.f32.xlu1 %v2757_v49  ;;  %v2731_v15 = vpop.f32.mrb[35].mxu1  ;;  %v2740_v12 = vadd.f32 %v3747_v60, %v3503_v31  ;;  %v2749_v61 = vadd.f32 %v2737_v2, %v4072_v35  ;;  %3749 = vmatpush3.bf16.msra.mxu0 %v3807_v46 }
 0x5e0   : > { %v2732_v57 = vadd.f32 %v3503_v31, %v2731_v15  ;;  %v2747_v13 = vadd.f32 %v2729_v54, %v4069_v32  ;;  %3750 = vmatprep.subr.bf16.mxu0 %v3808_v53 }
 0x5e1   : > { %2761 = vadd.xlane.f32.xlu0 %v2760_v20  ;;  %v2750_v62 = vadd.f32 %v2740_v12, %v4074_v36  ;;  %v2769_v3 = vsel %vm748_vm1, %v2749_v61, 0.0 }
 0x5e2   : > { %v2763_v21 = vsel %vm748_vm1, %v2747_v13, 0.0  ;;  %v2748_v17 = vadd.f32 %v2732_v57, %v4077_v38 }
 0x5e3   : > { %2764 = vadd.xlane.f32.xlu1 %v2763_v21  ;;  %v2772_v43 = vsel %vm748_vm1, %v2750_v62, 0.0  ;;  %3751 = vmatpush3.bf16.msra.mxu0 %v3808_v53 }
 0x5e4   : > { %v2766_v33 = vsel %vm748_vm1, %v2748_v17, 0.0 }
 0x5e5   : > { %2767 = vadd.xlane.f32.xlu0 %v2766_v33 }
 0x5e7   : > { %2770 = vadd.xlane.f32.xlu1 %v2769_v3 }
 0x5e9   : > { %2773 = vadd.xlane.f32.xlu0 %v2772_v43  ;;  %v4503_v43 = vld [vmem:[%s4700_s12] sm:$0xf] }
 0x668   : > { %v2753_v32 = vpop.xlane.xlu1 %2752 }
 0x669   : > { %v2776_v4 = vmul.f32 0.03125, %v2753_v32 }
 0x66a   : > { %v2756_v28 = vpop.xlane.xlu0 %2755 }
 0x66b   : > { %v4448_v5 = vsub.f32 %v2743_v29, %v2776_v4  ;;  %v2777_v38 = vmul.f32 0.03125, %v2756_v28 }
 0x66c   : > { %v2759_v39 = vpop.xlane.xlu1 %2758 }
 0x66d   : > { %v4450_v35 = vsub.f32 %v2744_v48, %v2777_v38  ;;  %v2778_v63 = vmul.f32 0.03125, %v2759_v39  ;;  %v2792_v36 = vmul.f32 %v4448_v5, %v4448_v5 }
 0x66e   : > { %v2762_v6 = vpop.xlane.xlu0 %2761 }
 0x66f   : > { %v4454_v7 = vsub.f32 %v2745_v41, %v2778_v63  ;;  %v2779_v26 = vmul.f32 0.03125, %v2762_v6  ;;  %v2800_v0 = vsel %vm748_vm1, %v2792_v36, 0.0  ;;  %v2793_v8 = vmul.f32 %v4450_v35, %v4450_v35 }
 0x670   : > { %2801 = vadd.xlane.f32.xlu1 %v2800_v0  ;;  %v2765_v9 = vpop.xlane.xlu1 %2764  ;;  %v2859_v63 = vrot.slane %v4503_v43, %v4285_v59  ;;  %v2870_v6 = vsub.s32 1, %v4113_v58 }
 0x671   : > { %v4459_v10 = vsub.f32 %v2746_v52, %v2779_v26  ;;  %v2780_v1 = vmul.f32 0.03125, %v2765_v9  ;;  %v2803_v27 = vsel %vm748_vm1, %v2793_v8, 0.0  ;;  %v2794_v14 = vmul.f32 %v4454_v7, %v4454_v7  ;;  %v3809_v52 = vld [vmem:[%s4703_s15] sm:$0xff]  }
 0x672   : > { %2804 = vadd.xlane.f32.xlu0 %v2803_v27  ;;  %v2768_v16 = vpop.xlane.xlu0 %2767  ;;  %3760 = vmatprep.subr.bf16.mxu1 %v3809_v52 }
 0x673   : > { %v4464_v11 = vsub.f32 %v2747_v13, %v2780_v1  ;;  %v2781_v19 = vmul.f32 0.03125, %v2768_v16  ;;  %v2806_v22 = vsel %vm748_vm1, %v2794_v14, 0.0  ;;  %v2795_v24 = vmul.f32 %v4459_v10, %v4459_v10  ;;  %3761 = vmatpush3.bf16.msra.mxu1 %v3809_v52 }
 0x674   : > { %2807 = vadd.xlane.f32.xlu1 %v2806_v22  ;;  %v2771_v42 = vpop.xlane.xlu1 %2770  ;;  %3762 = vmatprep.subr.bf16.mxu1 %v3810_v56 }
 0x675   : > { %v4469_v25 = vsub.f32 %v2748_v17, %v2781_v19  ;;  %v2782_v30 = vmul.f32 0.03125, %v2771_v42  ;;  %v2809_v31 = vsel %vm748_vm1, %v2795_v24, 0.0  ;;  %v2796_v34 = vmul.f32 %v4464_v11, %v4464_v11 }
 0x676   : > { %2810 = vadd.xlane.f32.xlu0 %v2809_v31  ;;  %v2774_v37 = vpop.xlane.xlu0 %2773  ;;  %v2871_v19 = vrot.slane %v4503_v43, %v2870_v6 }
 0x677   : > { %v4474_v44 = vsub.f32 %v2749_v61, %v2782_v30  ;;  %v2783_v40 = vmul.f32 0.03125, %v2774_v37  ;;  %v2812_v18 = vsel %vm748_vm1, %v2796_v34, 0.0  ;;  %v2797_v45 = vmul.f32 %v4469_v25, %v4469_v25  ;;  %3763 = vmatpush3.bf16.msra.mxu1 %v3810_v56 }
 0x678   : > { %2813 = vadd.xlane.f32.xlu1 %v2812_v18 }
 0x679   : > { %v4479_v55 = vsub.f32 %v2750_v62, %v2783_v40  ;;  %v2815_v23 = vsel %vm748_vm1, %v2797_v45, 0.0  ;;  %v2798_v29 = vmul.f32 %v4474_v44, %v4474_v44 }
 0x67a   : > { %2816 = vadd.xlane.f32.xlu0 %v2815_v23 }
 0x67b   : > { %v2818_v47 = vsel %vm748_vm1, %v2798_v29, 0.0  ;;  %v2799_v48 = vmul.f32 %v4479_v55, %v4479_v55 }
 0x67c   : > { %2819 = vadd.xlane.f32.xlu1 %v2818_v47 }
 0x67d   : > { %v2821_v41 = vsel %vm748_vm1, %v2799_v48, 0.0 }
 0x67e   : > { %2822 = vadd.xlane.f32.xlu0 %v2821_v41 }
 0x6fd   : > { %v2802_v2 = vpop.xlane.xlu1 %2801 }
 0x6fe   : > { %v2824_v54 = vmul.f32 0.03125, %v2802_v2 }
 0x6ff   : > { %v2805_v60 = vpop.xlane.xlu0 %2804 }
 0x700   : > { %v2832_v49 = vadd.f32 1e-05, %v2824_v54  ;;  %v2825_v15 = vmul.f32 0.03125, %v2805_v60 }
 0x701   : > { %v2808_v12 = vpop.xlane.xlu1 %2807 }
 0x702   : > { %3867 = vrsqrt.f32 %v2832_v49  ;;  %v2833_v57 = vadd.f32 1e-05, %v2825_v15  ;;  %v2826_v20 = vmul.f32 0.03125, %v2808_v12  ;;  %v3811_v49 = vld [vmem:[%s4703_s15 + $0x10] sm:$0xff]   ;;  %v3812_v15 = vld [vmem:[%s4703_s15 + $0x18] sm:$0xff]  }
 0x703   : > { %v2811_v13 = vpop.xlane.xlu0 %2810  ;;  %3764 = vmatprep.subr.bf16.mxu1 %v3811_v49  ;;  %v3510_v12 = vld [vmem:[%s4702_s14] ss:$0 sm:$0xff] }
 0x704   : > { %3869 = vrsqrt.f32 %v2833_v57  ;;  %v2834_v21 = vadd.f32 1e-05, %v2826_v20  ;;  %v2827_v17 = vmul.f32 0.03125, %v2811_v13  ;;  %3765 = vmatpush3.bf16.msra.mxu1 %v3811_v49 }
 0x705   : > { %v2814_v61 = vpop.xlane.xlu1 %2813  ;;  %3766 = vmatprep.subr.bf16.mxu1 %v3812_v15 }
 0x706   : > { %3871 = vrsqrt.f32 %v2834_v21  ;;  %v2835_v33 = vadd.f32 1e-05, %v2827_v17  ;;  %v2828_v62 = vmul.f32 0.03125, %v2814_v61 }
 0x707   : > { %v2817_v3 = vpop.xlane.xlu0 %2816 }
 0x708   : > { %3873 = vrsqrt.f32 %v2835_v33  ;;  %v2836_v32 = vadd.f32 1e-05, %v2828_v62  ;;  %v2829_v4 = vmul.f32 0.03125, %v2817_v3  ;;  %3767 = vmatpush3.bf16.msra.mxu1 %v3812_v15 }
 0x709   : > { %v2820_v28 = vpop.xlane.xlu1 %2819 }
 0x70a   : > { %3875 = vrsqrt.f32 %v2836_v32  ;;  %v2837_v38 = vadd.f32 1e-05, %v2829_v4  ;;  %v2830_v39 = vmul.f32 0.03125, %v2820_v28 }
 0x70b   : > { %v2823_v36 = vpop.xlane.xlu0 %2822 }
 0x70c   : > { %v3868_v26 = vpop.eup %3867  ;;  %3877 = vrsqrt.f32 %v2837_v38  ;;  %v2838_v0 = vadd.f32 1e-05, %v2830_v39  ;;  %v2831_v8 = vmul.f32 0.03125, %v2823_v36 }
 0x70d   : > { %v2848_v9 = vmul.f32 %v3868_v26, %v4448_v5 }
 0x70e   : > { %v3870_v1 = vpop.eup %3869  ;;  %3879 = vrsqrt.f32 %v2838_v0  ;;  %v2839_v27 = vadd.f32 1e-05, %v2831_v8 }
 0x70f   : > { %v2849_v14 = vmul.f32 %v3870_v1, %v4450_v35  ;;  %v2860_v16 = vmul.f32 %v2859_v63, %v2848_v9 }
 0x710   : > { %v3872_v22 = vpop.eup %3871  ;;  %3881 = vrsqrt.f32 %v2839_v27 }
 0x711   : > { %v2850_v59 = vmul.f32 %v3872_v22, %v4454_v7  ;;  %v2861_v24 = vmul.f32 %v2859_v63, %v2849_v14  ;;  %v4513_v34 = vadd.f32 %v2871_v19, %v2860_v16 }
 0x712   : > { %v3874_v42 = vpop.eup %3873 }
 0x713   : > { %v2862_v30 = vmul.f32 %v2859_v63, %v2850_v59  ;;  %v2851_v31 = vmul.f32 %v3874_v42, %v4459_v10  ;;  %v4515_v5 = vadd.f32 %v2871_v19, %v2861_v24  ;;  %v3517_v24 = vld [vmem:[%s4704_s16] ss:$0 sm:$0xff] }
 0x714   : > { %v3876_v37 = vpop.eup %3875 }
 0x715   : > { %v2863_v40 = vmul.f32 %v2859_v63, %v2851_v31  ;;  %v2852_v35 = vmul.f32 %v3876_v37, %v4464_v11  ;;  %v2880_v18 = vpack.c.bf16 %v4515_v5, %v4513_v34  ;;  %v4522_v7 = vadd.f32 %v2871_v19, %v2862_v30 }
 0x716   : > { %v3878_v45 = vpop.eup %3877 }
 0x717   : > { %v2853_v23 = vmul.f32 %v3878_v45, %v4469_v25  ;;  %3752 = vmatprep.mubr.msk.bf16.mxu0 %vm748_vm1, %v2880_v18  ;;  %v4524_v29 = vadd.f32 %v2871_v19, %v2863_v40  ;;  %v2864_v10 = vmul.f32 %v2859_v63, %v2852_v35 }
 0x718   : > { %v3880_v47 = vpop.eup %3879 }
 0x719   : > { %v2854_v48 = vmul.f32 %v3880_v47, %v4474_v44  ;;  %v2881_v41 = vpack.c.bf16 %v4524_v29, %v4522_v7  ;;  %v2865_v11 = vmul.f32 %v2859_v63, %v2853_v23  ;;  %v4531_v25 = vadd.f32 %v2871_v19, %v2864_v10 }
 0x71a   : > { %v3882_v46 = vpop.eup %3881 }
 0x71b   : > { %v2855_v53 = vmul.f32 %v3882_v46, %v4479_v55  ;;  %3753 = vmatmul.mubr.msk.bf16.vlgmr.msra.gmra.mrb[36].mxu0 %vm748_vm1, %v2881_v41  ;;  %v4533_v52 = vadd.f32 %v2871_v19, %v2865_v11  ;;  %v2866_v56 = vmul.f32 %v2859_v63, %v2854_v48 }
 0x71d   : > { %v2882_v2 = vpack.c.bf16 %v4533_v52, %v4531_v25  ;;  %v2867_v54 = vmul.f32 %v2859_v63, %v2855_v53  ;;  %v4538_v44 = vadd.f32 %v2871_v19, %v2866_v56 }
 0x71f   : > { %3756 = vmatprep.mubr.msk.bf16.mxu0 %vm748_vm1, %v2882_v2  ;;  %v4540_v60 = vadd.f32 %v2871_v19, %v2867_v54 }
 0x721   : > { %v2883_v55 = vpack.c.bf16 %v4540_v60, %v4538_v44 }
 0x723   : > { %3757 = vmatmul.mubr.msk.bf16.gmra.mrb[40].mxu0 %vm748_vm1, %v2883_v55 }
 0x7ee   : > { %v3754_v57 = vpop.f32.mrb[36].mxu0 }
 0x7ef   : > { %v2957_v20 = vadd.f32 %v3754_v57, %v3510_v12  ;;  %v2948_v13 = vpop.f32.mrb[37].mxu0 }
 0x7f0   : > { %v2949_v21 = vadd.f32 %v3510_v12, %v2948_v13  ;;  %v3755_v17 = vpop.f32.mrb[38].mxu0 }
 0x7f1   : > { %v2960_v61 = vadd.f32 %v3755_v17, %v3510_v12  ;;  %v2951_v33 = vpop.f32.mrb[39].mxu0  ;;  %v2981_v3 = vmax.f32 %v2957_v20, 0.0 }
 0x7f2   : > { %v2952_v62 = vadd.f32 %v3510_v12, %v2951_v33  ;;  %v2979_v4 = vmax.f32 %v2949_v21, 0.0 }
 0x7f3   : > { %v2982_v32 = vmax.f32 %v2960_v61, 0.0 }
 0x7f4   : > { %v2980_v28 = vmax.f32 %v2952_v62, 0.0 }
 0x7f5   : > { %v2988_v38 = vpack.c.bf16 %v2982_v32, %v2981_v3 }
 0x7f6   : > { %v2987_v39 = vpack.c.bf16 %v2980_v28, %v2979_v4  ;;  %v3758_v63 = vpop.f32.mrb[40].mxu0 }
 0x7f7   : > { %v2973_v36 = vadd.f32 %v3758_v63, %v3510_v12  ;;  %v2964_v6 = vpop.f32.mrb[41].mxu0 }
 0x7f8   : > { %v2965_v26 = vadd.f32 %v3510_v12, %v2964_v6  ;;  %v3759_v0 = vpop.f32.mrb[42].mxu0  ;;  %3768 = vmatprep.mubr.msk.bf16.mxu1 %vm3021_vm2, %v2987_v39 }
 0x7f9   : > { %v2976_v8 = vadd.f32 %v3759_v0, %v3510_v12  ;;  %v2967_v9 = vpop.f32.mrb[43].mxu0  ;;  %3769 = vmatmul.mubr.msk.bf16.vlgmr.msra.gmra.mrb[36].mxu1 %vm3021_vm2, %v2988_v38  ;;  %v2985_v27 = vmax.f32 %v2973_v36, 0.0 }
 0x7fa   : > { %v2968_v1 = vadd.f32 %v3510_v12, %v2967_v9  ;;  %v2983_v16 = vmax.f32 %v2965_v26, 0.0 }
 0x7fb   : > { %v2986_v14 = vmax.f32 %v2976_v8, 0.0 }
 0x7fc   : > { %v2984_v19 = vmax.f32 %v2968_v1, 0.0 }
 0x7fd   : > { %v2990_v22 = vpack.c.bf16 %v2986_v14, %v2985_v27 }
 0x7fe   : > { %v2989_v59 = vpack.c.bf16 %v2984_v19, %v2983_v16 }
 0x800   : > { %3772 = vmatprep.mubr.msk.bf16.mxu1 %vm3021_vm2, %v2989_v59 }
 0x801   : > { %3773 = vmatmul.mubr.msk.bf16.gmra.mrb[40].mxu1 %vm3021_vm2, %v2990_v22 }
 0x8cc   : > { %v3770_v42 = vpop.f32.mrb[36].mxu1 }
 0x8cd   : > { %v3077_v30 = vadd.f32 %v3770_v42, %v3517_v24  ;;  %v3068_v31 = vpop.f32.mrb[37].mxu1 }
 0x8ce   : > { %v3069_v37 = vadd.f32 %v3517_v24, %v3068_v31  ;;  %v3771_v40 = vpop.f32.mrb[38].mxu1 }
 0x8cf   : > { %v3080_v35 = vadd.f32 %v3771_v40, %v3517_v24  ;;  %v3071_v18 = vpop.f32.mrb[39].mxu1  ;;  %v3101_v45 = vadd.f32 %v3077_v30, %v4522_v7 }
 0x8d0   : > { %v3072_v23 = vadd.f32 %v3517_v24, %v3071_v18  ;;  %v3099_v10 = vadd.f32 %v3069_v37, %v4513_v34 }
 0x8d1   : > { %v3113_v47 = vsel %vm748_vm1, %v3101_v45, 0.0  ;;  %v3102_v48 = vadd.f32 %v3080_v35, %v4524_v29 }
 0x8d2   : > { %3114 = vadd.xlane.f32.xlu0 %v3113_v47  ;;  %v3107_v41 = vsel %vm748_vm1, %v3099_v10, 0.0  ;;  %v3100_v11 = vadd.f32 %v3072_v23, %v4515_v5 }
 0x8d3   : > { %3108 = vadd.xlane.f32.xlu1 %v3107_v41  ;;  %v3116_v56 = vsel %vm748_vm1, %v3102_v48, 0.0  ;;  %v3235_v41 = vsel %vm888_vm3, %v4277_v51, 0.0 }
 0x8d4   : > { %v3774_v46 = vpop.f32.mrb[40].mxu1  ;;  %v3110_v34 = vsel %vm748_vm1, %v3100_v11, 0.0 }
 0x8d5   : > { %v3084_v53 = vpop.f32.mrb[41].mxu1  ;;  %v3093_v2 = vadd.f32 %v3774_v46, %v3517_v24 }
 0x8d6   : > { %v3085_v54 = vadd.f32 %v3517_v24, %v3084_v53  ;;  %3117 = vadd.xlane.f32.xlu0 %v3116_v56  ;;  %v3775_v7 = vpop.f32.mrb[42].mxu1 }
 0x8d7   : > { %3111 = vadd.xlane.f32.xlu1 %v3110_v34  ;;  %v3087_v55 = vpop.f32.mrb[43].mxu1  ;;  %v3096_v49 = vadd.f32 %v3775_v7, %v3517_v24  ;;  %v3105_v57 = vadd.f32 %v3093_v2, %v4538_v44 }
 0x8d8   : > { %v3088_v29 = vadd.f32 %v3517_v24, %v3087_v55  ;;  %v3103_v15 = vadd.f32 %v3085_v54, %v4531_v25 }
 0x8d9   : > { %v3106_v13 = vadd.f32 %v3096_v49, %v4540_v60  ;;  %v3125_v21 = vsel %vm748_vm1, %v3105_v57, 0.0 }
 0x8da   : > { %v3119_v12 = vsel %vm748_vm1, %v3103_v15, 0.0  ;;  %v3104_v5 = vadd.f32 %v3088_v29, %v4533_v52 }
 0x8db   : > { %3120 = vadd.xlane.f32.xlu1 %v3119_v12  ;;  %v3128_v17 = vsel %vm748_vm1, %v3106_v13, 0.0 }
 0x8dc   : > { %v3122_v20 = vsel %vm748_vm1, %v3104_v5, 0.0 }
 0x8dd   : > { %3123 = vadd.xlane.f32.xlu0 %v3122_v20 }
 0x8df   : > { %3126 = vadd.xlane.f32.xlu1 %v3125_v21 }
 0x8e1   : > { %3129 = vadd.xlane.f32.xlu0 %v3128_v17 }
 0x95f   : > { %v3115_v61 = vpop.xlane.xlu0 %3114 }
 0x960   : > { %v3133_v25 = vmul.f32 0.03125, %v3115_v61  ;;  %v3109_v33 = vpop.xlane.xlu1 %3108 }
 0x961   : > { %v3131_v62 = vmul.f32 0.03125, %v3109_v33 }
 0x962   : > { %v4577_v3 = vsub.f32 %v3101_v45, %v3133_v25 }
 0x963   : > { %v4579_v52 = vsub.f32 %v3099_v10, %v3131_v62  ;;  %v3118_v44 = vpop.xlane.xlu0 %3117 }
 0x964   : > { %v3134_v32 = vmul.f32 0.03125, %v3118_v44  ;;  %v3112_v4 = vpop.xlane.xlu1 %3111  ;;  %v3149_v60 = vmul.f32 %v4577_v3, %v4577_v3 }
 0x965   : > { %v3132_v28 = vmul.f32 0.03125, %v3112_v4  ;;  %v3147_v38 = vmul.f32 %v4579_v52, %v4579_v52 }
 0x966   : > { %v4585_v39 = vsub.f32 %v3102_v48, %v3134_v32  ;;  %v3161_v63 = vsel %vm748_vm1, %v3149_v60, 0.0 }
 0x967   : > { %v4588_v36 = vsub.f32 %v3100_v11, %v3132_v28  ;;  %3162 = vadd.xlane.f32.xlu0 %v3161_v63  ;;  %v3155_v6 = vsel %vm748_vm1, %v3147_v38, 0.0 }
 0x968   : > { %3156 = vadd.xlane.f32.xlu1 %v3155_v6  ;;  %v3121_v26 = vpop.xlane.xlu1 %3120  ;;  %v3150_v0 = vmul.f32 %v4585_v39, %v4585_v39 }
 0x969   : > { %v3135_v8 = vmul.f32 0.03125, %v3121_v26  ;;  %v3148_v9 = vmul.f32 %v4588_v36, %v4588_v36 }
 0x96a   : > { %v3124_v1 = vpop.xlane.xlu0 %3123  ;;  %v3164_v27 = vsel %vm748_vm1, %v3150_v0, 0.0 }
 0x96b   : > { %v4596_v14 = vsub.f32 %v3103_v15, %v3135_v8  ;;  %v3136_v16 = vmul.f32 0.03125, %v3124_v1  ;;  %3165 = vadd.xlane.f32.xlu0 %v3164_v27  ;;  %v3158_v19 = vsel %vm748_vm1, %v3148_v9, 0.0 }
 0x96c   : > { %3159 = vadd.xlane.f32.xlu1 %v3158_v19  ;;  %v3127_v22 = vpop.xlane.xlu1 %3126 }
 0x96d   : > { %v4599_v59 = vsub.f32 %v3104_v5, %v3136_v16  ;;  %v3137_v24 = vmul.f32 0.03125, %v3127_v22  ;;  %v3151_v42 = vmul.f32 %v4596_v14, %v4596_v14  ;;  %v3213_v5 = vsub.s32 2, %v4113_v58 }
 0x96e   : > { %v3130_v30 = vpop.xlane.xlu0 %3129 }
 0x96f   : > { %v4603_v31 = vsub.f32 %v3105_v57, %v3137_v24  ;;  %v3138_v37 = vmul.f32 0.03125, %v3130_v30  ;;  %v3167_v40 = vsel %vm748_vm1, %v3151_v42, 0.0  ;;  %v3152_v35 = vmul.f32 %v4599_v59, %v4599_v59 }
 0x970   : > { %3168 = vadd.xlane.f32.xlu1 %v3167_v40  ;;  %v3225_v57 = vsub.s32 3, %v4113_v58  ;;  %v4622_v61 = vrot.slane %v4503_v43, %v3213_v5 }
 0x971   : > { %v4608_v18 = vsub.f32 %v3106_v13, %v3138_v37  ;;  %v3170_v45 = vsel %vm748_vm1, %v3152_v35, 0.0  ;;  %v3153_v23 = vmul.f32 %v4603_v31, %v4603_v31 }
 0x972   : > { %3171 = vadd.xlane.f32.xlu0 %v3170_v45  ;;  %v4625_v44 = vrot.slane %v4503_v43, %v3225_v57 }
 0x973   : > { %v3173_v10 = vsel %vm748_vm1, %v3153_v23, 0.0  ;;  %v3154_v47 = vmul.f32 %v4608_v18, %v4608_v18 }
 0x974   : > { %3174 = vadd.xlane.f32.xlu1 %v3173_v10 }
 0x975   : > { %v3176_v48 = vsel %vm748_vm1, %v3154_v47, 0.0 }
 0x976   : > { %3177 = vadd.xlane.f32.xlu0 %v3176_v48 }
 0x978   : > { %3236 = vadd.xlane.f32.xlu1 %v3235_v41 }
 0x9f4   : > { %v3163_v11 = vpop.xlane.xlu0 %3162 }
 0x9f5   : > { %v3181_v46 = vmul.f32 0.03125, %v3163_v11  ;;  %v3157_v53 = vpop.xlane.xlu1 %3156 }
 0x9f6   : > { %v3179_v56 = vmul.f32 0.03125, %v3157_v53 }
 0x9f7   : > { %v3189_v2 = vadd.f32 1e-05, %v3181_v46 }
 0x9f8   : > { %v3187_v54 = vadd.f32 1e-05, %v3179_v56  ;;  %v3166_v7 = vpop.xlane.xlu0 %3165 }
 0x9f9   : > { %3883 = vrsqrt.f32 %v3189_v2  ;;  %v3182_v34 = vmul.f32 0.03125, %v3166_v7  ;;  %v3160_v55 = vpop.xlane.xlu1 %3159 }
 0x9fa   : > { %3885 = vrsqrt.f32 %v3187_v54  ;;  %v3180_v49 = vmul.f32 0.03125, %v3160_v55 }
 0x9fb   : > { %v3190_v29 = vadd.f32 1e-05, %v3182_v34 }
 0x9fc   : > { %v3188_v15 = vadd.f32 1e-05, %v3180_v49 }
 0x9fd   : > { %3887 = vrsqrt.f32 %v3190_v29  ;;  %v3169_v12 = vpop.xlane.xlu1 %3168 }
 0x9fe   : > { %3889 = vrsqrt.f32 %v3188_v15  ;;  %v3183_v51 = vmul.f32 0.03125, %v3169_v12 }
 0x9ff   : > { %v3172_v20 = vpop.xlane.xlu0 %3171 }
 0xa00   : > { %v3191_v13 = vadd.f32 1e-05, %v3183_v51  ;;  %v3184_v21 = vmul.f32 0.03125, %v3172_v20 }
 0xa01   : > { %v3175_v17 = vpop.xlane.xlu1 %3174 }
 0xa02   : > { %3891 = vrsqrt.f32 %v3191_v13  ;;  %v3192_v25 = vadd.f32 1e-05, %v3184_v21  ;;  %v3185_v33 = vmul.f32 0.03125, %v3175_v17 }
 0xa03   : > { %v3884_v62 = vpop.eup %3883  ;;  %v3178_v32 = vpop.xlane.xlu0 %3177 }
 0xa04   : > { %v3886_v4 = vpop.eup %3885  ;;  %v3205_v60 = vmul.f32 %v3884_v62, %v4577_v3  ;;  %3893 = vrsqrt.f32 %v3192_v25  ;;  %v3193_v58 = vadd.f32 1e-05, %v3185_v33  ;;  %v3186_v28 = vmul.f32 0.03125, %v3178_v32 }
 0xa05   : > { %v3203_v38 = vmul.f32 %v3886_v4, %v4579_v52  ;;  %v3237_v8 = vpop.xlane.xlu1 %3236 }
 0xa06   : > { %v3217_v63 = vmul.f32 %v4622_v61, %v3205_v60  ;;  %3895 = vrsqrt.f32 %v3193_v58  ;;  %v3194_v6 = vadd.f32 1e-05, %v3186_v28  ;;  %vm3238_vm3 = vcmp.gt.f32.partialorder %v3237_v8, 0.0 }
 0xa07   : > { %v3888_v26 = vpop.eup %3887  ;;  %v3215_v0 = vmul.f32 %v4622_v61, %v3203_v38  ;;  %v3297_v19 = vmax.f32 %v3237_v8, 1.0  ;;  %v4643_v45 = vsel %vm3238_vm3, 1.0, %v3909_v50 }
 0xa08   : > { %v3890_v9 = vpop.eup %3889  ;;  %v3229_v43 = vadd.f32 %v4625_v44, %v3217_v63  ;;  %v3206_v1 = vmul.f32 %v3888_v26, %v4585_v39  ;;  %3897 = vrsqrt.f32 %v3194_v6  ;;  %v3325_v5 = vrot.slane %v4643_v45, 2 }
 0xa09   : > { %v3227_v3 = vadd.f32 %v4625_v44, %v3215_v0  ;;  %v3204_v27 = vmul.f32 %v3890_v9, %v4588_v36  ;;  %3899 = vrcp.f32 %v3297_v19  ;;  %v3326_v20 = vrot.slane %v4643_v45, 3 }
 0xa0a   : > { %v3255_v52 = vsel %vm748_vm1, %v3229_v43, 0.0  ;;  %v3218_v16 = vmul.f32 %v4622_v61, %v3206_v1  ;;  %v3327_v26 = vrot.slane %v4643_v45, 4 }
 0xa0b   : > { %v3256_v22 = vrot.slane %v3255_v52, 4  ;;  %v3241_v24 = vsel %vm748_vm1, %v3227_v3, 0.0  ;;  %v3216_v42 = vmul.f32 %v4622_v61, %v3204_v27 }
 0xa0c   : > { %v3892_v30 = vpop.eup %3891  ;;  %v3242_v37 = vrot.slane %v3241_v24, 4  ;;  %v3230_v39 = vadd.f32 %v4625_v44, %v3218_v16 }
 0xa0d   : > { %v3257_v40 = vadd.f32 %v3256_v22, %v3255_v52  ;;  %v3228_v35 = vadd.f32 %v4625_v44, %v3216_v42  ;;  %v3207_v36 = vmul.f32 %v3892_v30, %v4596_v14  ;;  %v3324_v14 = vrot.slane %v4643_v45, 1 }
 0xa0e   : > { %v3894_v23 = vpop.eup %3893  ;;  %v3243_v10 = vadd.f32 %v3242_v37, %v3241_v24  ;;  %v3262_v47 = vsel %vm748_vm1, %v3230_v39, 0.0  ;;  %v3328_v52 = vrot.slane %v4643_v45, 5 }
 0xa0f   : > { %v3258_v48 = vrot.slane %v3257_v40, 2  ;;  %v3263_v41 = vrot.slane %v3262_v47, 4  ;;  %v3248_v11 = vsel %vm748_vm1, %v3228_v35, 0.0  ;;  %v3219_v46 = vmul.f32 %v4622_v61, %v3207_v36 }
 0xa10   : > { %v3896_v53 = vpop.eup %3895  ;;  %v3244_v56 = vrot.slane %v3243_v10, 2  ;;  %v3249_v2 = vrot.slane %v3248_v11, 4  ;;  %v3208_v54 = vmul.f32 %v3894_v23, %v4599_v59 }
 0xa11   : > { %v3259_v50 = vadd.f32 %v3258_v48, %v3257_v40  ;;  %v3264_v7 = vadd.f32 %v3263_v41, %v3262_v47  ;;  %v3231_v34 = vadd.f32 %v4625_v44, %v3219_v46  ;;  %v3209_v55 = vmul.f32 %v3896_v53, %v4603_v31 }
 0xa12   : > { %v3898_v49 = vpop.eup %3897  ;;  %v3245_v29 = vadd.f32 %v3244_v56, %v3243_v10  ;;  %v3250_v15 = vadd.f32 %v3249_v2, %v3248_v11  ;;  %v3220_v12 = vmul.f32 %v4622_v61, %v3208_v54 }
 0xa13   : > { %v3265_v51 = vrot.slane %v3264_v7, 2  ;;  %v3269_v57 = vsel %vm748_vm1, %v3231_v34, 0.0  ;;  %v3221_v59 = vmul.f32 %v4622_v61, %v3209_v55  ;;  %v3210_v31 = vmul.f32 %v3898_v49, %v4608_v18  ;;  %v3900_v0 = vpop.eup %3899 }
 0xa14   : > { %v3251_v13 = vrot.slane %v3250_v15, 2  ;;  %v3270_v21 = vrot.slane %v3269_v57, 4  ;;  %v3232_v17 = vadd.f32 %v4625_v44, %v3220_v12  ;;  %v3260_v25 = vrot.slane %v3259_v50, 1 }
 0xa15   : > { %v3266_v33 = vadd.f32 %v3265_v51, %v3264_v7  ;;  %v3233_v62 = vadd.f32 %v4625_v44, %v3221_v59  ;;  %v3246_v32 = vrot.slane %v3245_v29, 1  ;;  %v3222_v28 = vmul.f32 %v4622_v61, %v3210_v31 }
 0xa16   : > { %v3252_v4 = vadd.f32 %v3251_v13, %v3250_v15  ;;  %v3271_v60 = vadd.f32 %v3270_v21, %v3269_v57  ;;  %v3276_v58 = vsel %vm748_vm1, %v3232_v17, 0.0  ;;  %v3261_v27 = vadd.f32 %v3260_v25, %v3259_v50 }
 0xa17   : > { %v3267_v38 = vrot.slane %v3266_v33, 1  ;;  %v3277_v63 = vrot.slane %v3276_v58, 4  ;;  %v3283_v6 = vsel %vm748_vm1, %v3233_v62, 0.0  ;;  %v3234_v43 = vadd.f32 %v4625_v44, %v3222_v28 }
 0xa18   : > { %v3253_v8 = vrot.slane %v3252_v4, 1  ;;  %v3272_v18 = vrot.slane %v3271_v60, 2  ;;  %v3284_v9 = vrot.slane %v3283_v6, 4  ;;  %v3247_v3 = vadd.f32 %v3246_v32, %v3245_v29 }
 0xa19   : > { %v3278_v1 = vadd.f32 %v3277_v63, %v3276_v58  ;;  %v3290_v61 = vsel %vm748_vm1, %v3234_v43, 0.0  ;;  %v3268_v30 = vadd.f32 %v3267_v38, %v3266_v33  ;;  %v3300_v37 = vrot.slane %v3900_v0, 1 }
 0xa1a   : > { %v3273_v16 = vadd.f32 %v3272_v18, %v3271_v60  ;;  %v3285_v19 = vadd.f32 %v3284_v9, %v3283_v6  ;;  %v3254_v22 = vadd.f32 %v3253_v8, %v3252_v4  ;;  %v3291_v42 = vrot.slane %v3290_v61, 4 }
 0xa1b   : > { %v3279_v24 = vrot.slane %v3278_v1, 2  ;;  %v3301_v35 = vrot.slane %v3900_v0, 2  ;;  %v3302_v36 = vrot.slane %v3900_v0, 3  ;;  %v3303_v10 = vrot.slane %v3900_v0, 4 }
 0xa1c   : > { %v3274_v39 = vrot.slane %v3273_v16, 1  ;;  %v3286_v40 = vrot.slane %v3285_v19, 2  ;;  %v3292_v44 = vadd.f32 %v3291_v42, %v3290_v61  ;;  %v3315_v47 = vmul.f32 %v3900_v0, %v3247_v3 }
 0xa1d   : > { %v3280_v23 = vadd.f32 %v3279_v24, %v3278_v1  ;;  %v3316_v11 = vmul.f32 %v3300_v37, %v3254_v22  ;;  %v3317_v46 = vmul.f32 %v3301_v35, %v3261_v27  ;;  %v3304_v2 = vrot.slane %v3900_v0, 5 }
 0xa1e   : > { %v3287_v48 = vadd.f32 %v3286_v40, %v3285_v19  ;;  %v3275_v41 = vadd.f32 %v3274_v39, %v3273_v16  ;;  %v3293_v56 = vrot.slane %v3292_v44, 2  ;;  %v3318_v54 = vmul.f32 %v3302_v36, %v3268_v30 }
 0xa1f   : > { %v3281_v53 = vrot.slane %v3280_v23, 1  ;;  %v3340_v34 = vmul.f32 %v3324_v14, %v3316_v11  ;;  %v3341_v55 = vmul.f32 %v3325_v5, %v3317_v46  ;;  %v3305_v15 = vrot.slane %v3900_v0, 6 }
 0xa20   : > { %v3288_v50 = vrot.slane %v3287_v48, 1  ;;  %v3319_v7 = vmul.f32 %v3303_v10, %v3275_v41  ;;  %v3294_v49 = vadd.f32 %v3293_v56, %v3292_v44  ;;  %v3342_v12 = vmul.f32 %v3326_v20, %v3318_v54 }
 0xa21   : > { %v3282_v29 = vadd.f32 %v3281_v53, %v3280_v23  ;;  %v3339_v57 = vmul.f32 %v4643_v45, %v3315_v47  ;;  %v3355_v13 = vrot.slane %v3340_v34, 7  ;;  %v3329_v31 = vrot.slane %v4643_v45, 6 }
 0xa22   : > { %v3289_v51 = vadd.f32 %v3288_v50, %v3287_v48  ;;  %v3343_v59 = vmul.f32 %v3327_v26, %v3319_v7  ;;  %v3295_v21 = vrot.slane %v3294_v49, 1  ;;  %v3357_v25 = vrot.slane %v3341_v55, 6 }
 0xa23   : > { %v3320_v17 = vmul.f32 %v3304_v2, %v3282_v29  ;;  %v3356_v62 = vsel %vm872_vm5, %v3355_v13, %v3339_v57  ;;  %v3359_v32 = vrot.slane %v3342_v12, 5  ;;  %v3306_v4 = vrot.slane %v3900_v0, 7 }
 0xa24   : > { %v3321_v33 = vmul.f32 %v3305_v15, %v3289_v51  ;;  %v3361_v14 = vrot.slane %v3343_v59, 4  ;;  %v3296_v5 = vadd.f32 %v3295_v21, %v3294_v49  ;;  %v3358_v20 = vsel %vm874_vm12, %v3357_v25, %v3356_v62 }
 0xa25   : > { %v3344_v60 = vmul.f32 %v3328_v52, %v3320_v17  ;;  %v3360_v28 = vsel %vm876_vm13, %v3359_v32, %v3358_v20  ;;  %v3330_v63 = vrot.slane %v4643_v45, 7 }
 0xa26   : > { %v3345_v58 = vmul.f32 %v3329_v31, %v3321_v33  ;;  %v3322_v38 = vmul.f32 %v3306_v4, %v3296_v5  ;;  %v3362_v6 = vsel %vm878_vm14, %v3361_v14, %v3360_v28 }
 0xa27   : > { %v3363_v26 = vrot.slane %v3344_v60, 3 }
 0xa28   : > { %v3365_v8 = vrot.slane %v3345_v58, 2  ;;  %v3346_v18 = vmul.f32 %v3330_v63, %v3322_v38 }
 0xa29   : > { %v3364_v9 = vsel %vm880_vm6, %v3363_v26, %v3362_v6 }
 0xa2a   : > { %v3366_v43 = vsel %vm882_vm9, %v3365_v8, %v3364_v9  ;;  %v3367_v0 = vrot.slane %v3346_v18, 1 }
 0xa2c   : > { %v3368_v1 = vsel %vm884_vm15, %v3367_v0, %v3366_v43 }
 0xa2d   : > { %3370 = vst.msk [vmem:[%s565_s27] sm:$0xff] %vm748_vm1, %v3368_v1 }
 0xa2e PF: > { %s27_s24 = sadd.s32 1, %s3907_s24  }
 0xa2f   : > { %p24_p5 = scmp.ge.s32.totalorder %s27_s24, 4  }
 0xa31   :  { %26 = sbr.rel (!%p24_p5) target bundleno = 3 (0x3), region = 121 }

// kernel: event_detection_forward.5
= control target key start
LH: loop header
LB: loop body
LE: loop exit
PB: predicated region body
PF: predicated region fallthrough
CT: control target
= control target key end

     0   :  { %v68_v0 = vlaneseq  ;;  %v13202_v1 = vmov 0.0   ;;  %v10593_v3 = vmov 1966171168   ;;  %vm10594_vm0 = vmmov 0   ;;  %s13180_s3 = inlined_call_operand.vmem [shape: bf16[32,32], index: 3, kind: input, shape index: {}]   ;;  %s13181_s0 = inlined_call_operand.vmem [shape: f32[16,32], index: 0, kind: input, shape index: {}]   ;;  %s13182_s1 = inlined_call_operand.vmem [shape: f32[16,32], index: 1, kind: input, shape index: {}]   ;;  %s13183_s2 = inlined_call_operand.vmem [shape: f32[16,32], index: 2, kind: input, shape index: {}]   ;;  %s13184_s5 = inlined_call_operand.vmem [shape: bf16[32,32], index: 5, kind: input, shape index: {}]   ;;  %s13185_s7 = inlined_call_operand.vmem [shape: bf16[32,32], index: 7, kind: input, shape index: {}]   ;;  %s13186_s4 = inlined_call_operand.vmem [shape: f32[1,32], index: 4, kind: input, shape index: {}]   ;;  %s13187_s6 = inlined_call_operand.vmem [shape: f32[1,32], index: 6, kind: input, shape index: {}]   ;;  %s13188_s8 = inlined_call_operand.vmem [shape: f32[1,32], index: 8, kind: input, shape index: {}]   ;;  %s13189_s9 = inlined_call_operand.vmem [shape: bf16[32,32], index: 9, kind: input, shape index: {}]   ;;  %s13190_s10 = inlined_call_operand.vmem [shape: f32[1,32], index: 10, kind: input, shape index: {}]   ;;  %s13191_s12 = inlined_call_operand.vmem [shape: bf16[32,64], index: 12, kind: input, shape index: {}]   ;;  %s13192_s14 = inlined_call_operand.vmem [shape: bf16[64,32], index: 14, kind: input, shape index: {}]   ;;  %s13193_s11 = inlined_call_operand.vmem [shape: f32[4,32], index: 11, kind: input, shape index: {}]   ;;  %s13194_s13 = inlined_call_operand.vmem [shape: f32[1,64], index: 13, kind: input, shape index: {}]   ;;  %s13195_s15 = inlined_call_operand.vmem [shape: f32[1,32], index: 15, kind: input, shape index: {}]   ;;  %s13196_s17 = inlined_call_operand.vmem [shape: f32[2,1], index: 17, kind: input, shape index: {}]   ;;  %s13197_s16 = inlined_call_operand.vmem [shape: bf16[2,32], index: 16, kind: input, shape index: {}]   ;;  %s13198_s18 = inlined_call_operand.vmem [shape: f32[2,16], index: 18, kind: output, shape index: {}]  }
   0x1   :  { %13211 = sst [smem:[#allocation8_spill]] %s13180_s3  ;;  %10164 = vmatprep.subr.bf16.mxu0 %v13202_v1  ;;  %10430 = vmatprep.subr.bf16.mxu1 %v13202_v1  ;;  %v66_v4 = vunpack.c.l.s4 %v10593_v3  ;;  %v280_v10 = vld [vmem:[%s13183_s2] sm:$0xff]  ;;  %v10729_v16 = vld [vmem:[%s13183_s2 + $0x8] sm:$0xff]  ;;  %vm542_vm1 = vcmask 1040384   ;;  %vm559_vm2 = vcmask 1041408   ;;  %vm1316_vm3 = vcmask 261120  }
   0x2   :  { %13212 = sst [smem:[#allocation9_spill]] %s13181_s0  ;;  %s13214_s29 = sld [smem:[#allocation8_spill]]  ;;  %10168 = vmatprep.mubr.msk.bf16.mxu0 %vm10594_vm0, %v13202_v1  ;;  %10176 = vmatprep.mubr.msk.bf16.mxu1 %vm10594_vm0, %v13202_v1  ;;  %v10703_v6 = vshrl.u32 %v68_v0, 7  ;;  %v284_v13 = vcombine.high %v280_v10, %v280_v10  ;;  %v333_v20 = vcombine.high %v10729_v16, %v10729_v16  ;;  %vm4589_vm4 = vcmask 1042432  }
   0x3   :  { %13213 = sst [smem:[#allocation10_spill]] %s13182_s1  ;;  %s13216_s20 = sld [smem:[#allocation9_spill]]  ;;  %v67_v8 = vunpack.c.0.s8 %v66_v4  ;;  %vm4369_vm5 = vcmask 18432   ;;  %vm4585_vm6 = vcmask 23552   ;;  %vm7603_vm7 = vcmask 256000  }
   0x4   :  { %13215 = vst [vmem:[#allocation2_spill] sm:$0xff] %v10703_v6  ;;  %s13217_s1 = sld [smem:[#allocation10_spill]]  ;;  %v10744_v24 = vsub.s32 0, %v10703_v6  ;;  %vm8663_vm8 = vcmask 523264   ;;  %vm9862_vm9 = vcmask 1041409   ;;  %vm9864_vm10 = vcmask 1042434  }
   0x5   :  { %v10732_v17 = vsub.s32 %v67_v8, %v10703_v6  ;;  %vm9866_vm11 = vcmask 1043459   ;;  %vm9868_vm12 = vcmask 1044484   ;;  %vm9870_vm13 = vcmask 1045509  }
   0x6   :  { %13218 = vst [vmem:[#allocation3_spill] sm:$0xff] %v10744_v24  ;;  %vm9872_vm14 = vcmask 1046534   ;;  %vm9874_vm15 = vcmask 1047559  }
   0x7   :  { %v291_v26 = vrot.slane %v280_v10, %v10732_v17  ;;  %v298_v27 = vrot.slane %v284_v13, %v10732_v17 }
   0x8   :  { %v10439_v2 = vld [vmem:[%s13214_s29] sm:$0xff]   ;;  %v10440_v5 = vld [vmem:[%s13214_s29 + $0x8] sm:$0xff]  }
   0x9   :  { %10165 = vmatpush3.bf16.msra.mxu0 %v10439_v2  ;;  %10432 = vmatpush3.bf16.msra.mxu1 %v10439_v2  ;;  %v60_v7 = vld [vmem:[%s13216_s20] sm:$0xff]  ;;  %v10719_v14 = vld [vmem:[%s13216_s20 + $0x8] sm:$0xff]  ;;  %v299_v40 = vcombine.high %v291_v26, %v291_v26  ;;  %v300_v44 = vcombine.high %v298_v27, %v298_v27  ;;  %v307_v46 = vrot.slane %v291_v26, %v10732_v17 }
   0xa   :  { %v178_v9 = vld [vmem:[%s13217_s1] sm:$0xff]  ;;  %10166 = vmatprep.subr.bf16.mxu0 %v13202_v1  ;;  %10431 = vmatprep.subr.bf16.mxu1 %v13202_v1  ;;  %v64_v11 = vcombine.high %v60_v7, %v60_v7  ;;  %v10724_v15 = vld [vmem:[%s13217_s1 + $0x8] sm:$0xff]  ;;  %v113_v18 = vcombine.high %v10719_v14, %v10719_v14  ;;  %v71_v21 = vrot.slane %v60_v7, %v10732_v17 }
   0xb   :  { %v182_v12 = vcombine.high %v178_v9, %v178_v9  ;;  %v231_v19 = vcombine.high %v10724_v15, %v10724_v15  ;;  %v189_v23 = vrot.slane %v178_v9, %v10732_v17  ;;  %v10751_v28 = vrot.slane %v10719_v14, %v10732_v17 }
   0xc   :  { %v78_v22 = vrot.slane %v64_v11, %v10732_v17  ;;  %v79_v29 = vcombine.high %v71_v21, %v71_v21  ;;  %v87_v31 = vrot.slane %v71_v21, %v10732_v17  ;;  %v10773_v47 = vrot.slane %v298_v27, %v10732_v17 }
   0xd   :  { %10167 = vmatpush3.bf16.msra.mxu0 %v10440_v5  ;;  %10433 = vmatpush3.bf16.msra.mxu1 %v10440_v5  ;;  %v196_v25 = vrot.slane %v182_v12, %v10732_v17  ;;  %v197_v33 = vcombine.high %v189_v23, %v189_v23  ;;  %v205_v35 = vrot.slane %v189_v23, %v10732_v17 }
   0xe   :  { %10180 = vmatprep.subr.bf16.mxu1 %v13202_v1  ;;  %v80_v30 = vcombine.high %v78_v22, %v78_v22  ;;  %v10756_v32 = vrot.slane %v78_v22, %v10732_v17  ;;  %10196 = vmatprep.subr.bf16.mxu0 %v13202_v1  ;;  %v101_v37 = vrot.slane %v79_v29, %v10732_v17 }
   0xf   :  { %v198_v34 = vcombine.high %v196_v25, %v196_v25  ;;  %v10761_v36 = vrot.slane %v196_v25, %v10732_v17  ;;  %v109_v39 = vcombine.high %v87_v31, %v87_v31  ;;  %v219_v41 = vrot.slane %v197_v33, %v10732_v17 }
  0x10   :  { %v10765_v38 = vrot.slane %v80_v30, %v10732_v17  ;;  %v227_v43 = vcombine.high %v205_v35, %v205_v35  ;;  %v111_v45 = vcombine.high %v101_v37, %v101_v37  ;;  %v321_v48 = vrot.slane %v299_v40, %v10732_v17 }
  0x11   :  { %v10769_v42 = vrot.slane %v198_v34, %v10732_v17  ;;  %v229_v49 = vcombine.high %v219_v41, %v219_v41  ;;  %v10777_v50 = vrot.slane %v300_v44, %v10732_v17  ;;  %v385_v51 = vrot.slane %v205_v35, %v10744_v24 }
  0x12   :  { %v389_v52 = vrot.slane %v219_v41, %v10744_v24  ;;  %v329_v53 = vcombine.high %v307_v46, %v307_v46  ;;  %v331_v54 = vcombine.high %v321_v48, %v321_v48  ;;  %v393_v55 = vrot.slane %v227_v43, %v10744_v24 }
  0x13   :  { %v401_v56 = vrot.slane %v10761_v36, %v10744_v24  ;;  %v397_v57 = vrot.slane %v229_v49, %v10744_v24  ;;  %v405_v58 = vrot.slane %v10769_v42, %v10744_v24  ;;  %v465_v59 = vrot.slane %v307_v46, %v10744_v24 }
  0x14   :  { %v469_v60 = vrot.slane %v321_v48, %v10744_v24  ;;  %v473_v61 = vrot.slane %v329_v53, %v10744_v24  ;;  %v477_v62 = vrot.slane %v331_v54, %v10744_v24  ;;  %v481_v63 = vrot.slane %v10773_v47, %v10744_v24 }
  0x15   :  { %v485_v0 = vrot.slane %v10777_v50, %v10744_v24  ;;  %v543_v2 = vsel %vm542_vm1, %v87_v31, %v385_v51  ;;  %v544_v3 = vsel %vm542_vm1, %v101_v37, %v389_v52  ;;  %v545_v4 = vsel %vm542_vm1, %v109_v39, %v393_v55 }
  0x16   :  { %v546_v5 = vsel %vm542_vm1, %v111_v45, %v397_v57  ;;  %v547_v7 = vsel %vm542_vm1, %v10756_v32, %v401_v56  ;;  %v548_v8 = vsel %vm542_vm1, %v10765_v38, %v405_v58  ;;  %v10804_v9 = vsel %vm559_vm2, %v543_v2, %v465_v59 }
  0x17   :  { %v10807_v10 = vsel %vm559_vm2, %v544_v3, %v469_v60  ;;  %v10810_v11 = vsel %vm559_vm2, %v545_v4, %v473_v61  ;;  %v10813_v12 = vsel %vm559_vm2, %v546_v5, %v477_v62  ;;  %v10816_v13 = vsel %vm559_vm2, %v547_v7, %v481_v63 }
  0x18   :  { %v10819_v21 = vsel %vm559_vm2, %v548_v8, %v485_v0  ;;  %v633_v22 = vrot.slane %v10804_v9, %v10732_v17  ;;  %v656_v23 = vrot.slane %v10807_v10, %v10732_v17  ;;  %v679_v25 = vrot.slane %v10810_v11, %v10732_v17 }
  0x19   :  { %v702_v26 = vrot.slane %v10813_v12, %v10732_v17  ;;  %v725_v27 = vrot.slane %v10816_v13, %v10732_v17  ;;  %v10833_v29 = vrot.slane %v10819_v21, %v10732_v17  ;;  %v127_v30 = vrot.slane %v113_v18, %v10732_v17 }
  0x1a   :  { %v128_v31 = vcombine.high %v10751_v28, %v10751_v28  ;;  %v634_v33 = vcombine.high %v633_v22, %v633_v22  ;;  %v641_v34 = vrot.slane %v633_v22, %v10732_v17  ;;  %v657_v35 = vcombine.high %v656_v23, %v656_v23 }
  0x1b   :  { %v664_v37 = vrot.slane %v656_v23, %v10732_v17  ;;  %v680_v39 = vcombine.high %v679_v25, %v679_v25  ;;  %v687_v40 = vrot.slane %v679_v25, %v10732_v17  ;;  %v703_v41 = vcombine.high %v702_v26, %v702_v26 }
  0x1c   :  { %v710_v43 = vrot.slane %v702_v26, %v10732_v17  ;;  %v648_v44 = vrot.slane %v634_v33, %v10732_v17  ;;  %v649_v45 = vcombine.high %v641_v34, %v641_v34  ;;  %v671_v14 = vrot.slane %v657_v35, %v10732_v17 }
  0x1d   :  { %v672_v18 = vcombine.high %v664_v37, %v664_v37  ;;  %v694_v46 = vrot.slane %v680_v39, %v10732_v17  ;;  %v695_v48 = vcombine.high %v687_v40, %v687_v40  ;;  %v717_v49 = vrot.slane %v703_v41, %v10732_v17 }
  0x1e   :  { %v718_v51 = vcombine.high %v710_v43, %v710_v43  ;;  %v726_v52 = vcombine.high %v725_v27, %v725_v27  ;;  %v733_v53 = vrot.slane %v725_v27, %v10732_v17  ;;  %v10852_v54 = vrot.slane %v10833_v29, %v10732_v17 }
  0x1f   :  { %v995_v55 = vcombine.low %v641_v34, %v648_v44  ;;  %v996_v56 = vcombine.low %v649_v45, %v664_v37  ;;  %v997_v57 = vcombine.low %v671_v14, %v672_v18  ;;  %v998_v58 = vcombine.low %v687_v40, %v694_v46 }
  0x20   :  { %v1044_v59 = vcombine.low %v695_v48, %v710_v43  ;;  %v740_v60 = vrot.slane %v726_v52, %v10732_v17  ;;  %v741_v61 = vcombine.high %v733_v53, %v733_v53  ;;  %v1045_v63 = vcombine.low %v717_v49, %v718_v51 }
  0x21   :  { %v1005_v62 = vrot.slane %v995_v55, %v10732_v17  ;;  %v1012_v0 = vrot.slane %v996_v56, %v10732_v17  ;;  %v1019_v2 = vrot.slane %v997_v57, %v10732_v17  ;;  %v1026_v3 = vrot.slane %v998_v58, %v10732_v17 }
  0x22   :  { %v1054_v4 = vrot.slane %v1044_v59, %v10732_v17  ;;  %v1046_v5 = vcombine.low %v733_v53, %v740_v60  ;;  %v1047_v7 = vcombine.low %v741_v61, %v10852_v54  ;;  %v1061_v8 = vrot.slane %v1045_v63, %v10732_v17 }
  0x23   :  { %v129_v22 = vcombine.high %v127_v30, %v127_v30  ;;  %v1027_v23 = vcombine.low %v1005_v62, %v1012_v0  ;;  %v1028_v25 = vcombine.low %v1019_v2, %v1026_v3  ;;  %v10864_v26 = vrot.slane %v10751_v28, %v10732_v17 }
  0x24   :  { %v10867_v27 = vrot.slane %v127_v30, %v10732_v17  ;;  %v1068_v33 = vrot.slane %v1046_v5, %v10732_v17  ;;  %v1075_v34 = vrot.slane %v1047_v7, %v10732_v17  ;;  %v1076_v35 = vcombine.low %v1054_v4, %v1061_v8 }
  0x25   :  { %v10872_v37 = vrot.slane %v128_v31, %v10732_v17  ;;  %v1035_v39 = vrot.slane %v1027_v23, %v10732_v17  ;;  %v1042_v40 = vrot.slane %v1028_v25, %v10732_v17  ;;  %v157_v41 = vrot.slane %v129_v22, %v10732_v17 }
  0x26   :  { %v158_v28 = vcombine.high %v10864_v26, %v10864_v26  ;;  %v1077_v43 = vcombine.low %v1068_v33, %v1075_v34  ;;  %v1084_v30 = vrot.slane %v1076_v35, %v10732_v17  ;;  %v159_v44 = vcombine.high %v10867_v27, %v10867_v27 }
  0x27   :  { %v160_v45 = vcombine.high %v10872_v37, %v10872_v37  ;;  %v1043_v31 = vcombine.low %v1035_v39, %v1042_v40  ;;  %v161_v14 = vcombine.high %v157_v41, %v157_v41  ;;  %v238_v18 = vrot.slane %v10724_v15, %v10732_v17 }
  0x28   :  { %v245_v46 = vrot.slane %v231_v19, %v10732_v17  ;;  %v1091_v48 = vrot.slane %v1077_v43, %v10732_v17  ;;  %v340_v49 = vrot.slane %v10729_v16, %v10732_v17  ;;  %v347_v51 = vrot.slane %v333_v20, %v10732_v17 }
  0x29   :  { %v110_v52 = vcombine.high %v10756_v32, %v10756_v32  ;;  %v246_v53 = vcombine.high %v238_v18, %v238_v18  ;;  %v10900_v56 = vrot.slane %v238_v18, %v10732_v17  ;;  %v10447_v32 = vld [vmem:[%s13184_s5] sm:$0xff]  }
  0x2a   :  { %v247_v55 = vcombine.high %v245_v46, %v245_v46  ;;  %v261_v15 = vrot.slane %v245_v46, %v10732_v17  ;;  %v1092_v19 = vcombine.low %v1084_v30, %v1091_v48  ;;  %v348_v57 = vcombine.high %v340_v49, %v340_v49 }
  0x2b   :  { %v349_v58 = vcombine.high %v347_v51, %v347_v51  ;;  %v10904_v59 = vrot.slane %v340_v49, %v10732_v17  ;;  %v10907_v60 = vrot.slane %v246_v53, %v10732_v17  ;;  %v276_v20 = vcombine.high %v10900_v56, %v10900_v56 }
  0x2c   :  { %v275_v16 = vrot.slane %v247_v55, %v10732_v17  ;;  %v277_v61 = vcombine.high %v261_v15, %v261_v15  ;;  %v10912_v62 = vpack.c.bf16 %v1092_v19, %v1043_v31  ;;  %v363_v63 = vrot.slane %v347_v51, %v10732_v17 }
  0x2d   :  { %v10916_v0 = vrot.slane %v348_v57, %v10732_v17  ;;  %v377_v2 = vrot.slane %v349_v58, %v10732_v17  ;;  %v278_v3 = vcombine.high %v10907_v60, %v10907_v60  ;;  %v378_v5 = vcombine.high %v10904_v59, %v10904_v59 }
  0x2e   :  { %v279_v4 = vcombine.high %v275_v16, %v275_v16  ;;  %v425_v7 = vrot.slane %v276_v20, %v10744_v24  ;;  %10169 = vmatmul.mubr.msk.bf16.vlgmr.msra.gmra.mrb[0].mxu0 %vm1316_vm3, %v10912_v62  ;;  %v379_v8 = vcombine.high %v363_v63, %v363_v63  ;;  %v433_v25 = vrot.slane %v261_v15, %v10744_v24 }
  0x2f   :  { %v380_v22 = vcombine.high %v10916_v0, %v10916_v0  ;;  %v381_v23 = vcombine.high %v377_v2, %v377_v2  ;;  %v429_v33 = vrot.slane %v278_v3, %v10744_v24  ;;  %v437_v34 = vrot.slane %v275_v16, %v10744_v24  ;;  %10172 = vmatprep.mubr.msk.bf16.mxu0 %vm10594_vm0, %v13202_v1 }
  0x30   :  { %v441_v35 = vrot.slane %v277_v61, %v10744_v24  ;;  %v445_v39 = vrot.slane %v279_v4, %v10744_v24  ;;  %v505_v40 = vrot.slane %v378_v5, %v10744_v24  ;;  %v513_v30 = vrot.slane %v363_v63, %v10744_v24 }
  0x31   :  { %v509_v43 = vrot.slane %v380_v22, %v10744_v24  ;;  %v517_v31 = vrot.slane %v377_v2, %v10744_v24  ;;  %v521_v18 = vrot.slane %v379_v8, %v10744_v24  ;;  %v525_v46 = vrot.slane %v381_v23, %v10744_v24 }
  0x32   :  { %v553_v48 = vsel %vm542_vm1, %v158_v28, %v425_v7  ;;  %v554_v49 = vsel %vm542_vm1, %v160_v45, %v429_v33  ;;  %v555_v51 = vsel %vm542_vm1, %v10867_v27, %v433_v25  ;;  %v556_v53 = vsel %vm542_vm1, %v157_v41, %v437_v34 }
  0x33   :  { %v557_v55 = vsel %vm542_vm1, %v159_v44, %v441_v35  ;;  %v558_v15 = vsel %vm542_vm1, %v161_v14, %v445_v39  ;;  %v10949_v19 = vsel %vm559_vm2, %v553_v48, %v505_v40  ;;  %v10952_v57 = vsel %vm559_vm2, %v554_v49, %v509_v43 }
  0x34   :  { %v10955_v58 = vsel %vm559_vm2, %v555_v51, %v513_v30  ;;  %v10958_v28 = vsel %vm559_vm2, %v556_v53, %v517_v31  ;;  %v10961_v27 = vsel %vm559_vm2, %v557_v55, %v521_v18  ;;  %v10964_v41 = vsel %vm559_vm2, %v558_v15, %v525_v46 }
  0x35   :  { %13219 = vst [vmem:[#allocation4_spill] sm:$0xff] %v10955_v58  ;;  %13220 = vst [vmem:[#allocation5_spill] sm:$0xff] %v10958_v28  ;;  %v10968_v44 = vrot.slane %v10949_v19, %v10732_v17  ;;  %v886_v45 = vrot.slane %v10952_v57, %v10732_v17  ;;  %v909_v14 = vrot.slane %v10955_v58, %v10732_v17 }
  0x36   :  { %13221 = vst [vmem:[#allocation6_spill] sm:$0xff] %v10961_v27  ;;  %13222 = vst [vmem:[#allocation7_spill] sm:$0xff] %v10964_v41  ;;  %v932_v16 = vrot.slane %v10958_v28, %v10732_v17  ;;  %v955_v20 = vrot.slane %v10961_v27, %v10732_v17  ;;  %v978_v61 = vrot.slane %v10964_v41, %v10732_v17 }
  0x37   :  { %v10982_v63 = vrot.slane %v10968_v44, %v10732_v17  ;;  %v887_v2 = vcombine.high %v886_v45, %v886_v45  ;;  %v894_v3 = vrot.slane %v886_v45, %v10732_v17  ;;  %v112_v4 = vcombine.high %v10765_v38, %v10765_v38 }
  0x38   :  { %v910_v5 = vcombine.high %v909_v14, %v909_v14  ;;  %v917_v7 = vrot.slane %v909_v14, %v10732_v17  ;;  %v933_v8 = vcombine.high %v932_v16, %v932_v16  ;;  %v940_v22 = vrot.slane %v932_v16, %v10732_v17 }
  0x39   :  { %v879_v23 = vcombine.high %v10982_v63, %v10982_v63  ;;  %v901_v25 = vrot.slane %v887_v2, %v10732_v17  ;;  %v902_v33 = vcombine.high %v894_v3, %v894_v3  ;;  %v956_v34 = vcombine.high %v955_v20, %v955_v20 }
  0x3a   :  { %v924_v35 = vrot.slane %v910_v5, %v10732_v17  ;;  %v925_v39 = vcombine.high %v917_v7, %v917_v7  ;;  %v947_v40 = vrot.slane %v933_v8, %v10732_v17  ;;  %v948_v43 = vcombine.high %v940_v22, %v940_v22 }
  0x3b   :  { %v963_v38 = vrot.slane %v955_v20, %v10732_v17  ;;  %v970_v30 = vrot.slane %v956_v34, %v10732_v17  ;;  %v979_v31 = vcombine.high %v978_v61, %v978_v61  ;;  %v986_v18 = vrot.slane %v978_v61, %v10732_v17 }
  0x3c   :  { %v1191_v46 = vcombine.low %v879_v23, %v894_v3  ;;  %v1192_v48 = vcombine.low %v901_v25, %v902_v33  ;;  %v1193_v49 = vcombine.low %v917_v7, %v924_v35  ;;  %v1194_v51 = vcombine.low %v925_v39, %v940_v22 }
  0x3d   :  { %v971_v53 = vcombine.high %v963_v38, %v963_v38  ;;  %v993_v55 = vrot.slane %v979_v31, %v10732_v17  ;;  %v994_v15 = vcombine.high %v986_v18, %v986_v18  ;;  %v1240_v45 = vcombine.low %v947_v40, %v948_v43 }
  0x3e   :  { %v1201_v14 = vrot.slane %v1191_v46, %v10732_v17  ;;  %v1208_v16 = vrot.slane %v1192_v48, %v10732_v17  ;;  %v1215_v20 = vrot.slane %v1193_v49, %v10732_v17  ;;  %v1222_v2 = vrot.slane %v1194_v51, %v10732_v17 }
  0x3f   :  { %v1241_v5 = vcombine.low %v963_v38, %v970_v30  ;;  %v1242_v8 = vcombine.low %v971_v53, %v986_v18  ;;  %v1243_v61 = vcombine.low %v993_v55, %v994_v15  ;;  %v1250_v3 = vrot.slane %v1240_v45, %v10732_v17 }
  0x40   :  { %v1223_v7 = vcombine.low %v1201_v14, %v1208_v16  ;;  %v1224_v22 = vcombine.low %v1215_v20, %v1222_v2  ;;  %v228_v23 = vcombine.high %v10761_v36, %v10761_v36  ;;  %v230_v25 = vcombine.high %v10769_v42, %v10769_v42 }
  0x41   :  { %v1257_v33 = vrot.slane %v1241_v5, %v10732_v17  ;;  %v1264_v34 = vrot.slane %v1242_v8, %v10732_v17  ;;  %v1271_v35 = vrot.slane %v1243_v61, %v10732_v17  ;;  %v330_v39 = vcombine.high %v10773_v47, %v10773_v47 }
  0x42   :  { %v1231_v40 = vrot.slane %v1223_v7, %v10732_v17  ;;  %v1238_v43 = vrot.slane %v1224_v22, %v10732_v17  ;;  %v332_v38 = vcombine.high %v10777_v50, %v10777_v50  ;;  %v409_v36 = vrot.slane %v228_v23, %v10744_v24 }
  0x43   :  { %v1272_v30 = vcombine.low %v1250_v3, %v1257_v33  ;;  %v1273_v42 = vcombine.low %v1264_v34, %v1271_v35  ;;  %v413_v31 = vrot.slane %v230_v25, %v10744_v24  ;;  %v417_v18 = vrot.slane %v10900_v56, %v10744_v24  ;;  %v10448_v33 = vld [vmem:[%s13184_s5 + $0x8] sm:$0xff]  }
  0x44   :  { %v1239_v46 = vcombine.low %v1231_v40, %v1238_v43  ;;  %v421_v47 = vrot.slane %v10907_v60, %v10744_v24  ;;  %v489_v48 = vrot.slane %v330_v39, %v10744_v24  ;;  %v493_v49 = vrot.slane %v332_v38, %v10744_v24 }
  0x45   :  { %v1280_v51 = vrot.slane %v1272_v30, %v10732_v17  ;;  %v1287_v50 = vrot.slane %v1273_v42, %v10732_v17  ;;  %v497_v53 = vrot.slane %v10904_v59, %v10744_v24  ;;  %v501_v55 = vrot.slane %v10916_v0, %v10744_v24 }
  0x46   :  { %v549_v56 = vsel %vm542_vm1, %v110_v52, %v409_v36  ;;  %v550_v60 = vsel %vm542_vm1, %v112_v4, %v413_v31  ;;  %v551_v15 = vsel %vm542_vm1, %v10864_v26, %v417_v18  ;;  %v552_v45 = vsel %vm542_vm1, %v10872_v37, %v421_v47 }
  0x47   :  { %v1288_v14 = vcombine.low %v1280_v51, %v1287_v50  ;;  %v11040_v16 = vsel %vm559_vm2, %v549_v56, %v489_v48  ;;  %v11043_v59 = vsel %vm559_vm2, %v550_v60, %v493_v49  ;;  %v11046_v0 = vsel %vm559_vm2, %v551_v15, %v497_v53 }
  0x48   :  { %v11052_v52 = vsel %vm559_vm2, %v552_v45, %v501_v55  ;;  %v749_v26 = vcombine.high %v10833_v29, %v10833_v29  ;;  %v764_v37 = vcombine.high %v10852_v54, %v10852_v54  ;;  %v771_v4 = vrot.slane %v11040_v16, %v10732_v17 }
  0x49   :  { %v11060_v20 = vpack.c.bf16 %v1288_v14, %v1239_v46  ;;  %v794_v2 = vrot.slane %v11043_v59, %v10732_v17  ;;  %v817_v5 = vrot.slane %v11046_v0, %v10732_v17  ;;  %v840_v8 = vrot.slane %v11052_v52, %v10732_v17 }
  0x4a   :  { %v763_v61 = vrot.slane %v749_v26, %v10732_v17  ;;  %v772_v29 = vcombine.high %v771_v4, %v771_v4  ;;  %v779_v3 = vrot.slane %v771_v4, %v10732_v17  ;;  %v864_v54 = vcombine.high %v10968_v44, %v10968_v44 }
  0x4b   :  { %10177 = vmatmul.mubr.msk.bf16.vlgmr.msra.gmra.mrb[0].mxu1 %vm1316_vm3, %v11060_v20  ;;  %v795_v7 = vcombine.high %v794_v2, %v794_v2  ;;  %v802_v22 = vrot.slane %v794_v2, %v10732_v17  ;;  %v818_v23 = vcombine.high %v817_v5, %v817_v5  ;;  %v825_v25 = vrot.slane %v817_v5, %v10732_v17 }
  0x4c   :  { %10181 = vmatpush3.bf16.msra.mxu1 %v10447_v32  ;;  %10184 = vmatprep.mubr.msk.bf16.mxu1 %vm10594_vm0, %v13202_v1  ;;  %v786_v34 = vrot.slane %v772_v29, %v10732_v17  ;;  %v787_v44 = vcombine.high %v779_v3, %v779_v3  ;;  %v841_v35 = vcombine.high %v840_v8, %v840_v8 }
  0x4d   :  { %10182 = vmatprep.subr.bf16.mxu1 %v13202_v1  ;;  %v809_v39 = vrot.slane %v795_v7, %v10732_v17  ;;  %v810_v40 = vcombine.high %v802_v22, %v802_v22  ;;  %v832_v43 = vrot.slane %v818_v23, %v10732_v17  ;;  %v833_v38 = vcombine.high %v825_v25, %v825_v25  ;;  %v10450_v23 = vld [vmem:[%s13185_s7 + $0x8] sm:$0xff]  }
  0x4e   :  { %v848_v36 = vrot.slane %v840_v8, %v10732_v17  ;;  %v855_v30 = vrot.slane %v841_v35, %v10732_v17  ;;  %v878_v42 = vrot.slane %v864_v54, %v10732_v17  ;;  %v1093_v31 = vcombine.low %v763_v61, %v764_v37 }
  0x4f   :  { %v1094_v18 = vcombine.low %v779_v3, %v786_v34  ;;  %v1095_v46 = vcombine.low %v787_v44, %v802_v22  ;;  %v1096_v47 = vcombine.low %v809_v39, %v810_v40  ;;  %v1142_v48 = vcombine.low %v825_v25, %v832_v43  ;;  %v10449_v22 = vld [vmem:[%s13185_s7] sm:$0xff]  }
  0x50   :  { %10183 = vmatpush3.bf16.msra.mxu1 %v10448_v33  ;;  %v856_v49 = vcombine.high %v848_v36, %v848_v36  ;;  %v1103_v51 = vrot.slane %v1093_v31, %v10732_v17  ;;  %v1143_v50 = vcombine.low %v833_v38, %v848_v36  ;;  %v1145_v53 = vcombine.low %v10982_v63, %v878_v42  ;;  %v11138_v25 = vld [vmem:[%s13186_s4] ss:$0 sm:$0xff] }
  0x51   :  { %v1110_v55 = vrot.slane %v1094_v18, %v10732_v17  ;;  %v1117_v56 = vrot.slane %v1095_v46, %v10732_v17  ;;  %v1124_v60 = vrot.slane %v1096_v47, %v10732_v17  ;;  %v1152_v15 = vrot.slane %v1142_v48, %v10732_v17  ;;  %10212 = vmatprep.subr.mxu1 %v13202_v1 }
  0x52   :  { %v1144_v45 = vcombine.low %v855_v30, %v856_v49  ;;  %v1159_v14 = vrot.slane %v1143_v50, %v10732_v17  ;;  %v1173_v32 = vrot.slane %v1145_v53, %v10732_v17  ;;  %10197 = vmatpush3.bf16.msra.mxu0 %v10449_v22 }
  0x53   :  { %v1125_v26 = vcombine.low %v1103_v51, %v1110_v55  ;;  %v1126_v37 = vcombine.low %v1117_v56, %v1124_v60  ;;  %10185 = vmatmul.mubr.msk.bf16.vlgmr.msra.gmra.mrb[4].mxu1 %vm1316_vm3, %v10912_v62  ;;  %10198 = vmatprep.subr.bf16.mxu0 %v13202_v1 }
  0x54   :  { %v1166_v63 = vrot.slane %v1144_v45, %v10732_v17  ;;  %v1174_v4 = vcombine.low %v1152_v15, %v1159_v14  ;;  %10188 = vmatprep.mubr.msk.bf16.mxu1 %vm10594_vm0, %v13202_v1 }
  0x55   :  { %v1133_v2 = vrot.slane %v1125_v26, %v10732_v17  ;;  %v1140_v5 = vrot.slane %v1126_v37, %v10732_v17 }
  0x56   :  { %v1175_v8 = vcombine.low %v1166_v63, %v1173_v32  ;;  %v1182_v61 = vrot.slane %v1174_v4, %v10732_v17  ;;  %10199 = vmatpush3.bf16.msra.mxu0 %v10450_v23 }
  0x57   :  { %v1141_v29 = vcombine.low %v1133_v2, %v1140_v5  ;;  %10242 = vmatprep.subr.mxu0 %v13202_v1 }
  0x58   :  { %v1189_v3 = vrot.slane %v1175_v8, %v10732_v17 }
  0x5a   :  { %v1190_v54 = vcombine.low %v1182_v61, %v1189_v3 }
  0x5c   :  { %v1296_v7 = vpack.c.bf16 %v1190_v54, %v1141_v29 }
  0x5e   :  { %10173 = vmatmul.mubr.msk.bf16.gmra.mrb[4].mxu0 %vm1316_vm3, %v1296_v7  ;;  %10189 = vmatmul.mubr.msk.bf16.gmra.mrb[8].mxu1 %vm1316_vm3, %v1296_v7 }
  0x5f   :  { %10192 = vmatprep.mubr.msk.bf16.mxu1 %vm10594_vm0, %v13202_v1  ;;  %10200 = vmatprep.mubr.msk.bf16.mxu0 %vm10594_vm0, %v13202_v1 }
  0x66   :  { %10193 = vmatmul.mubr.msk.bf16.gmra.mrb[12].mxu1 %vm1316_vm3, %v11060_v20  ;;  %10201 = vmatmul.mubr.msk.bf16.vlgmr.msra.gmra.mrb[8].mxu0 %vm1316_vm3, %v10912_v62 }
  0x67   :  { %10214 = vmatprep.mubr.msk.f32.mxu1 %vm10594_vm0, %v13202_v1  ;;  %10204 = vmatprep.mubr.msk.bf16.mxu0 %vm10594_vm0, %v13202_v1 }
  0x6e   :  { %10205 = vmatmul.mubr.msk.bf16.gmra.mrb[12].mxu0 %vm1316_vm3, %v1296_v7 }
  0x6f   :  { %10208 = vmatprep.mubr.msk.bf16.mxu0 %vm10594_vm0, %v13202_v1 }
  0x76   :  { %10209 = vmatmul.mubr.msk.bf16.gmra.mrb[16].mxu0 %vm1316_vm3, %v11060_v20 }
  0x77   :  { %10244 = vmatprep.mubr.msk.f32.mxu0 %vm10594_vm0, %v13202_v1 }
 0x101   :  { %v1360_v62 = vpop.f32.mrb[0].mxu0 }
 0x102   :  { %v1361_v33 = vadd.f32 %v11138_v25, %v1360_v62  ;;  %v10170_v34 = vpop.f32.mrb[1].mxu0 }
 0x103   :  { %v1363_v44 = vpop.f32.mrb[2].mxu0 }
 0x104   :  { %v1389_v35 = vcombine.high %v1361_v33, %v1361_v33  ;;  %v10171_v39 = vpop.f32.mrb[3].mxu0  ;;  %v1364_v40 = vadd.f32 %v11138_v25, %v1363_v44  ;;  %v1396_v48 = vrot.slane %v1361_v33, %v10732_v17 }
 0x105   :  { %v11171_v39 = vld [vmem:[%s13187_s6] ss:$0 sm:$0xff] }
 0x106   :  { %v1403_v43 = vrot.slane %v1389_v35, %v10732_v17  ;;  %v1445_v20 = vrot.slane %v1364_v40, %v10732_v17  ;;  %v1438_v49 = vcombine.high %v1364_v40, %v1364_v40  ;;  %v1404_v51 = vcombine.high %v1396_v48, %v1396_v48 }
 0x107   :  { %v1412_v14 = vrot.slane %v1396_v48, %v10732_v17 }
 0x108   :  { %v1405_v38 = vcombine.high %v1403_v43, %v1403_v43  ;;  %v1419_v36 = vrot.slane %v1403_v43, %v10732_v17  ;;  %v1461_v30 = vrot.slane %v1445_v20, %v10732_v17  ;;  %v1452_v50 = vrot.slane %v1438_v49, %v10732_v17 }
 0x109   :  { %v1426_v53 = vrot.slane %v1404_v51, %v10732_v17  ;;  %v1453_v55 = vcombine.high %v1445_v20, %v1445_v20  ;;  %v1434_v3 = vcombine.high %v1412_v14, %v1412_v14 }
 0x10a   :  { %v11147_v42 = vrot.slane %v1405_v38, %v10732_v17  ;;  %v2687_v18 = vrot.slane %v1461_v30, %v10732_v17  ;;  %v1454_v60 = vcombine.high %v1452_v50, %v1452_v50  ;;  %v1468_v5 = vrot.slane %v1452_v50, %v10732_v17 }
 0x10b   :  { %v1436_v26 = vcombine.high %v1426_v53, %v1426_v53  ;;  %v1475_v37 = vrot.slane %v1453_v55, %v10732_v17  ;;  %v1483_v8 = vcombine.high %v1461_v30, %v1461_v30  ;;  %v2433_v7 = vcombine.low %v1412_v14, %v1426_v53 }
 0x10c   :  { %v9964_v31 = vcombine.high %v1419_v36, %v11147_v42  ;;  %v11163_v61 = vrot.slane %v1454_v60, %v10732_v17  ;;  %v1484_v33 = vcombine.high %v1468_v5, %v1468_v5  ;;  %v2447_v38 = vrot.slane %v1434_v3, %v10732_v17 }
 0x10d   :  { %v2553_v22 = vcombine.low %v1436_v26, %v1419_v36  ;;  %v1485_v23 = vcombine.high %v1475_v37, %v1475_v37  ;;  %v2793_v34 = vcombine.low %v1475_v37, %v1483_v8  ;;  %v2440_v30 = vrot.slane %v2433_v7, %v10732_v17 }
 0x10e   :  { %v2680_v46 = vrot.slane %v9964_v31, %v10732_v17  ;;  %v2913_v35 = vcombine.low %v1468_v5, %v11163_v61  ;;  %v2927_v50 = vrot.slane %v1484_v33, %v10732_v17 }
 0x10f   :  { %v2560_v31 = vrot.slane %v2553_v22, %v10732_v17  ;;  %v2800_v51 = vrot.slane %v2793_v34, %v10732_v17  ;;  %v2448_v37 = vcombine.low %v2440_v30, %v2447_v38 }
 0x110   :  { %v11152_v47 = vcombine.low %v2680_v46, %v2687_v18  ;;  %v2567_v18 = vrot.slane %v11147_v42, %v10732_v17  ;;  %v2807_v46 = vrot.slane %v1485_v23, %v10732_v17  ;;  %v2920_v42 = vrot.slane %v2913_v35, %v10732_v17 }
 0x111   :  { %v11217_v35 = vrot.slane %v2448_v37, %v10732_v17 }
 0x112   :  { %v2928_v7 = vcombine.low %v2920_v42, %v2927_v50 }
 0x114   :  { %v11237_v50 = vrot.slane %v2928_v7, %v10732_v17 }
 0x11e   :  { %v1376_v56 = vpop.f32.mrb[0].mxu1 }
 0x11f   :  { %v1377_v15 = vadd.f32 %v11138_v25, %v1376_v56  ;;  %v10178_v45 = vpop.f32.mrb[1].mxu1 }
 0x120   :  { %v1379_v32 = vpop.f32.mrb[2].mxu1 }
 0x121   :  { %v1585_v63 = vcombine.high %v1377_v15, %v1377_v15  ;;  %v1380_v4 = vadd.f32 %v11138_v25, %v1379_v32  ;;  %v10179_v2 = vpop.f32.mrb[3].mxu1  ;;  %v1592_v43 = vrot.slane %v1377_v15, %v10732_v17 }
 0x122   :  { %v11201_v2 = vcombine.low %v2800_v51, %v2807_v46 }
 0x123   :  { %v1599_v29 = vrot.slane %v1585_v63, %v10732_v17  ;;  %v1641_v54 = vrot.slane %v1380_v4, %v10732_v17  ;;  %v1634_v49 = vcombine.high %v1380_v4, %v1380_v4  ;;  %v1600_v45 = vcombine.high %v1592_v43, %v1592_v43 }
 0x124   :  { %v11192_v14 = vrot.slane %v1592_v43, %v10732_v17  ;;  %v11196_v63 = vcombine.low %v2560_v31, %v2567_v18 }
 0x125   :  { %v1601_v62 = vcombine.high %v1599_v29, %v1599_v29  ;;  %v1649_v44 = vcombine.high %v1641_v54, %v1641_v54  ;;  %v11185_v60 = vrot.slane %v1641_v54, %v10732_v17  ;;  %v1615_v32 = vrot.slane %v1599_v29, %v10732_v17 }
 0x126   :  { %v1735_v40 = vpop.f32.mrb[4].mxu1  ;;  %v11199_v4 = vrot.slane %v1634_v49, %v10732_v17  ;;  %v1486_v29 = vcombine.high %v11163_v61, %v11163_v61  ;;  %v11210_v22 = vrot.slane %v1600_v45, %v10732_v17  ;;  %v1630_v23 = vcombine.high %v11192_v14, %v11192_v14 }
 0x127   :  { %v1629_v20 = vrot.slane %v1601_v62, %v10732_v17  ;;  %v10186_v36 = vpop.f32.mrb[5].mxu1  ;;  %v1736_v53 = vadd.f32 %v11171_v39, %v1735_v40  ;;  %v11188_v15 = vrot.slane %v1649_v44, %v10732_v17  ;;  %v1631_v34 = vcombine.high %v1615_v32, %v1615_v32 }
 0x128   :  { %v1738_v48 = vpop.f32.mrb[6].mxu1  ;;  %v11223_v61 = vrot.slane %v11199_v4, %v10732_v17  ;;  %v13225_v58 = vrot.slane %v11196_v63, %v10732_v17 }
 0x129   :  { %v10187_v55 = vpop.f32.mrb[7].mxu1  ;;  %v1633_v56 = vcombine.high %v1629_v20, %v1629_v20  ;;  %v1764_v5 = vcombine.high %v1736_v53, %v1736_v53  ;;  %v1771_v8 = vrot.slane %v1736_v53, %v10732_v17  ;;  %v4007_v54 = vrot.slane %v11188_v15, %v10732_v17 }
 0x12a   :  { %v3873_v62 = vcombine.low %v1615_v32, %v1629_v20  ;;  %v1739_v49 = vadd.f32 %v11171_v39, %v1738_v48  ;;  %v11242_v55 = vcombine.low %v11210_v22, %v1630_v23  ;;  %v11251_v48 = vrot.slane %v1631_v34, %v10732_v17 }
 0x12b   :  { %v3993_v26 = vcombine.low %v1633_v56, %v11185_v60  ;;  %v1779_v33 = vcombine.high %v1771_v8, %v1771_v8  ;;  %v1778_v38 = vrot.slane %v1764_v5, %v10732_v17  ;;  %v9994_v37 = vcombine.high %v11185_v60, %v11188_v15 }
 0x12c   :  { %v11245_v56 = vrot.slane %v3873_v62, %v10732_v17  ;;  %v1787_v62 = vrot.slane %v1771_v8, %v10732_v17 }
 0x12d   :  { %v4000_v3 = vrot.slane %v3993_v26, %v10732_v17  ;;  %v1801_v42 = vrot.slane %v1779_v33, %v10732_v17  ;;  %v1780_v23 = vcombine.high %v1778_v38, %v1778_v38  ;;  %v1794_v7 = vrot.slane %v1778_v38, %v10732_v17 }
 0x12f   :  { %v11214_v44 = vcombine.low %v4000_v3, %v4007_v54  ;;  %v1811_v15 = vcombine.high %v1801_v42, %v1801_v42  ;;  %v2456_v8 = vcombine.low %v1787_v62, %v1801_v42 }
 0x131   :  { %v1368_v43 = vpop.f32.mrb[4].mxu0  ;;  %v11226_v36 = vpop.f32.mrb[8].mxu1  ;;  %v2576_v38 = vcombine.low %v1811_v15, %v1794_v7 }
 0x132   :  { %v1369_v18 = vadd.f32 %v11138_v25, %v1368_v43  ;;  %v10174_v46 = vpop.f32.mrb[5].mxu0  ;;  %v10190_v51 = vpop.f32.mrb[9].mxu1 }
 0x133   :  { %v1371_v45 = vpop.f32.mrb[6].mxu0  ;;  %v11248_v32 = vpop.f32.mrb[10].mxu1  ;;  %v1813_v51 = vcombine.high %v1739_v49, %v1739_v49 }
 0x134   :  { %v1494_v5 = vrot.slane %v1369_v18, %v10732_v17  ;;  %v10191_v3 = vpop.f32.mrb[11].mxu1  ;;  %v10175_v54 = vpop.f32.mrb[7].mxu0  ;;  %v1372_v33 = vadd.f32 %v11138_v25, %v1371_v45  ;;  %v1487_v34 = vcombine.high %v1369_v18, %v1369_v18  ;;  %v1808_v25 = vrot.slane %v1780_v23, %v10732_v17 }
 0x135   :  { %v1820_v3 = vrot.slane %v1739_v49, %v10732_v17  ;;  %v1809_v18 = vcombine.high %v1787_v62, %v1787_v62 }
 0x136   :  { %v1502_v43 = vcombine.high %v1494_v5, %v1494_v5  ;;  %v1510_v46 = vrot.slane %v1494_v5, %v10732_v17  ;;  %v1536_v26 = vcombine.high %v1372_v33, %v1372_v33  ;;  %v1543_v45 = vrot.slane %v1372_v33, %v10732_v17 }
 0x137   :  { %v1501_v60 = vrot.slane %v1487_v34, %v10732_v17  ;;  %v1828_v62 = vcombine.high %v1820_v3, %v1820_v3  ;;  %v9965_v31 = vcombine.high %v1794_v7, %v1808_v25 }
 0x138   :  { %v1524_v54 = vrot.slane %v1502_v43, %v10732_v17  ;;  %v3033_v53 = vcombine.low %v1486_v29, %v1510_v46  ;;  %v1550_v5 = vrot.slane %v1536_v26, %v10732_v17  ;;  %v1827_v29 = vrot.slane %v1813_v51, %v10732_v17 }
 0x139   :  { %v11271_v30 = vpop.f32.mrb[12].mxu1  ;;  %v11283_v26 = vrot.slane %v9994_v37, %v10732_v17  ;;  %v1503_v20 = vcombine.high %v1501_v60, %v1501_v60  ;;  %v1551_v51 = vcombine.high %v1543_v45, %v1543_v45  ;;  %v2470_v37 = vrot.slane %v1809_v18, %v10732_v17 }
 0x13a   :  { %v3040_v40 = vrot.slane %v3033_v53, %v10732_v17  ;;  %v3047_v49 = vrot.slane %v1524_v54, %v10732_v17  ;;  %v10194_v43 = vpop.f32.mrb[13].mxu1  ;;  %v1552_v42 = vcombine.high %v1550_v5, %v1550_v5  ;;  %v11278_v23 = vrot.slane %v1550_v5, %v10732_v17 }
 0x13b   :  { %v11280_v33 = vpop.f32.mrb[14].mxu1  ;;  %v2463_v53 = vrot.slane %v2456_v8, %v10732_v17  ;;  %v1836_v5 = vrot.slane %v1820_v3, %v10732_v17  ;;  %v11293_v43 = vrot.slane %v1501_v60, %v10732_v17  ;;  %v9974_v24 = vcombine.high %v1510_v46, %v1524_v54 }
 0x13c   :  { %v11285_v34 = vcombine.low %v3040_v40, %v3047_v49  ;;  %v10195_v1 = vpop.f32.mrb[15].mxu1  ;;  %v11289_v15 = vrot.slane %v1552_v42, %v10732_v17  ;;  %v1829_v6 = vcombine.high %v1827_v29, %v1827_v29  ;;  %v2583_v40 = vrot.slane %v2576_v38, %v10732_v17 }
 0x13d   :  { %v2590_v49 = vrot.slane %v1808_v25, %v10732_v17  ;;  %v1850_v7 = vrot.slane %v1828_v62, %v10732_v17  ;;  %v11302_v8 = vrot.slane %v1503_v20, %v10732_v17  ;;  %v2471_v3 = vcombine.low %v2463_v53, %v2470_v37 }
 0x13e   :  { %v9984_v1 = vcombine.high %v11278_v23, %v11289_v15  ;;  %v11305_v60 = vrot.slane %v1543_v45, %v10732_v17  ;;  %v11308_v46 = vrot.slane %v1827_v29, %v10732_v17  ;;  %v11311_v54 = vrot.slane %v1551_v51, %v10732_v17 }
 0x13f   :  { %v1858_v18 = vcombine.high %v1836_v5, %v1836_v5  ;;  %v2703_v38 = vrot.slane %v9965_v31, %v10732_v17  ;;  %v3160_v42 = vrot.slane %v9974_v24, %v10732_v17  ;;  %v3167_v20 = vrot.slane %v11293_v43, %v10732_v17 }
 0x140   :  { %v3640_v25 = vrot.slane %v9984_v1, %v10732_v17  ;;  %v11319_v62 = vrot.slane %v1829_v6, %v10732_v17  ;;  %v2710_v45 = vrot.slane %v1836_v5, %v10732_v17  ;;  %v1533_v29 = vcombine.high %v11293_v43, %v11293_v43 }
 0x141   :  { %v2591_v53 = vcombine.low %v2583_v40, %v2590_v49  ;;  %v13223_v51 = vrot.slane %v11192_v14, %v10732_v17  ;;  %v1860_v31 = vcombine.high %v1850_v7, %v1850_v7  ;;  %v1581_v1 = vcombine.high %v11305_v60, %v11305_v60 }
 0x142   :  { %v2711_v6 = vcombine.low %v2703_v38, %v2710_v45  ;;  %v1744_v5 = vadd.f32 %v11171_v39, %v11226_v36  ;;  %v3393_v43 = vcombine.low %v11305_v60, %v11311_v54  ;;  %v2816_v40 = vcombine.low %v1850_v7, %v1858_v18 }
 0x143   :  { %v11327_v37 = vcombine.low %v3640_v25, %v13223_v51  ;;  %v1747_v14 = vadd.f32 %v11171_v39, %v11248_v32  ;;  %v2478_v49 = vrot.slane %v2471_v3, %v10732_v17  ;;  %v11340_v25 = vcombine.low %v3160_v42, %v3167_v20 }
 0x144   :  { %v1861_v51 = vcombine.high %v11319_v62, %v11319_v62  ;;  %v1862_v24 = vcombine.high %v1744_v5, %v1744_v5  ;;  %v1869_v38 = vrot.slane %v1744_v5, %v10732_v17  ;;  %v1859_v36 = vcombine.high %v11308_v46, %v11308_v46 }
 0x145   :  { %v2830_v45 = vrot.slane %v1860_v31, %v10732_v17  ;;  %v1911_v60 = vcombine.high %v1747_v14, %v1747_v14  ;;  %v1918_v7 = vrot.slane %v1747_v14, %v10732_v17  ;;  %10213 = vmatpush3.xpose.msk.msra.mxu1 %vm1316_vm3, %v2478_v49  ;;  %v1752_v42 = vadd.f32 %v11171_v39, %v11271_v30 }
 0x146   :  { %v1876_v32 = vrot.slane %v1862_v24, %v10732_v17  ;;  %v1877_v3 = vcombine.high %v1869_v38, %v1869_v38  ;;  %v1885_v18 = vrot.slane %v1869_v38, %v10732_v17  ;;  %v13224_v20 = vmov 0.0  }
 0x147   :  { %10217 = vmatprep.subr.mxu1 %v13224_v20  ;;  %v2823_v5 = vrot.slane %v2816_v40, %v10732_v17  ;;  %v1925_v41 = vrot.slane %v1911_v60, %v10732_v17  ;;  %v1926_v31 = vcombine.high %v1918_v7, %v1918_v7  ;;  %v2598_v27 = vrot.slane %v2591_v53, %v10732_v17 }
 0x148   :  { %v1892_v14 = vrot.slane %v1876_v32, %v10732_v17  ;;  %v1899_v49 = vrot.slane %v1877_v3, %v10732_v17  ;;  %v3056_v24 = vcombine.low %v1861_v51, %v1885_v18  ;;  %v1934_v28 = vrot.slane %v1918_v7, %v10732_v17  ;;  %10215 = vmatmul.mubr.msk.f32.vlgmr.msra.gmra.mrb[16].mxu1 %vm1316_vm3, %v11217_v35 }
 0x149   :  { %v2718_v30 = vrot.slane %v2711_v6, %v10732_v17  ;;  %v2936_v40 = vcombine.low %v11308_v46, %v11319_v62  ;;  %v1927_v38 = vcombine.high %v1925_v41, %v1925_v41  ;;  %v11367_v60 = vrot.slane %v1926_v31, %v10732_v17  ;;  %10218 = vmatpush3.xpose.msk.msra.mxu1 %vm1316_vm3, %v2598_v27 }
 0x14a   :  { %v3063_v53 = vrot.slane %v3056_v24, %v10732_v17  ;;  %v3070_v51 = vrot.slane %v1899_v49, %v10732_v17  ;;  %v11373_v7 = vrot.slane %v1925_v41, %v10732_v17  ;;  %v1960_v3 = vcombine.high %v1752_v42, %v1752_v42  ;;  %10219 = vmatprep.mubr.msk.f32.mxu1 %vm10594_vm0, %v13224_v20 }
 0x14b   :  { %v1878_v35 = vcombine.high %v1876_v32, %v1876_v32  ;;  %v9975_v6 = vcombine.high %v1885_v18, %v1899_v49  ;;  %v3190_v46 = vrot.slane %v1892_v14, %v10732_v17  ;;  %v11379_v62 = vrot.slane %v1927_v38, %v10732_v17  ;;  %10222 = vmatprep.subr.mxu1 %v13224_v20 }
 0x14c   :  { %v11383_v27 = vcombine.low %v11302_v8, %v1533_v29  ;;  %v2831_v31 = vcombine.low %v2823_v5, %v2830_v45  ;;  %v11385_v24 = vcombine.low %v3063_v53, %v3070_v51  ;;  %v1956_v41 = vcombine.high %v1934_v28, %v1934_v28  ;;  %10220 = vmatmul.mubr.msk.f32.vlgmr.msra.gmra.mrb[18].mxu1 %vm1316_vm3, %v13225_v58 }
 0x14d   :  { %v11392_v32 = vrot.slane %v3393_v43, %v10732_v17  ;;  %v11395_v18 = vrot.slane %v1581_v1, %v10732_v17  ;;  %v3183_v49 = vrot.slane %v9975_v6, %v10732_v17  ;;  %v3416_v29 = vcombine.low %v1934_v28, %v11367_v60  ;;  %10223 = vmatpush3.xpose.msk.msra.mxu1 %vm1316_vm3, %v2718_v30 }
 0x14e   :  { %v3175_v45 = vrot.slane %v11340_v25, %v10732_v17  ;;  %v11403_v5 = vrot.slane %v2936_v40, %v10732_v17  ;;  %v11406_v58 = vrot.slane %v1859_v36, %v10732_v17  ;;  %v9985_v63 = vcombine.high %v11373_v7, %v11379_v62  ;;  %10224 = vmatprep.mubr.msk.f32.mxu1 %vm10594_vm0, %v13224_v20 }
 0x14f   :  { %v1906_v1 = vrot.slane %v1878_v35, %v10732_v17  ;;  %v3191_v28 = vcombine.low %v3183_v49, %v3190_v46  ;;  %v1967_v43 = vrot.slane %v1752_v42, %v10732_v17  ;;  %v1974_v30 = vrot.slane %v1960_v3, %v10732_v17  ;;  %10227 = vmatprep.subr.mxu1 %v13224_v20 }
 0x150   :  { %v1908_v25 = vcombine.high %v1892_v14, %v1892_v14  ;;  %v3430_v40 = vrot.slane %v1956_v41, %v10732_v17  ;;  %v1755_v36 = vadd.f32 %v11171_v39, %v11280_v33  ;;  %v13226_v38 = vrot.slane %v11152_v47, %v10732_v17 }
 0x151   :  { %v2838_v53 = vrot.slane %v2831_v31, %v10732_v17  ;;  %v3423_v51 = vrot.slane %v3416_v29, %v10732_v17  ;;  %v1976_v42 = vcombine.high %v1974_v30, %v1974_v30  ;;  %v1983_v3 = vrot.slane %v1967_v43, %v10732_v17 }
 0x152   :  { %10225 = vmatmul.mubr.msk.f32.vlgmr.msra.gmra.mrb[20].mxu1 %vm1316_vm3, %v13226_v38  ;;  %v3663_v35 = vrot.slane %v9985_v63, %v10732_v17  ;;  %v1990_v14 = vrot.slane %v1974_v30, %v10732_v17  ;;  %v2009_v39 = vcombine.high %v1755_v36, %v1755_v36  ;;  %v2016_v33 = vrot.slane %v1755_v36, %v10732_v17 }
 0x153   :  { %10229 = vmatprep.mubr.msk.f32.mxu1 %vm10594_vm0, %v13224_v20  ;;  %v3198_v47 = vrot.slane %v3191_v28, %v10732_v17  ;;  %10228 = vmatpush3.xpose.msk.msra.mxu1 %vm1316_vm3, %v2838_v53  ;;  %v1910_v6 = vcombine.high %v1906_v1, %v1906_v1  ;;  %v1958_v46 = vcombine.high %v11367_v60, %v11367_v60 }
 0x154   :  { %v2004_v31 = vrot.slane %v1976_v42, %v10732_v17  ;;  %v3670_v41 = vrot.slane %v1983_v3, %v10732_v17  ;;  %10232 = vmatprep.subr.mxu1 %v13224_v20  ;;  %v3296_v49 = vcombine.low %v1906_v1, %v1908_v25  ;;  %v2006_v29 = vcombine.high %v1990_v14, %v1990_v14 }
 0x155   :  { %v11439_v63 = vrot.slane %v2009_v39, %v10732_v17  ;;  %v2024_v30 = vcombine.high %v2016_v33, %v2016_v33  ;;  %10243 = vmatpush3.xpose.msk.msra.mxu0 %vm1316_vm3, %v3198_v47  ;;  %v3431_v28 = vcombine.low %v3423_v51, %v3430_v40  ;;  %v1975_v36 = vcombine.high %v1967_v43, %v1967_v43 }
 0x156   :  { %v3671_v38 = vcombine.low %v3663_v35, %v3670_v41  ;;  %v3896_v53 = vcombine.low %v1990_v14, %v2004_v31  ;;  %10252 = vmatprep.subr.mxu0 %v13224_v20  ;;  %v1583_v60 = vcombine.high %v11311_v54, %v11311_v54  ;;  %v3408_v42 = vcombine.low %v11392_v32, %v11395_v18 }
 0x157   :  { %v2008_v1 = vcombine.high %v2004_v31, %v2004_v31  ;;  %v2032_v25 = vrot.slane %v2016_v33, %v10732_v17  ;;  %v13227_v39 = vrot.slane %v11201_v2, %v10732_v17  ;;  %v2951_v43 = vcombine.low %v11403_v5, %v11406_v58 }
 0x158   :  { %v3903_v40 = vrot.slane %v3896_v53, %v10732_v17  ;;  %v3910_v51 = vrot.slane %v2006_v29, %v10732_v17  ;;  %v11458_v54 = vrot.slane %v11439_v63, %v10732_v17  ;;  %10245 = vmatmul.mubr.msk.f32.vlgmr.msra.gmra.mrb[20].mxu0 %vm1316_vm3, %v3175_v45  ;;  %v3303_v32 = vrot.slane %v3296_v49, %v10732_v17 }
 0x159   :  { %10230 = vmatmul.mubr.msk.f32.vlgmr.msra.gmra.mrb[22].mxu1 %vm1316_vm3, %v13227_v39  ;;  %v3536_v18 = vcombine.low %v1958_v46, %v11373_v7  ;;  %v2046_v2 = vrot.slane %v2024_v30, %v10732_v17  ;;  %v4016_v35 = vcombine.low %v2008_v1, %v2032_v25  ;;  %10254 = vmatprep.mubr.msk.f32.mxu0 %vm10594_vm0, %v13224_v20 }
 0x15a   :  { %v3310_v5 = vrot.slane %v1910_v6, %v10732_v17  ;;  %v1997_v58 = vrot.slane %v1975_v36, %v10732_v17  ;;  %v2005_v14 = vcombine.high %v1983_v3, %v1983_v3  ;;  %v3438_v33 = vrot.slane %v3431_v28, %v10732_v17  ;;  %10234 = vmatprep.mubr.msk.f32.mxu1 %vm10594_vm0, %v13224_v20 }
 0x15b   :  { %v3678_v45 = vrot.slane %v3671_v38, %v10732_v17  ;;  %v4023_v7 = vrot.slane %v4016_v35, %v10732_v17  ;;  %v4030_v47 = vrot.slane %v2046_v2, %v10732_v17  ;;  %v9995_v46 = vcombine.high %v2032_v25, %v2046_v2 }
 0x15c   :  { %v3911_v31 = vcombine.low %v3903_v40, %v3910_v51  ;;  %v4150_v41 = vrot.slane %v11458_v54, %v10732_v17  ;;  %10253 = vmatpush3.xpose.msk.msra.mxu0 %vm1316_vm3, %v3438_v33  ;;  %v3415_v3 = vrot.slane %v3408_v42, %v10732_v17  ;;  %v2958_v6 = vrot.slane %v2951_v43, %v10732_v17 }
 0x15d   :  { %v3280_v49 = vrot.slane %v11383_v27, %v10732_v17  ;;  %v13228_v29 = vcombine.high %v11302_v8, %v11302_v8  ;;  %v11485_v28 = vcombine.low %v4023_v7, %v4030_v47  ;;  %v4143_v36 = vrot.slane %v9995_v46, %v10732_v17  ;;  %10262 = vmatprep.subr.mxu0 %v13224_v20 }
 0x15e   :  { %v3513_v38 = vcombine.low %v1583_v60, %v11278_v23  ;;  %v2007_v53 = vcombine.high %v1997_v58, %v1997_v58  ;;  %v3776_v42 = vcombine.low %v1997_v58, %v2005_v14  ;;  %10233 = vmatpush3.xpose.msk.msra.mxu1 %vm1316_vm3, %v2958_v6  ;;  %v3311_v1 = vcombine.low %v3303_v32, %v3310_v5 }
 0x15f   :  { %v3287_v30 = vrot.slane %v13228_v29, %v10732_v17  ;;  %v3543_v27 = vrot.slane %v3536_v18, %v10732_v17  ;;  %v3550_v25 = vrot.slane %v11379_v62, %v10732_v17  ;;  %v2025_v8 = vcombine.high %v11439_v63, %v11439_v63  ;;  %10255 = vmatmul.mubr.msk.f32.vlgmr.msra.gmra.mrb[22].mxu0 %vm1316_vm3, %v3415_v3 }
 0x160   :  { %10237 = vmatprep.subr.mxu1 %v13224_v20  ;;  %v4151_v39 = vcombine.low %v4143_v36, %v4150_v41  ;;  %10263 = vmatpush3.xpose.msk.msra.mxu0 %vm1316_vm3, %v3678_v45  ;;  %v3078_v23 = vrot.slane %v11385_v24, %v10732_v17  ;;  %v3918_v60 = vrot.slane %v3911_v31, %v10732_v17 }
 0x161   :  { %10264 = vmatprep.mubr.msk.f32.mxu0 %vm10594_vm0, %v13224_v20  ;;  %v3527_v62 = vrot.slane %v11289_v15, %v10732_v17  ;;  %10235 = vmatmul.mubr.msk.f32.vlgmr.msra.gmra.mrb[24].mxu1 %vm1316_vm3, %v11237_v50  ;;  %v3655_v63 = vrot.slane %v11327_v37, %v10732_v17  ;;  %v3288_v43 = vcombine.low %v3280_v49, %v3287_v30 }
 0x162   :  { %10272 = vmatprep.subr.mxu0 %v13224_v20  ;;  %v3783_v40 = vrot.slane %v3776_v42, %v10732_v17  ;;  %v3790_v51 = vrot.slane %v2007_v53, %v10732_v17  ;;  %10238 = vmatpush3.xpose.msk.msra.mxu1 %vm1316_vm3, %v3078_v23  ;;  %v3318_v15 = vrot.slane %v3311_v1, %v10732_v17 }
 0x163   :  { %10239 = vmatprep.mubr.msk.f32.mxu1 %vm10594_vm0, %v13224_v20  ;;  %v3520_v24 = vrot.slane %v3513_v38, %v10732_v17  ;;  %v3551_v50 = vcombine.low %v3543_v27, %v3550_v25  ;;  %10265 = vmatmul.mubr.msk.f32.vlgmr.msra.gmra.mrb[24].mxu0 %vm1316_vm3, %v3655_v63  ;;  %v3055_v37 = vrot.slane %v11285_v34, %v10732_v17 }
 0x164   :  { %10247 = vmatprep.subr.mxu1 %v13224_v20  ;;  %v2053_v32 = vrot.slane %v2025_v8, %v10732_v17  ;;  %v2055_v18 = vcombine.high %v11458_v54, %v11458_v54  ;;  %10273 = vmatpush3.xpose.msk.msra.mxu0 %vm1316_vm3, %v3918_v60  ;;  %v4158_v2 = vrot.slane %v4151_v39, %v10732_v17  ;;  %v2110_v8 = vpop.f32.mrb[8].mxu0 }
 0x165   :  { %10274 = vmatprep.mubr.msk.f32.mxu0 %vm10594_vm0, %v13224_v20  ;;  %v13229_v35 = vrot.slane %v11223_v61, %v10732_v17  ;;  %10240 = vmatmul.mubr.msk.f32.vlgmr.msra.gmra.mrb[26].mxu1 %vm1316_vm3, %v3055_v37  ;;  %v13230_v34 = vcombine.low %v11245_v56, %v11251_v48  ;;  %v3295_v54 = vrot.slane %v3288_v43, %v10732_v17  ;;  %v10202_v23 = vpop.f32.mrb[9].mxu0 }
 0x166   :  { %10282 = vmatprep.subr.mxu0 %v13224_v20  ;;  %v3760_v14 = vrot.slane %v11242_v55, %v10732_v17  ;;  %v13231_v33 = vcombine.high %v11210_v22, %v11210_v22  ;;  %10248 = vmatpush3.xpose.msk.msra.mxu1 %vm1316_vm3, %v3318_v15  ;;  %v13232_v56 = vcombine.high %v11199_v4, %v11199_v4  ;;  %v2113_v60 = vpop.f32.mrb[10].mxu0 }
 0x167   :  { %v4128_v5 = vcombine.low %v11283_v26, %v13229_v35  ;;  %v3895_v58 = vrot.slane %v13230_v34, %v10732_v17  ;;  %v3791_v26 = vcombine.low %v3783_v40, %v3790_v51  ;;  %10249 = vmatprep.mubr.msk.f32.mxu1 %vm10594_vm0, %v13224_v20  ;;  %v1680_v7 = vcombine.high %v11223_v61, %v11223_v61  ;;  %v10203_v43 = vpop.f32.mrb[11].mxu0 }
 0x168   :  { %v3767_v45 = vrot.slane %v13231_v33, %v10732_v17  ;;  %v1678_v48 = vrot.slane %v13232_v56, %v10732_v17  ;;  %v3528_v55 = vcombine.low %v3520_v24, %v3527_v62  ;;  %10257 = vmatprep.subr.mxu1 %v13224_v20  ;;  %v2057_v22 = vcombine.high %v2053_v32, %v2053_v32 }
 0x169   :  { %10275 = vmatmul.mubr.msk.f32.vlgmr.msra.gmra.mrb[26].mxu0 %vm1316_vm3, %v3895_v58  ;;  %v4256_v47 = vcombine.low %v2053_v32, %v2055_v18  ;;  %v3558_v46 = vrot.slane %v3551_v50, %v10732_v17  ;;  %10250 = vmatmul.mubr.msk.f32.vlgmr.msra.gmra.mrb[28].mxu1 %vm1316_vm3, %v3295_v54  ;;  %v4135_v4 = vrot.slane %v4128_v5, %v10732_v17 }
 0x16a   :  { %10283 = vmatpush3.xpose.msk.msra.mxu0 %vm1316_vm3, %v4158_v2  ;;  %10284 = vmatprep.mubr.msk.f32.mxu0 %vm10594_vm0, %v13224_v20  ;;  %v3768_v61 = vcombine.low %v3760_v14, %v3767_v45  ;;  %v3798_v31 = vrot.slane %v3791_v26, %v10732_v17  ;;  %v1682_v41 = vcombine.high %v1678_v48, %v1678_v48  ;;  %v2118_v14 = vpop.f32.mrb[12].mxu0 }
 0x16b   :  { %10292 = vmatprep.subr.mxu0 %v13224_v20  ;;  %10258 = vmatpush3.xpose.msk.msra.mxu1 %vm1316_vm3, %v3558_v46  ;;  %v4233_v3 = vcombine.low %v1678_v48, %v1680_v7  ;;  %v3535_v6 = vrot.slane %v3528_v55, %v10732_v17  ;;  %v4263_v49 = vrot.slane %v4256_v47, %v10732_v17  ;;  %v10206_v26 = vpop.f32.mrb[13].mxu0 }
 0x16c   :  { %10259 = vmatprep.mubr.msk.f32.mxu1 %vm10594_vm0, %v13224_v20  ;;  %10267 = vmatprep.subr.mxu1 %v13224_v20  ;;  %v4270_v29 = vrot.slane %v2057_v22, %v10732_v17  ;;  %v4247_v36 = vrot.slane %v1682_v41, %v10732_v17  ;;  %v3775_v38 = vrot.slane %v3768_v61, %v10732_v17  ;;  %v2121_v48 = vpop.f32.mrb[14].mxu0 }
 0x16d   :  { %10285 = vmatmul.mubr.msk.f32.vlgmr.msra.gmra.mrb[28].mxu0 %vm1316_vm3, %v4135_v4  ;;  %v4240_v30 = vrot.slane %v4233_v3, %v10732_v17  ;;  %v4038_v53 = vrot.slane %v11485_v28, %v10732_v17  ;;  %v4015_v1 = vrot.slane %v11214_v44, %v10732_v17  ;;  %v11605_v44 = vld [vmem:[%s13188_s8] ss:$0 sm:$0xff]  ;;  %v10207_v47 = vpop.f32.mrb[15].mxu0 }
 0x16e   :  { %10294 = vmatprep.mubr.msk.f32.mxu0 %vm10594_vm0, %v13224_v20  ;;  %10260 = vmatmul.mubr.msk.f32.vlgmr.msra.gmra.mrb[30].mxu1 %vm1316_vm3, %v3535_v6  ;;  %v4271_v42 = vcombine.low %v4263_v49, %v4270_v29  ;;  %v2111_v39 = vadd.f32 %v11605_v44, %v2110_v8  ;;  %v2114_v63 = vadd.f32 %v11605_v44, %v2113_v60  ;;  %v2126_v46 = vpop.f32.mrb[16].mxu0 }
 0x16f   :  { %10268 = vmatpush3.xpose.msk.msra.mxu1 %vm1316_vm3, %v3798_v31  ;;  %10269 = vmatprep.mubr.msk.f32.mxu1 %vm10594_vm0, %v13224_v20  ;;  %v4248_v27 = vcombine.low %v4240_v30, %v4247_v36  ;;  %v11634_v45 = vadd.f32 %v11605_v44, %v2118_v14  ;;  %v11641_v22 = vadd.f32 %v11605_v44, %v2121_v48  ;;  %v10210_v41 = vpop.f32.mrb[17].mxu0 }
 0x170   :  { %10277 = vmatprep.subr.mxu1 %v13224_v20  ;;  %v4278_v25 = vrot.slane %v4271_v42, %v10732_v17  ;;  %v2139_v62 = vcombine.high %v2111_v39, %v2111_v39  ;;  %v11611_v51 = vrot.slane %v2114_v63, %v10732_v17  ;;  %v2188_v35 = vcombine.high %v2114_v63, %v2114_v63  ;;  %v2129_v49 = vpop.f32.mrb[18].mxu0 }
 0x171   :  { %v4255_v28 = vrot.slane %v4248_v27, %v10732_v17  ;;  %v2146_v54 = vrot.slane %v2111_v39, %v10732_v17  ;;  %v2244_v55 = vrot.slane %v11634_v45, %v10732_v17  ;;  %v2286_v31 = vcombine.high %v11641_v22, %v11641_v22 }
 0x172   :  { %10270 = vmatmul.mubr.msk.f32.vlgmr.msra.gmra.mrb[32].mxu1 %vm1316_vm3, %v3775_v38  ;;  %v2153_v40 = vrot.slane %v2139_v62, %v10732_v17  ;;  %v11616_v50 = vrot.slane %v11611_v51, %v10732_v17  ;;  %v11625_v34 = vrot.slane %v2188_v35, %v10732_v17  ;;  %v2127_v6 = vadd.f32 %v11605_v44, %v2126_v46  ;;  %v10211_v38 = vpop.f32.mrb[19].mxu0 }
 0x173   :  { %10278 = vmatpush3.xpose.msk.msra.mxu1 %vm1316_vm3, %v4038_v53  ;;  %10279 = vmatprep.mubr.msk.f32.mxu1 %vm10594_vm0, %v13224_v20  ;;  %v2154_v56 = vcombine.high %v2146_v54, %v2146_v54  ;;  %v2252_v4 = vcombine.high %v2244_v55, %v2244_v55  ;;  %v11644_v61 = vrot.slane %v2244_v55, %v10732_v17 }
 0x174   :  { %10287 = vmatprep.subr.mxu1 %v13224_v20  ;;  %v2155_v15 = vcombine.high %v2153_v40, %v2153_v40  ;;  %v2169_v24 = vrot.slane %v2153_v40, %v10732_v17  ;;  %v4774_v18 = vrot.slane %v11616_v50, %v10732_v17  ;;  %v2204_v58 = vcombine.high %v11625_v34, %v11625_v34 }
 0x175   :  { %v2176_v3 = vrot.slane %v2154_v56, %v10732_v17  ;;  %v2162_v29 = vrot.slane %v2146_v54, %v10732_v17  ;;  %v11652_v30 = vrot.slane %v2252_v4, %v10732_v17  ;;  %v2300_v53 = vrot.slane %v2286_v31, %v10732_v17 }
 0x176   :  { %10280 = vmatmul.mubr.msk.f32.vlgmr.msra.gmra.mrb[34].mxu1 %vm1316_vm3, %v4015_v1  ;;  %v2183_v37 = vrot.slane %v2155_v15, %v10732_v17  ;;  %v11631_v33 = vrot.slane %v2204_v58, %v10732_v17  ;;  %v2335_v23 = vcombine.high %v2127_v6, %v2127_v6  ;;  %v11668_v63 = vrot.slane %v2127_v6, %v10732_v17 }
 0x177   :  { %10288 = vmatpush3.xpose.msk.msra.mxu1 %vm1316_vm3, %v4278_v25  ;;  %10289 = vmatprep.mubr.msk.f32.mxu1 %vm10594_vm0, %v13224_v20  ;;  %v5068_v1 = vrot.slane %v11652_v30, %v10732_v17  ;;  %v2186_v27 = vcombine.high %v2176_v3, %v2176_v3  ;;  %v2302_v25 = vcombine.high %v2300_v53, %v2300_v53 }
 0x178   :  { %10297 = vmatprep.subr.mxu1 %v13224_v20  ;;  %v10004_v32 = vcombine.high %v2169_v24, %v2183_v37  ;;  %v2236_v7 = vcombine.high %v11631_v33, %v11631_v33  ;;  %v2184_v8 = vcombine.high %v2162_v29, %v2162_v29  ;;  %v4562_v60 = vcombine.low %v2162_v29, %v2176_v3 }
 0x179   :  { %v11665_v62 = vrot.slane %v2302_v25, %v10732_v17  ;;  %v4662_v43 = vcombine.low %v2186_v27, %v2169_v24  ;;  %v11683_v58 = vadd.f32 %v11605_v44, %v2129_v49  ;;  %v4676_v14 = vrot.slane %v2183_v37, %v10732_v17 }
 0x17a   :  { %10290 = vmatmul.mubr.msk.f32.vlgmr.msra.gmra.mrb[36].mxu1 %vm1316_vm3, %v4255_v28  ;;  %v4767_v2 = vrot.slane %v10004_v32, %v10732_v17  ;;  %v5054_v36 = vcombine.low %v2236_v7, %v11644_v61  ;;  %v11660_v28 = vrot.slane %v2300_v53, %v10732_v17  ;;  %v4576_v15 = vrot.slane %v2184_v8, %v10732_v17 }
 0x17b   :  { %10299 = vmatprep.mubr.msk.f32.mxu1 %vm10594_vm0, %v13224_v20  ;;  %v11674_v32 = vrot.slane %v2335_v23, %v10732_v17  ;;  %v4669_v54 = vrot.slane %v4662_v43, %v10732_v17  ;;  %v2391_v48 = vrot.slane %v11683_v58, %v10732_v17 }
 0x17c   :  { %v11622_v5 = vcombine.low %v4767_v2, %v4774_v18  ;;  %v5061_v42 = vrot.slane %v5054_v36, %v10732_v17  ;;  %v10022_v40 = vcombine.high %v11660_v28, %v11665_v62  ;;  %v4569_v18 = vrot.slane %v4562_v60, %v10732_v17 }
 0x17d   :  { %v11679_v2 = vrot.slane %v11668_v63, %v10732_v17  ;;  %v2351_v24 = vcombine.high %v11674_v32, %v11674_v32  ;;  %v2399_v47 = vcombine.high %v2391_v48, %v2391_v48  ;;  %v4677_v46 = vcombine.low %v4669_v54, %v4676_v14 }
 0x17e   :  { %v11662_v39 = vcombine.low %v5061_v42, %v5068_v1  ;;  %v5551_v35 = vrot.slane %v10022_v40, %v10732_v17  ;;  %v4577_v7 = vcombine.low %v4569_v18, %v4576_v15  ;;  %v11701_v4 = vrot.slane %v2391_v48, %v10732_v17 }
 0x17f   :  { %v5558_v26 = vrot.slane %v11679_v2, %v10732_v17  ;;  %v11692_v56 = vrot.slane %v2351_v24, %v10732_v17  ;;  %v11704_v37 = vrot.slane %v2399_v47, %v10732_v17  ;;  %v4684_v6 = vrot.slane %v4677_v46, %v10732_v17 }
 0x180   :  { %v4584_v31 = vrot.slane %v4577_v7, %v10732_v17 }
 0x181   :  { %v11696_v55 = vcombine.low %v5551_v35, %v5558_v26  ;;  %v2383_v44 = vcombine.high %v11692_v56, %v11692_v56  ;;  %v5852_v3 = vrot.slane %v11704_v37, %v10732_v17  ;;  %10298 = vmatpush3.msk.msra.mxu1 %vm4589_vm4, %v4684_v6 }
 0x182   :  { %10293 = vmatpush3.msk.msra.mxu0 %vm4589_vm4, %v4584_v31  ;;  %10307 = vmatprep.subr.mxu1 %v13224_v20 }
 0x183   :  { %v5838_v41 = vcombine.low %v2383_v44, %v11701_v4  ;;  %10302 = vmatprep.subr.mxu0 %v13224_v20 }
 0x185   :  { %v5845_v49 = vrot.slane %v5838_v41, %v10732_v17 }
 0x187   :  { %v11715_v29 = vcombine.low %v5845_v49, %v5852_v3 }
 0x21b   :  { %v2549_v36 = vpop.f32.mrb[16].mxu1 }
 0x21c   :  { %v11718_v38 = vmul.f32 0.17677669, %v2549_v36  ;;  %v10216_v53 = vpop.f32.mrb[17].mxu1 }
 0x21e   :  { %v4370_v42 = vsel %vm4369_vm5, %v11718_v38, -inf }
 0x21f   :  { %4371 = vmax.xlane.f32.xlu0 %v4370_v42  ;;  %v2669_v1 = vpop.f32.mrb[18].mxu1 }
 0x220   :  { %v11722_v27 = vmul.f32 0.17677669, %v2669_v1  ;;  %v10221_v25 = vpop.f32.mrb[19].mxu1 }
 0x222   :  { %v4373_v8 = vsel %vm4369_vm5, %v11722_v27, -inf }
 0x223   :  { %4374 = vmax.xlane.f32.xlu0 %v4373_v8 }
 0x225   :  { %v2789_v23 = vpop.f32.mrb[20].mxu1 }
 0x226   :  { %v11726_v60 = vmul.f32 0.17677669, %v2789_v23  ;;  %v10226_v43 = vpop.f32.mrb[21].mxu1 }
 0x228   :  { %v4376_v40 = vsel %vm4369_vm5, %v11726_v60, -inf }
 0x229   :  { %4377 = vmax.xlane.f32.xlu1 %v4376_v40 }
 0x22b   :  { %v3269_v35 = vpop.f32.mrb[20].mxu0 }
 0x22c   :  { %v2909_v15 = vpop.f32.mrb[22].mxu1  ;;  %v10246_v54 = vpop.f32.mrb[21].mxu0  ;;  %v11734_v44 = vmul.f32 0.17677669, %v3269_v35 }
 0x22d   :  { %v11730_v18 = vmul.f32 0.17677669, %v2909_v15  ;;  %v10231_v24 = vpop.f32.mrb[23].mxu1 }
 0x22e   :  { %v4388_v53 = vsel %vm4369_vm5, %v11734_v44, -inf }
 0x22f   :  { %v4379_v14 = vsel %vm4369_vm5, %v11730_v18, -inf }
 0x230   :  { %4380 = vmax.xlane.f32.xlu1 %v4379_v14 }
 0x232   :  { %v3509_v26 = vpop.f32.mrb[22].mxu0 }
 0x233   :  { %v10256_v48 = vpop.f32.mrb[23].mxu0  ;;  %v11744_v1 = vmul.f32 0.17677669, %v3509_v26 }
 0x234   :  { %v3029_v7 = vpop.f32.mrb[24].mxu1 }
 0x235   :  { %v11736_v47 = vmul.f32 0.17677669, %v3029_v7  ;;  %v10236_v46 = vpop.f32.mrb[25].mxu1  ;;  %v4394_v14 = vsel %vm4369_vm5, %v11744_v1, -inf }
 0x236   :  { %v3749_v31 = vpop.f32.mrb[24].mxu0 }
 0x237   :  { %v10266_v41 = vpop.f32.mrb[25].mxu0  ;;  %v4382_v3 = vsel %vm4369_vm5, %v11736_v47, -inf  ;;  %v11750_v35 = vmul.f32 0.17677669, %v3749_v31 }
 0x238   :  { %4383 = vmax.xlane.f32.xlu0 %v4382_v3  ;;  %v3149_v6 = vpop.f32.mrb[26].mxu1 }
 0x239   :  { %v11740_v49 = vmul.f32 0.17677669, %v3149_v6  ;;  %v10241_v36 = vpop.f32.mrb[27].mxu1  ;;  %v4400_v31 = vsel %vm4369_vm5, %v11750_v35, -inf }
 0x23b   :  { %v4385_v8 = vsel %vm4369_vm5, %v11740_v49, -inf }
 0x23c   :  { %v3989_v42 = vpop.f32.mrb[26].mxu0  ;;  %4386 = vmax.xlane.f32.xlu1 %v4385_v8  ;;  %v3389_v23 = vpop.f32.mrb[28].mxu1  ;;  %4389 = vmax.xlane.f32.xlu0 %v4388_v53 }
 0x23d   :  { %v10276_v25 = vpop.f32.mrb[27].mxu0  ;;  %v11748_v43 = vmul.f32 0.17677669, %v3389_v23  ;;  %v10251_v40 = vpop.f32.mrb[29].mxu1  ;;  %v11758_v46 = vmul.f32 0.17677669, %v3989_v42 }
 0x23f   :  { %v4391_v54 = vsel %vm4369_vm5, %v11748_v43, -inf  ;;  %v4406_v42 = vsel %vm4369_vm5, %v11758_v46, -inf }
 0x240   :  { %v4229_v15 = vpop.f32.mrb[28].mxu0  ;;  %4392 = vmax.xlane.f32.xlu1 %v4391_v54  ;;  %4395 = vmax.xlane.f32.xlu0 %v4394_v14 }
 0x241   :  { %v10286_v24 = vpop.f32.mrb[29].mxu0  ;;  %v3629_v26 = vpop.f32.mrb[30].mxu1  ;;  %v11766_v53 = vmul.f32 0.17677669, %v4229_v15 }
 0x242   :  { %v11756_v48 = vmul.f32 0.17677669, %v3629_v26  ;;  %v10261_v7 = vpop.f32.mrb[31].mxu1 }
 0x243   :  { %v4412_v54 = vsel %vm4369_vm5, %v11766_v53, -inf }
 0x244   :  { %v4397_v41 = vsel %vm4369_vm5, %v11756_v48, -inf  ;;  %4401 = vmax.xlane.f32.xlu0 %v4400_v31 }
 0x245   :  { %4398 = vmax.xlane.f32.xlu1 %v4397_v41  ;;  %v3869_v3 = vpop.f32.mrb[32].mxu1 }
 0x246   :  { %v11764_v6 = vmul.f32 0.17677669, %v3869_v3  ;;  %v10271_v36 = vpop.f32.mrb[33].mxu1 }
 0x248   :  { %v4403_v25 = vsel %vm4369_vm5, %v11764_v6, -inf  ;;  %4407 = vmax.xlane.f32.xlu0 %v4406_v42 }
 0x249   :  { %4404 = vmax.xlane.f32.xlu1 %v4403_v25  ;;  %v4109_v8 = vpop.f32.mrb[34].mxu1 }
 0x24a   :  { %v11772_v23 = vmul.f32 0.17677669, %v4109_v8  ;;  %v10281_v40 = vpop.f32.mrb[35].mxu1 }
 0x24c   :  { %v4409_v24 = vsel %vm4369_vm5, %v11772_v23, -inf  ;;  %4413 = vmax.xlane.f32.xlu0 %v4412_v54 }
 0x24d   :  { %4410 = vmax.xlane.f32.xlu1 %v4409_v24  ;;  %v4349_v15 = vpop.f32.mrb[36].mxu1 }
 0x24e   :  { %v11778_v14 = vmul.f32 0.17677669, %v4349_v15  ;;  %v10291_v26 = vpop.f32.mrb[37].mxu1 }
 0x250   :  { %v4415_v7 = vsel %vm4369_vm5, %v11778_v14, -inf }
 0x251   :  { %4416 = vmax.xlane.f32.xlu1 %v4415_v7 }
 0x2ac   :  { %v4372_v41 = vpop.xlane.xlu0 %4371 }
 0x2ad   :  { %v4418_v31 = vsub.f32 %v11718_v38, %v4372_v41 }
 0x2af   :  { %v4434_v3 = vmul.f32 1.442695, %v4418_v31 }
 0x2b0   :  { %v4375_v36 = vpop.xlane.xlu0 %4374 }
 0x2b1   :  { %10459 = vpow2.f32 %v4434_v3  ;;  %v4419_v25 = vsub.f32 %v11722_v27, %v4375_v36 }
 0x2b3   :  { %v4436_v42 = vmul.f32 1.442695, %v4419_v25 }
 0x2b5   :  { %10461 = vpow2.f32 %v4436_v42 }
 0x2b6   :  { %v4378_v8 = vpop.xlane.xlu1 %4377 }
 0x2b7   :  { %v4420_v40 = vsub.f32 %v11726_v60, %v4378_v8 }
 0x2b9   :  { %v4438_v24 = vmul.f32 1.442695, %v4420_v40 }
 0x2bb   :  { %10463 = vpow2.f32 %v4438_v24  ;;  %v11785_v15 = vpop.eup %10459 }
 0x2bc   :  { %v4466_v38 = vsel %vm4369_vm5, %v11785_v15, 0.0 }
 0x2bd   :  { %v4381_v54 = vpop.xlane.xlu1 %4380  ;;  %4467 = vadd.xlane.f32.xlu0 %v4466_v38 }
 0x2be   :  { %v4421_v26 = vsub.f32 %v11730_v18, %v4381_v54 }
 0x2bf   :  { %v11790_v41 = vpop.eup %10461 }
 0x2c0   :  { %v4440_v7 = vmul.f32 1.442695, %v4421_v26  ;;  %v4469_v27 = vsel %vm4369_vm5, %v11790_v41, 0.0 }
 0x2c1   :  { %4470 = vadd.xlane.f32.xlu1 %v4469_v27 }
 0x2c2   :  { %10465 = vpow2.f32 %v4440_v7 }
 0x2c5   :  { %v11794_v60 = vpop.eup %10463  ;;  %v4384_v31 = vpop.xlane.xlu0 %4383 }
 0x2c6   :  { %v4472_v3 = vsel %vm4369_vm5, %v11794_v60, 0.0  ;;  %v4422_v18 = vsub.f32 %v11736_v47, %v4384_v31 }
 0x2c7   :  { %4473 = vadd.xlane.f32.xlu0 %v4472_v3 }
 0x2c8   :  { %v4442_v36 = vmul.f32 1.442695, %v4422_v18 }
 0x2c9   :  { %v4387_v25 = vpop.xlane.xlu1 %4386  ;;  %v4390_v42 = vpop.xlane.xlu0 %4389 }
 0x2ca   :  { %10467 = vpow2.f32 %v4442_v36  ;;  %v4423_v40 = vsub.f32 %v11740_v49, %v4387_v25  ;;  %v4424_v24 = vsub.f32 %v11734_v44, %v4390_v42 }
 0x2cc   :  { %v11799_v8 = vpop.eup %10465  ;;  %v4444_v26 = vmul.f32 1.442695, %v4423_v40  ;;  %v4446_v38 = vmul.f32 1.442695, %v4424_v24 }
 0x2cd   :  { %v4475_v54 = vsel %vm4369_vm5, %v11799_v8, 0.0  ;;  %v4393_v7 = vpop.xlane.xlu1 %4392  ;;  %v4396_v27 = vpop.xlane.xlu0 %4395 }
 0x2ce   :  { %4476 = vadd.xlane.f32.xlu1 %v4475_v54  ;;  %10469 = vpow2.f32 %v4444_v26  ;;  %v4425_v47 = vsub.f32 %v11748_v43, %v4393_v7  ;;  %v4426_v31 = vsub.f32 %v11744_v1, %v4396_v27 }
 0x2cf   :  { %10471 = vpow2.f32 %v4446_v38 }
 0x2d0   :  { %v4448_v3 = vmul.f32 1.442695, %v4425_v47  ;;  %v4450_v18 = vmul.f32 1.442695, %v4426_v31 }
 0x2d1   :  { %v4402_v49 = vpop.xlane.xlu0 %4401 }
 0x2d2   :  { %v4399_v36 = vpop.xlane.xlu1 %4398  ;;  %10473 = vpow2.f32 %v4448_v3  ;;  %v4428_v25 = vsub.f32 %v11750_v35, %v4402_v49 }
 0x2d3   :  { %v4427_v44 = vsub.f32 %v11756_v48, %v4399_v36  ;;  %10475 = vpow2.f32 %v4450_v18 }
 0x2d4   :  { %v11809_v42 = vpop.eup %10467  ;;  %v4454_v24 = vmul.f32 1.442695, %v4428_v25 }
 0x2d5   :  { %v4452_v40 = vmul.f32 1.442695, %v4427_v44  ;;  %v4408_v26 = vpop.xlane.xlu0 %4407  ;;  %v4478_v1 = vsel %vm4369_vm5, %v11809_v42, 0.0 }
 0x2d6   :  { %v4405_v54 = vpop.xlane.xlu1 %4404  ;;  %v4430_v38 = vsub.f32 %v11758_v46, %v4408_v26  ;;  %4479 = vadd.xlane.f32.xlu0 %v4478_v1 }
 0x2d7   :  { %10477 = vpow2.f32 %v4452_v40  ;;  %v4429_v43 = vsub.f32 %v11764_v6, %v4405_v54 }
 0x2d8   :  { %10479 = vpow2.f32 %v4454_v24  ;;  %v11815_v48 = vpop.eup %10469  ;;  %v4458_v7 = vmul.f32 1.442695, %v4430_v38 }
 0x2d9   :  { %v4456_v35 = vmul.f32 1.442695, %v4429_v43  ;;  %v11817_v27 = vpop.eup %10471  ;;  %v4414_v31 = vpop.xlane.xlu0 %4413  ;;  %v4481_v3 = vsel %vm4369_vm5, %v11815_v48, 0.0 }
 0x2da   :  { %v4411_v47 = vpop.xlane.xlu1 %4410  ;;  %v4432_v6 = vsub.f32 %v11766_v53, %v4414_v31  ;;  %4482 = vadd.xlane.f32.xlu1 %v4481_v3  ;;  %v4484_v46 = vsel %vm4369_vm5, %v11817_v27, 0.0 }
 0x2db   :  { %10481 = vpow2.f32 %v4456_v35  ;;  %v4431_v18 = vsub.f32 %v11772_v23, %v4411_v47  ;;  %4485 = vadd.xlane.f32.xlu0 %v4484_v46 }
 0x2dc   :  { %10483 = vpow2.f32 %v4458_v7  ;;  %v11825_v36 = vpop.eup %10473  ;;  %v4462_v44 = vmul.f32 1.442695, %v4432_v6 }
 0x2dd   :  { %v4460_v49 = vmul.f32 1.442695, %v4431_v18  ;;  %v11827_v25 = vpop.eup %10475  ;;  %v4487_v24 = vsel %vm4369_vm5, %v11825_v36, 0.0 }
 0x2de   :  { %v4417_v40 = vpop.xlane.xlu1 %4416  ;;  %4488 = vadd.xlane.f32.xlu1 %v4487_v24  ;;  %v4490_v53 = vsel %vm4369_vm5, %v11827_v25, 0.0 }
 0x2df   :  { %10485 = vpow2.f32 %v4460_v49  ;;  %v4433_v23 = vsub.f32 %v11778_v14, %v4417_v40  ;;  %4491 = vadd.xlane.f32.xlu0 %v4490_v53  ;;  %v2233_v53 = vcombine.high %v11616_v50, %v11616_v50 }
 0x2e0   :  { %10487 = vpow2.f32 %v4462_v44  ;;  %v2203_v44 = vcombine.high %v11611_v51, %v11611_v51 }
 0x2e1   :  { %v11834_v54 = vpop.eup %10477  ;;  %v4464_v26 = vmul.f32 1.442695, %v4433_v23 }
 0x2e2   :  { %v11836_v1 = vpop.eup %10479  ;;  %v4493_v43 = vsel %vm4369_vm5, %v11834_v54, 0.0  ;;  %v2225_v23 = vrot.slane %v2203_v44, %v10732_v17 }
 0x2e3   :  { %10489 = vpow2.f32 %v4464_v26  ;;  %4494 = vadd.xlane.f32.xlu1 %v4493_v43  ;;  %v4496_v38 = vsel %vm4369_vm5, %v11836_v1, 0.0 }
 0x2e4   :  { %4497 = vadd.xlane.f32.xlu0 %v4496_v38  ;;  %v2218_v38 = vrot.slane %v11625_v34, %v10732_v17 }
 0x2e5   :  { %v11842_v14 = vpop.eup %10481 }
 0x2e6   :  { %v11844_v35 = vpop.eup %10483  ;;  %v4499_v7 = vsel %vm4369_vm5, %v11842_v14, 0.0  ;;  %v4956_v51 = vcombine.low %v2218_v38, %v11631_v33  ;;  %v2237_v33 = vcombine.high %v11634_v45, %v11634_v45 }
 0x2e7   :  { %4500 = vadd.xlane.f32.xlu1 %v4499_v7  ;;  %v4502_v47 = vsel %vm4369_vm5, %v11844_v35, 0.0  ;;  %v2235_v7 = vcombine.high %v2225_v23, %v2225_v23 }
 0x2e8   :  { %4503 = vadd.xlane.f32.xlu0 %v4502_v47  ;;  %v4858_v47 = vcombine.low %v2225_v23, %v2233_v53  ;;  %v4782_v53 = vrot.slane %v11622_v5, %v10732_v17  ;;  %v2251_v45 = vrot.slane %v2237_v33, %v10732_v17 }
 0x2e9   :  { %v11850_v31 = vpop.eup %10485  ;;  %v4872_v44 = vrot.slane %v2235_v7, %v10732_v17  ;;  %v2293_v7 = vrot.slane %v11641_v22, %v10732_v17 }
 0x2ea   :  { %v11852_v3 = vpop.eup %10487  ;;  %v4505_v18 = vsel %vm4369_vm5, %v11850_v31, 0.0 }
 0x2eb   :  { %4506 = vadd.xlane.f32.xlu1 %v4505_v18  ;;  %v4508_v6 = vsel %vm4369_vm5, %v11852_v3, 0.0 }
 0x2ec   :  { %4509 = vadd.xlane.f32.xlu0 %v4508_v6 }
 0x2ed   :  { %v11858_v46 = vpop.eup %10489 }
 0x2ee   :  { %v4511_v49 = vsel %vm4369_vm5, %v11858_v46, 0.0 }
 0x2ef   :  { %4512 = vadd.xlane.f32.xlu1 %v4511_v49  ;;  %v2234_v49 = vcombine.high %v2218_v38, %v2218_v38 }
 0x34a   :  { %v4468_v40 = vpop.xlane.xlu0 %4467 }
 0x34b   :  { %v4514_v24 = vmax.f32 %v4468_v40, 1e-12  ;;  %v4865_v40 = vrot.slane %v4858_v47, %v10732_v17 }
 0x34d   :  { %10491 = vrcp.f32 %v4514_v24  ;;  %v4963_v24 = vrot.slane %v4956_v51, %v10732_v17  ;;  %v2267_v51 = vrot.slane %v2251_v45, %v10732_v17 }
 0x34e   :  { %v4471_v26 = vpop.xlane.xlu1 %4470 }
 0x34f   :  { %v4515_v43 = vmax.f32 %v4471_v26, 1e-12  ;;  %v4970_v26 = vrot.slane %v2234_v49, %v10732_v17 }
 0x351   :  { %10493 = vrcp.f32 %v4515_v43  ;;  %v4873_v43 = vcombine.low %v4865_v40, %v4872_v44  ;;  %v4971_v5 = vcombine.low %v4963_v24, %v4970_v26 }
 0x353   :  { %v4978_v40 = vrot.slane %v4971_v5, %v10732_v17 }
 0x354   :  { %v4474_v18 = vpop.xlane.xlu0 %4473 }
 0x355   :  { %v4516_v6 = vmax.f32 %v4474_v18, 1e-12  ;;  %v4880_v18 = vrot.slane %v4873_v43, %v10732_v17 }
 0x357   :  { %10495 = vrcp.f32 %v4516_v6  ;;  %v10492_v50 = vpop.eup %10491  ;;  %v2301_v6 = vcombine.high %v2293_v7, %v2293_v7 }
 0x358   :  { %v4546_v23 = vmul.f32 %v10492_v50, %v11785_v15 }
 0x359   :  { %v2323_v44 = vrot.slane %v2301_v6, %v10732_v17 }
 0x35a   :  { %10295 = vmatmul.mubr.msk.f32.vlgmr.msra.gmra.mrb[30].mxu0 %vm4585_vm6, %v4546_v23  ;;  %v10013_v23 = vcombine.high %v11644_v61, %v11652_v30  ;;  %v2384_v61 = vcombine.high %v11683_v58, %v11683_v58  ;;  %v2365_v58 = vrot.slane %v11674_v32, %v10732_v17 }
 0x35b   :  { %v4477_v34 = vpop.xlane.xlu1 %4476  ;;  %v10494_v47 = vpop.eup %10493  ;;  %10303 = vmatpush3.msk.msra.mxu0 %vm4589_vm4, %v4782_v53  ;;  %10304 = vmatprep.mubr.msk.f32.mxu0 %vm10594_vm0, %v13224_v20  ;;  %v2309_v53 = vrot.slane %v2293_v7, %v10732_v17  ;;  %v2333_v43 = vcombine.high %v2323_v44, %v2323_v44 }
 0x35c   :  { %v4517_v38 = vmax.f32 %v4477_v34, 1e-12  ;;  %v4547_v15 = vmul.f32 %v10494_v47, %v11790_v41  ;;  %10312 = vmatprep.subr.mxu0 %v13224_v20  ;;  %v2253_v41 = vcombine.high %v2251_v45, %v2251_v45  ;;  %v2283_v34 = vcombine.high %v2267_v51, %v2267_v51 }
 0x35d   :  { %v2350_v47 = vcombine.high %v11668_v63, %v11668_v63  ;;  %v5076_v45 = vrot.slane %v11662_v39, %v10732_v17  ;;  %v5159_v6 = vrot.slane %v10013_v23, %v10732_v17  ;;  %v2331_v63 = vcombine.high %v2309_v53, %v2309_v53 }
 0x35e   :  { %10497 = vrcp.f32 %v4517_v38  ;;  %10300 = vmatmul.mubr.msk.f32.vlgmr.msra.gmra.mrb[38].mxu1 %vm4585_vm6, %v4547_v15  ;;  %v2281_v26 = vrot.slane %v2253_v41, %v10732_v17  ;;  %v5348_v39 = vcombine.low %v2309_v53, %v2323_v44  ;;  %v5460_v23 = vrot.slane %v11665_v62, %v10732_v17 }
 0x35f   :  { %10308 = vmatpush3.msk.msra.mxu1 %vm4589_vm4, %v4880_v18  ;;  %10309 = vmatprep.mubr.msk.f32.mxu1 %vm10594_vm0, %v13224_v20  ;;  %v5166_v18 = vrot.slane %v2267_v51, %v10732_v17  ;;  %v2372_v41 = vrot.slane %v2350_v47, %v10732_v17  ;;  %v2380_v51 = vcombine.high %v11679_v2, %v11679_v2 }
 0x360   :  { %10317 = vmatprep.subr.mxu1 %v13224_v20  ;;  %v2285_v7 = vcombine.high %v2281_v26, %v2281_v26  ;;  %v5362_v32 = vrot.slane %v2331_v63, %v10732_v17 }
 0x361   :  { %v10496_v22 = vpop.eup %10495  ;;  %v5167_v44 = vcombine.low %v5159_v6, %v5166_v18 }
 0x362   :  { %v4548_v49 = vmul.f32 %v10496_v22, %v11794_v60  ;;  %v5446_v22 = vcombine.low %v2333_v43, %v11660_v28 }
 0x363   :  { %v4480_v50 = vpop.xlane.xlu0 %4479  ;;  %v5174_v62 = vrot.slane %v5167_v44, %v10732_v17 }
 0x364   :  { %10305 = vmatmul.mubr.msk.f32.vlgmr.msra.gmra.mrb[32].mxu0 %vm4585_vm6, %v4548_v49  ;;  %v4518_v24 = vmax.f32 %v4480_v50, 1e-12  ;;  %v5453_v43 = vrot.slane %v5446_v22, %v10732_v17 }
 0x365   :  { %10313 = vmatpush3.msk.msra.mxu0 %vm4589_vm4, %v4978_v40  ;;  %10314 = vmatprep.mubr.msk.f32.mxu0 %vm10594_vm0, %v13224_v20 }
 0x366   :  { %10322 = vmatprep.subr.mxu0 %v13224_v20  ;;  %10499 = vrcp.f32 %v4518_v24  ;;  %v2398_v24 = vrot.slane %v2384_v61, %v10732_v17  ;;  %v5461_v22 = vcombine.low %v5453_v43, %v5460_v23 }
 0x367   :  { %v4483_v33 = vpop.xlane.xlu1 %4482 }
 0x368   :  { %v10498_v60 = vpop.eup %10497  ;;  %v4519_v15 = vmax.f32 %v4483_v33, 1e-12  ;;  %v4486_v5 = vpop.xlane.xlu0 %4485  ;;  %v2381_v33 = vcombine.high %v2365_v58, %v2365_v58 }
 0x369   :  { %v4549_v38 = vmul.f32 %v10498_v60, %v11799_v8  ;;  %v4520_v30 = vmax.f32 %v4486_v5, 1e-12  ;;  %v5250_v8 = vcombine.low %v2281_v26, %v2283_v34  ;;  %v5264_v26 = vrot.slane %v2285_v7, %v10732_v17 }
 0x36a   :  { %10501 = vrcp.f32 %v4519_v15  ;;  %v5355_v34 = vrot.slane %v5348_v39, %v10732_v17  ;;  %v2382_v5 = vcombine.high %v2372_v41, %v2372_v41 }
 0x36b   :  { %10310 = vmatmul.mubr.msk.f32.vlgmr.msra.gmra.mrb[40].mxu1 %vm4585_vm6, %v4549_v38  ;;  %10503 = vrcp.f32 %v4520_v30  ;;  %v4489_v49 = vpop.xlane.xlu1 %4488  ;;  %v5257_v28 = vrot.slane %v5250_v8, %v10732_v17  ;;  %v5642_v38 = vcombine.low %v2372_v41, %v2380_v51  ;;  %v11937_v30 = vrot.slane %v2398_v24, %v10732_v17 }
 0x36c   :  { %10318 = vmatpush3.msk.msra.mxu1 %vm4589_vm4, %v5076_v45  ;;  %10319 = vmatprep.mubr.msk.f32.mxu1 %vm10594_vm0, %v13224_v20  ;;  %v4521_v40 = vmax.f32 %v4489_v49, 1e-12  ;;  %v4492_v50 = vpop.xlane.xlu0 %4491  ;;  %v2400_v45 = vcombine.high %v2398_v24, %v2398_v24  ;;  %v5363_v6 = vcombine.low %v5355_v34, %v5362_v32  ;;  %v5740_v8 = vcombine.low %v2365_v58, %v11692_v56 }
 0x36d   :  { %10327 = vmatprep.subr.mxu1 %v13224_v20  ;;  %v4522_v60 = vmax.f32 %v4492_v50, 1e-12  ;;  %v5265_v7 = vcombine.low %v5257_v28, %v5264_v26  ;;  %v5649_v49 = vrot.slane %v5642_v38, %v10732_v17  ;;  %v5656_v56 = vrot.slane %v2382_v5, %v10732_v17 }
 0x36e   :  { %10505 = vrcp.f32 %v4521_v40  ;;  %v2428_v58 = vrot.slane %v2400_v45, %v10732_v17  ;;  %v5747_v26 = vrot.slane %v5740_v8, %v10732_v17  ;;  %v10031_v34 = vcombine.high %v11701_v4, %v11704_v37 }
 0x36f   :  { %10507 = vrcp.f32 %v4522_v60  ;;  %v2430_v60 = vcombine.high %v11937_v30, %v11937_v30  ;;  %v5272_v28 = vrot.slane %v5265_v7, %v10732_v17  ;;  %v5370_v23 = vrot.slane %v5363_v6, %v10732_v17 }
 0x370   :  { %v4495_v2 = vpop.xlane.xlu1 %4494  ;;  %v10500_v53 = vpop.eup %10499  ;;  %v2432_v38 = vcombine.high %v2428_v58, %v2428_v58  ;;  %v5943_v45 = vrot.slane %v10031_v34, %v10732_v17 }
 0x371   :  { %v4523_v47 = vmax.f32 %v4495_v2, 1e-12  ;;  %v4498_v15 = vpop.xlane.xlu0 %4497  ;;  %v4550_v61 = vmul.f32 %v10500_v53, %v11809_v42  ;;  %v11944_v42 = vrot.slane %v2381_v33, %v10732_v17  ;;  %v5566_v2 = vrot.slane %v11696_v55, %v10732_v17 }
 0x372   :  { %v4524_v18 = vmax.f32 %v4498_v15, 1e-12  ;;  %v5657_v33 = vcombine.low %v5649_v49, %v5656_v56  ;;  %v5468_v15 = vrot.slane %v5461_v22, %v10732_v17  ;;  %v6048_v7 = vrot.slane %v2432_v38, %v10732_v17 }
 0x373   :  { %10509 = vrcp.f32 %v4523_v47  ;;  %10315 = vmatmul.mubr.msk.f32.vlgmr.msra.gmra.mrb[34].mxu0 %vm4585_vm6, %v4550_v61  ;;  %v6034_v47 = vcombine.low %v2428_v58, %v2430_v60  ;;  %v5755_v5 = vcombine.low %v5747_v26, %v11944_v42 }
 0x374   :  { %10511 = vrcp.f32 %v4524_v18  ;;  %v4501_v63 = vpop.xlane.xlu1 %4500  ;;  %v10502_v39 = vpop.eup %10501  ;;  %10323 = vmatpush3.msk.msra.mxu0 %vm4589_vm4, %v5174_v62  ;;  %10324 = vmatprep.mubr.msk.f32.mxu0 %vm10594_vm0, %v13224_v20  ;;  %v5950_v18 = vrot.slane %v11937_v30, %v10732_v17 }
 0x375   :  { %v4525_v41 = vmax.f32 %v4501_v63, 1e-12  ;;  %v4504_v51 = vpop.xlane.xlu0 %4503  ;;  %v10504_v40 = vpop.eup %10503  ;;  %10332 = vmatprep.subr.mxu0 %v13224_v20  ;;  %v4551_v24 = vmul.f32 %v10502_v39, %v11815_v48  ;;  %v6041_v6 = vrot.slane %v6034_v47, %v10732_v17  ;;  %v5664_v63 = vrot.slane %v5657_v33, %v10732_v17 }
 0x376   :  { %v4526_v50 = vmax.f32 %v4504_v51, 1e-12  ;;  %v4552_v44 = vmul.f32 %v10504_v40, %v11817_v27  ;;  %v5951_v39 = vcombine.low %v5943_v45, %v5950_v18  ;;  %v5762_v22 = vrot.slane %v5755_v5, %v10732_v17 }
 0x377   :  { %10513 = vrcp.f32 %v4525_v41  ;;  %10320 = vmatmul.mubr.msk.f32.vlgmr.msra.gmra.mrb[42].mxu1 %vm4585_vm6, %v4551_v24  ;;  %v5860_v41 = vrot.slane %v11715_v29, %v10732_v17  ;;  %v6049_v51 = vcombine.low %v6041_v6, %v6048_v7  ;;  %v10452_v24 = vld [vmem:[%s13189_s9 + $0x8] sm:$0xff]  }
 0x378   :  { %10515 = vrcp.f32 %v4526_v50  ;;  %v4507_v32 = vpop.xlane.xlu1 %4506  ;;  %v10506_v48 = vpop.eup %10505  ;;  %10325 = vmatmul.mubr.msk.f32.vlgmr.msra.gmra.mrb[36].mxu0 %vm4585_vm6, %v4552_v44  ;;  %10328 = vmatpush3.msk.msra.mxu1 %vm4589_vm4, %v5272_v28  ;;  %v5958_v40 = vrot.slane %v5951_v39, %v10732_v17 }
 0x379   :  { %v4527_v53 = vmax.f32 %v4507_v32, 1e-12  ;;  %v4510_v27 = vpop.xlane.xlu0 %4509  ;;  %v10508_v43 = vpop.eup %10507  ;;  %10333 = vmatpush3.msk.msra.mxu0 %vm4589_vm4, %v5370_v23  ;;  %10329 = vmatprep.mubr.msk.f32.mxu1 %vm10594_vm0, %v13224_v20  ;;  %v4553_v37 = vmul.f32 %v10506_v48, %v11825_v36  ;;  %v6056_v58 = vrot.slane %v6049_v51, %v10732_v17 }
 0x37a   :  { %v4528_v4 = vmax.f32 %v4510_v27, 1e-12  ;;  %10334 = vmatprep.mubr.msk.f32.mxu0 %vm10594_vm0, %v13224_v20  ;;  %10337 = vmatprep.subr.mxu1 %v13224_v20  ;;  %v4554_v55 = vmul.f32 %v10508_v43, %v11827_v25 }
 0x37b   :  { %10517 = vrcp.f32 %v4527_v53  ;;  %10342 = vmatprep.subr.mxu0 %v13224_v20  ;;  %10330 = vmatmul.mubr.msk.f32.vlgmr.msra.gmra.mrb[44].mxu1 %vm4585_vm6, %v4553_v37 }
 0x37c   :  { %10519 = vrcp.f32 %v4528_v4  ;;  %v4513_v36 = vpop.xlane.xlu1 %4512  ;;  %10335 = vmatmul.mubr.msk.f32.vlgmr.msra.gmra.mrb[38].mxu0 %vm4585_vm6, %v4554_v55  ;;  %10338 = vmatpush3.msk.msra.mxu1 %vm4589_vm4, %v5468_v15 }
 0x37d   :  { %v10510_v61 = vpop.eup %10509  ;;  %v4529_v62 = vmax.f32 %v4513_v36, 1e-12  ;;  %10343 = vmatpush3.msk.msra.mxu0 %vm4589_vm4, %v5566_v2  ;;  %10339 = vmatprep.mubr.msk.f32.mxu1 %vm10594_vm0, %v13224_v20 }
 0x37e   :  { %v10512_v25 = vpop.eup %10511  ;;  %v4555_v30 = vmul.f32 %v10510_v61, %v11834_v54  ;;  %10344 = vmatprep.mubr.msk.f32.mxu0 %vm10594_vm0, %v13224_v20  ;;  %10347 = vmatprep.subr.mxu1 %v13224_v20 }
 0x37f   :  { %10521 = vrcp.f32 %v4529_v62  ;;  %v4556_v8 = vmul.f32 %v10512_v25, %v11836_v1  ;;  %10352 = vmatprep.subr.mxu0 %v13224_v20 }
 0x380   :  { %10340 = vmatmul.mubr.msk.f32.vlgmr.msra.gmra.mrb[46].mxu1 %vm4585_vm6, %v4555_v30 }
 0x381   :  { %v10514_v54 = vpop.eup %10513  ;;  %10345 = vmatmul.mubr.msk.f32.vlgmr.msra.gmra.mrb[40].mxu0 %vm4585_vm6, %v4556_v8  ;;  %10348 = vmatpush3.msk.msra.mxu1 %vm4589_vm4, %v5664_v63 }
 0x382   :  { %v10516_v49 = vpop.eup %10515  ;;  %10353 = vmatpush3.msk.msra.mxu0 %vm4589_vm4, %v5762_v22  ;;  %10349 = vmatprep.mubr.msk.f32.mxu1 %vm10594_vm0, %v13224_v20  ;;  %v4557_v1 = vmul.f32 %v10514_v54, %v11842_v14 }
 0x383   :  { %10354 = vmatprep.mubr.msk.f32.mxu0 %vm10594_vm0, %v13224_v20  ;;  %10357 = vmatprep.subr.mxu1 %v13224_v20  ;;  %v4558_v42 = vmul.f32 %v10516_v49, %v11844_v35 }
 0x384   :  { %10362 = vmatprep.subr.mxu0 %v13224_v20  ;;  %10350 = vmatmul.mubr.msk.f32.vlgmr.msra.gmra.mrb[48].mxu1 %vm4585_vm6, %v4557_v1 }
 0x385   :  { %v10518_v56 = vpop.eup %10517  ;;  %10355 = vmatmul.mubr.msk.f32.vlgmr.msra.gmra.mrb[42].mxu0 %vm4585_vm6, %v4558_v42  ;;  %10358 = vmatpush3.msk.msra.mxu1 %vm4589_vm4, %v5860_v41 }
 0x386   :  { %v10520_v14 = vpop.eup %10519  ;;  %10363 = vmatpush3.msk.msra.mxu0 %vm4589_vm4, %v5958_v40  ;;  %10359 = vmatprep.mubr.msk.f32.mxu1 %vm10594_vm0, %v13224_v20  ;;  %v4559_v29 = vmul.f32 %v10518_v56, %v11850_v31 }
 0x387   :  { %10364 = vmatprep.mubr.msk.f32.mxu0 %vm10594_vm0, %v13224_v20  ;;  %10367 = vmatprep.subr.mxu1 %v13224_v20  ;;  %v4560_v35 = vmul.f32 %v10520_v14, %v11852_v3  ;;  %v10451_v3 = vld [vmem:[%s13189_s9] sm:$0xff]  }
 0x388   :  { %10360 = vmatmul.mubr.msk.f32.vlgmr.msra.gmra.mrb[50].mxu1 %vm4585_vm6, %v4559_v29  ;;  %10372 = vmatprep.subr.bf16.mxu0 %v13224_v20 }
 0x389   :  { %v10522_v50 = vpop.eup %10521  ;;  %10365 = vmatmul.mubr.msk.f32.vlgmr.msra.gmra.mrb[44].mxu0 %vm4585_vm6, %v4560_v35  ;;  %10368 = vmatpush3.msk.msra.mxu1 %vm4589_vm4, %v6056_v58 }
 0x38a   :  { %10369 = vmatprep.mubr.msk.f32.mxu1 %vm10594_vm0, %v13224_v20  ;;  %v4561_v31 = vmul.f32 %v10522_v50, %v11858_v46  ;;  %10376 = vmatprep.mubr.msk.bf16.mxu0 %vm10594_vm0, %v13224_v20 }
 0x38b   :  { %10388 = vmatprep.subr.bf16.mxu1 %v13224_v20  ;;  %10373 = vmatpush3.bf16.msra.mxu0 %v10451_v3 }
 0x38c   :  { %10370 = vmatmul.mubr.msk.f32.vlgmr.msra.gmra.mrb[52].mxu1 %vm4585_vm6, %v4561_v31  ;;  %10374 = vmatprep.subr.bf16.mxu0 %v13224_v20 }
 0x38d   :  { %10392 = vmatprep.mubr.msk.bf16.mxu1 %vm10594_vm0, %v13224_v20 }
 0x38f   :  { %10375 = vmatpush3.bf16.msra.mxu0 %v10452_v24 }
 0x390   :  { %10404 = vmatprep.subr.bf16.mxu0 %v13224_v20 }
 0x42d   :  { %v4658_v46 = vpop.f32.mrb[30].mxu0 }
 0x42e   :  { %v6154_v60 = vrot.slane %v4658_v46, %v10732_v17  ;;  %v10296_v44 = vpop.f32.mrb[31].mxu0 }
 0x430   :  { %v6155_v28 = vcombine.high %v6154_v60, %v6154_v60  ;;  %v6162_v26 = vrot.slane %v6154_v60, %v10732_v17 }
 0x431   :  { %v4756_v34 = vpop.f32.mrb[38].mxu1 }
 0x432   :  { %v6169_v32 = vrot.slane %v6155_v28, %v10732_v17  ;;  %v6177_v23 = vrot.slane %v4756_v34, %v10732_v17  ;;  %v10301_v48 = vpop.f32.mrb[39].mxu1  ;;  %v6170_v2 = vcombine.high %v6162_v26, %v6162_v26 }
 0x434   :  { %v6516_v53 = vcombine.low %v6162_v26, %v6169_v32  ;;  %v6178_v27 = vcombine.high %v6177_v23, %v6177_v23  ;;  %v6185_v43 = vrot.slane %v6177_v23, %v10732_v17 }
 0x436   :  { %v6517_v38 = vcombine.low %v6170_v2, %v6185_v43  ;;  %v6192_v37 = vrot.slane %v6178_v27, %v10732_v17  ;;  %v6193_v47 = vcombine.high %v6185_v43, %v6185_v43  ;;  %v6526_v15 = vrot.slane %v6516_v53, %v10732_v17 }
 0x437   :  { %v4854_v33 = vpop.f32.mrb[32].mxu0 }
 0x438   :  { %v10306_v4 = vpop.f32.mrb[33].mxu0  ;;  %v6200_v55 = vrot.slane %v4854_v33, %v10732_v17  ;;  %v6533_v5 = vrot.slane %v6517_v38, %v10732_v17  ;;  %v6518_v61 = vcombine.low %v6192_v37, %v6193_v47 }
 0x43a   :  { %v6201_v45 = vcombine.high %v6200_v55, %v6200_v55  ;;  %v6548_v18 = vcombine.low %v6526_v15, %v6533_v5  ;;  %v6208_v36 = vrot.slane %v6200_v55, %v10732_v17  ;;  %v6540_v22 = vrot.slane %v6518_v61, %v10732_v17 }
 0x43c   :  { %v6215_v62 = vrot.slane %v6201_v45, %v10732_v17  ;;  %v6216_v8 = vcombine.high %v6208_v36, %v6208_v36  ;;  %v6556_v40 = vrot.slane %v6548_v18, %v10732_v17 }
 0x43e   :  { %v4952_v25 = vpop.f32.mrb[40].mxu1  ;;  %v6519_v6 = vcombine.low %v6208_v36, %v6215_v62 }
 0x43f   :  { %v6223_v7 = vrot.slane %v4952_v25, %v10732_v17  ;;  %v10311_v30 = vpop.f32.mrb[41].mxu1 }
 0x440   :  { %v6547_v54 = vrot.slane %v6519_v6, %v10732_v17 }
 0x441   :  { %v6224_v63 = vcombine.high %v6223_v7, %v6223_v7  ;;  %v6231_v39 = vrot.slane %v6223_v7, %v10732_v17 }
 0x442   :  { %v6549_v41 = vcombine.low %v6540_v22, %v6547_v54 }
 0x443   :  { %v6238_v49 = vrot.slane %v6224_v63, %v10732_v17  ;;  %v6239_v1 = vcombine.high %v6231_v39, %v6231_v39  ;;  %v6565_v42 = vcombine.low %v6216_v8, %v6231_v39 }
 0x444   :  { %v6563_v56 = vrot.slane %v6549_v41, %v10732_v17 }
 0x445   :  { %v6566_v51 = vcombine.low %v6238_v49, %v6239_v1  ;;  %v6575_v14 = vrot.slane %v6565_v42, %v10732_v17 }
 0x446   :  { %v12064_v35 = vcombine.low %v6556_v40, %v6563_v56  ;;  %v5050_v58 = vpop.f32.mrb[34].mxu0 }
 0x447   :  { %v6582_v29 = vrot.slane %v6566_v51, %v10732_v17  ;;  %v6246_v31 = vrot.slane %v5050_v58, %v10732_v17  ;;  %v10316_v3 = vpop.f32.mrb[35].mxu0 }
 0x449   :  { %v6597_v50 = vcombine.low %v6575_v14, %v6582_v29  ;;  %v6247_v24 = vcombine.high %v6246_v31, %v6246_v31  ;;  %v6254_v46 = vrot.slane %v6246_v31, %v10732_v17 }
 0x44a   :  { %v5148_v60 = vpop.f32.mrb[42].mxu1 }
 0x44b   :  { %v6261_v44 = vrot.slane %v6247_v24, %v10732_v17  ;;  %v6269_v28 = vrot.slane %v5148_v60, %v10732_v17  ;;  %v5246_v26 = vpop.f32.mrb[36].mxu0  ;;  %v10321_v34 = vpop.f32.mrb[43].mxu1  ;;  %v6262_v48 = vcombine.high %v6254_v46, %v6254_v46  ;;  %v6605_v58 = vrot.slane %v6597_v50, %v10732_v17 }
 0x44c   :  { %v6292_v32 = vrot.slane %v5246_v26, %v10732_v17  ;;  %v10326_v23 = vpop.f32.mrb[37].mxu0 }
 0x44d   :  { %v6567_v2 = vcombine.low %v6254_v46, %v6261_v44  ;;  %v6270_v53 = vcombine.high %v6269_v28, %v6269_v28  ;;  %v6277_v27 = vrot.slane %v6269_v28, %v10732_v17 }
 0x44e   :  { %v6293_v43 = vcombine.high %v6292_v32, %v6292_v32  ;;  %v6300_v33 = vrot.slane %v6292_v32, %v10732_v17  ;;  %v5344_v38 = vpop.f32.mrb[44].mxu1 }
 0x44f   :  { %v6284_v4 = vrot.slane %v6270_v53, %v10732_v17  ;;  %v6285_v37 = vcombine.high %v6277_v27, %v6277_v27  ;;  %v6568_v47 = vcombine.low %v6262_v48, %v6277_v27  ;;  %v5442_v55 = vpop.f32.mrb[38].mxu0  ;;  %v10331_v15 = vpop.f32.mrb[45].mxu1  ;;  %v6315_v45 = vrot.slane %v5344_v38, %v10732_v17 }
 0x450   :  { %v6307_v5 = vrot.slane %v6293_v43, %v10732_v17  ;;  %v6338_v18 = vrot.slane %v5442_v55, %v10732_v17  ;;  %v10336_v36 = vpop.f32.mrb[39].mxu0  ;;  %v6589_v61 = vrot.slane %v6567_v2, %v10732_v17  ;;  %v6308_v7 = vcombine.high %v6300_v33, %v6300_v33 }
 0x451   :  { %v6596_v62 = vrot.slane %v6568_v47, %v10732_v17  ;;  %v6614_v25 = vcombine.low %v6284_v4, %v6285_v37  ;;  %v6316_v6 = vcombine.high %v6315_v45, %v6315_v45  ;;  %v6323_v8 = vrot.slane %v6315_v45, %v10732_v17 }
 0x452   :  { %v6615_v30 = vcombine.low %v6300_v33, %v6307_v5  ;;  %v6339_v63 = vcombine.high %v6338_v18, %v6338_v18  ;;  %v6346_v49 = vrot.slane %v6338_v18, %v10732_v17 }
 0x453   :  { %v5540_v39 = vpop.f32.mrb[46].mxu1  ;;  %v6598_v22 = vcombine.low %v6589_v61, %v6596_v62  ;;  %v6624_v54 = vrot.slane %v6614_v25, %v10732_v17  ;;  %v6330_v40 = vrot.slane %v6316_v6, %v10732_v17  ;;  %v6331_v56 = vcombine.high %v6323_v8, %v6323_v8 }
 0x454   :  { %v6361_v1 = vrot.slane %v5540_v39, %v10732_v17  ;;  %v5638_v42 = vpop.f32.mrb[40].mxu0  ;;  %v10341_v41 = vpop.f32.mrb[47].mxu1  ;;  %v6631_v51 = vrot.slane %v6615_v30, %v10732_v17  ;;  %v6616_v14 = vcombine.low %v6308_v7, %v6323_v8  ;;  %v6353_v3 = vrot.slane %v6339_v63, %v10732_v17 }
 0x455   :  { %v10346_v29 = vpop.f32.mrb[41].mxu0  ;;  %v6612_v31 = vrot.slane %v6598_v22, %v10732_v17  ;;  %v6617_v60 = vcombine.low %v6330_v40, %v6331_v56  ;;  %v6354_v44 = vcombine.high %v6346_v49, %v6346_v49  ;;  %v6384_v48 = vrot.slane %v5638_v42, %v10732_v17 }
 0x456   :  { %v6362_v24 = vcombine.high %v6361_v1, %v6361_v1  ;;  %v12088_v46 = vcombine.low %v6624_v54, %v6631_v51  ;;  %v6369_v28 = vrot.slane %v6361_v1, %v10732_v17  ;;  %v6663_v32 = vcombine.low %v6346_v49, %v6353_v3 }
 0x457   :  { %v5736_v26 = vpop.f32.mrb[48].mxu1  ;;  %v12091_v34 = vcombine.low %v6605_v58, %v6612_v31  ;;  %v6638_v53 = vrot.slane %v6616_v14, %v10732_v17  ;;  %v6645_v27 = vrot.slane %v6617_v60, %v10732_v17  ;;  %v6385_v37 = vcombine.high %v6384_v48, %v6384_v48 }
 0x458   :  { %v6376_v23 = vrot.slane %v6362_v24, %v10732_v17  ;;  %v5834_v50 = vpop.f32.mrb[42].mxu0  ;;  %v10351_v2 = vpop.f32.mrb[49].mxu1  ;;  %v6377_v43 = vcombine.high %v6369_v28, %v6369_v28  ;;  %v6664_v33 = vcombine.low %v6354_v44, %v6369_v28  ;;  %v6673_v4 = vrot.slane %v6663_v32, %v10732_v17 }
 0x459   :  { %v10356_v38 = vpop.f32.mrb[43].mxu0  ;;  %v6392_v47 = vrot.slane %v6384_v48, %v10732_v17  ;;  %v6407_v55 = vrot.slane %v5736_v26, %v10732_v17  ;;  %v6647_v15 = vcombine.low %v6638_v53, %v6645_v27  ;;  %v6430_v18 = vrot.slane %v5834_v50, %v10732_v17 }
 0x45a   :  { %v6665_v5 = vcombine.low %v6376_v23, %v6377_v43  ;;  %v6680_v45 = vrot.slane %v6664_v33, %v10732_v17  ;;  %v6399_v61 = vrot.slane %v6385_v37, %v10732_v17  ;;  %v6654_v8 = vrot.slane %v12088_v46, %v10732_v17 }
 0x45b   :  { %v5932_v36 = vpop.f32.mrb[50].mxu1  ;;  %v6400_v62 = vcombine.high %v6392_v47, %v6392_v47  ;;  %v6408_v25 = vcombine.high %v6407_v55, %v6407_v55  ;;  %v6415_v7 = vrot.slane %v6407_v55, %v10732_v17  ;;  %v6431_v22 = vcombine.high %v6430_v18, %v6430_v18 }
 0x45c   :  { %v6030_v30 = vpop.f32.mrb[44].mxu0  ;;  %v10361_v6 = vpop.f32.mrb[51].mxu1  ;;  %v6687_v63 = vrot.slane %v6665_v5, %v10732_v17  ;;  %v6695_v39 = vcombine.low %v6673_v4, %v6680_v45  ;;  %v6666_v49 = vcombine.low %v6392_v47, %v6399_v61  ;;  %v6661_v51 = vrot.slane %v6647_v15, %v10732_v17 }
 0x45d   :  { %v10366_v54 = vpop.f32.mrb[45].mxu0  ;;  %v6422_v1 = vrot.slane %v6408_v25, %v10732_v17  ;;  %v6423_v42 = vcombine.high %v6415_v7, %v6415_v7  ;;  %v6712_v41 = vcombine.low %v6400_v62, %v6415_v7  ;;  %v6438_v40 = vrot.slane %v6430_v18, %v10732_v17 }
 0x45e   :  { %v6445_v56 = vrot.slane %v6431_v22, %v10732_v17  ;;  %v6453_v14 = vrot.slane %v5932_v36, %v10732_v17  ;;  %v6694_v58 = vrot.slane %v6666_v49, %v10732_v17  ;;  %v6476_v24 = vrot.slane %v6030_v30, %v10732_v17 }
 0x45f   :  { %v6128_v29 = vpop.f32.mrb[52].mxu1  ;;  %v6713_v31 = vcombine.low %v6422_v1, %v6423_v42  ;;  %v6722_v3 = vrot.slane %v6712_v41, %v10732_v17  ;;  %v6446_v60 = vcombine.high %v6438_v40, %v6438_v40  ;;  %v6703_v2 = vrot.slane %v6695_v39, %v10732_v17 }
 0x460   :  { %v10371_v46 = vpop.f32.mrb[53].mxu1  ;;  %v6714_v44 = vcombine.low %v6438_v40, %v6445_v56  ;;  %v6454_v28 = vcombine.high %v6453_v14, %v6453_v14  ;;  %v6461_v26 = vrot.slane %v6453_v14, %v10732_v17  ;;  %v6696_v32 = vcombine.low %v6687_v63, %v6694_v58  ;;  %v12149_v58 = vld [vmem:[%s13190_s10] ss:$0 sm:$0xff] }
 0x461   :  { %v6729_v23 = vrot.slane %v6713_v31, %v10732_v17  ;;  %v6477_v48 = vcombine.high %v6476_v24, %v6476_v24  ;;  %v6484_v50 = vrot.slane %v6476_v24, %v10732_v17  ;;  %v6816_v15 = vpack.c.bf16 %v12091_v34, %v12064_v35 }
 0x462   :  { %v6468_v53 = vrot.slane %v6454_v28, %v10732_v17  ;;  %v6469_v27 = vcombine.high %v6461_v26, %v6461_v26  ;;  %v6715_v43 = vcombine.low %v6446_v60, %v6461_v26  ;;  %v6710_v33 = vrot.slane %v6696_v32, %v10732_v17 }
 0x463   :  { %v6744_v38 = vcombine.low %v6722_v3, %v6729_v23  ;;  %v6736_v4 = vrot.slane %v6714_v44, %v10732_v17  ;;  %v6491_v37 = vrot.slane %v6477_v48, %v10732_v17  ;;  %v6499_v5 = vrot.slane %v6128_v29, %v10732_v17  ;;  %10377 = vmatmul.mubr.msk.bf16.vlgmr.msra.gmra.mrb[48].mxu0 %vm1316_vm3, %v6816_v15 }
 0x464   :  { %v6743_v47 = vrot.slane %v6715_v43, %v10732_v17  ;;  %v6761_v55 = vcombine.low %v6468_v53, %v6469_v27  ;;  %v6492_v45 = vcombine.high %v6484_v50, %v6484_v50  ;;  %v6662_v36 = vcombine.low %v6654_v8, %v6661_v51  ;;  %10380 = vmatprep.mubr.msk.bf16.mxu0 %vm10594_vm0, %v13224_v20 }
 0x465   :  { %v6762_v18 = vcombine.low %v6484_v50, %v6491_v37  ;;  %v6711_v61 = vcombine.low %v6703_v2, %v6710_v33  ;;  %v6500_v7 = vcombine.high %v6499_v5, %v6499_v5  ;;  %v6507_v30 = vrot.slane %v6499_v5, %v10732_v17 }
 0x466   :  { %v6745_v62 = vcombine.low %v6736_v4, %v6743_v47  ;;  %v6771_v25 = vrot.slane %v6761_v55, %v10732_v17  ;;  %v6752_v6 = vrot.slane %v6744_v38, %v10732_v17 }
 0x467   :  { %v6778_v63 = vrot.slane %v6762_v18, %v10732_v17  ;;  %v6817_v35 = vpack.c.bf16 %v6711_v61, %v6662_v36  ;;  %v6514_v8 = vrot.slane %v6500_v7, %v10732_v17  ;;  %v6515_v39 = vcombine.high %v6507_v30, %v6507_v30 }
 0x468   :  { %v6759_v34 = vrot.slane %v6745_v62, %v10732_v17  ;;  %v6763_v22 = vcombine.low %v6492_v45, %v6507_v30 }
 0x469   :  { %v6793_v54 = vcombine.low %v6771_v25, %v6778_v63  ;;  %v6764_v49 = vcombine.low %v6514_v8, %v6515_v39 }
 0x46a   :  { %v6760_v1 = vcombine.low %v6752_v6, %v6759_v34  ;;  %v6785_v42 = vrot.slane %v6763_v22, %v10732_v17 }
 0x46b   :  { %v6792_v41 = vrot.slane %v6764_v49, %v10732_v17  ;;  %10381 = vmatmul.mubr.msk.bf16.gmra.mrb[52].mxu0 %vm1316_vm3, %v6817_v35  ;;  %v6801_v40 = vrot.slane %v6793_v54, %v10732_v17 }
 0x46c   :  { %10384 = vmatprep.mubr.msk.bf16.mxu0 %vm10594_vm0, %v13224_v20 }
 0x46d   :  { %v6794_v51 = vcombine.low %v6785_v42, %v6792_v41 }
 0x46f   :  { %v6808_v56 = vrot.slane %v6794_v51, %v10732_v17 }
 0x471   :  { %v6809_v14 = vcombine.low %v6801_v40, %v6808_v56 }
 0x473   :  { %v6818_v29 = vpack.c.bf16 %v6809_v14, %v6760_v1 }
 0x475   :  { %10385 = vmatmul.mubr.msk.bf16.gmra.mrb[56].mxu0 %vm1316_vm3, %v6818_v29 }
 0x476   :  { %10412 = vmatprep.mubr.msk.bf16.mxu0 %vm10594_vm0, %v13224_v20 }
 0x536   :  { %v6880_v31 = vpop.f32.mrb[48].mxu0 }
 0x537   :  { %v6881_v3 = vadd.f32 %v12149_v58, %v6880_v31  ;;  %v10378_v24 = vpop.f32.mrb[49].mxu0 }
 0x538   :  { %v6883_v46 = vpop.f32.mrb[50].mxu0 }
 0x539   :  { %v6909_v60 = vcombine.high %v6881_v3, %v6881_v3  ;;  %v6916_v44 = vrot.slane %v6881_v3, %v10732_v17  ;;  %v6884_v28 = vadd.f32 %v12149_v58, %v6883_v46  ;;  %v10379_v26 = vpop.f32.mrb[51].mxu0 }
 0x53b   :  { %v6923_v32 = vrot.slane %v6909_v60, %v10732_v17  ;;  %v6924_v23 = vcombine.high %v6916_v44, %v6916_v44  ;;  %v6932_v48 = vrot.slane %v6916_v44, %v10732_v17  ;;  %v6958_v50 = vcombine.high %v6884_v28, %v6884_v28 }
 0x53c   :  { %v6965_v2 = vrot.slane %v6884_v28, %v10732_v17 }
 0x53d   :  { %v6925_v53 = vcombine.high %v6923_v32, %v6923_v32  ;;  %v6939_v27 = vrot.slane %v6923_v32, %v10732_v17  ;;  %v6946_v43 = vrot.slane %v6924_v23, %v10732_v17  ;;  %v6954_v33 = vcombine.high %v6932_v48, %v6932_v48 }
 0x53e   :  { %v6972_v38 = vrot.slane %v6958_v50, %v10732_v17  ;;  %v6973_v4 = vcombine.high %v6965_v2, %v6965_v2  ;;  %v12161_v37 = vrot.slane %v6965_v2, %v10732_v17  ;;  %v6888_v47 = vpop.f32.mrb[52].mxu0 }
 0x53f   :  { %v6953_v55 = vrot.slane %v6925_v53, %v10732_v17  ;;  %v6956_v15 = vcombine.high %v6946_v43, %v6946_v43  ;;  %v7203_v5 = vcombine.low %v6932_v48, %v6946_v43  ;;  %v6889_v45 = vadd.f32 %v12149_v58, %v6888_v47  ;;  %v10382_v18 = vpop.f32.mrb[53].mxu0 }
 0x540   :  { %v6974_v36 = vcombine.high %v6972_v38, %v6972_v38  ;;  %v12166_v61 = vrot.slane %v6972_v38, %v10732_v17  ;;  %v12169_v62 = vrot.slane %v6973_v4, %v10732_v17  ;;  %v7003_v25 = vcombine.high %v12161_v37, %v12161_v37  ;;  %v6891_v7 = vpop.f32.mrb[54].mxu0 }
 0x541   :  { %v7226_v30 = vcombine.low %v6956_v15, %v6939_v27  ;;  %v10042_v6 = vcombine.high %v6939_v27, %v6953_v55  ;;  %v7007_v63 = vcombine.high %v6889_v45, %v6889_v45  ;;  %v10383_v35 = vpop.f32.mrb[55].mxu0  ;;  %v7263_v22 = vrot.slane %v12161_v37, %v10732_v17 }
 0x542   :  { %v12174_v34 = vrot.slane %v6974_v36, %v10732_v17  ;;  %v7004_v8 = vcombine.high %v12166_v61, %v12166_v61  ;;  %v7005_v39 = vcombine.high %v12169_v62, %v12169_v62  ;;  %v7014_v54 = vrot.slane %v6889_v45, %v10732_v17 }
 0x543   :  { %v7021_v49 = vrot.slane %v7007_v63, %v10732_v17  ;;  %v6892_v1 = vadd.f32 %v12149_v58, %v6891_v7  ;;  %v7210_v42 = vrot.slane %v7203_v5, %v10732_v17  ;;  %v12187_v41 = vcombine.low %v12169_v62, %v7003_v25 }
 0x544   :  { %v7006_v51 = vcombine.high %v12174_v34, %v12174_v34  ;;  %v7217_v40 = vrot.slane %v6954_v33, %v10732_v17  ;;  %v7233_v56 = vrot.slane %v7226_v30, %v10732_v17  ;;  %v7022_v14 = vcombine.high %v7014_v54, %v7014_v54 }
 0x545   :  { %v7023_v29 = vcombine.high %v7021_v49, %v7021_v49  ;;  %v12194_v31 = vrot.slane %v7014_v54, %v10732_v17  ;;  %v12197_v3 = vrot.slane %v7021_v49, %v10732_v17  ;;  %v7295_v24 = vcombine.low %v12166_v61, %v12174_v34 }
 0x546   :  { %v7056_v46 = vcombine.high %v6892_v1, %v6892_v1  ;;  %v7063_v60 = vrot.slane %v6892_v1, %v10732_v17  ;;  %v7218_v44 = vcombine.low %v7210_v42, %v7217_v40  ;;  %v12203_v26 = vrot.slane %v7022_v14, %v10732_v17 }
 0x547   :  { %v12206_v32 = vrot.slane %v7023_v29, %v10732_v17  ;;  %v12209_v23 = vcombine.low %v7006_v51, %v12194_v31  ;;  %v7240_v48 = vrot.slane %v6953_v55, %v10732_v17  ;;  %v7053_v38 = vcombine.high %v12197_v3, %v12197_v3 }
 0x548   :  { %v6896_v28 = vpop.f32.mrb[56].mxu0  ;;  %v7070_v2 = vrot.slane %v7056_v46, %v10732_v17  ;;  %v7071_v53 = vcombine.high %v7063_v60, %v7063_v60  ;;  %v12214_v27 = vrot.slane %v7063_v60, %v10732_v17  ;;  %v7225_v43 = vrot.slane %v7218_v44, %v10732_v17 }
 0x549   :  { %v10386_v50 = vpop.f32.mrb[57].mxu0  ;;  %v7241_v4 = vcombine.low %v7233_v56, %v7240_v48  ;;  %v6897_v37 = vadd.f32 %v12149_v58, %v6896_v28  ;;  %v7256_v47 = vrot.slane %v10042_v6, %v10732_v17  ;;  %v10043_v55 = vcombine.high %v12194_v31, %v12203_v26 }
 0x54a   :  { %v6899_v33 = vpop.f32.mrb[58].mxu0  ;;  %v7072_v5 = vcombine.high %v7070_v2, %v7070_v2  ;;  %v12224_v45 = vrot.slane %v7070_v2, %v10732_v17  ;;  %v12227_v18 = vrot.slane %v7071_v53, %v10732_v17  ;;  %v12230_v36 = vadd.f32 %v7225_v43, %v10804_v9 }
 0x54b   :  { %v10387_v15 = vpop.f32.mrb[59].mxu0  ;;  %v7248_v25 = vrot.slane %v7241_v4, %v10732_v17  ;;  %v7105_v7 = vcombine.high %v6897_v37, %v6897_v37  ;;  %v7112_v30 = vrot.slane %v6897_v37, %v10732_v17  ;;  %v7101_v63 = vcombine.high %v12214_v27, %v12214_v27 }
 0x54c   :  { %v12235_v6 = vrot.slane %v7072_v5, %v10732_v17  ;;  %v7103_v35 = vcombine.high %v12227_v18, %v12227_v18  ;;  %v7264_v34 = vcombine.low %v7256_v47, %v7263_v22  ;;  %v7604_v54 = vsel %vm7603_vm7, %v12230_v36, 0.0 }
 0x54d   :  { %v12244_v9 = vadd.f32 %v7248_v25, %v10807_v10  ;;  %v7119_v49 = vrot.slane %v7105_v7, %v10732_v17  ;;  %v7120_v1 = vcombine.high %v7112_v30, %v7112_v30  ;;  %v7387_v42 = vcombine.low %v12214_v27, %v12227_v18  ;;  %7605 = vadd.xlane.f32.xlu0 %v7604_v54 }
 0x54e   :  { %v12250_v51 = vcombine.low %v7103_v35, %v12224_v45  ;;  %v12253_v40 = vrot.slane %v7112_v30, %v10732_v17  ;;  %v7271_v22 = vrot.slane %v7264_v34, %v10732_v17  ;;  %v10044_v31 = vcombine.high %v12224_v45, %v12235_v6 }
 0x54f   :  { %v7607_v56 = vsel %vm7603_vm7, %v12244_v9, 0.0  ;;  %v7121_v10 = vcombine.high %v7119_v49, %v7119_v49  ;;  %v12259_v14 = vrot.slane %v7119_v49, %v10732_v17  ;;  %v12262_v29 = vrot.slane %v7120_v1, %v10732_v17 }
 0x550   :  { %7608 = vadd.xlane.f32.xlu1 %v7607_v56  ;;  %v7150_v46 = vcombine.high %v12253_v40, %v12253_v40  ;;  %v12269_v60 = vadd.f32 %v7271_v22, %v10810_v11  ;;  %v6900_v44 = vadd.f32 %v12149_v58, %v6899_v33  ;;  %v7447_v50 = vrot.slane %v12253_v40, %v10732_v17 }
 0x551   :  { %v12273_v28 = vrot.slane %v7121_v10, %v10732_v17  ;;  %v7151_v48 = vcombine.high %v12259_v14, %v12259_v14  ;;  %v7279_v2 = vrot.slane %v12187_v41, %v10732_v17  ;;  %v7152_v53 = vcombine.high %v12262_v29, %v12262_v29 }
 0x552   :  { %v7610_v11 = vsel %vm7603_vm7, %v12269_v60, 0.0  ;;  %v7154_v27 = vcombine.high %v6900_v44, %v6900_v44  ;;  %v7161_v58 = vrot.slane %v6900_v44, %v10732_v17  ;;  %v7456_v43 = vcombine.low %v12262_v29, %v7150_v46 }
 0x553   :  { %7611 = vadd.xlane.f32.xlu0 %v7610_v11  ;;  %v7153_v33 = vcombine.high %v12273_v28, %v12273_v28  ;;  %v7286_v41 = vrot.slane %v7005_v39, %v10732_v17  ;;  %v7302_v4 = vrot.slane %v7295_v24, %v10732_v17  ;;  %v7309_v5 = vrot.slane %v7004_v8, %v10732_v17 }
 0x554   :  { %v7168_v37 = vrot.slane %v7154_v27, %v10732_v17  ;;  %v7169_v47 = vcombine.high %v7161_v58, %v7161_v58  ;;  %v12296_v15 = vrot.slane %v7161_v58, %v10732_v17  ;;  %v7325_v18 = vrot.slane %v12209_v23, %v10732_v17 }
 0x555   :  { %v7287_v45 = vcombine.low %v7279_v2, %v7286_v41  ;;  %v7332_v62 = vrot.slane %v12203_v26, %v10732_v17  ;;  %v7348_v39 = vrot.slane %v10043_v55, %v10732_v17  ;;  %v7479_v24 = vcombine.low %v12259_v14, %v12273_v28 }
 0x556   :  { %v7170_v25 = vcombine.high %v7168_v37, %v7168_v37  ;;  %v7191_v7 = vrot.slane %v7169_v47, %v10732_v17  ;;  %v7502_v30 = vcombine.low %v7153_v33, %v12296_v15  ;;  %v7310_v8 = vcombine.low %v7302_v4, %v7309_v5 }
 0x557   :  { %v7294_v61 = vrot.slane %v7287_v45, %v10732_v17  ;;  %v7333_v35 = vcombine.low %v7325_v18, %v7332_v62  ;;  %v7355_v23 = vrot.slane %v12197_v3, %v10732_v17  ;;  %v12315_v34 = vrot.slane %v7168_v37, %v10732_v17 }
 0x558   :  { %v12318_v26 = vrot.slane %v7170_v25, %v10732_v17  ;;  %v10045_v55 = vcombine.high %v12296_v15, %v7191_v7  ;;  %v7055_v54 = vcombine.high %v12206_v32, %v12206_v32  ;;  %v7317_v1 = vrot.slane %v7310_v8, %v10732_v17 }
 0x559   :  { %v12324_v49 = vadd.f32 %v7294_v61, %v10813_v12  ;;  %v7340_v40 = vrot.slane %v7333_v35, %v10732_v17  ;;  %v7356_v22 = vcombine.low %v7348_v39, %v7355_v23  ;;  %v7364_v56 = vcombine.low %v12206_v32, %v7053_v38 }
 0x55a   :  { %v7378_v10 = vrot.slane %v7055_v54, %v10732_v17  ;;  %v7394_v29 = vrot.slane %v7387_v42, %v10732_v17  ;;  %v7401_v46 = vrot.slane %v7101_v63, %v10732_v17  ;;  %v12338_v44 = vadd.f32 %v7317_v1, %v10816_v13 }
 0x55b   :  { %v7613_v12 = vsel %vm7603_vm7, %v12324_v49, 0.0  ;;  %v12341_v28 = vadd.f32 %v7340_v40, %v10819_v21  ;;  %v7363_v2 = vrot.slane %v7356_v22, %v10732_v17  ;;  %v7371_v3 = vrot.slane %v7364_v56, %v10732_v17  ;;  %v13234_v22 = vld [vmem:[#allocation5_spill] sm:$0xff] }
 0x55c   :  { %7614 = vadd.xlane.f32.xlu1 %v7613_v12  ;;  %v7402_v32 = vcombine.low %v7394_v29, %v7401_v46  ;;  %v7417_v38 = vrot.slane %v12250_v51, %v10732_v17  ;;  %v7424_v63 = vrot.slane %v12235_v6, %v10732_v17  ;;  %v7616_v42 = vsel %vm7603_vm7, %v12338_v44, 0.0  ;;  %v13235_v12 = vld [vmem:[#allocation6_spill] sm:$0xff] }
 0x55d   :  { %v7619_v13 = vsel %vm7603_vm7, %v12341_v28, 0.0  ;;  %v12354_v21 = vadd.f32 %v7363_v2, %v11040_v16  ;;  %v7440_v11 = vrot.slane %v10044_v31, %v10732_v17  ;;  %7617 = vadd.xlane.f32.xlu0 %v7616_v42  ;;  %v7379_v27 = vcombine.low %v7371_v3, %v7378_v10 }
 0x55e   :  { %v7409_v58 = vrot.slane %v7402_v32, %v10732_v17  ;;  %v7425_v33 = vcombine.low %v7417_v38, %v7424_v63  ;;  %v7463_v51 = vrot.slane %v7456_v43, %v10732_v17  ;;  %v7470_v4 = vrot.slane %v7152_v53, %v10732_v17  ;;  %v13236_v32 = vld [vmem:[#allocation7_spill] sm:$0xff] }
 0x55f   :  { %v7622_v6 = vsel %vm7603_vm7, %v12354_v21, 0.0  ;;  %v7448_v41 = vcombine.low %v7440_v11, %v7447_v50  ;;  %v7486_v37 = vrot.slane %v7479_v24, %v10732_v17  ;;  %v7386_v16 = vrot.slane %v7379_v27, %v10732_v17 }
 0x560   :  { %7620 = vadd.xlane.f32.xlu1 %v7619_v13  ;;  %v12365_v31 = vadd.f32 %v7409_v58, %v11046_v0  ;;  %v7432_v47 = vrot.slane %v7425_v33, %v10732_v17  ;;  %v7493_v43 = vrot.slane %v7151_v48, %v10732_v17  ;;  %v7471_v50 = vcombine.low %v7463_v51, %v7470_v4 }
 0x561   :  { %v7455_v15 = vrot.slane %v7448_v41, %v10732_v17  ;;  %v7509_v53 = vrot.slane %v7502_v30, %v10732_v17  ;;  %v7516_v5 = vrot.slane %v7191_v7, %v10732_v17  ;;  %v7200_v45 = vcombine.high %v12315_v34, %v12315_v34  ;;  %7623 = vadd.xlane.f32.xlu0 %v7622_v6 }
 0x562   :  { %v12378_v0 = vadd.f32 %v7386_v16, %v11043_v59  ;;  %v7494_v18 = vcombine.low %v7486_v37, %v7493_v43  ;;  %v7478_v62 = vrot.slane %v7471_v50, %v10732_v17  ;;  %v7532_v14 = vrot.slane %v10045_v55, %v10732_v17 }
 0x563   :  { %v7517_v39 = vcombine.low %v7509_v53, %v7516_v5  ;;  %v12385_v24 = vadd.f32 %v7432_v47, %v11052_v52  ;;  %v7539_v7 = vrot.slane %v12315_v34, %v10732_v17  ;;  %v7628_v59 = vsel %vm7603_vm7, %v12365_v31, 0.0  ;;  %v13233_v34 = vld [vmem:[#allocation4_spill] sm:$0xff] }
 0x564   :  { %v7625_v48 = vsel %vm7603_vm7, %v12378_v0, 0.0  ;;  %v7501_v25 = vrot.slane %v7494_v18, %v10732_v17  ;;  %v12393_v30 = vadd.f32 %v7455_v15, %v10949_v19  ;;  %v7202_v61 = vcombine.high %v12318_v26, %v12318_v26 }
 0x565   :  { %7626 = vadd.xlane.f32.xlu1 %v7625_v48  ;;  %7629 = vadd.xlane.f32.xlu0 %v7628_v59  ;;  %v12398_v8 = vadd.f32 %v7478_v62, %v10952_v57  ;;  %v7524_v52 = vrot.slane %v7517_v39, %v10732_v17  ;;  %v7540_v35 = vcombine.low %v7532_v14, %v7539_v7  ;;  %v7631_v19 = vsel %vm7603_vm7, %v12385_v24, 0.0 }
 0x566   :  { %v7548_v23 = vcombine.low %v12318_v26, %v7200_v45  ;;  %v12403_v55 = vadd.f32 %v7501_v25, %v13233_v34  ;;  %v7562_v54 = vrot.slane %v7202_v61, %v10732_v17  ;;  %v7634_v57 = vsel %vm7603_vm7, %v12393_v30, 0.0 }
 0x567   :  { %v7547_v40 = vrot.slane %v7540_v35, %v10732_v17  ;;  %v7637_v26 = vsel %vm7603_vm7, %v12398_v8, 0.0  ;;  %v12415_v56 = vadd.f32 %v7524_v52, %v13234_v22 }
 0x568   :  { %v7555_v1 = vrot.slane %v7548_v23, %v10732_v17  ;;  %v7640_v29 = vsel %vm7603_vm7, %v12403_v55, 0.0 }
 0x569   :  { %7632 = vadd.xlane.f32.xlu1 %v7631_v19  ;;  %7635 = vadd.xlane.f32.xlu0 %v7634_v57  ;;  %v12421_v2 = vadd.f32 %v7547_v40, %v13235_v12  ;;  %v7643_v3 = vsel %vm7603_vm7, %v12415_v56, 0.0 }
 0x56a   :  { %v7563_v10 = vcombine.low %v7555_v1, %v7562_v54 }
 0x56b   :  { %v7646_v63 = vsel %vm7603_vm7, %v12421_v2, 0.0 }
 0x56c   :  { %v7570_v46 = vrot.slane %v7563_v10, %v10732_v17 }
 0x56d   :  { %7638 = vadd.xlane.f32.xlu1 %v7637_v26  ;;  %7641 = vadd.xlane.f32.xlu0 %v7640_v29 }
 0x56e   :  { %v12426_v38 = vadd.f32 %v7570_v46, %v13236_v32 }
 0x570   :  { %v7649_v42 = vsel %vm7603_vm7, %v12426_v38, 0.0 }
 0x571   :  { %7644 = vadd.xlane.f32.xlu1 %v7643_v3  ;;  %7647 = vadd.xlane.f32.xlu0 %v7646_v63 }
 0x575   :  { %7650 = vadd.xlane.f32.xlu1 %v7649_v42 }
 0x5da   :  { %v7606_v13 = vpop.xlane.xlu0 %7605 }
 0x5db   :  { %v7653_v11 = vmul.f32 0.03125, %v7606_v13 }
 0x5dd   :  { %v7609_v27 = vpop.xlane.xlu1 %7608  ;;  %v12433_v58 = vsub.f32 %v12230_v36, %v7653_v11 }
 0x5de   :  { %v7654_v33 = vmul.f32 0.03125, %v7609_v27 }
 0x5df   :  { %v7685_v41 = vmul.f32 %v12433_v58, %v12433_v58 }
 0x5e0   :  { %v12436_v51 = vsub.f32 %v12244_v9, %v7654_v33  ;;  %v7612_v6 = vpop.xlane.xlu0 %7611 }
 0x5e1   :  { %v7655_v4 = vmul.f32 0.03125, %v7612_v6  ;;  %v7701_v37 = vsel %vm7603_vm7, %v7685_v41, 0.0 }
 0x5e2   :  { %v7686_v16 = vmul.f32 %v12436_v51, %v12436_v51  ;;  %7702 = vadd.xlane.f32.xlu0 %v7701_v37 }
 0x5e3   :  { %v12444_v47 = vsub.f32 %v12269_v60, %v7655_v4 }
 0x5e4   :  { %v7704_v36 = vsel %vm7603_vm7, %v7686_v16, 0.0 }
 0x5e5   :  { %7705 = vadd.xlane.f32.xlu1 %v7704_v36  ;;  %v7687_v9 = vmul.f32 %v12444_v47, %v12444_v47 }
 0x5e7   :  { %v7707_v43 = vsel %vm7603_vm7, %v7687_v9, 0.0 }
 0x5e8   :  { %7708 = vadd.xlane.f32.xlu0 %v7707_v43 }
 0x5e9   :  { %v7615_v15 = vpop.xlane.xlu1 %7614 }
 0x5ea   :  { %v7656_v50 = vmul.f32 0.03125, %v7615_v15  ;;  %v7618_v53 = vpop.xlane.xlu0 %7617 }
 0x5eb   :  { %v7657_v45 = vmul.f32 0.03125, %v7618_v53 }
 0x5ec   :  { %v12451_v5 = vsub.f32 %v12324_v49, %v7656_v50 }
 0x5ed   :  { %v7621_v18 = vpop.xlane.xlu1 %7620  ;;  %v12454_v60 = vsub.f32 %v12338_v44, %v7657_v45 }
 0x5ee   :  { %v7658_v62 = vmul.f32 0.03125, %v7621_v18  ;;  %v7688_v39 = vmul.f32 %v12451_v5, %v12451_v5  ;;  %v7624_v14 = vpop.xlane.xlu0 %7623 }
 0x5ef   :  { %v7659_v25 = vmul.f32 0.03125, %v7624_v14  ;;  %v7689_v49 = vmul.f32 %v12454_v60, %v12454_v60  ;;  %v10453_v14 = vld [vmem:[%s13191_s12] sm:$0xff]  }
 0x5f0   :  { %v12459_v48 = vsub.f32 %v12341_v28, %v7658_v62  ;;  %v7710_v7 = vsel %vm7603_vm7, %v7688_v39, 0.0  ;;  %10389 = vmatpush3.bf16.msra.mxu1 %v10453_v14 }
 0x5f1   :  { %7711 = vadd.xlane.f32.xlu1 %v7710_v7  ;;  %v12465_v59 = vsub.f32 %v12354_v21, %v7659_v25  ;;  %v7713_v61 = vsel %vm7603_vm7, %v7689_v49, 0.0  ;;  %10390 = vmatprep.subr.bf16.mxu1 %v13224_v20  ;;  %v10455_v25 = vld [vmem:[%s13192_s14] sm:$0xff]   ;;  %v10456_v7 = vld [vmem:[%s13192_s14 + $0x8] sm:$0xff]  }
 0x5f2   :  { %v7627_v44 = vpop.xlane.xlu1 %7626  ;;  %v7690_v52 = vmul.f32 %v12459_v48, %v12459_v48  ;;  %v7630_v23 = vpop.xlane.xlu0 %7629  ;;  %7714 = vadd.xlane.f32.xlu0 %v7713_v61  ;;  %10405 = vmatpush3.bf16.msra.mxu0 %v10455_v25 }
 0x5f3   :  { %v7660_v35 = vmul.f32 0.03125, %v7627_v44  ;;  %v7661_v28 = vmul.f32 0.03125, %v7630_v23  ;;  %v7691_v54 = vmul.f32 %v12465_v59, %v12465_v59  ;;  %10406 = vmatprep.subr.bf16.mxu0 %v13224_v20 }
 0x5f4   :  { %v7716_v34 = vsel %vm7603_vm7, %v7690_v52, 0.0 }
 0x5f5   :  { %v12474_v19 = vsub.f32 %v12378_v0, %v7660_v35  ;;  %7717 = vadd.xlane.f32.xlu1 %v7716_v34  ;;  %v12477_v21 = vsub.f32 %v12365_v31, %v7661_v28  ;;  %v7719_v57 = vsel %vm7603_vm7, %v7691_v54, 0.0 }
 0x5f6   :  { %v7633_v1 = vpop.xlane.xlu1 %7632  ;;  %v7636_v26 = vpop.xlane.xlu0 %7635  ;;  %7720 = vadd.xlane.f32.xlu0 %v7719_v57  ;;  %10407 = vmatpush3.bf16.msra.mxu0 %v10456_v7  ;;  %v13237_v57 = vld [vmem:[#allocation2_spill] sm:$0xff] }
 0x5f7   :  { %v7662_v40 = vmul.f32 0.03125, %v7633_v1  ;;  %v7692_v22 = vmul.f32 %v12474_v19, %v12474_v19  ;;  %v7663_v10 = vmul.f32 0.03125, %v7636_v26  ;;  %v7693_v29 = vmul.f32 %v12477_v21, %v12477_v21  ;;  %10408 = vmatprep.subr.bf16.mxu0 %v13224_v20  ;;  %v596_v1 = vld [vmem:[%s13193_s11] sm:$0xf]  ;;  %v13238_v26 = vld [vmem:[#allocation3_spill] sm:$0xff] }
 0x5f9   :  { %v12485_v0 = vsub.f32 %v12385_v24, %v7662_v40  ;;  %v7722_v46 = vsel %vm7603_vm7, %v7692_v22, 0.0  ;;  %v12489_v31 = vsub.f32 %v12393_v30, %v7663_v10  ;;  %v7725_v3 = vsel %vm7603_vm7, %v7693_v29, 0.0 }
 0x5fa   :  { %v7639_v12 = vpop.xlane.xlu1 %7638  ;;  %7723 = vadd.xlane.f32.xlu1 %v7722_v46  ;;  %v7642_v63 = vpop.xlane.xlu0 %7641  ;;  %7726 = vadd.xlane.f32.xlu0 %v7725_v3  ;;  %v7835_v40 = vsub.s32 1, %v13237_v57  ;;  %v12549_v22 = vrot.slane %v596_v1, %v13238_v26 }
 0x5fb   :  { %v7664_v32 = vmul.f32 0.03125, %v7639_v12  ;;  %v7694_v42 = vmul.f32 %v12485_v0, %v12485_v0  ;;  %v7665_v13 = vmul.f32 0.03125, %v7642_v63  ;;  %v7695_v24 = vmul.f32 %v12489_v31, %v12489_v31 }
 0x5fc   :  { %v12551_v12 = vrot.slane %v596_v1, %v7835_v40 }
 0x5fd   :  { %v12497_v11 = vsub.f32 %v12398_v8, %v7664_v32  ;;  %v7728_v30 = vsel %vm7603_vm7, %v7694_v42, 0.0  ;;  %v12501_v27 = vsub.f32 %v12403_v55, %v7665_v13  ;;  %v7731_v6 = vsel %vm7603_vm7, %v7695_v24, 0.0 }
 0x5fe   :  { %v7645_v33 = vpop.xlane.xlu1 %7644  ;;  %7729 = vadd.xlane.f32.xlu1 %v7728_v30  ;;  %7732 = vadd.xlane.f32.xlu0 %v7731_v6  ;;  %v7648_v4 = vpop.xlane.xlu0 %7647 }
 0x5ff   :  { %v7666_v41 = vmul.f32 0.03125, %v7645_v33  ;;  %v7696_v37 = vmul.f32 %v12497_v11, %v12497_v11  ;;  %v7667_v16 = vmul.f32 0.03125, %v7648_v4  ;;  %v7697_v8 = vmul.f32 %v12501_v27, %v12501_v27 }
 0x601   :  { %v12509_v36 = vsub.f32 %v12415_v56, %v7666_v41  ;;  %v7734_v55 = vsel %vm7603_vm7, %v7696_v37, 0.0  ;;  %v12513_v9 = vsub.f32 %v12421_v2, %v7667_v16  ;;  %v7737_v15 = vsel %vm7603_vm7, %v7697_v8, 0.0 }
 0x602   :  { %7735 = vadd.xlane.f32.xlu1 %v7734_v55  ;;  %v7651_v43 = vpop.xlane.xlu1 %7650  ;;  %7738 = vadd.xlane.f32.xlu0 %v7737_v15 }
 0x603   :  { %v7668_v50 = vmul.f32 0.03125, %v7651_v43  ;;  %v7698_v53 = vmul.f32 %v12509_v36, %v12509_v36  ;;  %v7699_v45 = vmul.f32 %v12513_v9, %v12513_v9 }
 0x605   :  { %v12521_v56 = vsub.f32 %v12426_v38, %v7668_v50  ;;  %v7740_v18 = vsel %vm7603_vm7, %v7698_v53, 0.0  ;;  %v7743_v2 = vsel %vm7603_vm7, %v7699_v45, 0.0  ;;  %v10454_v38 = vld [vmem:[%s13191_s12 + $0x8] sm:$0xff]  }
 0x606   :  { %7741 = vadd.xlane.f32.xlu1 %v7740_v18  ;;  %7744 = vadd.xlane.f32.xlu0 %v7743_v2 }
 0x607   :  { %v7700_v62 = vmul.f32 %v12521_v56, %v12521_v56  ;;  %10391 = vmatpush3.bf16.msra.mxu1 %v10454_v38 }
 0x608   :  { %10424 = vmatprep.subr.bf16.mxu1 %v13224_v20 }
 0x609   :  { %v7746_v39 = vsel %vm7603_vm7, %v7700_v62, 0.0 }
 0x60a   :  { %7747 = vadd.xlane.f32.xlu1 %v7746_v39 }
 0x66f   :  { %v7703_v49 = vpop.xlane.xlu0 %7702 }
 0x670   :  { %v7749_v44 = vmul.f32 0.03125, %v7703_v49 }
 0x672   :  { %v7706_v61 = vpop.xlane.xlu1 %7705  ;;  %v7765_v52 = vadd.f32 1e-05, %v7749_v44 }
 0x673   :  { %v7750_v35 = vmul.f32 0.03125, %v7706_v61 }
 0x674   :  { %10523 = vrsqrt.f32 %v7765_v52 }
 0x675   :  { %v7766_v23 = vadd.f32 1e-05, %v7750_v35  ;;  %v7709_v28 = vpop.xlane.xlu0 %7708 }
 0x676   :  { %v7751_v34 = vmul.f32 0.03125, %v7709_v28 }
 0x677   :  { %10525 = vrsqrt.f32 %v7766_v23 }
 0x678   :  { %v7767_v54 = vadd.f32 1e-05, %v7751_v34 }
 0x67a   :  { %10527 = vrsqrt.f32 %v7767_v54 }
 0x67e   :  { %v7712_v10 = vpop.xlane.xlu1 %7711  ;;  %v10524_v29 = vpop.eup %10523 }
 0x67f   :  { %v7752_v46 = vmul.f32 0.03125, %v7712_v10  ;;  %v7797_v3 = vmul.f32 %v10524_v29, %v12433_v58  ;;  %v7715_v32 = vpop.xlane.xlu0 %7714 }
 0x680   :  { %v7753_v13 = vmul.f32 0.03125, %v7715_v32 }
 0x681   :  { %v10526_v63 = vpop.eup %10525  ;;  %v7768_v42 = vadd.f32 1e-05, %v7752_v46  ;;  %v7817_v24 = vmul.f32 %v12549_v22, %v7797_v3 }
 0x682   :  { %v7798_v30 = vmul.f32 %v10526_v63, %v12436_v51  ;;  %v7718_v33 = vpop.xlane.xlu1 %7717  ;;  %v7769_v6 = vadd.f32 1e-05, %v7753_v13 }
 0x683   :  { %10529 = vrsqrt.f32 %v7768_v42  ;;  %v7754_v41 = vmul.f32 0.03125, %v7718_v33  ;;  %v12557_v37 = vadd.f32 %v12551_v12, %v7817_v24  ;;  %v7721_v8 = vpop.xlane.xlu0 %7720 }
 0x684   :  { %v10528_v4 = vpop.eup %10527  ;;  %v7818_v16 = vmul.f32 %v12549_v22, %v7798_v30  ;;  %10531 = vrsqrt.f32 %v7769_v6  ;;  %v7755_v43 = vmul.f32 0.03125, %v7721_v8 }
 0x685   :  { %v7799_v58 = vmul.f32 %v10528_v4, %v12444_v47  ;;  %v7770_v55 = vadd.f32 1e-05, %v7754_v41  ;;  %v7875_v15 = vrot.slane %v12557_v37, %v10732_v17 }
 0x686   :  { %v12564_v51 = vadd.f32 %v12551_v12, %v7818_v16  ;;  %v7771_v53 = vadd.f32 1e-05, %v7755_v43 }
 0x687   :  { %v7819_v50 = vmul.f32 %v12549_v22, %v7799_v58  ;;  %10533 = vrsqrt.f32 %v7770_v55  ;;  %v7724_v45 = vpop.xlane.xlu1 %7723  ;;  %v7876_v18 = vcombine.high %v7875_v15, %v7875_v15  ;;  %v7883_v2 = vrot.slane %v7875_v15, %v10732_v17  ;;  %v7727_v39 = vpop.xlane.xlu0 %7726 }
 0x688   :  { %v7898_v47 = vrot.slane %v12564_v51, %v10732_v17  ;;  %v7756_v62 = vmul.f32 0.03125, %v7724_v45  ;;  %10535 = vrsqrt.f32 %v7771_v53  ;;  %v7757_v38 = vmul.f32 0.03125, %v7727_v39 }
 0x689   :  { %v12571_v14 = vadd.f32 %v12551_v12, %v7819_v50  ;;  %v7890_v25 = vrot.slane %v7876_v18, %v10732_v17  ;;  %v7891_v7 = vcombine.high %v7883_v2, %v7883_v2 }
 0x68a   :  { %v7899_v49 = vcombine.high %v7898_v47, %v7898_v47  ;;  %v7906_v44 = vrot.slane %v7898_v47, %v10732_v17  ;;  %v7772_v52 = vadd.f32 1e-05, %v7756_v62  ;;  %v7773_v35 = vadd.f32 1e-05, %v7757_v38 }
 0x68b   :  { %v7921_v61 = vrot.slane %v12571_v14, %v10732_v17  ;;  %v7730_v23 = vpop.xlane.xlu1 %7729  ;;  %v7733_v1 = vpop.xlane.xlu0 %7732  ;;  %v8237_v40 = vcombine.low %v7883_v2, %v7890_v25 }
 0x68c   :  { %v7913_v28 = vrot.slane %v7899_v49, %v10732_v17  ;;  %v7914_v34 = vcombine.high %v7906_v44, %v7906_v44  ;;  %v7758_v54 = vmul.f32 0.03125, %v7730_v23  ;;  %10537 = vrsqrt.f32 %v7772_v52 }
 0x68d   :  { %v10530_v26 = vpop.eup %10529  ;;  %v7922_v10 = vcombine.high %v7921_v61, %v7921_v61  ;;  %v12579_v29 = vrot.slane %v7921_v61, %v10732_v17  ;;  %v7759_v46 = vmul.f32 0.03125, %v7733_v1  ;;  %10539 = vrsqrt.f32 %v7773_v35 }
 0x68e   :  { %v7800_v3 = vmul.f32 %v10530_v26, %v12451_v5  ;;  %v7774_v32 = vadd.f32 1e-05, %v7758_v54  ;;  %v8238_v63 = vcombine.low %v7891_v7, %v7906_v44  ;;  %v10532_v42 = vpop.eup %10531  ;;  %v12585_v6 = vcombine.low %v7913_v28, %v7914_v34 }
 0x68f   :  { %v7936_v13 = vrot.slane %v7922_v10, %v10732_v17  ;;  %v7937_v24 = vcombine.high %v12579_v29, %v12579_v29  ;;  %v7775_v30 = vadd.f32 1e-05, %v7759_v46  ;;  %v7736_v33 = vpop.xlane.xlu1 %7735  ;;  %v7801_v4 = vmul.f32 %v10532_v42, %v12454_v60  ;;  %v7739_v5 = vpop.xlane.xlu0 %7738 }
 0x690   :  { %v7820_v41 = vmul.f32 %v12549_v22, %v7800_v3  ;;  %10541 = vrsqrt.f32 %v7774_v32  ;;  %v7760_v16 = vmul.f32 0.03125, %v7736_v33  ;;  %v7761_v58 = vmul.f32 0.03125, %v7739_v5 }
 0x691   :  { %v10534_v8 = vpop.eup %10533  ;;  %10543 = vrsqrt.f32 %v7775_v30  ;;  %v8240_v55 = vcombine.low %v12579_v29, %v7936_v13  ;;  %v8247_v43 = vrot.slane %v8237_v40, %v10732_v17  ;;  %v7821_v50 = vmul.f32 %v12549_v22, %v7801_v4 }
 0x692   :  { %v12592_v15 = vadd.f32 %v12551_v12, %v7820_v41  ;;  %v7802_v53 = vmul.f32 %v10534_v8, %v12459_v48  ;;  %v7776_v45 = vadd.f32 1e-05, %v7760_v16  ;;  %v10536_v18 = vpop.eup %10535  ;;  %v7777_v60 = vadd.f32 1e-05, %v7761_v58 }
 0x693   :  { %v7742_v2 = vpop.xlane.xlu1 %7741  ;;  %v8254_v47 = vrot.slane %v8238_v63, %v10732_v17  ;;  %v8261_v62 = vrot.slane %v12585_v6, %v10732_v17  ;;  %v8268_v39 = vrot.slane %v8240_v55, %v10732_v17  ;;  %v12603_v25 = vadd.f32 %v12551_v12, %v7821_v50  ;;  %v7745_v49 = vpop.xlane.xlu0 %7744 }
 0x694   :  { %v7944_v38 = vrot.slane %v12592_v15, %v10732_v17  ;;  %v7822_v7 = vmul.f32 %v12549_v22, %v7802_v53  ;;  %v7803_v48 = vmul.f32 %v10536_v18, %v12465_v59  ;;  %10545 = vrsqrt.f32 %v7776_v45 }
 0x695   :  { %v7762_v44 = vmul.f32 0.03125, %v7742_v2  ;;  %v7763_v61 = vmul.f32 0.03125, %v7745_v49  ;;  %v8269_v52 = vcombine.low %v8247_v43, %v8254_v47  ;;  %v7967_v28 = vrot.slane %v12603_v25, %v10732_v17 }
 0x696   :  { %v7945_v35 = vcombine.high %v7944_v38, %v7944_v38  ;;  %v7952_v23 = vrot.slane %v7944_v38, %v10732_v17  ;;  %v12611_v34 = vadd.f32 %v12551_v12, %v7822_v7  ;;  %v10538_v54 = vpop.eup %10537  ;;  %v7823_v1 = vmul.f32 %v12549_v22, %v7803_v48 }
 0x697   :  { %10547 = vrsqrt.f32 %v7777_v60  ;;  %v7778_v40 = vadd.f32 1e-05, %v7762_v44  ;;  %v7779_v59 = vadd.f32 1e-05, %v7763_v61  ;;  %v7748_v26 = vpop.xlane.xlu1 %7747  ;;  %v10540_v10 = vpop.eup %10539  ;;  %v7968_v32 = vcombine.high %v7967_v28, %v7967_v28 }
 0x698   :  { %v7959_v46 = vrot.slane %v7945_v35, %v10732_v17  ;;  %v7960_v3 = vcombine.high %v7952_v23, %v7952_v23  ;;  %v7975_v63 = vrot.slane %v7967_v28, %v10732_v17  ;;  %v7990_v42 = vrot.slane %v12611_v34, %v10732_v17 }
 0x699   :  { %v12619_v13 = vadd.f32 %v12551_v12, %v7823_v1  ;;  %v7804_v30 = vmul.f32 %v10538_v54, %v12474_v19  ;;  %v7805_v33 = vmul.f32 %v10540_v10, %v12477_v21  ;;  %v7982_v41 = vrot.slane %v7968_v32, %v10732_v17 }
 0x69a   :  { %v10542_v6 = vpop.eup %10541  ;;  %v7983_v4 = vcombine.high %v7975_v63, %v7975_v63  ;;  %10549 = vrsqrt.f32 %v7778_v40  ;;  %v7764_v16 = vmul.f32 0.03125, %v7748_v26  ;;  %v7991_v8 = vcombine.high %v7990_v42, %v7990_v42 }
 0x69b   :  { %v10544_v5 = vpop.eup %10543  ;;  %v12625_v58 = vrot.slane %v7990_v42, %v10732_v17  ;;  %v8013_v55 = vrot.slane %v12619_v13, %v10732_v17  ;;  %v7824_v43 = vmul.f32 %v12549_v22, %v7804_v30  ;;  %v7825_v19 = vmul.f32 %v12549_v22, %v7805_v33 }
 0x69c   :  { %v7806_v21 = vmul.f32 %v10542_v6, %v12485_v0  ;;  %v7807_v50 = vmul.f32 %v10544_v5, %v12489_v31  ;;  %10551 = vrsqrt.f32 %v7779_v59  ;;  %v7780_v18 = vadd.f32 1e-05, %v7764_v16 }
 0x69d   :  { %v8014_v53 = vcombine.high %v8013_v55, %v8013_v55  ;;  %v12634_v45 = vadd.f32 %v12551_v12, %v7824_v43  ;;  %v8270_v60 = vcombine.low %v8261_v62, %v8268_v39  ;;  %v12637_v2 = vadd.f32 %v12551_v12, %v7825_v19 }
 0x69e   :  { %v7826_v47 = vmul.f32 %v12549_v22, %v7806_v21  ;;  %v7827_v38 = vmul.f32 %v12549_v22, %v7807_v50  ;;  %v8277_v7 = vrot.slane %v8269_v52, %v10732_v17  ;;  %v10546_v48 = vpop.eup %10545  ;;  %10553 = vrsqrt.f32 %v7780_v18 }
 0x69f   :  { %v8036_v0 = vrot.slane %v12634_v45, %v10732_v17  ;;  %v8284_v31 = vrot.slane %v8270_v60, %v10732_v17  ;;  %v8286_v62 = vcombine.low %v7937_v24, %v7952_v23  ;;  %v8059_v39 = vrot.slane %v12637_v2, %v10732_v17 }
 0x6a0   :  { %v12651_v49 = vadd.f32 %v12551_v12, %v7826_v47  ;;  %v12654_v44 = vadd.f32 %v12551_v12, %v7827_v38  ;;  %v7808_v61 = vmul.f32 %v10546_v48, %v12497_v11  ;;  %v8287_v54 = vcombine.low %v7959_v46, %v7960_v3 }
 0x6a1   :  { %v10548_v52 = vpop.eup %10547  ;;  %v8037_v35 = vcombine.high %v8036_v0, %v8036_v0  ;;  %v8285_v28 = vcombine.low %v8277_v7, %v8284_v31  ;;  %v8288_v1 = vcombine.low %v7975_v63, %v7982_v41  ;;  %v8060_v40 = vcombine.high %v8059_v39, %v8059_v39 }
 0x6a2   :  { %v8082_v29 = vrot.slane %v12651_v49, %v10732_v17  ;;  %v8105_v24 = vrot.slane %v12654_v44, %v10732_v17  ;;  %v7828_v23 = vmul.f32 %v12549_v22, %v7808_v61  ;;  %v7809_v59 = vmul.f32 %v10548_v52, %v12501_v27 }
 0x6a3   :  { %v8289_v26 = vcombine.low %v7983_v4, %v12625_v58  ;;  %v8296_v11 = vrot.slane %v8286_v62, %v10732_v17  ;;  %v8303_v10 = vrot.slane %v8287_v54, %v10732_v17  ;;  %v8310_v42 = vrot.slane %v8288_v1, %v10732_v17 }
 0x6a4   :  { %v10550_v32 = vpop.eup %10549  ;;  %v8083_v46 = vcombine.high %v8082_v29, %v8082_v29  ;;  %v8106_v3 = vcombine.high %v8105_v24, %v8105_v24  ;;  %v12667_v63 = vadd.f32 %v12551_v12, %v7828_v23  ;;  %v7829_v30 = vmul.f32 %v12549_v22, %v7809_v59 }
 0x6a5   :  { %v7810_v33 = vmul.f32 %v10550_v32, %v12509_v36  ;;  %v8317_v27 = vrot.slane %v8289_v26, %v10732_v17  ;;  %v8318_v6 = vcombine.low %v8296_v11, %v8303_v10  ;;  %v8005_v16 = vrot.slane %v7991_v8, %v10732_v17 }
 0x6a6   :  { %v10552_v41 = vpop.eup %10551  ;;  %v12675_v4 = vrot.slane %v12667_v63, %v10732_v17  ;;  %v8006_v5 = vcombine.high %v12625_v58, %v12625_v58  ;;  %v8021_v43 = vrot.slane %v8013_v55, %v10732_v17  ;;  %v12682_v19 = vadd.f32 %v12551_v12, %v7829_v30 }
 0x6a7   :  { %v7830_v36 = vmul.f32 %v12549_v22, %v7810_v33  ;;  %v7811_v21 = vmul.f32 %v10552_v41, %v12513_v9  ;;  %v8319_v50 = vcombine.low %v8310_v42, %v8317_v27  ;;  %v8326_v60 = vrot.slane %v8318_v6, %v10732_v17 }
 0x6a8   :  { %v8129_v18 = vcombine.high %v12675_v4, %v12675_v4  ;;  %v8028_v8 = vrot.slane %v8014_v53, %v10732_v17  ;;  %v8029_v47 = vcombine.high %v8021_v43, %v8021_v43  ;;  %v10554_v38 = vpop.eup %10553  ;;  %v8151_v58 = vrot.slane %v12682_v19, %v10732_v17 }
 0x6a9   :  { %v12693_v55 = vadd.f32 %v12551_v12, %v7830_v36  ;;  %v7831_v7 = vmul.f32 %v12549_v22, %v7811_v21  ;;  %v8333_v9 = vrot.slane %v8319_v50, %v10732_v17  ;;  %v7812_v48 = vmul.f32 %v10554_v38, %v12521_v56 }
 0x6aa   :  { %v8044_v31 = vrot.slane %v8036_v0, %v10732_v17  ;;  %v8051_v62 = vrot.slane %v8037_v35, %v10732_v17  ;;  %v8067_v53 = vrot.slane %v8059_v39, %v10732_v17  ;;  %v8152_v61 = vcombine.high %v8151_v58, %v8151_v58 }
 0x6ab   :  { %v8174_v52 = vrot.slane %v12693_v55, %v10732_v17  ;;  %v12704_v54 = vadd.f32 %v12551_v12, %v7831_v7  ;;  %v8334_v1 = vcombine.low %v8326_v60, %v8333_v9  ;;  %v7832_v23 = vmul.f32 %v12549_v22, %v7812_v48 }
 0x6ac   :  { %v8052_v59 = vcombine.high %v8044_v31, %v8044_v31  ;;  %v8074_v26 = vrot.slane %v8060_v40, %v10732_v17  ;;  %v8075_v56 = vcombine.high %v8067_v53, %v8067_v53  ;;  %v8090_v39 = vrot.slane %v8082_v29, %v10732_v17 }
 0x6ad   :  { %v8175_v11 = vcombine.high %v8174_v52, %v8174_v52  ;;  %v8197_v0 = vrot.slane %v12704_v54, %v10732_v17  ;;  %v8537_v35 = vpack.c.bf16 %v8334_v1, %v8285_v28  ;;  %v12712_v10 = vadd.f32 %v12551_v12, %v7832_v23 }
 0x6ae   :  { %v8097_v32 = vrot.slane %v8083_v46, %v10732_v17  ;;  %v8113_v42 = vrot.slane %v8105_v24, %v10732_v17  ;;  %v8120_v22 = vrot.slane %v8106_v3, %v10732_v17  ;;  %v8098_v40 = vcombine.high %v8090_v39, %v8090_v39 }
 0x6af   :  { %v8198_v30 = vcombine.high %v8197_v0, %v8197_v0  ;;  %10393 = vmatmul.mubr.msk.bf16.vlgmr.msra.gmra.mrb[56].mxu1 %vm1316_vm3, %v8537_v35  ;;  %v8335_v33 = vcombine.low %v8005_v16, %v8006_v5  ;;  %v8336_v27 = vcombine.low %v8021_v43, %v8028_v8  ;;  %v8220_v28 = vrot.slane %v12712_v10, %v10732_v17 }
 0x6b0   :  { %10396 = vmatprep.mubr.msk.bf16.mxu1 %vm10594_vm0, %v13224_v20  ;;  %v8337_v12 = vcombine.low %v8029_v47, %v8044_v31  ;;  %v8338_v29 = vcombine.low %v8051_v62, %v8052_v59  ;;  %v8384_v6 = vcombine.low %v8067_v53, %v8074_v26  ;;  %v8385_v3 = vcombine.low %v8075_v56, %v8090_v39 }
 0x6b1   :  { %v8345_v46 = vrot.slane %v8335_v33, %v10732_v17  ;;  %v8352_v24 = vrot.slane %v8336_v27, %v10732_v17  ;;  %v8386_v41 = vcombine.low %v8097_v32, %v8098_v40  ;;  %v8221_v36 = vcombine.high %v8220_v28, %v8220_v28 }
 0x6b2   :  { %v8359_v21 = vrot.slane %v8337_v12, %v10732_v17  ;;  %v8366_v16 = vrot.slane %v8338_v29, %v10732_v17  ;;  %v8387_v5 = vcombine.low %v8113_v42, %v8120_v22  ;;  %v8394_v50 = vrot.slane %v8384_v6, %v10732_v17 }
 0x6b3   :  { %v8367_v43 = vcombine.low %v8345_v46, %v8352_v24  ;;  %v8401_v60 = vrot.slane %v8385_v3, %v10732_v17  ;;  %v8408_v8 = vrot.slane %v8386_v41, %v10732_v17  ;;  %v8121_v7 = vcombine.high %v8113_v42, %v8113_v42 }
 0x6b4   :  { %v8368_v47 = vcombine.low %v8359_v21, %v8366_v16  ;;  %v8415_v38 = vrot.slane %v8387_v5, %v10732_v17  ;;  %v8136_v9 = vrot.slane %v12675_v4, %v10732_v17  ;;  %v8143_v62 = vrot.slane %v8129_v18, %v10732_v17 }
 0x6b5   :  { %v8375_v48 = vrot.slane %v8367_v43, %v10732_v17  ;;  %v8416_v31 = vcombine.low %v8394_v50, %v8401_v60  ;;  %v8159_v53 = vrot.slane %v8151_v58, %v10732_v17  ;;  %v8166_v26 = vrot.slane %v8152_v61, %v10732_v17 }
 0x6b6   :  { %v8382_v1 = vrot.slane %v8368_v47, %v10732_v17  ;;  %v8417_v23 = vcombine.low %v8408_v8, %v8415_v38  ;;  %v8144_v59 = vcombine.high %v8136_v9, %v8136_v9  ;;  %v8182_v39 = vrot.slane %v8174_v52, %v10732_v17 }
 0x6b7   :  { %v8424_v56 = vrot.slane %v8416_v31, %v10732_v17  ;;  %v8167_v35 = vcombine.high %v8159_v53, %v8159_v53  ;;  %v8189_v4 = vrot.slane %v8175_v11, %v10732_v17  ;;  %v8205_v18 = vrot.slane %v8197_v0, %v10732_v17 }
 0x6b8   :  { %v8383_v32 = vcombine.low %v8375_v48, %v8382_v1  ;;  %v8431_v42 = vrot.slane %v8417_v23, %v10732_v17  ;;  %v8212_v58 = vrot.slane %v8198_v30, %v10732_v17  ;;  %v8190_v22 = vcombine.high %v8182_v39, %v8182_v39  ;;  %v10457_v23 = vld [vmem:[%s13192_s14 + $0x10] sm:$0xff]  }
 0x6b9   :  { %v8228_v40 = vrot.slane %v8220_v28, %v10732_v17  ;;  %v8235_v33 = vrot.slane %v8221_v36, %v10732_v17  ;;  %v8433_v61 = vcombine.low %v8121_v7, %v8136_v9  ;;  %v8213_v12 = vcombine.high %v8205_v18, %v8205_v18  ;;  %10409 = vmatpush3.bf16.msra.mxu0 %v10457_v23 }
 0x6ba   :  { %v8432_v27 = vcombine.low %v8424_v56, %v8431_v42  ;;  %v8434_v29 = vcombine.low %v8143_v62, %v8144_v59  ;;  %v8435_v6 = vcombine.low %v8159_v53, %v8166_v26  ;;  %v8436_v46 = vcombine.low %v8167_v35, %v8182_v39  ;;  %v10458_v59 = vld [vmem:[%s13192_s14 + $0x18] sm:$0xff]   ;;  %10410 = vmatprep.subr.bf16.mxu0 %v13224_v20  ;;  %v10046_v26 = vld [vmem:[%s13194_s13] ss:$0 sm:$0xff] }
 0x6bb   :  { %v8236_v52 = vcombine.high %v8228_v40, %v8228_v40  ;;  %v8482_v11 = vcombine.low %v8189_v4, %v8190_v22  ;;  %v8483_v41 = vcombine.low %v8205_v18, %v8212_v58  ;;  %v8443_v30 = vrot.slane %v8433_v61, %v10732_v17 }
 0x6bc   :  { %v8538_v24 = vpack.c.bf16 %v8432_v27, %v8383_v32  ;;  %v8450_v3 = vrot.slane %v8434_v29, %v10732_v17  ;;  %v8457_v0 = vrot.slane %v8435_v6, %v10732_v17  ;;  %v8464_v28 = vrot.slane %v8436_v46, %v10732_v17 }
 0x6bd   :  { %v8484_v21 = vcombine.low %v8213_v12, %v8228_v40  ;;  %v8485_v36 = vcombine.low %v8235_v33, %v8236_v52  ;;  %v8492_v16 = vrot.slane %v8482_v11, %v10732_v17  ;;  %v8499_v5 = vrot.slane %v8483_v41, %v10732_v17  ;;  %10411 = vmatpush3.bf16.msra.mxu0 %v10458_v59 }
 0x6be   :  { %10397 = vmatmul.mubr.msk.bf16.gmra.mrb[60].mxu1 %vm1316_vm3, %v8538_v24  ;;  %v8465_v43 = vcombine.low %v8443_v30, %v8450_v3  ;;  %v8466_v50 = vcombine.low %v8457_v0, %v8464_v28 }
 0x6bf   :  { %10400 = vmatprep.mubr.msk.bf16.mxu1 %vm10594_vm0, %v13224_v20  ;;  %v8506_v60 = vrot.slane %v8484_v21, %v10732_v17  ;;  %v8513_v8 = vrot.slane %v8485_v36, %v10732_v17  ;;  %v8514_v47 = vcombine.low %v8492_v16, %v8499_v5  ;;  %v12783_v16 = vld [vmem:[%s13195_s15] ss:$0 sm:$0xff] }
 0x6c0   :  { %v8480_v38 = vrot.slane %v8466_v50, %v10732_v17  ;;  %v8473_v9 = vrot.slane %v8465_v43, %v10732_v17 }
 0x6c1   :  { %v8515_v7 = vcombine.low %v8506_v60, %v8513_v8  ;;  %v8522_v48 = vrot.slane %v8514_v47, %v10732_v17 }
 0x6c2   :  { %v8481_v62 = vcombine.low %v8473_v9, %v8480_v38 }
 0x6c3   :  { %v8529_v31 = vrot.slane %v8515_v7, %v10732_v17 }
 0x6c5   :  { %v8530_v53 = vcombine.low %v8522_v48, %v8529_v31 }
 0x6c7   :  { %v8539_v1 = vpack.c.bf16 %v8530_v53, %v8481_v62 }
 0x6c9   :  { %10401 = vmatmul.mubr.msk.bf16.gmra.mrb[64].mxu1 %vm1316_vm3, %v8539_v1 }
 0x6ca   :  { %10426 = vmatprep.mubr.msk.bf16.mxu1 %vm10594_vm0, %v13224_v20 }
 0x782   :  { %v8601_v56 = vpop.f32.mrb[56].mxu1 }
 0x783   :  { %v8602_v35 = vadd.f32 %v10046_v26, %v8601_v56  ;;  %v10394_v39 = vpop.f32.mrb[57].mxu1 }
 0x784   :  { %v8604_v4 = vpop.f32.mrb[58].mxu1 }
 0x785   :  { %v8605_v32 = vadd.f32 %v10046_v26, %v8604_v4  ;;  %v10395_v42 = vpop.f32.mrb[59].mxu1  ;;  %v8624_v18 = vmax.f32 %v8602_v35, 0.0 }
 0x787   :  { %v8625_v58 = vmax.f32 %v8605_v32, 0.0 }
 0x789   :  { %v8630_v22 = vpack.c.bf16 %v8625_v58, %v8624_v18 }
 0x78b   :  { %10413 = vmatmul.mubr.msk.bf16.vlgmr.msra.gmra.mrb[60].mxu0 %vm8663_vm8, %v8630_v22 }
 0x78c   :  { %10416 = vmatprep.mubr.msk.bf16.mxu0 %vm10594_vm0, %v13224_v20 }
 0x791   :  { %v8609_v40 = vpop.f32.mrb[60].mxu1 }
 0x792   :  { %v8610_v33 = vadd.f32 %v10046_v26, %v8609_v40  ;;  %v10398_v61 = vpop.f32.mrb[61].mxu1 }
 0x793   :  { %v8612_v27 = vpop.f32.mrb[62].mxu1 }
 0x794   :  { %v8613_v12 = vadd.f32 %v10046_v26, %v8612_v27  ;;  %v10399_v29 = vpop.f32.mrb[63].mxu1  ;;  %v8626_v6 = vmax.f32 %v8610_v33, 0.0 }
 0x796   :  { %v8627_v52 = vmax.f32 %v8613_v12, 0.0 }
 0x798   :  { %v8631_v46 = vpack.c.bf16 %v8627_v52, %v8626_v6 }
 0x79a   :  { %10417 = vmatmul.mubr.msk.bf16.gmra.mrb[64].mxu0 %vm8663_vm8, %v8631_v46 }
 0x79b   :  { %10420 = vmatprep.mubr.msk.bf16.mxu0 %vm10594_vm0, %v13224_v20  ;;  %vm9936_vm0 = vcmask 123904  }
 0x79c   :  { %v8617_v11 = vpop.f32.mrb[64].mxu1 }
 0x79d   :  { %v8618_v24 = vadd.f32 %v10046_v26, %v8617_v11  ;;  %v10402_v3 = vpop.f32.mrb[65].mxu1 }
 0x79e   :  { %v8620_v0 = vpop.f32.mrb[66].mxu1 }
 0x79f   :  { %v8621_v41 = vadd.f32 %v10046_v26, %v8620_v0  ;;  %v10403_v30 = vpop.f32.mrb[67].mxu1  ;;  %v8628_v28 = vmax.f32 %v8618_v24, 0.0 }
 0x7a1   :  { %v8629_v21 = vmax.f32 %v8621_v41, 0.0 }
 0x7a3   :  { %v8632_v36 = vpack.c.bf16 %v8629_v21, %v8628_v28 }
 0x7a5   :  { %10421 = vmatmul.mubr.msk.bf16.gmra.mrb[68].mxu0 %vm8663_vm8, %v8632_v36 }
 0x85e   :  { %v8707_v5 = vpop.f32.mrb[60].mxu0 }
 0x85f   :  { %v8708_v43 = vadd.f32 %v12783_v16, %v8707_v5  ;;  %v10414_v20 = vpop.f32.mrb[61].mxu0 }
 0x860   :  { %v8710_v50 = vpop.f32.mrb[62].mxu0 }
 0x861   :  { %v8736_v60 = vcombine.high %v8708_v43, %v8708_v43  ;;  %v8743_v8 = vrot.slane %v8708_v43, %v10732_v17  ;;  %v8711_v47 = vadd.f32 %v12783_v16, %v8710_v50  ;;  %v10415_v38 = vpop.f32.mrb[63].mxu0 }
 0x863   :  { %v8750_v7 = vrot.slane %v8736_v60, %v10732_v17  ;;  %v8751_v9 = vcombine.high %v8743_v8, %v8743_v8  ;;  %v8759_v48 = vrot.slane %v8743_v8, %v10732_v17  ;;  %v8785_v31 = vcombine.high %v8711_v47, %v8711_v47 }
 0x864   :  { %v8792_v62 = vrot.slane %v8711_v47, %v10732_v17 }
 0x865   :  { %v8752_v53 = vcombine.high %v8750_v7, %v8750_v7  ;;  %v8773_v1 = vrot.slane %v8751_v9, %v10732_v17  ;;  %v8781_v23 = vcombine.high %v8759_v48, %v8759_v48  ;;  %v8766_v59 = vrot.slane %v8750_v7, %v10732_v17 }
 0x866   :  { %v8799_v26 = vrot.slane %v8785_v31, %v10732_v17  ;;  %v8800_v56 = vcombine.high %v8792_v62, %v8792_v62  ;;  %v8808_v35 = vrot.slane %v8792_v62, %v10732_v17 }
 0x867   :  { %v8780_v39 = vrot.slane %v8752_v53, %v10732_v17  ;;  %v8783_v4 = vcombine.high %v8773_v1, %v8773_v1  ;;  %v9030_v32 = vcombine.low %v8759_v48, %v8773_v1  ;;  %v9044_v42 = vrot.slane %v8781_v23, %v10732_v17 }
 0x868   :  { %v8801_v18 = vcombine.high %v8799_v26, %v8799_v26  ;;  %v8815_v58 = vrot.slane %v8799_v26, %v10732_v17  ;;  %v8822_v22 = vrot.slane %v8800_v56, %v10732_v17  ;;  %v8830_v40 = vcombine.high %v8808_v35, %v8808_v35 }
 0x869   :  { %v9053_v33 = vcombine.low %v8783_v4, %v8766_v59  ;;  %v10060_v61 = vcombine.high %v8766_v59, %v8780_v39  ;;  %v9090_v27 = vrot.slane %v8808_v35, %v10732_v17  ;;  %v9037_v12 = vrot.slane %v9030_v32, %v10732_v17 }
 0x86a   :  { %v8829_v29 = vrot.slane %v8801_v18, %v10732_v17  ;;  %v8831_v6 = vcombine.high %v8815_v58, %v8815_v58  ;;  %v8832_v52 = vcombine.high %v8822_v22, %v8822_v22  ;;  %v9099_v46 = vcombine.low %v8822_v22, %v8830_v40 }
 0x86b   :  { %v9045_v11 = vcombine.low %v9037_v12, %v9044_v42  ;;  %v9060_v24 = vrot.slane %v9053_v33, %v10732_v17  ;;  %v9067_v3 = vrot.slane %v8780_v39, %v10732_v17  ;;  %v9083_v0 = vrot.slane %v10060_v61, %v10732_v17 }
 0x86c   :  { %v9122_v41 = vcombine.low %v8815_v58, %v8829_v29  ;;  %v9106_v30 = vrot.slane %v9099_v46, %v10732_v17  ;;  %v9113_v28 = vrot.slane %v8832_v52, %v10732_v17  ;;  %v8833_v50 = vcombine.high %v8829_v29, %v8829_v29 }
 0x86d   :  { %v8715_v21 = vpop.f32.mrb[64].mxu0  ;;  %v9052_v36 = vrot.slane %v9045_v11, %v10732_v17  ;;  %v9068_v5 = vcombine.low %v9060_v24, %v9067_v3  ;;  %v9091_v43 = vcombine.low %v9083_v0, %v9090_v27  ;;  %v9136_v31 = vrot.slane %v8831_v6, %v10732_v17 }
 0x86e   :  { %v8716_v20 = vadd.f32 %v12783_v16, %v8715_v21  ;;  %v10418_v60 = vpop.f32.mrb[65].mxu0  ;;  %v9114_v8 = vcombine.low %v9106_v30, %v9113_v28  ;;  %v9129_v47 = vrot.slane %v9122_v41, %v10732_v17 }
 0x86f   :  { %v8718_v38 = vpop.f32.mrb[66].mxu0  ;;  %v12811_v7 = vadd.f32 %v9052_v36, %v12557_v37  ;;  %v9075_v9 = vrot.slane %v9068_v5, %v10732_v17  ;;  %v9098_v48 = vrot.slane %v9091_v43, %v10732_v17 }
 0x870   :  { %v8834_v62 = vcombine.high %v8716_v20, %v8716_v20  ;;  %v8841_v53 = vrot.slane %v8716_v20, %v10732_v17  ;;  %v8719_v1 = vadd.f32 %v12783_v16, %v8718_v38  ;;  %v10419_v23 = vpop.f32.mrb[67].mxu0  ;;  %v9121_v59 = vrot.slane %v9114_v8, %v10732_v17 }
 0x871   :  { %v9430_v26 = vsel %vm7603_vm7, %v12811_v7, 0.0  ;;  %v12822_v37 = vadd.f32 %v9075_v9, %v12564_v51  ;;  %v12825_v56 = vadd.f32 %v9098_v48, %v12571_v14  ;;  %v9137_v35 = vcombine.low %v9129_v47, %v9136_v31 }
 0x872   :  { %v8848_v39 = vrot.slane %v8834_v62, %v10732_v17  ;;  %v8849_v4 = vcombine.high %v8841_v53, %v8841_v53  ;;  %v8857_v32 = vrot.slane %v8841_v53, %v10732_v17  ;;  %v8883_v42 = vcombine.high %v8719_v1, %v8719_v1  ;;  %9431 = vadd.xlane.f32.xlu0 %v9430_v26 }
 0x873   :  { %v8890_v18 = vrot.slane %v8719_v1, %v10732_v17  ;;  %v9433_v58 = vsel %vm7603_vm7, %v12822_v37, 0.0  ;;  %v9436_v51 = vsel %vm7603_vm7, %v12825_v56, 0.0  ;;  %v12835_v22 = vadd.f32 %v9121_v59, %v12592_v15 }
 0x874   :  { %v8850_v14 = vcombine.high %v8848_v39, %v8848_v39  ;;  %v12838_v40 = vrot.slane %v8848_v39, %v10732_v17  ;;  %v8871_v33 = vrot.slane %v8849_v4, %v10732_v17  ;;  %v9145_v61 = vcombine.low %v8833_v50, %v8857_v32  ;;  %9434 = vadd.xlane.f32.xlu1 %v9433_v58 }
 0x875   :  { %v8897_v27 = vrot.slane %v8883_v42, %v10732_v17  ;;  %v8898_v12 = vcombine.high %v8890_v18, %v8890_v18  ;;  %v8906_v29 = vrot.slane %v8890_v18, %v10732_v17  ;;  %v9439_v6 = vsel %vm7603_vm7, %v12835_v22, 0.0 }
 0x876   :  { %v12846_v52 = vrot.slane %v8850_v14, %v10732_v17  ;;  %v8880_v15 = vcombine.high %v12838_v40, %v12838_v40  ;;  %v10061_v46 = vcombine.high %v8857_v32, %v8871_v33  ;;  %9437 = vadd.xlane.f32.xlu0 %v9436_v51  ;;  %v9144_v11 = vrot.slane %v9137_v35, %v10732_v17 }
 0x877   :  { %v8899_v24 = vcombine.high %v8897_v27, %v8897_v27  ;;  %v8913_v3 = vrot.slane %v8897_v27, %v10732_v17  ;;  %v8920_v0 = vrot.slane %v8898_v12, %v10732_v17  ;;  %v8928_v41 = vcombine.high %v8906_v29, %v8906_v29 }
 0x878   :  { %v8723_v30 = vpop.f32.mrb[68].mxu0  ;;  %v12854_v28 = vadd.f32 %v9144_v11, %v12603_v25  ;;  %v9152_v21 = vrot.slane %v9145_v61, %v10732_v17  ;;  %v9159_v36 = vrot.slane %v8871_v33, %v10732_v17  ;;  %v9175_v5 = vrot.slane %v10061_v46, %v10732_v17 }
 0x879   :  { %v8927_v43 = vrot.slane %v8899_v24, %v10732_v17  ;;  %v8930_v20 = vcombine.high %v8920_v0, %v8920_v0  ;;  %v9214_v50 = vcombine.low %v8906_v29, %v8920_v0  ;;  %v8724_v60 = vadd.f32 %v12783_v16, %v8723_v30  ;;  %v10422_v8 = vpop.f32.mrb[69].mxu0 }
 0x87a   :  { %v8726_v47 = vpop.f32.mrb[70].mxu0  ;;  %9440 = vadd.xlane.f32.xlu0 %v9439_v6  ;;  %v9442_v38 = vsel %vm7603_vm7, %v12854_v28, 0.0  ;;  %v9160_v25 = vcombine.low %v9152_v21, %v9159_v36  ;;  %v9228_v9 = vrot.slane %v8928_v41, %v10732_v17  ;;  %v9182_v48 = vrot.slane %v12838_v40, %v10732_v17 }
 0x87b   :  { %v9237_v31 = vcombine.low %v8930_v20, %v8913_v3  ;;  %v10062_v62 = vcombine.high %v8913_v3, %v8927_v43  ;;  %v8932_v53 = vcombine.high %v8724_v60, %v8724_v60  ;;  %v8939_v1 = vrot.slane %v8724_v60, %v10732_v17  ;;  %v10423_v23 = vpop.f32.mrb[71].mxu0 }
 0x87c   :  { %v8727_v59 = vadd.f32 %v12783_v16, %v8726_v47  ;;  %v9167_v26 = vrot.slane %v9160_v25, %v10732_v17  ;;  %v9251_v35 = vrot.slane %v8927_v43, %v10732_v17  ;;  %v9221_v39 = vrot.slane %v9214_v50, %v10732_v17 }
 0x87d   :  { %v8946_v4 = vrot.slane %v8932_v53, %v10732_v17  ;;  %v8947_v32 = vcombine.high %v8939_v1, %v8939_v1  ;;  %v8955_v42 = vrot.slane %v8939_v1, %v10732_v17  ;;  %v9244_v18 = vrot.slane %v9237_v31, %v10732_v17 }
 0x87e   :  { %v8981_v58 = vcombine.high %v8727_v59, %v8727_v59  ;;  %v8988_v51 = vrot.slane %v8727_v59, %v10732_v17  ;;  %9443 = vadd.xlane.f32.xlu0 %v9442_v38  ;;  %v12876_v14 = vadd.f32 %v9167_v26, %v12611_v34  ;;  %v9229_v16 = vcombine.low %v9221_v39, %v9228_v9 }
 0x87f   :  { %v8948_v33 = vcombine.high %v8946_v4, %v8946_v4  ;;  %v8962_v61 = vrot.slane %v8946_v4, %v10732_v17  ;;  %v8969_v27 = vrot.slane %v8947_v32, %v10732_v17  ;;  %v8977_v12 = vcombine.high %v8955_v42, %v8955_v42 }
 0x880   :  { %v9274_v29 = vrot.slane %v8955_v42, %v10732_v17  ;;  %v8995_v6 = vrot.slane %v8981_v58, %v10732_v17  ;;  %v8996_v46 = vcombine.high %v8988_v51, %v8988_v51  ;;  %v9004_v11 = vrot.slane %v8988_v51, %v10732_v17 }
 0x881   :  { %v8976_v24 = vrot.slane %v8948_v33, %v10732_v17  ;;  %v8978_v3 = vcombine.high %v8962_v61, %v8962_v61  ;;  %v8979_v0 = vcombine.high %v8969_v27, %v8969_v27  ;;  %v9283_v34 = vcombine.low %v8969_v27, %v8977_v12 }
 0x882   :  { %v8997_v41 = vcombine.high %v8995_v6, %v8995_v6  ;;  %v9011_v30 = vrot.slane %v8995_v6, %v10732_v17  ;;  %v9018_v21 = vrot.slane %v8996_v46, %v10732_v17  ;;  %v9445_v36 = vsel %vm7603_vm7, %v12876_v14, 0.0 }
 0x883   :  { %v9306_v43 = vcombine.low %v8962_v61, %v8976_v24  ;;  %v8980_v20 = vcombine.high %v8976_v24, %v8976_v24  ;;  %9446 = vadd.xlane.f32.xlu0 %v9445_v36  ;;  %v9252_v50 = vcombine.low %v9244_v18, %v9251_v35  ;;  %v9236_v60 = vrot.slane %v9229_v16, %v10732_v17 }
 0x884   :  { %v9025_v8 = vrot.slane %v8997_v41, %v10732_v17  ;;  %v9027_v47 = vcombine.high %v9011_v30, %v9011_v30  ;;  %v10063_v38 = vcombine.high %v9004_v11, %v9018_v21  ;;  %v9267_v25 = vrot.slane %v10062_v62, %v10732_v17 }
 0x885   :  { %v9329_v9 = vcombine.low %v8980_v20, %v9004_v11  ;;  %v9259_v31 = vrot.slane %v9252_v50, %v10732_v17  ;;  %v12893_v53 = vadd.f32 %v9236_v60, %v12637_v2  ;;  %v9183_v1 = vcombine.low %v9175_v5, %v9182_v48 }
 0x886   :  { %v9275_v23 = vcombine.low %v9267_v25, %v9274_v29  ;;  %v9290_v59 = vrot.slane %v9283_v34, %v10732_v17  ;;  %v9297_v26 = vrot.slane %v8979_v0, %v10732_v17  ;;  %v8882_v35 = vcombine.high %v12846_v52, %v12846_v52 }
 0x887   :  { %v12900_v39 = vadd.f32 %v9259_v31, %v12651_v49  ;;  %v9454_v62 = vsel %vm7603_vm7, %v12893_v53, 0.0  ;;  %v9190_v4 = vrot.slane %v9183_v1, %v10732_v17  ;;  %v9191_v2 = vcombine.low %v12846_v52, %v8880_v15 }
 0x888   :  { %9455 = vadd.xlane.f32.xlu0 %v9454_v62  ;;  %v9282_v5 = vrot.slane %v9275_v23, %v10732_v17  ;;  %v9298_v48 = vcombine.low %v9290_v59, %v9297_v26  ;;  %v9205_v32 = vrot.slane %v8882_v35, %v10732_v17  ;;  %v9313_v42 = vrot.slane %v9306_v43, %v10732_v17 }
 0x889   :  { %v9457_v49 = vsel %vm7603_vm7, %v12900_v39, 0.0  ;;  %v12915_v18 = vadd.f32 %v9190_v4, %v12619_v13  ;;  %v9198_v58 = vrot.slane %v9191_v2, %v10732_v17  ;;  %v9320_v40 = vrot.slane %v8978_v3, %v10732_v17 }
 0x88a   :  { %9458 = vadd.xlane.f32.xlu1 %v9457_v49  ;;  %v12920_v52 = vadd.f32 %v9282_v5, %v12654_v44  ;;  %v9305_v15 = vrot.slane %v9298_v48, %v10732_v17  ;;  %v9359_v51 = vrot.slane %v10063_v38, %v10732_v17  ;;  %v9366_v16 = vrot.slane %v9011_v30, %v10732_v17 }
 0x88b   :  { %v9448_v33 = vsel %vm7603_vm7, %v12915_v18, 0.0  ;;  %v9206_v61 = vcombine.low %v9198_v58, %v9205_v32  ;;  %v9321_v13 = vcombine.low %v9313_v42, %v9320_v40  ;;  %v9336_v27 = vrot.slane %v9329_v9, %v10732_v17 }
 0x88c   :  { %v9460_v12 = vsel %vm7603_vm7, %v12920_v52, 0.0  ;;  %9449 = vadd.xlane.f32.xlu0 %v9448_v33  ;;  %v12931_v44 = vadd.f32 %v9305_v15, %v12667_v63  ;;  %v9367_v29 = vcombine.low %v9359_v51, %v9366_v16  ;;  %v9343_v6 = vrot.slane %v9018_v21, %v10732_v17 }
 0x88d   :  { %v9213_v46 = vrot.slane %v9206_v61, %v10732_v17  ;;  %v9328_v11 = vrot.slane %v9321_v13, %v10732_v17  ;;  %v9029_v24 = vcombine.high %v9025_v8, %v9025_v8  ;;  %v9375_v3 = vcombine.low %v9025_v8, %v9027_v47 }
 0x88e   :  { %9461 = vadd.xlane.f32.xlu1 %v9460_v12  ;;  %v9344_v0 = vcombine.low %v9336_v27, %v9343_v6  ;;  %v9463_v41 = vsel %vm7603_vm7, %v12931_v44, 0.0  ;;  %v9374_v63 = vrot.slane %v9367_v29, %v10732_v17 }
 0x88f   :  { %v12937_v34 = vadd.f32 %v9213_v46, %v12634_v45  ;;  %v12945_v21 = vadd.f32 %v9328_v11, %v12682_v19  ;;  %v9382_v36 = vrot.slane %v9375_v3, %v10732_v17  ;;  %v9389_v43 = vrot.slane %v9029_v24, %v10732_v17 }
 0x890   :  { %v12952_v20 = vadd.f32 %v9374_v63, %v12704_v54  ;;  %v9351_v50 = vrot.slane %v9344_v0, %v10732_v17 }
 0x891   :  { %v9451_v30 = vsel %vm7603_vm7, %v12937_v34, 0.0  ;;  %v9466_v45 = vsel %vm7603_vm7, %v12945_v21, 0.0  ;;  %v9390_v60 = vcombine.low %v9382_v36, %v9389_v43 }
 0x892   :  { %9464 = vadd.xlane.f32.xlu1 %v9463_v41  ;;  %9452 = vadd.xlane.f32.xlu0 %v9451_v30  ;;  %v9472_v19 = vsel %vm7603_vm7, %v12952_v20, 0.0  ;;  %v12958_v8 = vadd.f32 %v9351_v50, %v12693_v55 }
 0x893   :  { %v9397_v47 = vrot.slane %v9390_v60, %v10732_v17 }
 0x894   :  { %v9469_v38 = vsel %vm7603_vm7, %v12958_v8, 0.0 }
 0x895   :  { %v12964_v25 = vadd.f32 %v9397_v47, %v12712_v10 }
 0x896   :  { %9467 = vadd.xlane.f32.xlu1 %v9466_v45 }
 0x897   :  { %v9475_v54 = vsel %vm7603_vm7, %v12964_v25, 0.0 }
 0x89a   :  { %9473 = vadd.xlane.f32.xlu1 %v9472_v19 }
 0x89e   :  { %9470 = vadd.xlane.f32.xlu1 %v9469_v38 }
 0x8a2   :  { %9476 = vadd.xlane.f32.xlu1 %v9475_v54 }
 0x8ff   :  { %v9432_v9 = vpop.xlane.xlu0 %9431 }
 0x900   :  { %v9478_v31 = vmul.f32 0.03125, %v9432_v9 }
 0x901   :  { %v9435_v1 = vpop.xlane.xlu1 %9434 }
 0x902   :  { %v12969_v55 = vsub.f32 %v12811_v7, %v9478_v31  ;;  %v9479_v23 = vmul.f32 0.03125, %v9435_v1 }
 0x903   :  { %v9438_v17 = vpop.xlane.xlu0 %9437 }
 0x904   :  { %v12972_v59 = vsub.f32 %v12822_v37, %v9479_v23  ;;  %v9480_v26 = vmul.f32 0.03125, %v9438_v17  ;;  %v9510_v10 = vmul.f32 %v12969_v55, %v12969_v55 }
 0x906   :  { %v12977_v35 = vsub.f32 %v12825_v56, %v9480_v26  ;;  %v9526_v62 = vsel %vm7603_vm7, %v9510_v10, 0.0  ;;  %v9511_v4 = vmul.f32 %v12972_v59, %v12972_v59 }
 0x907   :  { %v9441_v2 = vpop.xlane.xlu0 %9440  ;;  %9527 = vadd.xlane.f32.xlu0 %v9526_v62 }
 0x908   :  { %v9481_v7 = vmul.f32 0.03125, %v9441_v2  ;;  %v9529_v5 = vsel %vm7603_vm7, %v9511_v4, 0.0  ;;  %v9512_v37 = vmul.f32 %v12977_v35, %v12977_v35 }
 0x909   :  { %9530 = vadd.xlane.f32.xlu1 %v9529_v5 }
 0x90a   :  { %v12986_v48 = vsub.f32 %v12835_v22, %v9481_v7  ;;  %v9532_v56 = vsel %vm7603_vm7, %v9512_v37, 0.0 }
 0x90b   :  { %v9444_v32 = vpop.xlane.xlu0 %9443  ;;  %9533 = vadd.xlane.f32.xlu0 %v9532_v56 }
 0x90c   :  { %v9482_v42 = vmul.f32 0.03125, %v9444_v32  ;;  %v9513_v49 = vmul.f32 %v12986_v48, %v12986_v48 }
 0x90e   :  { %v12992_v58 = vsub.f32 %v12854_v28, %v9482_v42  ;;  %v9535_v40 = vsel %vm7603_vm7, %v9513_v49, 0.0 }
 0x90f   :  { %9536 = vadd.xlane.f32.xlu0 %v9535_v40 }
 0x910   :  { %v9447_v15 = vpop.xlane.xlu0 %9446  ;;  %v9514_v51 = vmul.f32 %v12992_v58, %v12992_v58 }
 0x911   :  { %v9483_v22 = vmul.f32 0.03125, %v9447_v15  ;;  %v10595_v15 = vmov 0  }
 0x912   :  { %v9538_v16 = vsel %vm7603_vm7, %v9514_v51, 0.0  ;;  %10438 = vset.pattern.permute.xlu0 %v10595_v15  ;;  %v9824_v51 = vld [vmem:[%s13196_s17] sm:$0x3] }
 0x913   :  { %v12999_v33 = vsub.f32 %v12876_v14, %v9483_v22  ;;  %9539 = vadd.xlane.f32.xlu0 %v9538_v16 }
 0x915   :  { %v9456_v61 = vpop.xlane.xlu0 %9455  ;;  %v9515_v13 = vmul.f32 %v12999_v33, %v12999_v33 }
 0x916   :  { %v9486_v28 = vmul.f32 0.03125, %v9456_v61 }
 0x917   :  { %v9459_v27 = vpop.xlane.xlu1 %9458  ;;  %v9541_v12 = vsel %vm7603_vm7, %v9515_v13, 0.0 }
 0x918   :  { %v9487_v29 = vmul.f32 0.03125, %v9459_v27  ;;  %v13005_v6 = vsub.f32 %v12893_v53, %v9486_v28  ;;  %9542 = vadd.xlane.f32.xlu0 %v9541_v12 }
 0x919   :  { %v9450_v46 = vpop.xlane.xlu0 %9449 }
 0x91a   :  { %v13008_v11 = vsub.f32 %v12900_v39, %v9487_v29  ;;  %v9484_v14 = vmul.f32 0.03125, %v9450_v46  ;;  %v9518_v24 = vmul.f32 %v13005_v6, %v13005_v6 }
 0x91b   :  { %v9462_v3 = vpop.xlane.xlu1 %9461 }
 0x91c   :  { %v9488_v0 = vmul.f32 0.03125, %v9462_v3  ;;  %v13013_v41 = vsub.f32 %v12915_v18, %v9484_v14  ;;  %v9519_v63 = vmul.f32 %v13008_v11, %v13008_v11  ;;  %v9550_v53 = vsel %vm7603_vm7, %v9518_v24, 0.0 }
 0x91d   :  { %9551 = vadd.xlane.f32.xlu0 %v9550_v53  ;;  %v9640_v24 = vsub.s32 2, %v13237_v57 }
 0x91e   :  { %v13019_v30 = vsub.f32 %v12920_v52, %v9488_v0  ;;  %v9553_v39 = vsel %vm7603_vm7, %v9519_v63, 0.0  ;;  %v9516_v36 = vmul.f32 %v13013_v41, %v13013_v41  ;;  %v9660_v0 = vsub.s32 3, %v13237_v57 }
 0x91f   :  { %v9465_v43 = vpop.xlane.xlu1 %9464  ;;  %9554 = vadd.xlane.f32.xlu1 %v9553_v39  ;;  %v9453_v45 = vpop.xlane.xlu0 %9452  ;;  %v10591_v39 = vld [vmem:[%s13193_s11] sm:$0xf] }
 0x920   :  { %v9489_v50 = vmul.f32 0.03125, %v9465_v43  ;;  %v9485_v18 = vmul.f32 0.03125, %v9453_v45  ;;  %v9520_v60 = vmul.f32 %v13019_v30, %v13019_v30  ;;  %v9544_v19 = vsel %vm7603_vm7, %v9516_v36, 0.0 }
 0x921   :  { %9545 = vadd.xlane.f32.xlu0 %v9544_v19  ;;  %v13072_v36 = vrot.slane %v10591_v39, %v9640_v24 }
 0x922   :  { %v13028_v47 = vsub.f32 %v12931_v44, %v9489_v50  ;;  %v13031_v52 = vsub.f32 %v12937_v34, %v9485_v18  ;;  %v9556_v38 = vsel %vm7603_vm7, %v9520_v60, 0.0  ;;  %v13074_v50 = vrot.slane %v10591_v39, %v9660_v0 }
 0x923   :  { %v9468_v54 = vpop.xlane.xlu1 %9467  ;;  %9557 = vadd.xlane.f32.xlu1 %v9556_v38 }
 0x924   :  { %v9490_v9 = vmul.f32 0.03125, %v9468_v54  ;;  %v9521_v31 = vmul.f32 %v13028_v47, %v13028_v47  ;;  %v9517_v1 = vmul.f32 %v13031_v52, %v13031_v52 }
 0x926   :  { %v13039_v23 = vsub.f32 %v12945_v21, %v9490_v9  ;;  %v9559_v44 = vsel %vm7603_vm7, %v9521_v31, 0.0  ;;  %v9547_v17 = vsel %vm7603_vm7, %v9517_v1, 0.0 }
 0x927   :  { %v9474_v34 = vpop.xlane.xlu1 %9473  ;;  %9560 = vadd.xlane.f32.xlu1 %v9559_v44  ;;  %9548 = vadd.xlane.f32.xlu0 %v9547_v17 }
 0x928   :  { %v9492_v26 = vmul.f32 0.03125, %v9474_v34  ;;  %v9522_v10 = vmul.f32 %v13039_v23, %v13039_v23 }
 0x92a   :  { %v13046_v62 = vsub.f32 %v12952_v20, %v9492_v26  ;;  %v9562_v4 = vsel %vm7603_vm7, %v9522_v10, 0.0 }
 0x92b   :  { %v9471_v2 = vpop.xlane.xlu1 %9470  ;;  %9563 = vadd.xlane.f32.xlu1 %v9562_v4 }
 0x92c   :  { %v9491_v21 = vmul.f32 0.03125, %v9471_v2  ;;  %v9524_v7 = vmul.f32 %v13046_v62, %v13046_v62 }
 0x92e   :  { %v13052_v5 = vsub.f32 %v12958_v8, %v9491_v21  ;;  %v9568_v37 = vsel %vm7603_vm7, %v9524_v7, 0.0 }
 0x92f   :  { %9569 = vadd.xlane.f32.xlu1 %v9568_v37  ;;  %v9477_v56 = vpop.xlane.xlu1 %9476 }
 0x930   :  { %v9493_v32 = vmul.f32 0.03125, %v9477_v56  ;;  %v9523_v20 = vmul.f32 %v13052_v5, %v13052_v5 }
 0x932   :  { %v13058_v42 = vsub.f32 %v12964_v25, %v9493_v32  ;;  %v9565_v49 = vsel %vm7603_vm7, %v9523_v20, 0.0 }
 0x933   :  { %9566 = vadd.xlane.f32.xlu1 %v9565_v49 }
 0x934   :  { %v9525_v40 = vmul.f32 %v13058_v42, %v13058_v42 }
 0x936   :  { %v9571_v8 = vsel %vm7603_vm7, %v9525_v40, 0.0 }
 0x937   :  { %9572 = vadd.xlane.f32.xlu1 %v9571_v8 }
 0x93d   :  { %9827 = vperm.xlu0 %10438, %v9824_v51  }
 0x994   :  { %v9528_v22 = vpop.xlane.xlu0 %9527 }
 0x995   :  { %v9574_v16 = vmul.f32 0.03125, %v9528_v22 }
 0x996   :  { %v9531_v25 = vpop.xlane.xlu1 %9530 }
 0x997   :  { %v9590_v61 = vadd.f32 1e-05, %v9574_v16  ;;  %v9575_v13 = vmul.f32 0.03125, %v9531_v25 }
 0x998   :  { %v9534_v28 = vpop.xlane.xlu0 %9533 }
 0x999   :  { %10555 = vrsqrt.f32 %v9590_v61  ;;  %v9591_v27 = vadd.f32 1e-05, %v9575_v13  ;;  %v9576_v12 = vmul.f32 0.03125, %v9534_v28 }
 0x99b   :  { %10557 = vrsqrt.f32 %v9591_v27  ;;  %v9592_v29 = vadd.f32 1e-05, %v9576_v12 }
 0x99c   :  { %v9537_v46 = vpop.xlane.xlu0 %9536 }
 0x99d   :  { %10559 = vrsqrt.f32 %v9592_v29  ;;  %v9577_v14 = vmul.f32 0.03125, %v9537_v46 }
 0x99f   :  { %v9593_v3 = vadd.f32 1e-05, %v9577_v14 }
 0x9a0   :  { %v9540_v63 = vpop.xlane.xlu0 %9539 }
 0x9a1   :  { %10561 = vrsqrt.f32 %v9593_v3  ;;  %v9578_v53 = vmul.f32 0.03125, %v9540_v63 }
 0x9a3   :  { %v10556_v43 = vpop.eup %10555  ;;  %v9594_v45 = vadd.f32 1e-05, %v9578_v53 }
 0x9a4   :  { %v9622_v18 = vmul.f32 %v10556_v43, %v12969_v55 }
 0x9a5   :  { %v10558_v60 = vpop.eup %10557  ;;  %10563 = vrsqrt.f32 %v9594_v45  ;;  %v9543_v19 = vpop.xlane.xlu0 %9542 }
 0x9a6   :  { %v9642_v57 = vmul.f32 %v13072_v36, %v9622_v18  ;;  %v9623_v38 = vmul.f32 %v10558_v60, %v12972_v59  ;;  %v9579_v54 = vmul.f32 0.03125, %v9543_v19 }
 0x9a7   :  { %v10560_v9 = vpop.eup %10559 }
 0x9a8   :  { %v9662_v31 = vadd.f32 %v13074_v50, %v9642_v57  ;;  %v9643_v1 = vmul.f32 %v13072_v36, %v9623_v38  ;;  %v9624_v44 = vmul.f32 %v10560_v9, %v12977_v35  ;;  %v9595_v17 = vadd.f32 1e-05, %v9579_v54 }
 0x9aa   :  { %v9678_v34 = vsel %vm7603_vm7, %v9662_v31, 0.0  ;;  %v9663_v55 = vadd.f32 %v13074_v50, %v9643_v1  ;;  %v9644_v26 = vmul.f32 %v13072_v36, %v9624_v44  ;;  %10565 = vrsqrt.f32 %v9595_v17  ;;  %v9552_v10 = vpop.xlane.xlu0 %9551 }
 0x9ab   :  { %v10562_v4 = vpop.eup %10561  ;;  %v9679_v2 = vrot.slane %v9678_v34, 4  ;;  %v9582_v59 = vmul.f32 0.03125, %v9552_v10 }
 0x9ac   :  { %v9685_v21 = vsel %vm7603_vm7, %v9663_v55, 0.0  ;;  %v9664_v7 = vadd.f32 %v13074_v50, %v9644_v26  ;;  %v9625_v37 = vmul.f32 %v10562_v4, %v12986_v48  ;;  %v9555_v56 = vpop.xlane.xlu1 %9554 }
 0x9ad   :  { %v9680_v35 = vadd.f32 %v9679_v2, %v9678_v34  ;;  %v9686_v32 = vrot.slane %v9685_v21, 4  ;;  %v9583_v20 = vmul.f32 0.03125, %v9555_v56  ;;  %v9598_v49 = vadd.f32 1e-05, %v9582_v59 }
 0x9ae   :  { %v9692_v40 = vsel %vm7603_vm7, %v9664_v7, 0.0  ;;  %v9645_v8 = vmul.f32 %v13072_v36, %v9625_v37  ;;  %v9546_v15 = vpop.xlane.xlu0 %9545 }
 0x9af   :  { %v10564_v51 = vpop.eup %10563  ;;  %v9681_v22 = vrot.slane %v9680_v35, 2  ;;  %v9687_v16 = vadd.f32 %v9686_v32, %v9685_v21  ;;  %v9693_v25 = vrot.slane %v9692_v40, 4  ;;  %v9599_v61 = vadd.f32 1e-05, %v9583_v20 }
 0x9b0   :  { %v9665_v13 = vadd.f32 %v13074_v50, %v9645_v8  ;;  %v9626_v28 = vmul.f32 %v10564_v51, %v12992_v58  ;;  %10567 = vrsqrt.f32 %v9598_v49  ;;  %v9558_v48 = vpop.xlane.xlu1 %9557  ;;  %v9580_v27 = vmul.f32 0.03125, %v9546_v15 }
 0x9b1   :  { %v9682_v12 = vadd.f32 %v9681_v22, %v9680_v35  ;;  %v9688_v29 = vrot.slane %v9687_v16, 2  ;;  %10569 = vrsqrt.f32 %v9599_v61  ;;  %v9584_v24 = vmul.f32 0.03125, %v9558_v48 }
 0x9b2   :  { %v9699_v46 = vsel %vm7603_vm7, %v9665_v13, 0.0  ;;  %v9646_v14 = vmul.f32 %v13072_v36, %v9626_v28  ;;  %v9596_v3 = vadd.f32 1e-05, %v9580_v27  ;;  %v9694_v0 = vadd.f32 %v9693_v25, %v9692_v40 }
 0x9b3   :  { %v9700_v53 = vrot.slane %v9699_v46, 4  ;;  %v9600_v43 = vadd.f32 1e-05, %v9584_v24  ;;  %v9683_v45 = vrot.slane %v9682_v12, 1  ;;  %v9689_v60 = vadd.f32 %v9688_v29, %v9687_v16 }
 0x9b4   :  { %v10566_v63 = vpop.eup %10565  ;;  %v9666_v39 = vadd.f32 %v13074_v50, %v9646_v14  ;;  %10571 = vrsqrt.f32 %v9596_v3  ;;  %v9561_v58 = vpop.xlane.xlu1 %9560  ;;  %v9695_v38 = vrot.slane %v9694_v0, 2 }
 0x9b5   :  { %v9549_v18 = vpop.xlane.xlu0 %9548  ;;  %v9627_v19 = vmul.f32 %v10566_v63, %v12999_v33  ;;  %10573 = vrsqrt.f32 %v9600_v43  ;;  %v9585_v57 = vmul.f32 0.03125, %v9561_v58  ;;  %v9701_v9 = vadd.f32 %v9700_v53, %v9699_v46 }
 0x9b6   :  { %v9706_v54 = vsel %vm7603_vm7, %v9666_v39, 0.0  ;;  %v9581_v44 = vmul.f32 0.03125, %v9549_v18  ;;  %v9684_v34 = vadd.f32 %v9683_v45, %v9682_v12  ;;  %v9690_v26 = vrot.slane %v9689_v60, 1 }
 0x9b7   :  { %v9647_v31 = vmul.f32 %v13072_v36, %v9627_v19  ;;  %v9601_v1 = vadd.f32 1e-05, %v9585_v57  ;;  %v9707_v10 = vrot.slane %v9706_v54, 4  ;;  %v9696_v59 = vadd.f32 %v9695_v38, %v9694_v0 }
 0x9b8   :  { %v9564_v17 = vpop.xlane.xlu1 %9563  ;;  %v9597_v4 = vadd.f32 1e-05, %v9581_v44  ;;  %v9702_v7 = vrot.slane %v9701_v9, 2  ;;  %v13102_v8 = vmul.f32 0.33333334, %v9684_v34  ;;  %v9691_v15 = vadd.f32 %v9690_v26, %v9689_v60 }
 0x9b9   :  { %10575 = vrsqrt.f32 %v9601_v1  ;;  %v9586_v21 = vmul.f32 0.03125, %v9564_v17  ;;  %v9667_v37 = vadd.f32 %v13074_v50, %v9647_v31  ;;  %v9708_v51 = vadd.f32 %v9707_v10, %v9706_v54 }
 0x9ba   :  { %v10568_v55 = vpop.eup %10567  ;;  %10577 = vrsqrt.f32 %v9597_v4  ;;  %v9703_v61 = vadd.f32 %v9702_v7, %v9701_v9  ;;  %v9808_v58 = vpack.c.bf16 %v13102_v8, %v13102_v8  ;;  %v13117_v45 = vmul.f32 0.33333334, %v9691_v15 }
 0x9bb   :  { %v10570_v2 = vpop.eup %10569  ;;  %v9630_v33 = vmul.f32 %v10568_v55, %v13005_v6  ;;  %v9602_v20 = vadd.f32 1e-05, %v9586_v21  ;;  %v9697_v6 = vrot.slane %v9696_v59, 1  ;;  %v9713_v13 = vsel %vm7603_vm7, %v9667_v37, 0.0 }
 0x9bc   :  { %v9631_v56 = vmul.f32 %v10570_v2, %v13008_v11  ;;  %v9570_v35 = vpop.xlane.xlu1 %9569  ;;  %v9709_v24 = vrot.slane %v9708_v51, 2  ;;  %v9704_v60 = vrot.slane %v9703_v61, 1 }
 0x9bd   :  { %v9650_v32 = vmul.f32 %v13072_v36, %v9630_v33  ;;  %v9588_v49 = vmul.f32 0.03125, %v9570_v35  ;;  %10579 = vrsqrt.f32 %v9602_v20  ;;  %v9698_v10 = vadd.f32 %v9697_v6, %v9696_v59 }
 0x9be   :  { %v10572_v40 = vpop.eup %10571  ;;  %v9651_v22 = vmul.f32 %v13072_v36, %v9631_v56  ;;  %v9710_v44 = vadd.f32 %v9709_v24, %v9708_v51  ;;  %v9705_v56 = vadd.f32 %v9704_v60, %v9703_v61 }
 0x9bf   :  { %v9670_v16 = vadd.f32 %v13074_v50, %v9650_v32  ;;  %v9628_v25 = vmul.f32 %v10572_v40, %v13013_v41  ;;  %v10574_v11 = vpop.eup %10573  ;;  %v9604_v48 = vadd.f32 1e-05, %v9588_v49 }
 0x9c0   :  { %v9671_v28 = vadd.f32 %v13074_v50, %v9651_v22  ;;  %v9567_v27 = vpop.xlane.xlu1 %9566  ;;  %v9632_v29 = vmul.f32 %v10574_v11, %v13019_v30  ;;  %v9714_v30 = vrot.slane %v9713_v13, 4  ;;  %v9711_v59 = vrot.slane %v9710_v44, 1 }
 0x9c1   :  { %v9734_v12 = vsel %vm7603_vm7, %v9670_v16, 0.0  ;;  %v9648_v46 = vmul.f32 %v13072_v36, %v9628_v25  ;;  %v9587_v14 = vmul.f32 0.03125, %v9567_v27  ;;  %10581 = vrsqrt.f32 %v9604_v48 }
 0x9c2   :  { %v9741_v3 = vsel %vm7603_vm7, %v9671_v28, 0.0  ;;  %v9735_v41 = vrot.slane %v9734_v12, 4  ;;  %v9652_v63 = vmul.f32 %v13072_v36, %v9632_v29  ;;  %v9715_v4 = vadd.f32 %v9714_v30, %v9713_v13 }
 0x9c3   :  { %v9742_v0 = vrot.slane %v9741_v3, 4  ;;  %v9668_v53 = vadd.f32 %v13074_v50, %v9648_v46  ;;  %v9603_v39 = vadd.f32 1e-05, %v9587_v14  ;;  %v10576_v43 = vpop.eup %10575  ;;  %v9809_v25 = vpack.c.bf16 %v13117_v45, %v13117_v45 }
 0x9c4   :  { %v9573_v18 = vpop.xlane.xlu1 %9572  ;;  %v9736_v19 = vadd.f32 %v9735_v41, %v9734_v12  ;;  %v9672_v57 = vadd.f32 %v13074_v50, %v9652_v63  ;;  %v9633_v54 = vmul.f32 %v10576_v43, %v13028_v47  ;;  %v10578_v9 = vpop.eup %10577  ;;  %v9716_v16 = vrot.slane %v9715_v4, 2 }
 0x9c5   :  { %v9720_v38 = vsel %vm7603_vm7, %v9668_v53, 0.0  ;;  %v9743_v31 = vadd.f32 %v9742_v0, %v9741_v3  ;;  %10583 = vrsqrt.f32 %v9603_v39  ;;  %v9589_v1 = vmul.f32 0.03125, %v9573_v18 }
 0x9c6   :  { %v9748_v17 = vsel %vm7603_vm7, %v9672_v57, 0.0  ;;  %v9721_v34 = vrot.slane %v9720_v38, 4  ;;  %v9653_v55 = vmul.f32 %v13072_v36, %v9633_v54  ;;  %v9629_v26 = vmul.f32 %v10578_v9, %v13031_v52 }
 0x9c7   :  { %v9749_v2 = vrot.slane %v9748_v17, 4  ;;  %v9605_v33 = vadd.f32 1e-05, %v9589_v1  ;;  %v10580_v21 = vpop.eup %10579  ;;  %v9737_v7 = vrot.slane %v9736_v19, 2  ;;  %v9744_v35 = vrot.slane %v9743_v31, 2 }
 0x9c8   :  { %v9673_v47 = vadd.f32 %v13074_v50, %v9653_v55  ;;  %v9649_v37 = vmul.f32 %v13072_v36, %v9629_v26  ;;  %v9634_v20 = vmul.f32 %v10580_v21, %v13039_v23  ;;  %v9722_v40 = vadd.f32 %v9721_v34, %v9720_v38 }
 0x9c9   :  { %v9750_v32 = vadd.f32 %v9749_v2, %v9748_v17  ;;  %10585 = vrsqrt.f32 %v9605_v33  ;;  %v9738_v11 = vadd.f32 %v9737_v7, %v9736_v19  ;;  %v13134_v23 = vmul.f32 0.33333334, %v9698_v10 }
 0x9ca   :  { %v9755_v49 = vsel %vm7603_vm7, %v9673_v47, 0.0  ;;  %v9669_v52 = vadd.f32 %v13074_v50, %v9649_v37  ;;  %v9654_v6 = vmul.f32 %v13072_v36, %v9634_v20  ;;  %v9745_v13 = vadd.f32 %v9744_v35, %v9743_v31 }
 0x9cb   :  { %v10582_v15 = vpop.eup %10581  ;;  %v9751_v51 = vrot.slane %v9750_v32, 2  ;;  %v9756_v22 = vrot.slane %v9755_v49, 4  ;;  %v9723_v29 = vrot.slane %v9722_v40, 2  ;;  %v13139_v14 = vmul.f32 0.33333334, %v9705_v56 }
 0x9cc   :  { %v9636_v61 = vmul.f32 %v10582_v15, %v13046_v62  ;;  %v9674_v27 = vadd.f32 %v13074_v50, %v9654_v6  ;;  %v9727_v46 = vsel %vm7603_vm7, %v9669_v52, 0.0  ;;  %v9712_v0 = vadd.f32 %v9711_v59, %v9710_v44 }
 0x9cd   :  { %v9752_v28 = vadd.f32 %v9751_v51, %v9750_v32  ;;  %v9757_v48 = vadd.f32 %v9756_v22, %v9755_v49  ;;  %v9717_v62 = vadd.f32 %v9716_v16, %v9715_v4  ;;  %v9739_v63 = vrot.slane %v9738_v11, 1 }
 0x9ce   :  { %v9656_v12 = vmul.f32 %v13072_v36, %v9636_v61  ;;  %v9762_v41 = vsel %vm7603_vm7, %v9674_v27, 0.0  ;;  %v9746_v30 = vrot.slane %v9745_v13, 1  ;;  %v9728_v19 = vrot.slane %v9727_v46, 4 }
 0x9cf   :  { %v10584_v24 = vpop.eup %10583  ;;  %v9758_v3 = vrot.slane %v9757_v48, 2  ;;  %v9763_v53 = vrot.slane %v9762_v41, 4  ;;  %v9753_v18 = vrot.slane %v9752_v28, 1  ;;  %v9724_v9 = vadd.f32 %v9723_v29, %v9722_v40 }
 0x9d0   :  { %v9676_v39 = vadd.f32 %v13074_v50, %v9656_v12  ;;  %v9635_v43 = vmul.f32 %v10584_v24, %v13052_v5  ;;  %v9718_v44 = vrot.slane %v9717_v62, 1  ;;  %v9729_v17 = vadd.f32 %v9728_v19, %v9727_v46 }
 0x9d1   :  { %v9759_v60 = vadd.f32 %v9758_v3, %v9757_v48  ;;  %v9764_v57 = vadd.f32 %v9763_v53, %v9762_v41  ;;  %v9740_v55 = vadd.f32 %v9739_v63, %v9738_v11  ;;  %v9747_v4 = vadd.f32 %v9746_v30, %v9745_v13 }
 0x9d2   :  { %v9776_v38 = vsel %vm7603_vm7, %v9676_v39, 0.0  ;;  %v9655_v54 = vmul.f32 %v13072_v36, %v9635_v43  ;;  %v9754_v2 = vadd.f32 %v9753_v18, %v9752_v28  ;;  %v9730_v33 = vrot.slane %v9729_v17, 2 }
 0x9d3   :  { %v10586_v31 = vpop.eup %10585  ;;  %v9777_v1 = vrot.slane %v9776_v38, 4  ;;  %v9760_v34 = vrot.slane %v9759_v60, 1  ;;  %v9765_v26 = vrot.slane %v9764_v57, 2  ;;  %v9725_v37 = vrot.slane %v9724_v9, 1 }
 0x9d4   :  { %v9675_v10 = vadd.f32 %v13074_v50, %v9655_v54  ;;  %v9637_v5 = vmul.f32 %v10586_v31, %v13058_v42  ;;  %v9731_v32 = vadd.f32 %v9730_v33, %v9729_v17  ;;  %v9799_v52 = vmul.f32 0.33333334, %v9740_v55 }
 0x9d5   :  { %v9778_v21 = vadd.f32 %v9777_v1, %v9776_v38  ;;  %v9766_v56 = vadd.f32 %v9765_v26, %v9764_v57  ;;  %v9761_v20 = vadd.f32 %v9760_v34, %v9759_v60  ;;  %v9719_v40 = vadd.f32 %v9718_v44, %v9717_v62 }
 0x9d6   :  { %v9769_v7 = vsel %vm7603_vm7, %v9675_v10, 0.0  ;;  %v9657_v47 = vmul.f32 %v13072_v36, %v9637_v5  ;;  %v9800_v42 = vmul.f32 0.33333334, %v9747_v4  ;;  %v9732_v22 = vrot.slane %v9731_v32, 1 }
 0x9d7   :  { %v9770_v35 = vrot.slane %v9769_v7, 4  ;;  %v9779_v49 = vrot.slane %v9778_v21, 2  ;;  %v9767_v15 = vrot.slane %v9766_v56, 1  ;;  %v9726_v16 = vadd.f32 %v9725_v37, %v9724_v9 }
 0x9d8   :  { %v9677_v59 = vadd.f32 %v13074_v50, %v9657_v47  ;;  %v9801_v36 = vmul.f32 0.33333334, %v9754_v2  ;;  %v9802_v27 = vmul.f32 0.33333334, %v9761_v20  ;;  %v9816_v12 = vpack.c.bf16 %v9799_v52, %v9799_v52 }
 0x9d9   :  { %v9771_v51 = vadd.f32 %v9770_v35, %v9769_v7  ;;  %v9780_v6 = vadd.f32 %v9779_v49, %v9778_v21  ;;  %v9768_v11 = vadd.f32 %v9767_v15, %v9766_v56  ;;  %v9795_v29 = vmul.f32 0.33333334, %v9712_v0 }
 0x9da   :  { %v9783_v61 = vsel %vm7603_vm7, %v9677_v59, 0.0  ;;  %v9810_v50 = vpack.c.bf16 %v13134_v23, %v13134_v23  ;;  %v9817_v24 = vpack.c.bf16 %v9800_v42, %v9800_v42  ;;  %v9733_v3 = vadd.f32 %v9732_v22, %v9731_v32 }
 0x9db   :  { %v9772_v13 = vrot.slane %v9771_v51, 2  ;;  %v9781_v28 = vrot.slane %v9780_v6, 1  ;;  %v9784_v48 = vrot.slane %v9783_v61, 4  ;;  %v9803_v46 = vmul.f32 0.33333334, %v9768_v11 }
 0x9dc   :  { %v9796_v53 = vmul.f32 0.33333334, %v9719_v40  ;;  %v9797_v39 = vmul.f32 0.33333334, %v9726_v16  ;;  %v9818_v43 = vpack.c.bf16 %v9801_v36, %v9801_v36  ;;  %v9811_v60 = vpack.c.bf16 %v13139_v14, %v13139_v14 }
 0x9dd   :  { %v9773_v41 = vadd.f32 %v9772_v13, %v9771_v51  ;;  %v9785_v62 = vadd.f32 %v9784_v48, %v9783_v61  ;;  %v9782_v63 = vadd.f32 %v9781_v28, %v9780_v6  ;;  %v9819_v0 = vpack.c.bf16 %v9802_v27, %v9802_v27 }
 0x9de   :  { %v9812_v19 = vpack.c.bf16 %v9795_v29, %v9795_v29  ;;  %v9820_v57 = vpack.c.bf16 %v9803_v46, %v9803_v46  ;;  %v9847_v23 = vunpack.c.l.b16 %v9809_v25  ;;  %v9854_v38 = vunpack.c.l.b16 %v9816_v12  ;;  %v9807_v12 = vld [vmem:[%s13197_s16] sm:$0x1]  ;;  %v9828_v29 = vpop.permute.xlu0 %9827 }
 0x9df   :  { %v9774_v30 = vrot.slane %v9773_v41, 1  ;;  %v9786_v18 = vrot.slane %v9785_v62, 2  ;;  %v9798_v31 = vmul.f32 0.33333334, %v9733_v3  ;;  %v9855_v1 = vunpack.c.l.b16 %v9817_v24 }
 0x9e0   :  { %v9805_v44 = vmul.f32 0.33333334, %v9782_v63  ;;  %v9813_v17 = vpack.c.bf16 %v9796_v53, %v9796_v53  ;;  %v9846_v34 = vunpack.c.l.b16 %v9808_v58  ;;  %v9856_v14 = vunpack.c.l.b16 %v9818_v43 }
 0x9e1   :  { %v9775_v54 = vadd.f32 %v9774_v30, %v9773_v41  ;;  %v9787_v9 = vadd.f32 %v9786_v18, %v9785_v62  ;;  %v9857_v10 = vunpack.c.l.b16 %v9819_v0  ;;  %v9876_v5 = vsel %vm9862_vm9, %v9855_v1, %v9854_v38 }
 0x9e2   :  { %v9814_v4 = vpack.c.bf16 %v9797_v39, %v9797_v39  ;;  %v9848_v45 = vunpack.c.l.b16 %v9810_v50  ;;  %v9849_v25 = vunpack.c.l.b16 %v9811_v60  ;;  %v9858_v2 = vunpack.c.l.b16 %v9820_v57 }
 0x9e3   :  { %v9788_v55 = vrot.slane %v9787_v9, 1  ;;  %v9804_v26 = vmul.f32 0.33333334, %v9775_v54  ;;  %v9815_v21 = vpack.c.bf16 %v9798_v31, %v9798_v31  ;;  %v9863_v47 = vsel %vm9862_vm9, %v9847_v23, %v9846_v34 }
 0x9e4   :  { %v9822_v37 = vpack.c.bf16 %v9805_v44, %v9805_v44  ;;  %v9850_v56 = vunpack.c.l.b16 %v9812_v19  ;;  %v9877_v8 = vsel %vm9864_vm10, %v9856_v14, %v9876_v5  ;;  %v9851_v35 = vunpack.c.l.b16 %v9813_v17 }
 0x9e5   :  { %v9789_v33 = vadd.f32 %v9788_v55, %v9787_v9  ;;  %v9821_v7 = vpack.c.bf16 %v9804_v26, %v9804_v26  ;;  %v9878_v20 = vsel %vm9866_vm11, %v9857_v10, %v9877_v8  ;;  %v9852_v49 = vunpack.c.l.b16 %v9814_v4 }
 0x9e6   :  { %v9865_v52 = vsel %vm9864_vm10, %v9848_v45, %v9863_v47  ;;  %v9879_v59 = vsel %vm9868_vm12, %v9858_v2, %v9878_v20  ;;  %v9853_v15 = vunpack.c.l.b16 %v9815_v21  ;;  %v9860_v22 = vunpack.c.l.b16 %v9822_v37 }
 0x9e7   :  { %v9806_v58 = vmul.f32 0.33333334, %v9789_v33  ;;  %v9859_v32 = vunpack.c.l.b16 %v9821_v7  ;;  %v9867_v42 = vsel %vm9866_vm11, %v9849_v25, %v9865_v52 }
 0x9e8   :  { %v9869_v6 = vsel %vm9868_vm12, %v9850_v56, %v9867_v42 }
 0x9e9   :  { %v9823_v40 = vpack.c.bf16 %v9806_v58, %v9806_v58  ;;  %v9880_v51 = vsel %vm9870_vm13, %v9859_v32, %v9879_v59  ;;  %v9871_v11 = vsel %vm9870_vm13, %v9851_v35, %v9869_v6 }
 0x9ea   :  { %v9873_v61 = vsel %vm9872_vm14, %v9852_v49, %v9871_v11  ;;  %v9881_v36 = vsel %vm9872_vm14, %v9860_v22, %v9880_v51 }
 0x9eb   :  { %v9861_v16 = vunpack.c.l.b16 %v9823_v40  ;;  %v9875_v13 = vsel %vm9874_vm15, %v9853_v15, %v9873_v61 }
 0x9ed   :  { %v9882_v28 = vsel %vm9874_vm15, %v9861_v16, %v9881_v36 }
 0x9ee   :  { %v9883_v48 = vpack.c.b16 %v9882_v28, %v9875_v13 }
 0x9f0   :  { %v9888_v27 = vsel %vm1316_vm3, %v9883_v48, 0 }
 0x9f1   :  { %10425 = vmatpush3.bf16.xpose.msra.mxu1 %v9888_v27 }
 0x9f8   :  { %10427 = vmatmul.mubr.msk.bf16.vlgmr.msra.gmra.mrb[68].mxu1 %vm1316_vm3, %v9807_v12 }
 0xacb   :  { %v9924_v46 = vpop.f32.mrb[68].mxu1 }
 0xacc   :  { %v10428_v50 = vpop.f32.mrb[69].mxu1  ;;  %v9925_v24 = vadd.f32 %v9924_v46, %v9828_v29 }
 0xacd   :  { %v9927_v3 = vpop.f32.mrb[70].mxu1 }
 0xace   :  { %v10065_v41 = vmul.f32 -1.442695, %v9925_v24  ;;  %v10429_v62 = vpop.f32.mrb[71].mxu1 }
 0xad0   :  { %10587 = vpow2.f32 %v10065_v41 }
 0xada   :  { %v10588_v63 = vpop.eup %10587 }
 0xadb   :  { %v9933_v53 = vadd.f32 1.0, %v10588_v63 }
 0xadd   :  { %10589 = vrcp.f32 %v9933_v53 }
 0xae7   :  { %v10590_v39 = vpop.eup %10589 }
 0xae8   :  { %9937 = vst.msk [vmem:[%s13198_s18] sm:$0x3] %vm9936_vm0, %v10590_v39 }

</bundles_post_ra>
